<compile_context>
chip_gen: v5e
topology: v5e:2x2
jax: 0.10.0
libtpu: 0.0.40
codegen_flags: <defaults>
</compile_context>

<pallas_src>
import functools

import jax
import jax.numpy as jnp
from jax import lax
from jax.experimental import pallas as pl
from jax.experimental.pallas import tpu as pltpu


# Lane-grid geometry (28x28 input, 3x3 convs with pad 1, 2x2/2 pools):
#   conv1 input : lane = hp*30 + wp,   hp, wp in [0, 30)          -> 900 lanes
#   conv1 output: lane = h*30 + w,     h, w   in [0, 28)          -> 838 lanes
#   pool1 sparse: lane = 60*r + 2*q,   r, q   in [0, 14)          -> 807 lanes
#   pool1 dense : lane = 16*(r+1)+(q+1)  (zero-padded 16x16 grid) -> 256 lanes
#   conv2 output: lane = 16*h2 + w2,   h2, w2 in [0, 14)          -> 222 lanes
#   pool2 sparse: lane = 32*r2 + 2*q2, r2, q2 in [0, 7)           -> 205 lanes
_L_IN, _L_C1, _L_P1, _L_G1, _L_C2, _L_P2 = 900, 838, 807, 256, 222, 205
_TAPS = [(di, dj) for di in range(3) for dj in range(3)]


# ------------------------------ fused kernel ------------------------------- #

def _cnn_fused_kernel(x_ref, w1_ref, b1_ref, w2_ref, b2_ref, sel_ref, vfc_ref,
                      bfc_ref, out_ref, *, nb):
    f32 = jnp.float32

    # ---- conv1 (3x3, pad 1, 1 -> 8) + bias + relu --------------------------
    # rows of the activation are ordered (out_channel * nb + image).
    x = x_ref[...].astype(jnp.bfloat16)                        # (nb, 900)
    acc1 = None
    for t, (di, dj) in enumerate(_TAPS):
        off = 30 * di + dj                                     # lane shift
        part = jnp.dot(w1_ref[t], x[:, off:off + _L_C1],
                       preferred_element_type=f32)             # (8*nb, 838)
        acc1 = part if acc1 is None else acc1 + part
    a1 = jnp.maximum(acc1 + b1_ref[...], 0.0)                  # (8*nb, 838)

    # ---- maxpool 2x2: max over (2r,2q),(2r,2q+1),(2r+1,2q),(2r+1,2q+1) ------
    p1s = jnp.maximum(jnp.maximum(a1[:, 0:_L_P1], a1[:, 1:_L_P1 + 1]),
                      jnp.maximum(a1[:, 30:30 + _L_P1],
                                  a1[:, 31:31 + _L_P1]))       # (8*nb, 807)

    # ---- compact + zero-pad onto a dense 16x16 grid (selection matmul) -----
    p1 = jnp.dot(p1s, sel_ref[...], preferred_element_type=f32)  # (8*nb, 256)
    p1b = p1.astype(jnp.bfloat16)

    # ---- conv2 (3x3, pad 1, 8 -> 16) + bias + relu --------------------------
    acc2 = None
    for t, (di, dj) in enumerate(_TAPS):
        off = 16 * di + dj
        part = jnp.dot(w2_ref[t], p1b[:, off:off + _L_C2],
                       preferred_element_type=f32)             # (16*nb, 222)
        acc2 = part if acc2 is None else acc2 + part
    a2 = jnp.maximum(acc2 + b2_ref[...], 0.0)                  # (16*nb, 222)

    # ---- maxpool 2x2 on the 16-stride lane grid ------------------------------
    p2s = jnp.maximum(jnp.maximum(a2[:, 0:_L_P2], a2[:, 1:_L_P2 + 1]),
                      jnp.maximum(a2[:, 16:16 + _L_P2],
                                  a2[:, 17:17 + _L_P2]))       # (16*nb, 205)

    # ---- fc: logits[n,k] = sum_{oc,lane} p2s[oc*nb+n, lane] * vfc[oc,lane,k]
    logits = None
    for oc in range(16):
        part = jnp.dot(p2s[oc * nb:(oc + 1) * nb, :], vfc_ref[oc],
                       preferred_element_type=f32)             # (nb, 10)
        logits = part if logits is None else logits + part
    out_ref[...] = logits + bfc_ref[...]


# ----------------------- wrapper-side constant folding ---------------------- #

def _prepare_constants(params, nb):
    """One-time re-layout of the PyTorch parameters for the fused kernel."""
    w1 = params["w1"].astype(jnp.float32)    # (8, 1, 3, 3)  OIHW
    w2 = params["w2"].astype(jnp.float32)    # (16, 8, 3, 3)
    b1 = params["b1"].astype(jnp.float32)    # (8,)
    b2 = params["b2"].astype(jnp.float32)    # (16,)
    wfc = params["wfc"].astype(jnp.float32)  # (10, 784)
    bfc = params["bfc"].astype(jnp.float32)  # (10,)

    eye = jnp.eye(nb, dtype=jnp.float32)
    # Block-diagonal (over images) channel-mixing weights, one per 3x3 tap.
    w1b = jnp.stack([jnp.kron(w1[:, :, di, dj], eye)
                     for di, dj in _TAPS])                     # (9, 8*nb, nb)
    w2b = jnp.stack([jnp.kron(w2[:, :, di, dj], eye)
                     for di, dj in _TAPS])                     # (9, 16*nb, 8*nb)

    # pool1 compaction: sparse lane 60r+2q -> padded dense lane 16(r+1)+(q+1)
    rr, qq = jnp.meshgrid(jnp.arange(14), jnp.arange(14), indexing="ij")
    src = (60 * rr + 2 * qq).ravel()
    dst = (16 * (rr + 1) + (qq + 1)).ravel()
    sel = jnp.zeros((_L_P1, _L_G1), jnp.float32).at[src, dst].set(1.0)

    # FC weights scattered onto pool2 sparse lanes (32r2 + 2q2), per channel,
    # reproducing PyTorch's NCHW flatten order  feature = oc*49 + r2*7 + q2.
    r2, q2 = jnp.meshgrid(jnp.arange(7), jnp.arange(7), indexing="ij")
    lane2 = (32 * r2 + 2 * q2).ravel()                         # order r2*7 + q2
    wfc_r = wfc.reshape(10, 16, 49)                            # [k, oc, r2*7+q2]
    vfc = jnp.zeros((16, _L_P2, 10), jnp.float32)
    vfc = vfc.at[:, lane2, :].set(jnp.transpose(wfc_r, (1, 2, 0)))

    return {
        "w1b": w1b.astype(jnp.bfloat16),
        "w2b": w2b.astype(jnp.bfloat16),
        "b1": jnp.repeat(b1, nb).reshape(8 * nb, 1),
        "b2": jnp.repeat(b2, nb).reshape(16 * nb, 1),
        "sel": sel,
        "vfc": vfc,
        "bfc": bfc.reshape(1, 10),
    }


def _resident_spec(a):
    """Full-array block with a constant index map -> DMA'd once, stays in VMEM."""
    nd = a.ndim
    return pl.BlockSpec(a.shape, lambda i, _nd=nd: (0,) * _nd)


def _cnn_forward_impl(x_nchw, params, *, batch_tile=8):
    n = x_nchw.shape[0]
    nb = batch_tile
    n_pad = ((n + nb - 1) // nb) * nb                          # static pad
    consts = _prepare_constants(params, nb)

    # Pad the batch to a multiple of the tile and pad the 28x28 image once
    # (C_in == 1); flatten the padded spatial grid into lanes: lane = hp*30+wp.
    xp = jnp.pad(x_nchw[:, 0], ((0, n_pad - n), (1, 1), (1, 1)))  # (n_pad,30,30)
    xf = xp.reshape(n_pad, _L_IN).astype(jnp.float32)             # (n_pad, 900)

    kernel = functools.partial(_cnn_fused_kernel, nb=nb)
    out = pl.pallas_call(
        kernel,
        out_shape=jax.ShapeDtypeStruct((n_pad, 10), jnp.float32),
        grid=(n_pad // nb,),
        in_specs=[
            pl.BlockSpec((nb, _L_IN), lambda i: (i, 0)),       # batch-tiled input
            _resident_spec(consts["w1b"]),
            _resident_spec(consts["b1"]),
            _resident_spec(consts["w2b"]),
            _resident_spec(consts["b2"]),
            _resident_spec(consts["sel"]),
            _resident_spec(consts["vfc"]),
            _resident_spec(consts["bfc"]),
        ],
        out_specs=pl.BlockSpec((nb, 10), lambda i: (i, 0)),
        compiler_params=pltpu.CompilerParams(
            dimension_semantics=("parallel",),
            vmem_limit_bytes=64 * 1024 * 1024,
        ),
    )(xf, consts["w1b"], consts["b1"], consts["w2b"], consts["b2"],
      consts["sel"], consts["vfc"], consts["bfc"])
    return out[:n]


cnn_forward = jax.jit(_cnn_forward_impl, static_argnames=("batch_tile",))


# --------------------------- pure-JAX reference ----------------------------- #

def cnn_reference(x, params):
    dn = ("NCHW", "OIHW", "NCHW")
    y = lax.conv_general_dilated(x, params["w1"], (1, 1), ((1, 1), (1, 1)),
                                 dimension_numbers=dn)
    y = jnp.maximum(y + params["b1"][None, :, None, None], 0.0)
    y = lax.reduce_window(y, -jnp.inf, lax.max, (1, 1, 2, 2), (1, 1, 2, 2),
                          "VALID")
    y = lax.conv_general_dilated(y, params["w2"], (1, 1), ((1, 1), (1, 1)),
                                 dimension_numbers=dn)
    y = jnp.maximum(y + params["b2"][None, :, None, None], 0.0)
    y = lax.reduce_window(y, -jnp.inf, lax.max, (1, 1, 2, 2), (1, 1, 2, 2),
                          "VALID")
    y = y.reshape(y.shape[0], -1)                              # NCHW flatten
    return y @ params["wfc"].T + params["bfc"]


def init_params(key):
    """Deterministic synthetic parameters with the PyTorch module's shapes."""
    k1, k2, k3, k4, k5, k6 = jax.random.split(key, 6)
    return {
        "w1": jax.random.normal(k1, (8, 1, 3, 3), jnp.float32) * 0.1,
        "b1": jax.random.normal(k2, (8,), jnp.float32) * 0.1,
        "w2": jax.random.normal(k3, (16, 8, 3, 3), jnp.float32) * 0.1,
        "b2": jax.random.normal(k4, (16,), jnp.float32) * 0.1,
        "wfc": jax.random.normal(k5, (10, 16 * 7 * 7), jnp.float32) * 0.05,
        "bfc": jax.random.normal(k6, (10,), jnp.float32) * 0.05,
    }


if __name__ == "__main__":
    key = jax.random.PRNGKey(0)
    pkey, xkey = jax.random.split(key)
    params = init_params(pkey)
    # Spatial size must be 28x28 so the 16*7*7 FC shape is consistent.
    x = jax.random.normal(xkey, (2, 1, 28, 28), jnp.float32)

    logits = cnn_forward(x, params)
    logits = jax.block_until_ready(logits)

    assert logits.shape == (2, 10), logits.shape
    assert bool(jnp.all(jnp.isfinite(logits)))

    # Correctness check against the plain-XLA reference (bf16 conv operands ->
    # loose but bug-revealing tolerance; structural errors would be O(1)).
    ref = cnn_reference(x, params)
    err = float(jnp.max(jnp.abs(logits - ref)))
    assert err < 1e-1, f"max |logits - ref| = {err}"

    print("KERNEL_OK")
</pallas_src>

<mosaic_0001>
module attributes {stable_mosaic.version = 11 : i64} {
  func.func @_cnn_fused_kernel(%arg0: i32, %arg1: memref<8x900xf32, #tpu.memory_space<vmem>>, %arg2: memref<9x64x8xbf16, #tpu.memory_space<vmem>>, %arg3: memref<64x1xf32, #tpu.memory_space<vmem>>, %arg4: memref<9x128x64xbf16, #tpu.memory_space<vmem>>, %arg5: memref<128x1xf32, #tpu.memory_space<vmem>>, %arg6: memref<807x256xf32, #tpu.memory_space<vmem>>, %arg7: memref<16x205x10xf32, #tpu.memory_space<vmem>>, %arg8: memref<1x10xf32, #tpu.memory_space<vmem>>, %arg9: memref<8x10xf32, #tpu.memory_space<vmem>>) attributes {dimension_semantics = [#tpu.dimension_semantics<parallel>], iteration_bounds = array<i64: 1>, scalar_prefetch = 0 : i64, scratch_operands = 0 : i64, tpu.core_type = #tpu.core_type<tc>, window_params = [{transform_indices = @transform_0, window_bounds = array<i64: 8, 900>}, {pipeline_mode = #tpu.pipeline_mode<synchronous>, transform_indices = @transform_1, window_bounds = array<i64: 9, 64, 8>}, {pipeline_mode = #tpu.pipeline_mode<synchronous>, transform_indices = @transform_2, window_bounds = array<i64: 64, 1>}, {pipeline_mode = #tpu.pipeline_mode<synchronous>, transform_indices = @transform_3, window_bounds = array<i64: 9, 128, 64>}, {pipeline_mode = #tpu.pipeline_mode<synchronous>, transform_indices = @transform_4, window_bounds = array<i64: 128, 1>}, {pipeline_mode = #tpu.pipeline_mode<synchronous>, transform_indices = @transform_5, window_bounds = array<i64: 807, 256>}, {pipeline_mode = #tpu.pipeline_mode<synchronous>, transform_indices = @transform_6, window_bounds = array<i64: 16, 205, 10>}, {pipeline_mode = #tpu.pipeline_mode<synchronous>, transform_indices = @transform_7, window_bounds = array<i64: 1, 10>}, {transform_indices = @transform_8, window_bounds = array<i64: 8, 10>}]} {
    %c0 = arith.constant 0 : index
    %c0_0 = arith.constant 0 : index
    %0 = vector.load %arg1[%c0, %c0_0] : memref<8x900xf32, #tpu.memory_space<vmem>>, vector<8x900xf32>
    %1 = arith.truncf %0 : vector<8x900xf32> to vector<8x900xbf16>
    %c0_1 = arith.constant 0 : index
    %c0_2 = arith.constant 0 : index
    %c0_3 = arith.constant 0 : index
    %2 = vector.load %arg2[%c0_1, %c0_2, %c0_3] : memref<9x64x8xbf16, #tpu.memory_space<vmem>>, vector<1x64x8xbf16>
    %3 = vector.shape_cast %2 : vector<1x64x8xbf16> to vector<64x8xbf16>
    %4 = vector.extract_strided_slice %1 {offsets = [0, 0], sizes = [8, 838], strides = [1, 1]} : vector<8x900xbf16> to vector<8x838xbf16>
    %cst = arith.constant dense<0.000000e+00> : vector<64x838xf32>
    %5 = tpu.matmul %3, %4, %cst {dimension_numbers = #tpu.dot_dimension_numbers<[1], [0], [0], [1], [0, 0, 1, 1], [], []>} : vector<64x8xbf16>, vector<8x838xbf16>, vector<64x838xf32> -> vector<64x838xf32>
    %c1 = arith.constant 1 : index
    %c0_4 = arith.constant 0 : index
    %c0_5 = arith.constant 0 : index
    %6 = vector.load %arg2[%c1, %c0_4, %c0_5] : memref<9x64x8xbf16, #tpu.memory_space<vmem>>, vector<1x64x8xbf16>
    %7 = vector.shape_cast %6 : vector<1x64x8xbf16> to vector<64x8xbf16>
    %8 = vector.extract_strided_slice %1 {offsets = [0, 1], sizes = [8, 838], strides = [1, 1]} : vector<8x900xbf16> to vector<8x838xbf16>
    %cst_6 = arith.constant dense<0.000000e+00> : vector<64x838xf32>
    %9 = tpu.matmul %7, %8, %cst_6 {dimension_numbers = #tpu.dot_dimension_numbers<[1], [0], [0], [1], [0, 0, 1, 1], [], []>} : vector<64x8xbf16>, vector<8x838xbf16>, vector<64x838xf32> -> vector<64x838xf32>
    %10 = arith.addf %5, %9 : vector<64x838xf32>
    %c2 = arith.constant 2 : index
    %c0_7 = arith.constant 0 : index
    %c0_8 = arith.constant 0 : index
    %11 = vector.load %arg2[%c2, %c0_7, %c0_8] : memref<9x64x8xbf16, #tpu.memory_space<vmem>>, vector<1x64x8xbf16>
    %12 = vector.shape_cast %11 : vector<1x64x8xbf16> to vector<64x8xbf16>
    %13 = vector.extract_strided_slice %1 {offsets = [0, 2], sizes = [8, 838], strides = [1, 1]} : vector<8x900xbf16> to vector<8x838xbf16>
    %cst_9 = arith.constant dense<0.000000e+00> : vector<64x838xf32>
    %14 = tpu.matmul %12, %13, %cst_9 {dimension_numbers = #tpu.dot_dimension_numbers<[1], [0], [0], [1], [0, 0, 1, 1], [], []>} : vector<64x8xbf16>, vector<8x838xbf16>, vector<64x838xf32> -> vector<64x838xf32>
    %15 = arith.addf %10, %14 : vector<64x838xf32>
    %c3 = arith.constant 3 : index
    %c0_10 = arith.constant 0 : index
    %c0_11 = arith.constant 0 : index
    %16 = vector.load %arg2[%c3, %c0_10, %c0_11] : memref<9x64x8xbf16, #tpu.memory_space<vmem>>, vector<1x64x8xbf16>
    %17 = vector.shape_cast %16 : vector<1x64x8xbf16> to vector<64x8xbf16>
    %18 = vector.extract_strided_slice %1 {offsets = [0, 30], sizes = [8, 838], strides = [1, 1]} : vector<8x900xbf16> to vector<8x838xbf16>
    %cst_12 = arith.constant dense<0.000000e+00> : vector<64x838xf32>
    %19 = tpu.matmul %17, %18, %cst_12 {dimension_numbers = #tpu.dot_dimension_numbers<[1], [0], [0], [1], [0, 0, 1, 1], [], []>} : vector<64x8xbf16>, vector<8x838xbf16>, vector<64x838xf32> -> vector<64x838xf32>
    %20 = arith.addf %15, %19 : vector<64x838xf32>
    %c4 = arith.constant 4 : index
    %c0_13 = arith.constant 0 : index
    %c0_14 = arith.constant 0 : index
    %21 = vector.load %arg2[%c4, %c0_13, %c0_14] : memref<9x64x8xbf16, #tpu.memory_space<vmem>>, vector<1x64x8xbf16>
    %22 = vector.shape_cast %21 : vector<1x64x8xbf16> to vector<64x8xbf16>
    %23 = vector.extract_strided_slice %1 {offsets = [0, 31], sizes = [8, 838], strides = [1, 1]} : vector<8x900xbf16> to vector<8x838xbf16>
    %cst_15 = arith.constant dense<0.000000e+00> : vector<64x838xf32>
    %24 = tpu.matmul %22, %23, %cst_15 {dimension_numbers = #tpu.dot_dimension_numbers<[1], [0], [0], [1], [0, 0, 1, 1], [], []>} : vector<64x8xbf16>, vector<8x838xbf16>, vector<64x838xf32> -> vector<64x838xf32>
    %25 = arith.addf %20, %24 : vector<64x838xf32>
    %c5 = arith.constant 5 : index
    %c0_16 = arith.constant 0 : index
    %c0_17 = arith.constant 0 : index
    %26 = vector.load %arg2[%c5, %c0_16, %c0_17] : memref<9x64x8xbf16, #tpu.memory_space<vmem>>, vector<1x64x8xbf16>
    %27 = vector.shape_cast %26 : vector<1x64x8xbf16> to vector<64x8xbf16>
    %28 = vector.extract_strided_slice %1 {offsets = [0, 32], sizes = [8, 838], strides = [1, 1]} : vector<8x900xbf16> to vector<8x838xbf16>
    %cst_18 = arith.constant dense<0.000000e+00> : vector<64x838xf32>
    %29 = tpu.matmul %27, %28, %cst_18 {dimension_numbers = #tpu.dot_dimension_numbers<[1], [0], [0], [1], [0, 0, 1, 1], [], []>} : vector<64x8xbf16>, vector<8x838xbf16>, vector<64x838xf32> -> vector<64x838xf32>
    %30 = arith.addf %25, %29 : vector<64x838xf32>
    %c6 = arith.constant 6 : index
    %c0_19 = arith.constant 0 : index
    %c0_20 = arith.constant 0 : index
    %31 = vector.load %arg2[%c6, %c0_19, %c0_20] : memref<9x64x8xbf16, #tpu.memory_space<vmem>>, vector<1x64x8xbf16>
    %32 = vector.shape_cast %31 : vector<1x64x8xbf16> to vector<64x8xbf16>
    %33 = vector.extract_strided_slice %1 {offsets = [0, 60], sizes = [8, 838], strides = [1, 1]} : vector<8x900xbf16> to vector<8x838xbf16>
    %cst_21 = arith.constant dense<0.000000e+00> : vector<64x838xf32>
    %34 = tpu.matmul %32, %33, %cst_21 {dimension_numbers = #tpu.dot_dimension_numbers<[1], [0], [0], [1], [0, 0, 1, 1], [], []>} : vector<64x8xbf16>, vector<8x838xbf16>, vector<64x838xf32> -> vector<64x838xf32>
    %35 = arith.addf %30, %34 : vector<64x838xf32>
    %c7 = arith.constant 7 : index
    %c0_22 = arith.constant 0 : index
    %c0_23 = arith.constant 0 : index
    %36 = vector.load %arg2[%c7, %c0_22, %c0_23] : memref<9x64x8xbf16, #tpu.memory_space<vmem>>, vector<1x64x8xbf16>
    %37 = vector.shape_cast %36 : vector<1x64x8xbf16> to vector<64x8xbf16>
    %38 = vector.extract_strided_slice %1 {offsets = [0, 61], sizes = [8, 838], strides = [1, 1]} : vector<8x900xbf16> to vector<8x838xbf16>
    %cst_24 = arith.constant dense<0.000000e+00> : vector<64x838xf32>
    %39 = tpu.matmul %37, %38, %cst_24 {dimension_numbers = #tpu.dot_dimension_numbers<[1], [0], [0], [1], [0, 0, 1, 1], [], []>} : vector<64x8xbf16>, vector<8x838xbf16>, vector<64x838xf32> -> vector<64x838xf32>
    %40 = arith.addf %35, %39 : vector<64x838xf32>
    %c8 = arith.constant 8 : index
    %c0_25 = arith.constant 0 : index
    %c0_26 = arith.constant 0 : index
    %41 = vector.load %arg2[%c8, %c0_25, %c0_26] : memref<9x64x8xbf16, #tpu.memory_space<vmem>>, vector<1x64x8xbf16>
    %42 = vector.shape_cast %41 : vector<1x64x8xbf16> to vector<64x8xbf16>
    %43 = vector.extract_strided_slice %1 {offsets = [0, 62], sizes = [8, 838], strides = [1, 1]} : vector<8x900xbf16> to vector<8x838xbf16>
    %cst_27 = arith.constant dense<0.000000e+00> : vector<64x838xf32>
    %44 = tpu.matmul %42, %43, %cst_27 {dimension_numbers = #tpu.dot_dimension_numbers<[1], [0], [0], [1], [0, 0, 1, 1], [], []>} : vector<64x8xbf16>, vector<8x838xbf16>, vector<64x838xf32> -> vector<64x838xf32>
    %45 = arith.addf %40, %44 : vector<64x838xf32>
    %c0_28 = arith.constant 0 : index
    %c0_29 = arith.constant 0 : index
    %46 = vector.load %arg3[%c0_28, %c0_29] : memref<64x1xf32, #tpu.memory_space<vmem>>, vector<64x1xf32>
    %47 = vector.broadcast %46 : vector<64x1xf32> to vector<64x838xf32>
    %48 = arith.addf %45, %47 : vector<64x838xf32>
    %cst_30 = arith.constant 0.000000e+00 : f32
    %49 = vector.broadcast %cst_30 : f32 to vector<64x838xf32>
    %50 = arith.maximumf %48, %49 : vector<64x838xf32>
    %51 = vector.extract_strided_slice %50 {offsets = [0, 0], sizes = [64, 807], strides = [1, 1]} : vector<64x838xf32> to vector<64x807xf32>
    %52 = vector.extract_strided_slice %50 {offsets = [0, 1], sizes = [64, 807], strides = [1, 1]} : vector<64x838xf32> to vector<64x807xf32>
    %53 = arith.maximumf %51, %52 : vector<64x807xf32>
    %54 = vector.extract_strided_slice %50 {offsets = [0, 30], sizes = [64, 807], strides = [1, 1]} : vector<64x838xf32> to vector<64x807xf32>
    %55 = vector.extract_strided_slice %50 {offsets = [0, 31], sizes = [64, 807], strides = [1, 1]} : vector<64x838xf32> to vector<64x807xf32>
    %56 = arith.maximumf %54, %55 : vector<64x807xf32>
    %57 = arith.maximumf %53, %56 : vector<64x807xf32>
    %c0_31 = arith.constant 0 : index
    %c0_32 = arith.constant 0 : index
    %58 = vector.load %arg6[%c0_31, %c0_32] : memref<807x256xf32, #tpu.memory_space<vmem>>, vector<807x256xf32>
    %cst_33 = arith.constant dense<0.000000e+00> : vector<64x256xf32>
    %59 = tpu.matmul %57, %58, %cst_33 {dimension_numbers = #tpu.dot_dimension_numbers<[1], [0], [0], [1], [0, 0, 1, 1], [], []>} : vector<64x807xf32>, vector<807x256xf32>, vector<64x256xf32> -> vector<64x256xf32>
    %60 = arith.truncf %59 : vector<64x256xf32> to vector<64x256xbf16>
    %c0_34 = arith.constant 0 : index
    %c0_35 = arith.constant 0 : index
    %c0_36 = arith.constant 0 : index
    %61 = vector.load %arg4[%c0_34, %c0_35, %c0_36] : memref<9x128x64xbf16, #tpu.memory_space<vmem>>, vector<1x128x64xbf16>
    %62 = vector.shape_cast %61 : vector<1x128x64xbf16> to vector<128x64xbf16>
    %63 = vector.extract_strided_slice %60 {offsets = [0, 0], sizes = [64, 222], strides = [1, 1]} : vector<64x256xbf16> to vector<64x222xbf16>
    %cst_37 = arith.constant dense<0.000000e+00> : vector<128x222xf32>
    %64 = tpu.matmul %62, %63, %cst_37 {dimension_numbers = #tpu.dot_dimension_numbers<[1], [0], [0], [1], [0, 0, 1, 1], [], []>} : vector<128x64xbf16>, vector<64x222xbf16>, vector<128x222xf32> -> vector<128x222xf32>
    %c1_38 = arith.constant 1 : index
    %c0_39 = arith.constant 0 : index
    %c0_40 = arith.constant 0 : index
    %65 = vector.load %arg4[%c1_38, %c0_39, %c0_40] : memref<9x128x64xbf16, #tpu.memory_space<vmem>>, vector<1x128x64xbf16>
    %66 = vector.shape_cast %65 : vector<1x128x64xbf16> to vector<128x64xbf16>
    %67 = vector.extract_strided_slice %60 {offsets = [0, 1], sizes = [64, 222], strides = [1, 1]} : vector<64x256xbf16> to vector<64x222xbf16>
    %cst_41 = arith.constant dense<0.000000e+00> : vector<128x222xf32>
    %68 = tpu.matmul %66, %67, %cst_41 {dimension_numbers = #tpu.dot_dimension_numbers<[1], [0], [0], [1], [0, 0, 1, 1], [], []>} : vector<128x64xbf16>, vector<64x222xbf16>, vector<128x222xf32> -> vector<128x222xf32>
    %69 = arith.addf %64, %68 : vector<128x222xf32>
    %c2_42 = arith.constant 2 : index
    %c0_43 = arith.constant 0 : index
    %c0_44 = arith.constant 0 : index
    %70 = vector.load %arg4[%c2_42, %c0_43, %c0_44] : memref<9x128x64xbf16, #tpu.memory_space<vmem>>, vector<1x128x64xbf16>
    %71 = vector.shape_cast %70 : vector<1x128x64xbf16> to vector<128x64xbf16>
    %72 = vector.extract_strided_slice %60 {offsets = [0, 2], sizes = [64, 222], strides = [1, 1]} : vector<64x256xbf16> to vector<64x222xbf16>
    %cst_45 = arith.constant dense<0.000000e+00> : vector<128x222xf32>
    %73 = tpu.matmul %71, %72, %cst_45 {dimension_numbers = #tpu.dot_dimension_numbers<[1], [0], [0], [1], [0, 0, 1, 1], [], []>} : vector<128x64xbf16>, vector<64x222xbf16>, vector<128x222xf32> -> vector<128x222xf32>
    %74 = arith.addf %69, %73 : vector<128x222xf32>
    %c3_46 = arith.constant 3 : index
    %c0_47 = arith.constant 0 : index
    %c0_48 = arith.constant 0 : index
    %75 = vector.load %arg4[%c3_46, %c0_47, %c0_48] : memref<9x128x64xbf16, #tpu.memory_space<vmem>>, vector<1x128x64xbf16>
    %76 = vector.shape_cast %75 : vector<1x128x64xbf16> to vector<128x64xbf16>
    %77 = vector.extract_strided_slice %60 {offsets = [0, 16], sizes = [64, 222], strides = [1, 1]} : vector<64x256xbf16> to vector<64x222xbf16>
    %cst_49 = arith.constant dense<0.000000e+00> : vector<128x222xf32>
    %78 = tpu.matmul %76, %77, %cst_49 {dimension_numbers = #tpu.dot_dimension_numbers<[1], [0], [0], [1], [0, 0, 1, 1], [], []>} : vector<128x64xbf16>, vector<64x222xbf16>, vector<128x222xf32> -> vector<128x222xf32>
    %79 = arith.addf %74, %78 : vector<128x222xf32>
    %c4_50 = arith.constant 4 : index
    %c0_51 = arith.constant 0 : index
    %c0_52 = arith.constant 0 : index
    %80 = vector.load %arg4[%c4_50, %c0_51, %c0_52] : memref<9x128x64xbf16, #tpu.memory_space<vmem>>, vector<1x128x64xbf16>
    %81 = vector.shape_cast %80 : vector<1x128x64xbf16> to vector<128x64xbf16>
    %82 = vector.extract_strided_slice %60 {offsets = [0, 17], sizes = [64, 222], strides = [1, 1]} : vector<64x256xbf16> to vector<64x222xbf16>
    %cst_53 = arith.constant dense<0.000000e+00> : vector<128x222xf32>
    %83 = tpu.matmul %81, %82, %cst_53 {dimension_numbers = #tpu.dot_dimension_numbers<[1], [0], [0], [1], [0, 0, 1, 1], [], []>} : vector<128x64xbf16>, vector<64x222xbf16>, vector<128x222xf32> -> vector<128x222xf32>
    %84 = arith.addf %79, %83 : vector<128x222xf32>
    %c5_54 = arith.constant 5 : index
    %c0_55 = arith.constant 0 : index
    %c0_56 = arith.constant 0 : index
    %85 = vector.load %arg4[%c5_54, %c0_55, %c0_56] : memref<9x128x64xbf16, #tpu.memory_space<vmem>>, vector<1x128x64xbf16>
    %86 = vector.shape_cast %85 : vector<1x128x64xbf16> to vector<128x64xbf16>
    %87 = vector.extract_strided_slice %60 {offsets = [0, 18], sizes = [64, 222], strides = [1, 1]} : vector<64x256xbf16> to vector<64x222xbf16>
    %cst_57 = arith.constant dense<0.000000e+00> : vector<128x222xf32>
    %88 = tpu.matmul %86, %87, %cst_57 {dimension_numbers = #tpu.dot_dimension_numbers<[1], [0], [0], [1], [0, 0, 1, 1], [], []>} : vector<128x64xbf16>, vector<64x222xbf16>, vector<128x222xf32> -> vector<128x222xf32>
    %89 = arith.addf %84, %88 : vector<128x222xf32>
    %c6_58 = arith.constant 6 : index
    %c0_59 = arith.constant 0 : index
    %c0_60 = arith.constant 0 : index
    %90 = vector.load %arg4[%c6_58, %c0_59, %c0_60] : memref<9x128x64xbf16, #tpu.memory_space<vmem>>, vector<1x128x64xbf16>
    %91 = vector.shape_cast %90 : vector<1x128x64xbf16> to vector<128x64xbf16>
    %92 = vector.extract_strided_slice %60 {offsets = [0, 32], sizes = [64, 222], strides = [1, 1]} : vector<64x256xbf16> to vector<64x222xbf16>
    %cst_61 = arith.constant dense<0.000000e+00> : vector<128x222xf32>
    %93 = tpu.matmul %91, %92, %cst_61 {dimension_numbers = #tpu.dot_dimension_numbers<[1], [0], [0], [1], [0, 0, 1, 1], [], []>} : vector<128x64xbf16>, vector<64x222xbf16>, vector<128x222xf32> -> vector<128x222xf32>
    %94 = arith.addf %89, %93 : vector<128x222xf32>
    %c7_62 = arith.constant 7 : index
    %c0_63 = arith.constant 0 : index
    %c0_64 = arith.constant 0 : index
    %95 = vector.load %arg4[%c7_62, %c0_63, %c0_64] : memref<9x128x64xbf16, #tpu.memory_space<vmem>>, vector<1x128x64xbf16>
    %96 = vector.shape_cast %95 : vector<1x128x64xbf16> to vector<128x64xbf16>
    %97 = vector.extract_strided_slice %60 {offsets = [0, 33], sizes = [64, 222], strides = [1, 1]} : vector<64x256xbf16> to vector<64x222xbf16>
    %cst_65 = arith.constant dense<0.000000e+00> : vector<128x222xf32>
    %98 = tpu.matmul %96, %97, %cst_65 {dimension_numbers = #tpu.dot_dimension_numbers<[1], [0], [0], [1], [0, 0, 1, 1], [], []>} : vector<128x64xbf16>, vector<64x222xbf16>, vector<128x222xf32> -> vector<128x222xf32>
    %99 = arith.addf %94, %98 : vector<128x222xf32>
    %c8_66 = arith.constant 8 : index
    %c0_67 = arith.constant 0 : index
    %c0_68 = arith.constant 0 : index
    %100 = vector.load %arg4[%c8_66, %c0_67, %c0_68] : memref<9x128x64xbf16, #tpu.memory_space<vmem>>, vector<1x128x64xbf16>
    %101 = vector.shape_cast %100 : vector<1x128x64xbf16> to vector<128x64xbf16>
    %102 = vector.extract_strided_slice %60 {offsets = [0, 34], sizes = [64, 222], strides = [1, 1]} : vector<64x256xbf16> to vector<64x222xbf16>
    %cst_69 = arith.constant dense<0.000000e+00> : vector<128x222xf32>
    %103 = tpu.matmul %101, %102, %cst_69 {dimension_numbers = #tpu.dot_dimension_numbers<[1], [0], [0], [1], [0, 0, 1, 1], [], []>} : vector<128x64xbf16>, vector<64x222xbf16>, vector<128x222xf32> -> vector<128x222xf32>
    %104 = arith.addf %99, %103 : vector<128x222xf32>
    %c0_70 = arith.constant 0 : index
    %c0_71 = arith.constant 0 : index
    %105 = vector.load %arg5[%c0_70, %c0_71] : memref<128x1xf32, #tpu.memory_space<vmem>>, vector<128x1xf32>
    %106 = vector.broadcast %105 : vector<128x1xf32> to vector<128x222xf32>
    %107 = arith.addf %104, %106 : vector<128x222xf32>
    %cst_72 = arith.constant 0.000000e+00 : f32
    %108 = vector.broadcast %cst_72 : f32 to vector<128x222xf32>
    %109 = arith.maximumf %107, %108 : vector<128x222xf32>
    %110 = vector.extract_strided_slice %109 {offsets = [0, 0], sizes = [128, 205], strides = [1, 1]} : vector<128x222xf32> to vector<128x205xf32>
    %111 = vector.extract_strided_slice %109 {offsets = [0, 1], sizes = [128, 205], strides = [1, 1]} : vector<128x222xf32> to vector<128x205xf32>
    %112 = arith.maximumf %110, %111 : vector<128x205xf32>
    %113 = vector.extract_strided_slice %109 {offsets = [0, 16], sizes = [128, 205], strides = [1, 1]} : vector<128x222xf32> to vector<128x205xf32>
    %114 = vector.extract_strided_slice %109 {offsets = [0, 17], sizes = [128, 205], strides = [1, 1]} : vector<128x222xf32> to vector<128x205xf32>
    %115 = arith.maximumf %113, %114 : vector<128x205xf32>
    %116 = arith.maximumf %112, %115 : vector<128x205xf32>
    %117 = vector.extract_strided_slice %116 {offsets = [0, 0], sizes = [8, 205], strides = [1, 1]} : vector<128x205xf32> to vector<8x205xf32>
    %c0_73 = arith.constant 0 : index
    %c0_74 = arith.constant 0 : index
    %c0_75 = arith.constant 0 : index
    %118 = vector.load %arg7[%c0_73, %c0_74, %c0_75] : memref<16x205x10xf32, #tpu.memory_space<vmem>>, vector<1x205x10xf32>
    %119 = vector.shape_cast %118 : vector<1x205x10xf32> to vector<205x10xf32>
    %cst_76 = arith.constant dense<0.000000e+00> : vector<8x10xf32>
    %120 = tpu.matmul %117, %119, %cst_76 {dimension_numbers = #tpu.dot_dimension_numbers<[1], [0], [0], [1], [0, 0, 1, 1], [], []>} : vector<8x205xf32>, vector<205x10xf32>, vector<8x10xf32> -> vector<8x10xf32>
    %121 = vector.extract_strided_slice %116 {offsets = [8, 0], sizes = [8, 205], strides = [1, 1]} : vector<128x205xf32> to vector<8x205xf32>
    %c1_77 = arith.constant 1 : index
    %c0_78 = arith.constant 0 : index
    %c0_79 = arith.constant 0 : index
    %122 = vector.load %arg7[%c1_77, %c0_78, %c0_79] : memref<16x205x10xf32, #tpu.memory_space<vmem>>, vector<1x205x10xf32>
    %123 = vector.shape_cast %122 : vector<1x205x10xf32> to vector<205x10xf32>
    %cst_80 = arith.constant dense<0.000000e+00> : vector<8x10xf32>
    %124 = tpu.matmul %121, %123, %cst_80 {dimension_numbers = #tpu.dot_dimension_numbers<[1], [0], [0], [1], [0, 0, 1, 1], [], []>} : vector<8x205xf32>, vector<205x10xf32>, vector<8x10xf32> -> vector<8x10xf32>
    %125 = arith.addf %120, %124 : vector<8x10xf32>
    %126 = vector.extract_strided_slice %116 {offsets = [16, 0], sizes = [8, 205], strides = [1, 1]} : vector<128x205xf32> to vector<8x205xf32>
    %c2_81 = arith.constant 2 : index
    %c0_82 = arith.constant 0 : index
    %c0_83 = arith.constant 0 : index
    %127 = vector.load %arg7[%c2_81, %c0_82, %c0_83] : memref<16x205x10xf32, #tpu.memory_space<vmem>>, vector<1x205x10xf32>
    %128 = vector.shape_cast %127 : vector<1x205x10xf32> to vector<205x10xf32>
    %cst_84 = arith.constant dense<0.000000e+00> : vector<8x10xf32>
    %129 = tpu.matmul %126, %128, %cst_84 {dimension_numbers = #tpu.dot_dimension_numbers<[1], [0], [0], [1], [0, 0, 1, 1], [], []>} : vector<8x205xf32>, vector<205x10xf32>, vector<8x10xf32> -> vector<8x10xf32>
    %130 = arith.addf %125, %129 : vector<8x10xf32>
    %131 = vector.extract_strided_slice %116 {offsets = [24, 0], sizes = [8, 205], strides = [1, 1]} : vector<128x205xf32> to vector<8x205xf32>
    %c3_85 = arith.constant 3 : index
    %c0_86 = arith.constant 0 : index
    %c0_87 = arith.constant 0 : index
    %132 = vector.load %arg7[%c3_85, %c0_86, %c0_87] : memref<16x205x10xf32, #tpu.memory_space<vmem>>, vector<1x205x10xf32>
    %133 = vector.shape_cast %132 : vector<1x205x10xf32> to vector<205x10xf32>
    %cst_88 = arith.constant dense<0.000000e+00> : vector<8x10xf32>
    %134 = tpu.matmul %131, %133, %cst_88 {dimension_numbers = #tpu.dot_dimension_numbers<[1], [0], [0], [1], [0, 0, 1, 1], [], []>} : vector<8x205xf32>, vector<205x10xf32>, vector<8x10xf32> -> vector<8x10xf32>
    %135 = arith.addf %130, %134 : vector<8x10xf32>
    %136 = vector.extract_strided_slice %116 {offsets = [32, 0], sizes = [8, 205], strides = [1, 1]} : vector<128x205xf32> to vector<8x205xf32>
    %c4_89 = arith.constant 4 : index
    %c0_90 = arith.constant 0 : index
    %c0_91 = arith.constant 0 : index
    %137 = vector.load %arg7[%c4_89, %c0_90, %c0_91] : memref<16x205x10xf32, #tpu.memory_space<vmem>>, vector<1x205x10xf32>
    %138 = vector.shape_cast %137 : vector<1x205x10xf32> to vector<205x10xf32>
    %cst_92 = arith.constant dense<0.000000e+00> : vector<8x10xf32>
    %139 = tpu.matmul %136, %138, %cst_92 {dimension_numbers = #tpu.dot_dimension_numbers<[1], [0], [0], [1], [0, 0, 1, 1], [], []>} : vector<8x205xf32>, vector<205x10xf32>, vector<8x10xf32> -> vector<8x10xf32>
    %140 = arith.addf %135, %139 : vector<8x10xf32>
    %141 = vector.extract_strided_slice %116 {offsets = [40, 0], sizes = [8, 205], strides = [1, 1]} : vector<128x205xf32> to vector<8x205xf32>
    %c5_93 = arith.constant 5 : index
    %c0_94 = arith.constant 0 : index
    %c0_95 = arith.constant 0 : index
    %142 = vector.load %arg7[%c5_93, %c0_94, %c0_95] : memref<16x205x10xf32, #tpu.memory_space<vmem>>, vector<1x205x10xf32>
    %143 = vector.shape_cast %142 : vector<1x205x10xf32> to vector<205x10xf32>
    %cst_96 = arith.constant dense<0.000000e+00> : vector<8x10xf32>
    %144 = tpu.matmul %141, %143, %cst_96 {dimension_numbers = #tpu.dot_dimension_numbers<[1], [0], [0], [1], [0, 0, 1, 1], [], []>} : vector<8x205xf32>, vector<205x10xf32>, vector<8x10xf32> -> vector<8x10xf32>
    %145 = arith.addf %140, %144 : vector<8x10xf32>
    %146 = vector.extract_strided_slice %116 {offsets = [48, 0], sizes = [8, 205], strides = [1, 1]} : vector<128x205xf32> to vector<8x205xf32>
    %c6_97 = arith.constant 6 : index
    %c0_98 = arith.constant 0 : index
    %c0_99 = arith.constant 0 : index
    %147 = vector.load %arg7[%c6_97, %c0_98, %c0_99] : memref<16x205x10xf32, #tpu.memory_space<vmem>>, vector<1x205x10xf32>
    %148 = vector.shape_cast %147 : vector<1x205x10xf32> to vector<205x10xf32>
    %cst_100 = arith.constant dense<0.000000e+00> : vector<8x10xf32>
    %149 = tpu.matmul %146, %148, %cst_100 {dimension_numbers = #tpu.dot_dimension_numbers<[1], [0], [0], [1], [0, 0, 1, 1], [], []>} : vector<8x205xf32>, vector<205x10xf32>, vector<8x10xf32> -> vector<8x10xf32>
    %150 = arith.addf %145, %149 : vector<8x10xf32>
    %151 = vector.extract_strided_slice %116 {offsets = [56, 0], sizes = [8, 205], strides = [1, 1]} : vector<128x205xf32> to vector<8x205xf32>
    %c7_101 = arith.constant 7 : index
    %c0_102 = arith.constant 0 : index
    %c0_103 = arith.constant 0 : index
    %152 = vector.load %arg7[%c7_101, %c0_102, %c0_103] : memref<16x205x10xf32, #tpu.memory_space<vmem>>, vector<1x205x10xf32>
    %153 = vector.shape_cast %152 : vector<1x205x10xf32> to vector<205x10xf32>
    %cst_104 = arith.constant dense<0.000000e+00> : vector<8x10xf32>
    %154 = tpu.matmul %151, %153, %cst_104 {dimension_numbers = #tpu.dot_dimension_numbers<[1], [0], [0], [1], [0, 0, 1, 1], [], []>} : vector<8x205xf32>, vector<205x10xf32>, vector<8x10xf32> -> vector<8x10xf32>
    %155 = arith.addf %150, %154 : vector<8x10xf32>
    %156 = vector.extract_strided_slice %116 {offsets = [64, 0], sizes = [8, 205], strides = [1, 1]} : vector<128x205xf32> to vector<8x205xf32>
    %c8_105 = arith.constant 8 : index
    %c0_106 = arith.constant 0 : index
    %c0_107 = arith.constant 0 : index
    %157 = vector.load %arg7[%c8_105, %c0_106, %c0_107] : memref<16x205x10xf32, #tpu.memory_space<vmem>>, vector<1x205x10xf32>
    %158 = vector.shape_cast %157 : vector<1x205x10xf32> to vector<205x10xf32>
    %cst_108 = arith.constant dense<0.000000e+00> : vector<8x10xf32>
    %159 = tpu.matmul %156, %158, %cst_108 {dimension_numbers = #tpu.dot_dimension_numbers<[1], [0], [0], [1], [0, 0, 1, 1], [], []>} : vector<8x205xf32>, vector<205x10xf32>, vector<8x10xf32> -> vector<8x10xf32>
    %160 = arith.addf %155, %159 : vector<8x10xf32>
    %161 = vector.extract_strided_slice %116 {offsets = [72, 0], sizes = [8, 205], strides = [1, 1]} : vector<128x205xf32> to vector<8x205xf32>
    %c9 = arith.constant 9 : index
    %c0_109 = arith.constant 0 : index
    %c0_110 = arith.constant 0 : index
    %162 = vector.load %arg7[%c9, %c0_109, %c0_110] : memref<16x205x10xf32, #tpu.memory_space<vmem>>, vector<1x205x10xf32>
    %163 = vector.shape_cast %162 : vector<1x205x10xf32> to vector<205x10xf32>
    %cst_111 = arith.constant dense<0.000000e+00> : vector<8x10xf32>
    %164 = tpu.matmul %161, %163, %cst_111 {dimension_numbers = #tpu.dot_dimension_numbers<[1], [0], [0], [1], [0, 0, 1, 1], [], []>} : vector<8x205xf32>, vector<205x10xf32>, vector<8x10xf32> -> vector<8x10xf32>
    %165 = arith.addf %160, %164 : vector<8x10xf32>
    %166 = vector.extract_strided_slice %116 {offsets = [80, 0], sizes = [8, 205], strides = [1, 1]} : vector<128x205xf32> to vector<8x205xf32>
    %c10 = arith.constant 10 : index
    %c0_112 = arith.constant 0 : index
    %c0_113 = arith.constant 0 : index
    %167 = vector.load %arg7[%c10, %c0_112, %c0_113] : memref<16x205x10xf32, #tpu.memory_space<vmem>>, vector<1x205x10xf32>
    %168 = vector.shape_cast %167 : vector<1x205x10xf32> to vector<205x10xf32>
    %cst_114 = arith.constant dense<0.000000e+00> : vector<8x10xf32>
    %169 = tpu.matmul %166, %168, %cst_114 {dimension_numbers = #tpu.dot_dimension_numbers<[1], [0], [0], [1], [0, 0, 1, 1], [], []>} : vector<8x205xf32>, vector<205x10xf32>, vector<8x10xf32> -> vector<8x10xf32>
    %170 = arith.addf %165, %169 : vector<8x10xf32>
    %171 = vector.extract_strided_slice %116 {offsets = [88, 0], sizes = [8, 205], strides = [1, 1]} : vector<128x205xf32> to vector<8x205xf32>
    %c11 = arith.constant 11 : index
    %c0_115 = arith.constant 0 : index
    %c0_116 = arith.constant 0 : index
    %172 = vector.load %arg7[%c11, %c0_115, %c0_116] : memref<16x205x10xf32, #tpu.memory_space<vmem>>, vector<1x205x10xf32>
    %173 = vector.shape_cast %172 : vector<1x205x10xf32> to vector<205x10xf32>
    %cst_117 = arith.constant dense<0.000000e+00> : vector<8x10xf32>
    %174 = tpu.matmul %171, %173, %cst_117 {dimension_numbers = #tpu.dot_dimension_numbers<[1], [0], [0], [1], [0, 0, 1, 1], [], []>} : vector<8x205xf32>, vector<205x10xf32>, vector<8x10xf32> -> vector<8x10xf32>
    %175 = arith.addf %170, %174 : vector<8x10xf32>
    %176 = vector.extract_strided_slice %116 {offsets = [96, 0], sizes = [8, 205], strides = [1, 1]} : vector<128x205xf32> to vector<8x205xf32>
    %c12 = arith.constant 12 : index
    %c0_118 = arith.constant 0 : index
    %c0_119 = arith.constant 0 : index
    %177 = vector.load %arg7[%c12, %c0_118, %c0_119] : memref<16x205x10xf32, #tpu.memory_space<vmem>>, vector<1x205x10xf32>
    %178 = vector.shape_cast %177 : vector<1x205x10xf32> to vector<205x10xf32>
    %cst_120 = arith.constant dense<0.000000e+00> : vector<8x10xf32>
    %179 = tpu.matmul %176, %178, %cst_120 {dimension_numbers = #tpu.dot_dimension_numbers<[1], [0], [0], [1], [0, 0, 1, 1], [], []>} : vector<8x205xf32>, vector<205x10xf32>, vector<8x10xf32> -> vector<8x10xf32>
    %180 = arith.addf %175, %179 : vector<8x10xf32>
    %181 = vector.extract_strided_slice %116 {offsets = [104, 0], sizes = [8, 205], strides = [1, 1]} : vector<128x205xf32> to vector<8x205xf32>
    %c13 = arith.constant 13 : index
    %c0_121 = arith.constant 0 : index
    %c0_122 = arith.constant 0 : index
    %182 = vector.load %arg7[%c13, %c0_121, %c0_122] : memref<16x205x10xf32, #tpu.memory_space<vmem>>, vector<1x205x10xf32>
    %183 = vector.shape_cast %182 : vector<1x205x10xf32> to vector<205x10xf32>
    %cst_123 = arith.constant dense<0.000000e+00> : vector<8x10xf32>
    %184 = tpu.matmul %181, %183, %cst_123 {dimension_numbers = #tpu.dot_dimension_numbers<[1], [0], [0], [1], [0, 0, 1, 1], [], []>} : vector<8x205xf32>, vector<205x10xf32>, vector<8x10xf32> -> vector<8x10xf32>
    %185 = arith.addf %180, %184 : vector<8x10xf32>
    %186 = vector.extract_strided_slice %116 {offsets = [112, 0], sizes = [8, 205], strides = [1, 1]} : vector<128x205xf32> to vector<8x205xf32>
    %c14 = arith.constant 14 : index
    %c0_124 = arith.constant 0 : index
    %c0_125 = arith.constant 0 : index
    %187 = vector.load %arg7[%c14, %c0_124, %c0_125] : memref<16x205x10xf32, #tpu.memory_space<vmem>>, vector<1x205x10xf32>
    %188 = vector.shape_cast %187 : vector<1x205x10xf32> to vector<205x10xf32>
    %cst_126 = arith.constant dense<0.000000e+00> : vector<8x10xf32>
    %189 = tpu.matmul %186, %188, %cst_126 {dimension_numbers = #tpu.dot_dimension_numbers<[1], [0], [0], [1], [0, 0, 1, 1], [], []>} : vector<8x205xf32>, vector<205x10xf32>, vector<8x10xf32> -> vector<8x10xf32>
    %190 = arith.addf %185, %189 : vector<8x10xf32>
    %191 = vector.extract_strided_slice %116 {offsets = [120, 0], sizes = [8, 205], strides = [1, 1]} : vector<128x205xf32> to vector<8x205xf32>
    %c15 = arith.constant 15 : index
    %c0_127 = arith.constant 0 : index
    %c0_128 = arith.constant 0 : index
    %192 = vector.load %arg7[%c15, %c0_127, %c0_128] : memref<16x205x10xf32, #tpu.memory_space<vmem>>, vector<1x205x10xf32>
    %193 = vector.shape_cast %192 : vector<1x205x10xf32> to vector<205x10xf32>
    %cst_129 = arith.constant dense<0.000000e+00> : vector<8x10xf32>
    %194 = tpu.matmul %191, %193, %cst_129 {dimension_numbers = #tpu.dot_dimension_numbers<[1], [0], [0], [1], [0, 0, 1, 1], [], []>} : vector<8x205xf32>, vector<205x10xf32>, vector<8x10xf32> -> vector<8x10xf32>
    %195 = arith.addf %190, %194 : vector<8x10xf32>
    %c0_130 = arith.constant 0 : index
    %c0_131 = arith.constant 0 : index
    %196 = vector.load %arg8[%c0_130, %c0_131] : memref<1x10xf32, #tpu.memory_space<vmem>>, vector<1x10xf32>
    %197 = vector.broadcast %196 : vector<1x10xf32> to vector<8x10xf32>
    %198 = arith.addf %195, %197 : vector<8x10xf32>
    %c0_132 = arith.constant 0 : index
    %c0_133 = arith.constant 0 : index
    %199 = vector.load %arg9[%c0_132, %c0_133] : memref<8x10xf32, #tpu.memory_space<vmem>>, vector<8x10xf32>
    tpu.vector_store %arg9[%c0_132, %c0_133], %198 {strides = array<i32>} : memref<8x10xf32, #tpu.memory_space<vmem>>, vector<8x10xf32>,
    return
  }
  func.func @transform_0(%arg0: i32) -> (i32, i32) {
    %c0_i32 = arith.constant 0 : i32
    %c0_i32_0 = arith.constant 0 : i32
    return %arg0, %c0_i32 : i32, i32
  }
  func.func @transform_1(%arg0: i32) -> (i32, i32, i32) {
    %c0_i32 = arith.constant 0 : i32
    %c0_i32_0 = arith.constant 0 : i32
    %c0_i32_1 = arith.constant 0 : i32
    %c0_i32_2 = arith.constant 0 : i32
    return %c0_i32, %c0_i32_0, %c0_i32_1 : i32, i32, i32
  }
  func.func @transform_2(%arg0: i32) -> (i32, i32) {
    %c0_i32 = arith.constant 0 : i32
    %c0_i32_0 = arith.constant 0 : i32
    %c0_i32_1 = arith.constant 0 : i32
    return %c0_i32, %c0_i32_0 : i32, i32
  }
  func.func @transform_3(%arg0: i32) -> (i32, i32, i32) {
    %c0_i32 = arith.constant 0 : i32
    %c0_i32_0 = arith.constant 0 : i32
    %c0_i32_1 = arith.constant 0 : i32
    %c0_i32_2 = arith.constant 0 : i32
    return %c0_i32, %c0_i32_0, %c0_i32_1 : i32, i32, i32
  }
  func.func @transform_4(%arg0: i32) -> (i32, i32) {
    %c0_i32 = arith.constant 0 : i32
    %c0_i32_0 = arith.constant 0 : i32
    %c0_i32_1 = arith.constant 0 : i32
    return %c0_i32, %c0_i32_0 : i32, i32
  }
  func.func @transform_5(%arg0: i32) -> (i32, i32) {
    %c0_i32 = arith.constant 0 : i32
    %c0_i32_0 = arith.constant 0 : i32
    %c0_i32_1 = arith.constant 0 : i32
    return %c0_i32, %c0_i32_0 : i32, i32
  }
  func.func @transform_6(%arg0: i32) -> (i32, i32, i32) {
    %c0_i32 = arith.constant 0 : i32
    %c0_i32_0 = arith.constant 0 : i32
    %c0_i32_1 = arith.constant 0 : i32
    %c0_i32_2 = arith.constant 0 : i32
    return %c0_i32, %c0_i32_0, %c0_i32_1 : i32, i32, i32
  }
  func.func @transform_7(%arg0: i32) -> (i32, i32) {
    %c0_i32 = arith.constant 0 : i32
    %c0_i32_0 = arith.constant 0 : i32
    %c0_i32_1 = arith.constant 0 : i32
    return %c0_i32, %c0_i32_0 : i32, i32
  }
  func.func @transform_8(%arg0: i32) -> (i32, i32) {
    %c0_i32 = arith.constant 0 : i32
    %c0_i32_0 = arith.constant 0 : i32
    return %arg0, %c0_i32 : i32, i32
  }
}

</mosaic_0001>

<bundles_post_ra>
// kernel: _cnn_forward_impl.1
= control target key start
LH: loop header
LB: loop body
LE: loop exit
PB: predicated region body
PF: predicated region fallthrough
CT: control target
= control target key end

     0   :  { %s10368_s21 = smov 127   ;;  %vm111_vm0 = vcmask 1039360   ;;  %vm131_vm1 = vcmask 1043456   ;;  %vm118_vm2 = vcmask 64512   ;;  %s10370_s30 = smov 98   ;;  %vm655_vm3 = vcmask 1031168   ;;  %s17729_s0 = inlined_call_operand.vmem [shape: f32[8,900], index: 0, kind: input, shape index: {}]   ;;  %s17730_s1 = inlined_call_operand.vmem [shape: bf16[9,64,8], index: 1, kind: input, shape index: {}]   ;;  %s17731_s2 = inlined_call_operand.vmem [shape: f32[64,1], index: 2, kind: input, shape index: {}]   ;;  %s17732_s5 = inlined_call_operand.vmem [shape: f32[807,256], index: 5, kind: input, shape index: {}]   ;;  %s17733_s3 = inlined_call_operand.vmem [shape: bf16[9,128,64], index: 3, kind: input, shape index: {}]   ;;  %s17734_s4 = inlined_call_operand.vmem [shape: f32[128,1], index: 4, kind: input, shape index: {}]   ;;  %s17735_s6 = inlined_call_operand.vmem [shape: f32[16,205,10], index: 6, kind: input, shape index: {}]   ;;  %s17736_s7 = inlined_call_operand.vmem [shape: f32[1,10], index: 7, kind: input, shape index: {}]   ;;  %s17737_s8 = inlined_call_operand.vmem [shape: f32[8,10], index: 8, kind: output, shape index: {}]  }
   0x1   :  { %v32_v0 = vld [vmem:[%s17729_s0 + $0x10] sm:$0xff]  ;;  %v33_v1 = vld [vmem:[%s17729_s0 + $0x18] sm:$0xff]  ;;  %v30_v2 = vld [vmem:[%s17729_s0] sm:$0xff]  ;;  %s10371_s17 = smov 97   ;;  %s10372_s27 = smov 96   ;;  %vm997_vm4 = vcmask 801792  }
   0x2   :  { %v39_v3 = vpack.c.bf16 %v33_v1, %v32_v0  ;;  %v31_v4 = vld [vmem:[%s17729_s0 + $0x8] sm:$0xff]  ;;  %v34_v5 = vld [vmem:[%s17729_s0 + $0x20] sm:$0xff]  ;;  %v36_v9 = vld [vmem:[%s17729_s0 + $0x30] sm:$0xff]  ;;  %s10373_s13 = smov 68   ;;  %vm1339_vm5 = vcmask 793600   ;;  %vm1681_vm6 = vcmask 785408  }
   0x3   :  { %v35_v6 = vld [vmem:[%s17729_s0 + $0x28] sm:$0xff]  ;;  %v38_v7 = vpack.c.bf16 %v31_v4, %v30_v2  ;;  %v37_v10 = vld [vmem:[%s17729_s0 + $0x38] sm:$0xff]  ;;  %s10369_s0 = smov 126   ;;  %v9926_v37 = vld [vmem:[%s17730_s1 + $0x20] sm:$0xff]  ;;  %s10374_s23 = smov 67   ;;  %vm2027_vm7 = vcmask 556032  }
   0x4   :  { %v40_v8 = vpack.c.bf16 %v35_v6, %v34_v5  ;;  %v85_v11 = vunpack.c.l.b16 %v39_v3  ;;  %v10451_v14 = vpack.c.bf16 %v37_v10, %v36_v9  ;;  %v86_v18 = vunpack.c.h.b16 %v39_v3  ;;  %v9927_v48 = vld [vmem:[%s17730_s1 + $0x28] sm:$0xff]  ;;  %v9928_v49 = vld [vmem:[%s17730_s1 + $0x30] sm:$0xff]  ;;  %v9929_v50 = vld [vmem:[%s17730_s1 + $0x38] sm:$0xff]  ;;  %s10378_s12 = smov 111   ;;  %s10381_s19 = smov 94  }
   0x5   :  { %v83_v12 = vunpack.c.l.b16 %v38_v7  ;;  %v84_v19 = vunpack.c.h.b16 %v38_v7  ;;  %v10554_v51 = vld [vmem:[%s17730_s1] sm:$0xff]  ;;  %v10574_v56 = vld [vmem:[%s17730_s1 + $0x8] sm:$0xff]  ;;  %v10584_v57 = vld [vmem:[%s17730_s1 + $0x10] sm:$0xff]  ;;  %vm2372_vm8 = vcmask 547840   ;;  %vm2717_vm9 = vcmask 539648  }
   0x6   :  { %v87_v13 = vunpack.c.l.b16 %v40_v8  ;;  %17860 = vst [vmem:[#allocation2_spill] sm:$0xff] %v10451_v14  ;;  %v10453_v15 = vpack.c.b16 %v85_v11, %v85_v11  ;;  %v89_v20 = vunpack.c.l.b16 %v10451_v14  ;;  %v10466_v21 = vpack.c.b16 %v86_v18, %v86_v18  ;;  %v10594_v58 = vld [vmem:[%s17730_s1 + $0x18] sm:$0xff] }
   0x7   :  { %v10455_v16 = vpack.c.b16 %v83_v12, %v83_v12  ;;  %v10468_v22 = vpack.c.b16 %v84_v19, %v84_v19  ;;  %v88_v24 = vunpack.c.h.b16 %v40_v8  ;;  %vm4062_vm10 = vcmask 1046528  }
   0x8   :  { %v10457_v17 = vpack.c.b16 %v87_v13, %v87_v13  ;;  %101 = vrot.lane.b32.xlu0 %v10453_v15, %s10368_s21  ;;  %17863 = vst [vmem:[#allocation5_spill] sm:$0xff] %v10466_v21  ;;  %v10470_v23 = vpack.c.b16 %v89_v20, %v89_v20  ;;  %v398_v52 = vsel %vm131_vm1, %v10466_v21, 0  ;;  %v395_v55 = vsel %vm131_vm1, %v10453_v15, 0 }
   0x9   :  { %17861 = vst [vmem:[#allocation3_spill] sm:$0xff] %v10455_v16  ;;  %97 = vrot.lane.b32.xlu1 %v10455_v16, %s10368_s21  ;;  %v10478_v25 = vpack.c.b16 %v88_v24, %v88_v24  ;;  %v389_v41 = vsel %vm131_vm1, %v10455_v16, 0  ;;  %v392_v54 = vsel %vm131_vm1, %v10468_v22, 0  ;;  %vm4037_vm11 = vcmask 318464  }
   0xa   :  { %17862 = vst [vmem:[#allocation4_spill] sm:$0xff] %v10457_v17  ;;  %105 = vrot.lane.b32.xlu2 %v10457_v17, %s10368_s21  ;;  %v401_v53 = vsel %vm131_vm1, %v10457_v17, 0  ;;  %v407_v20 = vsel %vm131_vm1, %v10470_v23, 0  ;;  %vm4784_vm12 = vcmask 523264   ;;  %vm5389_vm13 = vcmask 916480  }
   0xb   :  { %17864 = vst [vmem:[#allocation6_spill] sm:$0xff] %v10468_v22  ;;  %v404_v2 = vsel %vm131_vm1, %v10478_v25, 0  ;;  %vm5629_vm14 = vcmask 908288   ;;  %vm5869_vm15 = vcmask 900096  }
   0xc   :  { %17865 = vst [vmem:[#allocation7_spill] sm:$0xff] %v10470_v23 }
   0xd   :  { %17866 = vst [vmem:[#allocation8_spill] sm:$0xff] %v10478_v25 }
  0x10   :  { %103 = vrot.lane.b32.xlu0 %v10466_v21, %s10368_s21 }
  0x11   :  { %99 = vrot.lane.b32.xlu1 %v10468_v22, %s10368_s21 }
  0x12   :  { %109 = vrot.lane.b32.xlu2 %v10470_v23, %s10368_s21 }
  0x18   :  { %107 = vrot.lane.b32.xlu0 %v10478_v25, %s10368_s21 }
  0x19   :  { %641 = vrot.lane.b32.xlu1 %v10455_v16, %s10369_s0 }
  0x1a   :  { %643 = vrot.lane.b32.xlu2 %v10468_v22, %s10369_s0 }
  0x20   :  { %645 = vrot.lane.b32.xlu0 %v10453_v15, %s10369_s0 }
  0x21   :  { %649 = vrot.lane.b32.xlu1 %v10457_v17, %s10369_s0 }
  0x22   :  { %651 = vrot.lane.b32.xlu2 %v10478_v25, %s10369_s0 }
  0x28   :  { %647 = vrot.lane.b32.xlu0 %v10466_v21, %s10369_s0 }
  0x29   :  { %653 = vrot.lane.b32.xlu1 %v10470_v23, %s10369_s0 }
  0x2a   :  { %985 = vrot.lane.b32.xlu2 %v10468_v22, %s10370_s30 }
  0x30   :  { %987 = vrot.lane.b32.xlu0 %v10453_v15, %s10370_s30 }
  0x31   :  { %983 = vrot.lane.b32.xlu1 %v10455_v16, %s10370_s30 }
  0x32   :  { %989 = vrot.lane.b32.xlu2 %v10466_v21, %s10370_s30 }
  0x38   :  { %993 = vrot.lane.b32.xlu0 %v10478_v25, %s10370_s30 }
  0x39   :  { %995 = vrot.lane.b32.xlu1 %v10470_v23, %s10370_s30 }
  0x3a   :  { %991 = vrot.lane.b32.xlu2 %v10457_v17, %s10370_s30 }
  0x40   :  { %1329 = vrot.lane.b32.xlu0 %v10453_v15, %s10371_s17 }
  0x41   :  { %1331 = vrot.lane.b32.xlu1 %v10466_v21, %s10371_s17 }
  0x42   :  { %1325 = vrot.lane.b32.xlu2 %v10455_v16, %s10371_s17 }
  0x48   :  { %1327 = vrot.lane.b32.xlu0 %v10468_v22, %s10371_s17 }
  0x49   :  { %1333 = vrot.lane.b32.xlu1 %v10457_v17, %s10371_s17 }
  0x4a   :  { %1337 = vrot.lane.b32.xlu2 %v10470_v23, %s10371_s17 }
  0x50   :  { %1335 = vrot.lane.b32.xlu0 %v10478_v25, %s10371_s17 }
  0x51   :  { %1667 = vrot.lane.b32.xlu1 %v10455_v16, %s10372_s27 }
  0x52   :  { %1669 = vrot.lane.b32.xlu2 %v10468_v22, %s10372_s27 }
  0x58   :  { %1673 = vrot.lane.b32.xlu0 %v10466_v21, %s10372_s27 }
  0x59   :  { %1675 = vrot.lane.b32.xlu1 %v10457_v17, %s10372_s27 }
  0x5a   :  { %1671 = vrot.lane.b32.xlu2 %v10453_v15, %s10372_s27 }
  0x60   :  { %1677 = vrot.lane.b32.xlu0 %v10478_v25, %s10372_s27 }
  0x61   :  { %2011 = vrot.lane.b32.xlu1 %v10455_v16, %s10373_s13 }
  0x62   :  { %2013 = vrot.lane.b32.xlu2 %v10468_v22, %s10373_s13 }
  0x64   :  { %v106_v28 = vpop.permute.xlu2 %105 }
  0x68   :  { %1679 = vrot.lane.b32.xlu0 %v10470_v23, %s10372_s27 }
  0x69   :  { %2015 = vrot.lane.b32.xlu1 %v10453_v15, %s10373_s13 }
  0x6a   :  { %2019 = vrot.lane.b32.xlu2 %v10457_v17, %s10373_s13 }
  0x6c   :  { %v110_v40 = vpop.permute.xlu2 %109 }
  0x6d   :  { %v151_v43 = vsel %vm131_vm1, %v110_v40, 0 }
  0x70   :  { %2021 = vrot.lane.b32.xlu0 %v10478_v25, %s10373_s13 }
  0x71   :  { %2017 = vrot.lane.b32.xlu1 %v10466_v21, %s10373_s13 }
  0x72   :  { %2023 = vrot.lane.b32.xlu2 %v10470_v23, %s10373_s13 }
  0x74   :  { %v644_v4 = vpop.permute.xlu2 %643 }
  0x78   :  { %2358 = vrot.lane.b32.xlu0 %v10468_v22, %s10374_s23  ;;  %v17972_v22 = vld [vmem:[#allocation7_spill] sm:$0xff] }
  0x79   :  { %2360 = vrot.lane.b32.xlu1 %v10453_v15, %s10374_s23 }
  0x7a   :  { %v102_v26 = vpop.permute.xlu0 %101 }
  0x7b   :  { %v98_v27 = vpop.permute.xlu1 %97 }
  0x82   :  { %v104_v29 = vpop.permute.xlu0 %103 }
  0x83   :  { %v100_v30 = vpop.permute.xlu1 %99  ;;  %v114_v31 = vsel %vm111_vm0, %v102_v26, %v104_v29  ;;  %v115_v32 = vsel %vm111_vm0, %v104_v29, %v106_v28 }
  0x84   :  { %v112_v33 = vsel %vm111_vm0, %v98_v27, %v100_v30  ;;  %v113_v34 = vsel %vm111_vm0, %v100_v30, %v102_v26  ;;  %v139_v35 = vsel %vm131_vm1, %v114_v31, 0  ;;  %v142_v36 = vsel %vm131_vm1, %v115_v32, 0 }
  0x85   :  { %v133_v38 = vsel %vm131_vm1, %v112_v33, 0  ;;  %v136_v39 = vsel %vm131_vm1, %v113_v34, 0  ;;  %218 = vmatpush.bf16.msra.mxu2 %v139_v35  ;;  %247 = vmatpush.bf16.msra.mxu3 %v142_v36 }
  0x86   :  { %160 = vmatpush.bf16.msra.mxu0 %v133_v38  ;;  %189 = vmatpush.bf16.msra.mxu1 %v136_v39 }
  0x88   :  { %8494 = vmatmul.msk.bf16.vlgmr.msra.gmra.mxu2 %vm118_vm2, %v9926_v37  ;;  %8498 = vmatmul.msk.bf16.vlgmr.msra.gmra.mxu3 %vm118_vm2, %v9926_v37 }
  0x89   :  { %8486 = vmatmul.msk.bf16.vlgmr.msra.gmra.mxu0 %vm118_vm2, %v9926_v37  ;;  %8490 = vmatmul.msk.bf16.vlgmr.msra.gmra.mxu1 %vm118_vm2, %v9926_v37 }
  0x8a   :  { %v108_v42 = vpop.permute.xlu0 %107  ;;  %416 = vmatpush.bf16.msrb.mxu3 %v389_v41  ;;  %334 = vmatpush.bf16.msrb.mxu2 %v151_v43 }
  0x8b   :  { %v116_v44 = vsel %vm111_vm0, %v106_v28, %v108_v42  ;;  %v117_v45 = vsel %vm111_vm0, %v108_v42, %v110_v40  ;;  %v642_v7 = vpop.permute.xlu1 %641 }
  0x8c   :  { %v145_v46 = vsel %vm131_vm1, %v116_v44, 0  ;;  %v148_v47 = vsel %vm131_vm1, %v117_v45, 0  ;;  %v656_v8 = vsel %vm655_vm3, %v642_v7, %v644_v4 }
  0x8d   :  { %276 = vmatpush.bf16.msrb.mxu0 %v145_v46  ;;  %305 = vmatpush.bf16.msrb.mxu1 %v148_v47  ;;  %v675_v11 = vsel %vm131_vm1, %v656_v8, 0  ;;  %v10720_v47 = vld [vmem:[%s17730_s1 + $0x40] sm:$0xff] }
  0x8e   :  { %503 = vmatpush.bf16.msra.mxu2 %v398_v52  ;;  %532 = vmatpush.bf16.msra.mxu3 %v401_v53 }
  0x91   :  { %445 = vmatpush.bf16.msra.mxu0 %v392_v54  ;;  %474 = vmatpush.bf16.msra.mxu1 %v395_v55 }
  0x92   :  { %v646_v61 = vpop.permute.xlu0 %645 }
  0x93   :  { %v657_v6 = vsel %vm655_vm3, %v644_v4, %v646_v61  ;;  %v650_v52 = vpop.permute.xlu1 %649 }
  0x94   :  { %v678_v9 = vsel %vm131_vm1, %v657_v6, 0 }
  0x98   :  { %8495 = vmatmul.msk.bf16.gmra.mxu2 %vm118_vm2, %v9927_v48  ;;  %8499 = vmatmul.msk.bf16.gmra.mxu3 %vm118_vm2, %v9927_v48 }
  0x99   :  { %8487 = vmatmul.msk.bf16.gmra.mxu0 %vm118_vm2, %v9927_v48  ;;  %8491 = vmatmul.msk.bf16.gmra.mxu1 %vm118_vm2, %v9927_v48 }
  0x9a   :  { %v10623_v3 = vpop.permute.xlu0 %647 }
  0x9b   :  { %v658_v5 = vsel %vm655_vm3, %v646_v61, %v10623_v3  ;;  %v659_v53 = vsel %vm655_vm3, %v10623_v3, %v650_v52  ;;  %v654_v7 = vpop.permute.xlu1 %653 }
  0x9c   :  { %v681_v10 = vsel %vm131_vm1, %v658_v5, 0  ;;  %v684_v55 = vsel %vm131_vm1, %v659_v53, 0 }
  0xa8   :  { %8496 = vmatmul.msk.bf16.gmra.mxu2 %vm118_vm2, %v9928_v49  ;;  %8500 = vmatmul.msk.bf16.gmra.mxu3 %vm118_vm2, %v9928_v49 }
  0xa9   :  { %8488 = vmatmul.msk.bf16.gmra.mxu0 %vm118_vm2, %v9928_v49  ;;  %8492 = vmatmul.msk.bf16.gmra.mxu1 %vm118_vm2, %v9928_v49 }
  0xb8   :  { %8497 = vmatmul.msk.bf16.gmra.mxu2 %vm118_vm2, %v9929_v50  ;;  %8501 = vmatmul.msk.bf16.gmra.mxu3 %vm118_vm2, %v9929_v50 }
  0xb9   :  { %8489 = vmatmul.msk.bf16.gmra.mxu0 %vm118_vm2, %v9929_v50  ;;  %8493 = vmatmul.msk.bf16.gmra.mxu1 %vm118_vm2, %v9929_v50 }
  0xc8   :  { %8510 = vmatmul.msk.bf16.vlgmr.msrb.gmra.mxu2 %vm118_vm2, %v9926_v37  ;;  %8530 = vmatmul.msk.bf16.vlgmr.msrb.gmra.mxu3 %vm118_vm2, %v10554_v51 }
  0xc9   :  { %8502 = vmatmul.msk.bf16.vlgmr.msrb.gmra.mxu0 %vm118_vm2, %v9926_v37  ;;  %8506 = vmatmul.msk.bf16.vlgmr.msrb.gmra.mxu1 %vm118_vm2, %v9926_v37 }
  0xca   :  { %561 = vmatpush.bf16.msrb.mxu0 %v404_v2  ;;  %731 = vmatpush.bf16.msrb.mxu3 %v678_v9 }
  0xcb   :  { %702 = vmatpush.bf16.msrb.mxu2 %v675_v11  ;;  %590 = vmatpush.bf16.msrb.mxu1 %v407_v20 }
  0xd8   :  { %8511 = vmatmul.msk.bf16.gmra.mxu2 %vm118_vm2, %v9927_v48  ;;  %8531 = vmatmul.msk.bf16.gmra.mxu3 %vm118_vm2, %v10574_v56 }
  0xd9   :  { %8503 = vmatmul.msk.bf16.gmra.mxu0 %vm118_vm2, %v9927_v48  ;;  %8507 = vmatmul.msk.bf16.gmra.mxu1 %vm118_vm2, %v9927_v48 }
  0xe8   :  { %8512 = vmatmul.msk.bf16.gmra.mxu2 %vm118_vm2, %v9928_v49  ;;  %8532 = vmatmul.msk.bf16.gmra.mxu3 %vm118_vm2, %v10584_v57 }
  0xe9   :  { %8504 = vmatmul.msk.bf16.gmra.mxu0 %vm118_vm2, %v9928_v49  ;;  %8508 = vmatmul.msk.bf16.gmra.mxu1 %vm118_vm2, %v9928_v49 }
  0xf8   :  { %8513 = vmatmul.msk.bf16.gmra.mxu2 %vm118_vm2, %v9929_v50  ;;  %8533 = vmatmul.msk.bf16.gmra.mxu3 %vm118_vm2, %v10594_v58 }
  0xf9   :  { %8505 = vmatmul.msk.bf16.gmra.mxu0 %vm118_vm2, %v9929_v50  ;;  %8509 = vmatmul.msk.bf16.gmra.mxu1 %vm118_vm2, %v9929_v50  ;;  %v652_v50 = vpop.permute.xlu2 %651 }
  0xfa   :  { %v660_v54 = vsel %vm655_vm3, %v650_v52, %v652_v50  ;;  %v661_v8 = vsel %vm655_vm3, %v652_v50, %v654_v7 }
  0xfb   :  { %v687_v61 = vsel %vm131_vm1, %v660_v54, 0  ;;  %v690_v9 = vsel %vm131_vm1, %v661_v8, 0 }
 0x106   :  { %v10601_v59 = vpop.f32.mrf.mxu0  ;;  %v10603_v60 = vpop.f32.mrf.mxu1 }
 0x108   :  { %8542 = vmatmul.msk.bf16.vlgmr.msra.gmra.mxu2 %vm118_vm2, %v10554_v51  ;;  %8546 = vmatmul.msk.bf16.vlgmr.msra.gmra.mxu3 %vm118_vm2, %v10554_v51 }
 0x109   :  { %8534 = vmatmul.msk.bf16.vlgmr.msra.gmra.mxu0 %vm118_vm2, %v10554_v51  ;;  %8538 = vmatmul.msk.bf16.vlgmr.msra.gmra.mxu1 %vm118_vm2, %v10554_v51 }
 0x10a   :  { %760 = vmatpush.bf16.msra.mxu0 %v681_v10  ;;  %789 = vmatpush.bf16.msra.mxu1 %v684_v55 }
 0x10b   :  { %v10613_v62 = vpop.f32.mrf.mxu2  ;;  %v10615_v63 = vpop.f32.mrf.mxu3  ;;  %818 = vmatpush.bf16.msra.mxu2 %v687_v61  ;;  %847 = vmatpush.bf16.msra.mxu3 %v690_v9 }
 0x10e   :  { %v10617_v0 = vpop.f32.mrf.mxu0  ;;  %v10619_v1 = vpop.f32.mrf.mxu1 }
 0x113   :  { %v10632_v12 = vpop.f32.mrf.mxu2  ;;  %v10634_v13 = vpop.f32.mrf.mxu3 }
 0x116   :  { %v10636_v18 = vpop.f32.mrf.mxu0  ;;  %v10638_v19 = vpop.f32.mrf.mxu1 }
 0x118   :  { %8543 = vmatmul.msk.bf16.gmra.mxu2 %vm118_vm2, %v10574_v56  ;;  %8547 = vmatmul.msk.bf16.gmra.mxu3 %vm118_vm2, %v10574_v56 }
 0x119   :  { %8535 = vmatmul.msk.bf16.gmra.mxu0 %vm118_vm2, %v10574_v56  ;;  %8539 = vmatmul.msk.bf16.gmra.mxu1 %vm118_vm2, %v10574_v56 }
 0x11b   :  { %v10650_v24 = vpop.f32.mrf.mxu2  ;;  %v10652_v26 = vpop.f32.mrf.mxu3 }
 0x11e   :  { %v10654_v27 = vpop.f32.mrf.mxu0  ;;  %v10656_v28 = vpop.f32.mrf.mxu1 }
 0x123   :  { %v10658_v29 = vpop.f32.mrf.mxu2  ;;  %v10660_v30 = vpop.f32.mrf.mxu3 }
 0x124   :  { %17867 = vst [vmem:[#allocation9_spill] sm:$0xff] %v10658_v29 }
 0x125   :  { %17868 = vst [vmem:[#allocation10_spill] sm:$0xff] %v10660_v30 }
 0x126   :  { %v10662_v31 = vpop.f32.mrf.mxu0  ;;  %v10664_v32 = vpop.f32.mrf.mxu1 }
 0x128   :  { %8544 = vmatmul.msk.bf16.gmra.mxu2 %vm118_vm2, %v10584_v57  ;;  %8548 = vmatmul.msk.bf16.gmra.mxu3 %vm118_vm2, %v10584_v57 }
 0x129   :  { %8536 = vmatmul.msk.bf16.gmra.mxu0 %vm118_vm2, %v10584_v57  ;;  %8540 = vmatmul.msk.bf16.gmra.mxu1 %vm118_vm2, %v10584_v57 }
 0x12b   :  { %v10674_v33 = vpop.f32.mrf.mxu2  ;;  %v10676_v34 = vpop.f32.mrf.mxu3 }
 0x12c   :  { %17869 = vst [vmem:[#allocation11_spill] sm:$0xff] %v10674_v33 }
 0x12d   :  { %17870 = vst [vmem:[#allocation12_spill] sm:$0xff] %v10676_v34 }
 0x12e   :  { %v10680_v35 = vpop.f32.mrf.mxu0  ;;  %v10682_v36 = vpop.f32.mrf.mxu1 }
 0x133   :  { %v10685_v37 = vpop.f32.mrf.mxu2  ;;  %v10687_v38 = vpop.f32.mrf.mxu3 }
 0x134   :  { %17871 = vst [vmem:[#allocation13_spill] sm:$0xff] %v10685_v37 }
 0x135   :  { %17872 = vst [vmem:[#allocation14_spill] sm:$0xff] %v10687_v38 }
 0x136   :  { %v10691_v39 = vpop.f32.mrf.mxu0  ;;  %v10693_v40 = vpop.f32.mrf.mxu1 }
 0x138   :  { %8545 = vmatmul.msk.bf16.gmra.mxu2 %vm118_vm2, %v10594_v58  ;;  %8549 = vmatmul.msk.bf16.gmra.mxu3 %vm118_vm2, %v10594_v58 }
 0x139   :  { %8537 = vmatmul.msk.bf16.gmra.mxu0 %vm118_vm2, %v10594_v58  ;;  %8541 = vmatmul.msk.bf16.gmra.mxu1 %vm118_vm2, %v10594_v58 }
 0x13b   :  { %v10704_v41 = vpop.f32.mrf.mxu2  ;;  %v10706_v42 = vpop.f32.mrf.mxu3 }
 0x13c   :  { %17873 = vst [vmem:[#allocation15_spill] sm:$0xff] %v10704_v41 }
 0x13d   :  { %17874 = vst [vmem:[#allocation16_spill] sm:$0xff] %v10706_v42 }
 0x13e   :  { %v10709_v43 = vpop.f32.mrf.mxu0  ;;  %v10711_v44 = vpop.f32.mrf.mxu1 }
 0x143   :  { %v10713_v45 = vpop.f32.mrf.mxu2  ;;  %v10715_v46 = vpop.f32.mrf.mxu3 }
 0x144   :  { %17875 = vst [vmem:[#allocation17_spill] sm:$0xff] %v10713_v45 }
 0x145   :  { %17876 = vst [vmem:[#allocation18_spill] sm:$0xff] %v10715_v46 }
 0x146   :  { %v10722_v48 = vpop.f32.mrf.mxu0  ;;  %v10724_v49 = vpop.f32.mrf.mxu1 }
 0x148   :  { %8582 = vmatmul.msk.bf16.vlgmr.msrb.gmra.mxu2 %vm118_vm2, %v10720_v47  ;;  %8586 = vmatmul.msk.bf16.vlgmr.msrb.gmra.mxu3 %vm118_vm2, %v10720_v47 }
 0x149   :  { %8550 = vmatmul.msk.bf16.vlgmr.msrb.gmra.mxu0 %vm118_vm2, %v10554_v51  ;;  %8554 = vmatmul.msk.bf16.vlgmr.msrb.gmra.mxu1 %vm118_vm2, %v10554_v51  ;;  %v693_v51 = vsel %vm131_vm1, %v654_v7, 0 }
 0x14a   :  { %876 = vmatpush.bf16.msrb.mxu0 %v693_v51 }
 0x14b   :  { %v10739_v2 = vpop.f32.mrf.mxu2  ;;  %v418_v4 = vpop.f32.mrf.mxu3 }
 0x14c   :  { %17877 = vst [vmem:[#allocation19_spill] sm:$0xff] %v10739_v2  ;;  %v10742_v5 = vadd.f32 %v418_v4, %v10601_v59  ;;  %v10759_v59 = vld [vmem:[%s17730_s1 + $0x48] sm:$0xff] }
 0x14e   :  { %v10744_v3 = vpop.f32.mrf.mxu0  ;;  %v10746_v6 = vpop.f32.mrf.mxu1 }
 0x153   :  { %v10751_v10 = vpop.f32.mrf.mxu2  ;;  %v420_v11 = vpop.f32.mrf.mxu3 }
 0x154   :  { %17878 = vst [vmem:[#allocation20_spill] sm:$0xff] %v10751_v10  ;;  %v10754_v20 = vadd.f32 %v420_v11, %v10617_v0 }
 0x156   :  { %v10761_v52 = vpop.f32.mrf.mxu0  ;;  %v10763_v50 = vpop.f32.mrf.mxu1 }
 0x157   :  { %17879 = vst [vmem:[#allocation21_spill] sm:$0xff] %v10763_v50 }
 0x158   :  { %8583 = vmatmul.msk.bf16.gmra.mxu2 %vm118_vm2, %v10759_v59  ;;  %8587 = vmatmul.msk.bf16.gmra.mxu3 %vm118_vm2, %v10759_v59 }
 0x159   :  { %8551 = vmatmul.msk.bf16.gmra.mxu0 %vm118_vm2, %v10574_v56  ;;  %8555 = vmatmul.msk.bf16.gmra.mxu1 %vm118_vm2, %v10574_v56  ;;  %v10790_v56 = vld [vmem:[%s17730_s1 + $0x50] sm:$0xff] }
 0x15b   :  { %v10773_v0 = vpop.f32.mrf.mxu2  ;;  %v423_v53 = vpop.f32.mrf.mxu3 }
 0x15c   :  { %17880 = vst [vmem:[#allocation22_spill] sm:$0xff] %v10773_v0  ;;  %v10776_v54 = vadd.f32 %v423_v53, %v10636_v18 }
 0x15e   :  { %v10778_v55 = vpop.f32.mrf.mxu0  ;;  %v10780_v61 = vpop.f32.mrf.mxu1 }
 0x15f   :  { %17881 = vst [vmem:[#allocation23_spill] sm:$0xff] %v10780_v61 }
 0x163   :  { %v10782_v4 = vpop.f32.mrf.mxu2  ;;  %v425_v7 = vpop.f32.mrf.mxu3 }
 0x164   :  { %17882 = vst [vmem:[#allocation24_spill] sm:$0xff] %v10782_v4  ;;  %v10785_v8 = vadd.f32 %v425_v7, %v10654_v27 }
 0x166   :  { %v10792_v51 = vpop.f32.mrf.mxu0  ;;  %v10794_v9 = vpop.f32.mrf.mxu1 }
 0x167   :  { %17883 = vst [vmem:[#allocation25_spill] sm:$0xff] %v10794_v9 }
 0x168   :  { %8584 = vmatmul.msk.bf16.gmra.mxu2 %vm118_vm2, %v10790_v56  ;;  %8588 = vmatmul.msk.bf16.gmra.mxu3 %vm118_vm2, %v10790_v56 }
 0x169   :  { %8552 = vmatmul.msk.bf16.gmra.mxu0 %vm118_vm2, %v10584_v57  ;;  %8556 = vmatmul.msk.bf16.gmra.mxu1 %vm118_vm2, %v10584_v57  ;;  %v10821_v57 = vld [vmem:[%s17730_s1 + $0x58] sm:$0xff] }
 0x16b   :  { %v10804_v18 = vpop.f32.mrf.mxu2  ;;  %v428_v27 = vpop.f32.mrf.mxu3 }
 0x16c   :  { %17884 = vst [vmem:[#allocation26_spill] sm:$0xff] %v10804_v18  ;;  %v10807_v11 = vadd.f32 %v428_v27, %v10662_v31 }
 0x16e   :  { %v10809_v53 = vpop.f32.mrf.mxu0  ;;  %v10811_v7 = vpop.f32.mrf.mxu1 }
 0x16f   :  { %17885 = vst [vmem:[#allocation27_spill] sm:$0xff] %v10811_v7 }
 0x173   :  { %v10813_v14 = vpop.f32.mrf.mxu2  ;;  %v430_v4 = vpop.f32.mrf.mxu3 }
 0x174   :  { %17886 = vst [vmem:[#allocation28_spill] sm:$0xff] %v10813_v14  ;;  %v10816_v0 = vadd.f32 %v430_v4, %v10680_v35 }
 0x176   :  { %v10823_v18 = vpop.f32.mrf.mxu0  ;;  %v10825_v10 = vpop.f32.mrf.mxu1 }
 0x177   :  { %17887 = vst [vmem:[#allocation29_spill] sm:$0xff] %v10825_v10 }
 0x178   :  { %8585 = vmatmul.msk.bf16.gmra.mxu2 %vm118_vm2, %v10821_v57  ;;  %8589 = vmatmul.msk.bf16.gmra.mxu3 %vm118_vm2, %v10821_v57 }
 0x179   :  { %8553 = vmatmul.msk.bf16.gmra.mxu0 %vm118_vm2, %v10594_v58  ;;  %8557 = vmatmul.msk.bf16.gmra.mxu1 %vm118_vm2, %v10594_v58  ;;  %v986_v58 = vpop.permute.xlu2 %985 }
 0x17b   :  { %v10835_v31 = vpop.f32.mrf.mxu2  ;;  %v433_v35 = vpop.f32.mrf.mxu3 }
 0x17c   :  { %17888 = vst [vmem:[#allocation30_spill] sm:$0xff] %v10835_v31  ;;  %v10838_v4 = vadd.f32 %v433_v35, %v10691_v39 }
 0x17e   :  { %v10844_v27 = vpop.f32.mrf.mxu0  ;;  %v10846_v14 = vpop.f32.mrf.mxu1 }
 0x17f   :  { %17889 = vst [vmem:[#allocation31_spill] sm:$0xff] %v10846_v14  ;;  %v988_v14 = vpop.permute.xlu0 %987 }
 0x183   :  { %v10850_v31 = vpop.f32.mrf.mxu2  ;;  %v435_v2 = vpop.f32.mrf.mxu3 }
 0x184   :  { %17890 = vst [vmem:[#allocation32_spill] sm:$0xff] %v10850_v31  ;;  %v10853_v39 = vadd.f32 %v435_v2, %v10709_v43  ;;  %v990_v31 = vpop.permute.xlu2 %989  ;;  %v999_v43 = vsel %vm997_vm4, %v986_v58, %v988_v14  ;;  %v984_v2 = vpop.permute.xlu1 %983 }
 0x185   :  { %v998_v45 = vsel %vm997_vm4, %v984_v2, %v986_v58  ;;  %v1020_v10 = vsel %vm131_vm1, %v999_v43, 0  ;;  %v1000_v37 = vsel %vm997_vm4, %v988_v14, %v990_v31 }
 0x186   :  { %v10859_v35 = vpop.f32.mrf.mxu0  ;;  %v10861_v46 = vpop.f32.mrf.mxu1  ;;  %v1017_v42 = vsel %vm131_vm1, %v998_v45, 0  ;;  %1073 = vmatpush.bf16.msrb.mxu2 %v1020_v10  ;;  %v1023_v45 = vsel %vm131_vm1, %v1000_v37, 0 }
 0x187   :  { %1044 = vmatpush.bf16.msrb.mxu1 %v1017_v42  ;;  %1102 = vmatpush.bf16.msrb.mxu3 %v1023_v45 }
 0x188   :  { %8598 = vmatmul.msk.bf16.vlgmr.msra.gmra.mxu2 %vm118_vm2, %v10720_v47  ;;  %8602 = vmatmul.msk.bf16.vlgmr.msra.gmra.mxu3 %vm118_vm2, %v10720_v47 }
 0x189   :  { %8590 = vmatmul.msk.bf16.vlgmr.msra.gmra.mxu0 %vm118_vm2, %v10720_v47  ;;  %8594 = vmatmul.msk.bf16.vlgmr.msra.gmra.mxu1 %vm118_vm2, %v10720_v47 }
 0x18b   :  { %v10877_v41 = vpop.f32.mrf.mxu2  ;;  %v534_v7 = vpop.f32.mrf.mxu3 }
 0x18c   :  { %v10880_v38 = vadd.f32 %v534_v7, %v10722_v48  ;;  %v10889_v58 = vpop.permute.xlu2 %991  ;;  %v506_v23 = vadd.f32 %v10877_v41, %v10615_v63 }
 0x18d   :  { %v1001_v10 = vsel %vm997_vm4, %v990_v31, %v10889_v58 }
 0x18e   :  { %v10883_v9 = vpop.f32.mrf.mxu0  ;;  %v10885_v34 = vpop.f32.mrf.mxu1  ;;  %v1026_v42 = vsel %vm131_vm1, %v1001_v10, 0 }
 0x18f   :  { %1131 = vmatpush.bf16.msra.mxu0 %v1026_v42 }
 0x193   :  { %v10895_v48 = vpop.f32.mrf.mxu2  ;;  %v536_v14 = vpop.f32.mrf.mxu3 }
 0x194   :  { %v10898_v7 = vadd.f32 %v536_v14, %v10744_v3 }
 0x196   :  { %v10900_v43 = vpop.f32.mrf.mxu0  ;;  %v10902_v2 = vpop.f32.mrf.mxu1 }
 0x198   :  { %8599 = vmatmul.msk.bf16.gmra.mxu2 %vm118_vm2, %v10759_v59  ;;  %8603 = vmatmul.msk.bf16.gmra.mxu3 %vm118_vm2, %v10759_v59 }
 0x199   :  { %8591 = vmatmul.msk.bf16.gmra.mxu0 %vm118_vm2, %v10759_v59  ;;  %8595 = vmatmul.msk.bf16.gmra.mxu1 %vm118_vm2, %v10759_v59 }
 0x19b   :  { %v10912_v37 = vpop.f32.mrf.mxu2  ;;  %v539_v3 = vpop.f32.mrf.mxu3 }
 0x19c   :  { %v10915_v31 = vadd.f32 %v539_v3, %v10761_v52 }
 0x19e   :  { %17891 = vst [vmem:[#allocation33_spill] sm:$0xff] %v10915_v31  ;;  %v10917_v45 = vpop.f32.mrf.mxu0  ;;  %v10919_v10 = vpop.f32.mrf.mxu1 }
 0x19f   :  { %17892 = vst [vmem:[#allocation34_spill] sm:$0xff] %v10919_v10 }
 0x1a3   :  { %v10921_v42 = vpop.f32.mrf.mxu2  ;;  %v541_v14 = vpop.f32.mrf.mxu3 }
 0x1a4   :  { %17893 = vst [vmem:[#allocation35_spill] sm:$0xff] %v10921_v42  ;;  %v10924_v33 = vadd.f32 %v541_v14, %v10778_v55 }
 0x1a6   :  { %17894 = vst [vmem:[#allocation36_spill] sm:$0xff] %v10924_v33  ;;  %v10926_v61 = vpop.f32.mrf.mxu0  ;;  %v10928_v30 = vpop.f32.mrf.mxu1 }
 0x1a7   :  { %17895 = vst [vmem:[#allocation37_spill] sm:$0xff] %v10928_v30 }
 0x1a8   :  { %8600 = vmatmul.msk.bf16.gmra.mxu2 %vm118_vm2, %v10790_v56  ;;  %8604 = vmatmul.msk.bf16.gmra.mxu3 %vm118_vm2, %v10790_v56 }
 0x1a9   :  { %8592 = vmatmul.msk.bf16.gmra.mxu0 %vm118_vm2, %v10790_v56  ;;  %8596 = vmatmul.msk.bf16.gmra.mxu1 %vm118_vm2, %v10790_v56 }
 0x1ab   :  { %v10938_v52 = vpop.f32.mrf.mxu2  ;;  %v544_v55 = vpop.f32.mrf.mxu3 }
 0x1ac   :  { %17896 = vst [vmem:[#allocation38_spill] sm:$0xff] %v10938_v52  ;;  %v10941_v3 = vadd.f32 %v544_v55, %v10792_v51 }
 0x1ae   :  { %17897 = vst [vmem:[#allocation39_spill] sm:$0xff] %v10941_v3  ;;  %v10943_v14 = vpop.f32.mrf.mxu0  ;;  %v10945_v30 = vpop.f32.mrf.mxu1  ;;  %v10981_v3 = vld [vmem:[%s17730_s1 + $0x60] sm:$0xff] }
 0x1af   :  { %17898 = vst [vmem:[#allocation40_spill] sm:$0xff] %v10945_v30 }
 0x1b3   :  { %v10947_v33 = vpop.f32.mrf.mxu2  ;;  %v546_v42 = vpop.f32.mrf.mxu3 }
 0x1b4   :  { %17899 = vst [vmem:[#allocation41_spill] sm:$0xff] %v10947_v33  ;;  %v10950_v10 = vadd.f32 %v546_v42, %v10809_v53 }
 0x1b6   :  { %17900 = vst [vmem:[#allocation42_spill] sm:$0xff] %v10950_v10  ;;  %v10952_v29 = vpop.f32.mrf.mxu0  ;;  %v10954_v31 = vpop.f32.mrf.mxu1 }
 0x1b7   :  { %17901 = vst [vmem:[#allocation43_spill] sm:$0xff] %v10954_v31 }
 0x1b8   :  { %8601 = vmatmul.msk.bf16.gmra.mxu2 %vm118_vm2, %v10821_v57  ;;  %8605 = vmatmul.msk.bf16.gmra.mxu3 %vm118_vm2, %v10821_v57 }
 0x1b9   :  { %8593 = vmatmul.msk.bf16.gmra.mxu0 %vm118_vm2, %v10821_v57  ;;  %8597 = vmatmul.msk.bf16.gmra.mxu1 %vm118_vm2, %v10821_v57 }
 0x1bb   :  { %v10964_v51 = vpop.f32.mrf.mxu2  ;;  %v549_v53 = vpop.f32.mrf.mxu3 }
 0x1bc   :  { %17902 = vst [vmem:[#allocation44_spill] sm:$0xff] %v10964_v51  ;;  %v10967_v42 = vadd.f32 %v549_v53, %v10823_v18 }
 0x1be   :  { %17903 = vst [vmem:[#allocation45_spill] sm:$0xff] %v10967_v42  ;;  %v10969_v55 = vpop.f32.mrf.mxu0  ;;  %v10971_v31 = vpop.f32.mrf.mxu1 }
 0x1bf   :  { %17904 = vst [vmem:[#allocation46_spill] sm:$0xff] %v10971_v31  ;;  %v994_v31 = vpop.permute.xlu0 %993  ;;  %v996_v42 = vpop.permute.xlu1 %995 }
 0x1c0   :  { %v1003_v50 = vsel %vm997_vm4, %v994_v31, %v996_v42 }
 0x1c3   :  { %v10973_v10 = vpop.f32.mrf.mxu2  ;;  %v551_v33 = vpop.f32.mrf.mxu3 }
 0x1c4   :  { %17905 = vst [vmem:[#allocation47_spill] sm:$0xff] %v10973_v10  ;;  %v10976_v30 = vadd.f32 %v551_v33, %v10844_v27  ;;  %v448_v33 = vadd.f32 %v10859_v35, %v10603_v60  ;;  %v1035_v60 = vsel %vm131_vm1, %v996_v42, 0 }
 0x1c5   :  { %1218 = vmatpush.bf16.msra.mxu3 %v1035_v60 }
 0x1c6   :  { %17906 = vst [vmem:[#allocation48_spill] sm:$0xff] %v10976_v30  ;;  %v10983_v51 = vpop.f32.mrf.mxu0  ;;  %v10985_v52 = vpop.f32.mrf.mxu1 }
 0x1c7   :  { %17907 = vst [vmem:[#allocation49_spill] sm:$0xff] %v10985_v52  ;;  %v1330_v25 = vpop.permute.xlu0 %1329  ;;  %v1332_v17 = vpop.permute.xlu1 %1331  ;;  %v564_v41 = vadd.f32 %v10983_v51, %v10724_v49 }
 0x1c8   :  { %8638 = vmatmul.msk.bf16.vlgmr.msrb.gmra.mxu2 %vm118_vm2, %v10981_v3  ;;  %8642 = vmatmul.msk.bf16.vlgmr.msrb.gmra.mxu3 %vm118_vm2, %v10981_v3 }
 0x1c9   :  { %8606 = vmatmul.msk.bf16.vlgmr.msrb.gmra.mxu0 %vm118_vm2, %v10720_v47  ;;  %8634 = vmatmul.msk.bf16.vlgmr.msrb.gmra.mxu1 %vm118_vm2, %v10981_v3  ;;  %v1002_v47 = vsel %vm997_vm4, %v10889_v58, %v994_v31  ;;  %v11022_v31 = vld [vmem:[%s17730_s1 + $0x68] sm:$0xff] }
 0x1ca   :  { %v1029_v35 = vsel %vm131_vm1, %v1002_v47, 0 }
 0x1cb   :  { %v704_v18 = vpop.f32.mrf.mxu2  ;;  %v733_v27 = vpop.f32.mrf.mxu3  ;;  %1160 = vmatpush.bf16.msra.mxu1 %v1029_v35 }
 0x1cc   :  { %v10998_v53 = vadd.f32 %v704_v18, %v10742_v5  ;;  %v11000_v52 = vadd.f32 %v733_v27, %v448_v33  ;;  %v1032_v5 = vsel %vm131_vm1, %v1003_v50, 0  ;;  %v450_v33 = vadd.f32 %v10883_v9, %v10619_v1 }
 0x1cd   :  { %1189 = vmatpush.bf16.msra.mxu2 %v1032_v5  ;;  %v453_v1 = vadd.f32 %v10900_v43, %v10638_v19 }
 0x1ce   :  { %v11002_v30 = vpop.f32.mrf.mxu0  ;;  %v11004_v10 = vpop.f32.mrf.mxu1 }
 0x1cf   :  { %17908 = vst [vmem:[#allocation50_spill] sm:$0xff] %v11004_v10  ;;  %v1334_v21 = vpop.permute.xlu1 %1333 }
 0x1d3   :  { %v706_v18 = vpop.f32.mrf.mxu2  ;;  %v735_v27 = vpop.f32.mrf.mxu3 }
 0x1d4   :  { %v11015_v10 = vadd.f32 %v706_v18, %v10754_v20  ;;  %v11017_v58 = vadd.f32 %v735_v27, %v450_v33 }
 0x1d6   :  { %v11024_v42 = vpop.f32.mrf.mxu0  ;;  %v11026_v50 = vpop.f32.mrf.mxu1 }
 0x1d8   :  { %8639 = vmatmul.msk.bf16.gmra.mxu2 %vm118_vm2, %v11022_v31  ;;  %8643 = vmatmul.msk.bf16.gmra.mxu3 %vm118_vm2, %v11022_v31 }
 0x1d9   :  { %8607 = vmatmul.msk.bf16.gmra.mxu0 %vm118_vm2, %v10759_v59  ;;  %8635 = vmatmul.msk.bf16.gmra.mxu1 %vm118_vm2, %v11022_v31  ;;  %v455_v59 = vadd.f32 %v10917_v45, %v10656_v28  ;;  %v458_v28 = vadd.f32 %v10926_v61, %v10664_v32  ;;  %v460_v32 = vadd.f32 %v10943_v14, %v10682_v36 }
 0x1db   :  { %v709_v20 = vpop.f32.mrf.mxu2  ;;  %v738_v9 = vpop.f32.mrf.mxu3 }
 0x1dc   :  { %v11039_v47 = vadd.f32 %v709_v20, %v10776_v54  ;;  %v11041_v60 = vadd.f32 %v738_v9, %v453_v1  ;;  %v11057_v54 = vld [vmem:[%s17730_s1 + $0x70] sm:$0xff] }
 0x1de   :  { %v11043_v35 = vpop.f32.mrf.mxu0  ;;  %v11045_v5 = vpop.f32.mrf.mxu1 }
 0x1e3   :  { %v711_v33 = vpop.f32.mrf.mxu2  ;;  %v740_v18 = vpop.f32.mrf.mxu3 }
 0x1e4   :  { %v11050_v27 = vadd.f32 %v711_v33, %v10785_v8  ;;  %v11052_v19 = vadd.f32 %v740_v18, %v455_v59 }
 0x1e6   :  { %v11059_v43 = vpop.f32.mrf.mxu0  ;;  %v11061_v1 = vpop.f32.mrf.mxu1 }
 0x1e8   :  { %8640 = vmatmul.msk.bf16.gmra.mxu2 %vm118_vm2, %v11057_v54  ;;  %8644 = vmatmul.msk.bf16.gmra.mxu3 %vm118_vm2, %v11057_v54 }
 0x1e9   :  { %8608 = vmatmul.msk.bf16.gmra.mxu0 %vm118_vm2, %v10790_v56  ;;  %8636 = vmatmul.msk.bf16.gmra.mxu1 %vm118_vm2, %v11057_v54 }
 0x1eb   :  { %v714_v8 = vpop.f32.mrf.mxu2  ;;  %v743_v45 = vpop.f32.mrf.mxu3 }
 0x1ec   :  { %v11074_v20 = vadd.f32 %v714_v8, %v10807_v11  ;;  %v11076_v9 = vadd.f32 %v743_v45, %v458_v28  ;;  %v11098_v28 = vld [vmem:[%s17730_s1 + $0x78] sm:$0xff] }
 0x1ee   :  { %v11082_v56 = vpop.f32.mrf.mxu0  ;;  %v11084_v59 = vpop.f32.mrf.mxu1 }
 0x1f3   :  { %v716_v61 = vpop.f32.mrf.mxu2  ;;  %v745_v11 = vpop.f32.mrf.mxu3 }
 0x1f4   :  { %v11091_v33 = vadd.f32 %v716_v61, %v10816_v0  ;;  %v11093_v18 = vadd.f32 %v745_v11, %v460_v32  ;;  %v463_v0 = vadd.f32 %v10952_v29, %v10693_v40  ;;  %v465_v29 = vadd.f32 %v10969_v55, %v10711_v44  ;;  %v1328_v55 = vpop.permute.xlu0 %1327 }
 0x1f6   :  { %v11104_v8 = vpop.f32.mrf.mxu0  ;;  %v11106_v36 = vpop.f32.mrf.mxu1 }
 0x1f8   :  { %8641 = vmatmul.msk.bf16.gmra.mxu2 %vm118_vm2, %v11098_v28  ;;  %8645 = vmatmul.msk.bf16.gmra.mxu3 %vm118_vm2, %v11098_v28 }
 0x1f9   :  { %8609 = vmatmul.msk.bf16.gmra.mxu0 %vm118_vm2, %v10821_v57  ;;  %8637 = vmatmul.msk.bf16.gmra.mxu1 %vm118_vm2, %v11098_v28 }
 0x1fb   :  { %v719_v14 = vpop.f32.mrf.mxu2  ;;  %v748_v45 = vpop.f32.mrf.mxu3 }
 0x1fc   :  { %v11119_v32 = vadd.f32 %v719_v14, %v10838_v4  ;;  %v11121_v61 = vadd.f32 %v748_v45, %v463_v0  ;;  %v477_v45 = vadd.f32 %v10861_v46, %v10613_v62  ;;  %v1343_v62 = vsel %vm1339_vm5, %v1332_v17, %v1334_v21 }
 0x1fe   :  { %17909 = vst [vmem:[#allocation51_spill] sm:$0xff] %v11119_v32  ;;  %v11127_v57 = vpop.f32.mrf.mxu0  ;;  %v11129_v11 = vpop.f32.mrf.mxu1  ;;  %v1342_v32 = vsel %vm1339_vm5, %v1330_v25, %v1332_v17 }
 0x1ff   :  { %17910 = vst [vmem:[#allocation52_spill] sm:$0xff] %v11121_v61  ;;  %v1365_v63 = vsel %vm131_vm1, %v1342_v32, 0  ;;  %v508_v32 = vadd.f32 %v10895_v48, %v10634_v13 }
 0x200   :  { %17911 = vst [vmem:[#allocation53_spill] sm:$0xff] %v11129_v11  ;;  %1444 = vmatpush.bf16.msrb.mxu2 %v1365_v63 }
 0x203   :  { %v721_v40 = vpop.f32.mrf.mxu2  ;;  %v750_v4 = vpop.f32.mrf.mxu3 }
 0x204   :  { %v11134_v0 = vadd.f32 %v721_v40, %v10853_v39  ;;  %v11136_v14 = vadd.f32 %v750_v4, %v465_v29  ;;  %v1326_v29 = vpop.permute.xlu2 %1325 }
 0x205   :  { %v1340_v49 = vsel %vm1339_vm5, %v1326_v29, %v1328_v55 }
 0x206   :  { %v762_v11 = vpop.f32.mrf.mxu0  ;;  %v791_v61 = vpop.f32.mrf.mxu1  ;;  %v1359_v4 = vsel %vm131_vm1, %v1340_v49, 0 }
 0x207   :  { %v11143_v16 = vadd.f32 %v762_v11, %v477_v45  ;;  %v11145_v44 = vadd.f32 %v791_v61, %v506_v23  ;;  %v1368_v23 = vsel %vm131_vm1, %v1343_v62, 0  ;;  %v1341_v11 = vsel %vm1339_vm5, %v1328_v55, %v1330_v25  ;;  %v11176_v62 = vpop.permute.xlu0 %1335  ;;  %1386 = vmatpush.bf16.msrb.mxu0 %v1359_v4 }
 0x208   :  { %8654 = vmatmul.msk.bf16.vlgmr.msra.gmra.mxu2 %vm118_vm2, %v10981_v3  ;;  %8658 = vmatmul.msk.bf16.vlgmr.msra.gmra.mxu3 %vm118_vm2, %v10981_v3  ;;  %v1362_v25 = vsel %vm131_vm1, %v1341_v11, 0 }
 0x209   :  { %8646 = vmatmul.msk.bf16.vlgmr.msra.gmra.mxu0 %vm118_vm2, %v10981_v3  ;;  %8650 = vmatmul.msk.bf16.vlgmr.msra.gmra.mxu1 %vm118_vm2, %v10981_v3  ;;  %v479_v3 = vadd.f32 %v10885_v34, %v10632_v12  ;;  %v1344_v12 = vsel %vm1339_vm5, %v1334_v21, %v11176_v62  ;;  %v566_v34 = vadd.f32 %v11002_v30, %v10746_v6 }
 0x20a   :  { %1473 = vmatpush.bf16.msrb.mxu3 %v1368_v23  ;;  %1415 = vmatpush.bf16.msrb.mxu1 %v1362_v25  ;;  %v1371_v13 = vsel %vm131_vm1, %v1344_v12, 0  ;;  %v511_v21 = vadd.f32 %v10912_v37, %v10652_v26 }
 0x20b   :  { %v820_v46 = vpop.f32.mrf.mxu2  ;;  %v849_v39 = vpop.f32.mrf.mxu3  ;;  %1502 = vmatpush.bf16.msra.mxu0 %v1371_v13 }
 0x20c   :  { %v11161_v61 = vadd.f32 %v820_v46, %v10880_v38  ;;  %v11163_v17 = vadd.f32 %v849_v39, %v564_v41  ;;  %v482_v41 = vadd.f32 %v10902_v2, %v10650_v24  ;;  %v17912_v24 = vld [vmem:[#allocation21_spill] sm:$0xff] }
 0x20d   :  { %v569_v26 = vadd.f32 %v11024_v42, %v17912_v24  ;;  %v17918_v42 = vld [vmem:[#allocation23_spill] sm:$0xff]  ;;  %v17921_v24 = vld [vmem:[#allocation37_spill] sm:$0xff] }
 0x20e   :  { %v764_v51 = vpop.f32.mrf.mxu0  ;;  %v793_v40 = vpop.f32.mrf.mxu1 }
 0x20f   :  { %v11172_v45 = vadd.f32 %v764_v51, %v479_v3  ;;  %v11174_v38 = vadd.f32 %v793_v40, %v508_v32  ;;  %v17914_v3 = vld [vmem:[#allocation9_spill] sm:$0xff]  ;;  %v17915_v32 = vld [vmem:[#allocation34_spill] sm:$0xff]  ;;  %v17917_v40 = vld [vmem:[#allocation35_spill] sm:$0xff] }
 0x210   :  { %v484_v49 = vadd.f32 %v17915_v32, %v17914_v3  ;;  %v17916_v51 = vld [vmem:[#allocation10_spill] sm:$0xff] }
 0x211   :  { %v513_v4 = vadd.f32 %v17917_v40, %v17916_v51 }
 0x213   :  { %v822_v48 = vpop.f32.mrf.mxu2  ;;  %v851_v55 = vpop.f32.mrf.mxu3 }
 0x214   :  { %v11185_v63 = vadd.f32 %v822_v48, %v10898_v7  ;;  %v11187_v23 = vadd.f32 %v851_v55, %v566_v34  ;;  %v17913_v7 = vld [vmem:[#allocation33_spill] sm:$0xff]  ;;  %v571_v34 = vadd.f32 %v11043_v35, %v17918_v42 }
 0x215   :  { %v17924_v35 = vld [vmem:[#allocation25_spill] sm:$0xff] }
 0x216   :  { %v767_v46 = vpop.f32.mrf.mxu0  ;;  %v796_v39 = vpop.f32.mrf.mxu1  ;;  %v574_v40 = vadd.f32 %v11059_v43, %v17924_v35  ;;  %v17931_v43 = vld [vmem:[#allocation27_spill] sm:$0xff] }
 0x217   :  { %v11193_v11 = vadd.f32 %v767_v46, %v482_v41  ;;  %v11195_v29 = vadd.f32 %v796_v39, %v511_v21  ;;  %v17919_v41 = vld [vmem:[#allocation36_spill] sm:$0xff]  ;;  %v17920_v39 = vld [vmem:[#allocation11_spill] sm:$0xff] }
 0x218   :  { %8655 = vmatmul.msk.bf16.gmra.mxu2 %vm118_vm2, %v11022_v31  ;;  %8659 = vmatmul.msk.bf16.gmra.mxu3 %vm118_vm2, %v11022_v31 }
 0x219   :  { %8647 = vmatmul.msk.bf16.gmra.mxu0 %vm118_vm2, %v11022_v31  ;;  %8651 = vmatmul.msk.bf16.gmra.mxu1 %vm118_vm2, %v11022_v31 }
 0x21b   :  { %v825_v30 = vpop.f32.mrf.mxu2  ;;  %v854_v6 = vpop.f32.mrf.mxu3 }
 0x21c   :  { %v11208_v2 = vadd.f32 %v825_v30, %v17913_v7  ;;  %v11210_v37 = vadd.f32 %v854_v6, %v569_v26  ;;  %v487_v26 = vadd.f32 %v17921_v24, %v17920_v39  ;;  %v17922_v30 = vld [vmem:[#allocation12_spill] sm:$0xff]  ;;  %v17923_v6 = vld [vmem:[#allocation38_spill] sm:$0xff]  ;;  %v17930_v24 = vld [vmem:[#allocation41_spill] sm:$0xff] }
 0x21d   :  { %v516_v7 = vadd.f32 %v17923_v6, %v17922_v30  ;;  %v17929_v39 = vld [vmem:[#allocation14_spill] sm:$0xff] }
 0x21e   :  { %v769_v25 = vpop.f32.mrf.mxu0  ;;  %v798_v12 = vpop.f32.mrf.mxu1 }
 0x21f   :  { %v11216_v13 = vadd.f32 %v769_v25, %v484_v49  ;;  %v11218_v31 = vadd.f32 %v798_v12, %v513_v4  ;;  %v17925_v12 = vld [vmem:[#allocation39_spill] sm:$0xff] }
 0x223   :  { %v827_v48 = vpop.f32.mrf.mxu2  ;;  %v856_v55 = vpop.f32.mrf.mxu3 }
 0x224   :  { %v11223_v21 = vadd.f32 %v827_v48, %v17919_v41  ;;  %v11225_v46 = vadd.f32 %v856_v55, %v571_v34  ;;  %v17927_v48 = vld [vmem:[#allocation13_spill] sm:$0xff]  ;;  %v17928_v55 = vld [vmem:[#allocation40_spill] sm:$0xff] }
 0x225   :  { %v489_v41 = vadd.f32 %v17928_v55, %v17927_v48  ;;  %v17936_v48 = vld [vmem:[#allocation43_spill] sm:$0xff] }
 0x226   :  { %v772_v3 = vpop.f32.mrf.mxu0  ;;  %v801_v32 = vpop.f32.mrf.mxu1 }
 0x227   :  { %v11231_v49 = vadd.f32 %v772_v3, %v487_v26  ;;  %v11233_v51 = vadd.f32 %v801_v32, %v516_v7  ;;  %v518_v26 = vadd.f32 %v17930_v24, %v17929_v39  ;;  %v576_v3 = vadd.f32 %v11082_v56, %v17931_v43  ;;  %v17937_v39 = vld [vmem:[#allocation16_spill] sm:$0xff]  ;;  %v17940_v56 = vld [vmem:[#allocation29_spill] sm:$0xff] }
 0x228   :  { %8656 = vmatmul.msk.bf16.gmra.mxu2 %vm118_vm2, %v11057_v54  ;;  %8660 = vmatmul.msk.bf16.gmra.mxu3 %vm118_vm2, %v11057_v54  ;;  %v17938_v24 = vld [vmem:[#allocation44_spill] sm:$0xff]  ;;  %v579_v43 = vadd.f32 %v11104_v8, %v17940_v56  ;;  %v1338_v8 = vpop.permute.xlu2 %1337  ;;  %v17947_v56 = vld [vmem:[#allocation31_spill] sm:$0xff] }
 0x229   :  { %8648 = vmatmul.msk.bf16.gmra.mxu0 %vm118_vm2, %v11057_v54  ;;  %8652 = vmatmul.msk.bf16.gmra.mxu1 %vm118_vm2, %v11057_v54 }
 0x22b   :  { %v830_v4 = vpop.f32.mrf.mxu2  ;;  %v859_v25 = vpop.f32.mrf.mxu3 }
 0x22c   :  { %v11246_v42 = vadd.f32 %v830_v4, %v17925_v12  ;;  %v11248_v34 = vadd.f32 %v859_v25, %v574_v40  ;;  %v17932_v4 = vld [vmem:[#allocation42_spill] sm:$0xff]  ;;  %v17935_v12 = vld [vmem:[#allocation15_spill] sm:$0xff] }
 0x22d   :  { %v492_v55 = vadd.f32 %v17936_v48, %v17935_v12  ;;  %v17943_v12 = vld [vmem:[#allocation17_spill] sm:$0xff]  ;;  %v17944_v48 = vld [vmem:[#allocation46_spill] sm:$0xff] }
 0x22e   :  { %17926 = vst [vmem:[#allocation21_spill] sm:$0xff] %v11248_v34  ;;  %v774_v30 = vpop.f32.mrf.mxu0  ;;  %v803_v6 = vpop.f32.mrf.mxu1  ;;  %v521_v34 = vadd.f32 %v17938_v24, %v17937_v39  ;;  %v17945_v39 = vld [vmem:[#allocation18_spill] sm:$0xff]  ;;  %v17946_v24 = vld [vmem:[#allocation47_spill] sm:$0xff] }
 0x22f   :  { %v11254_v7 = vadd.f32 %v774_v30, %v489_v41  ;;  %v11256_v54 = vadd.f32 %v803_v6, %v518_v26 }
 0x233   :  { %v832_v32 = vpop.f32.mrf.mxu2  ;;  %v861_v35 = vpop.f32.mrf.mxu3 }
 0x234   :  { %v11261_v40 = vadd.f32 %v832_v32, %v17932_v4  ;;  %v11263_v25 = vadd.f32 %v861_v35, %v576_v3  ;;  %v17941_v35 = vld [vmem:[#allocation45_spill] sm:$0xff] }
 0x236   :  { %17933 = vst [vmem:[#allocation33_spill] sm:$0xff] %v11261_v40  ;;  %v777_v41 = vpop.f32.mrf.mxu0  ;;  %v806_v30 = vpop.f32.mrf.mxu1  ;;  %v581_v40 = vadd.f32 %v11127_v57, %v17947_v56  ;;  %v1345_v57 = vsel %vm1339_vm5, %v11176_v62, %v1338_v8  ;;  %v1377_v62 = vsel %vm131_vm1, %v1338_v8, 0 }
 0x237   :  { %17934 = vst [vmem:[#allocation9_spill] sm:$0xff] %v11263_v25  ;;  %v11269_v26 = vadd.f32 %v777_v41, %v492_v55  ;;  %v11271_v6 = vadd.f32 %v806_v30, %v521_v34  ;;  %v494_v55 = vadd.f32 %v17944_v48, %v17943_v12  ;;  %v523_v41 = vadd.f32 %v17946_v24, %v17945_v39  ;;  %v11306_v12 = vld [vmem:[%s17730_s1 + $0x80] sm:$0xff]  ;;  %v17949_v48 = vld [vmem:[#allocation19_spill] sm:$0xff] }
 0x238   :  { %8657 = vmatmul.msk.bf16.gmra.mxu2 %vm118_vm2, %v11098_v28  ;;  %8661 = vmatmul.msk.bf16.gmra.mxu3 %vm118_vm2, %v11098_v28  ;;  %v1374_v56 = vsel %vm131_vm1, %v1345_v57, 0 }
 0x239   :  { %17939 = vst [vmem:[#allocation34_spill] sm:$0xff] %v11271_v6  ;;  %8649 = vmatmul.msk.bf16.gmra.mxu0 %vm118_vm2, %v11098_v28  ;;  %8653 = vmatmul.msk.bf16.gmra.mxu1 %vm118_vm2, %v11098_v28 }
 0x23a   :  { %1560 = vmatpush.bf16.msra.mxu2 %v1377_v62  ;;  %1531 = vmatpush.bf16.msra.mxu1 %v1374_v56  ;;  %v1668_v62 = vpop.permute.xlu1 %1667 }
 0x23b   :  { %v835_v3 = vpop.f32.mrf.mxu2  ;;  %v864_v32 = vpop.f32.mrf.mxu3 }
 0x23c   :  { %v11284_v34 = vadd.f32 %v835_v3, %v17941_v35  ;;  %v11286_v4 = vadd.f32 %v864_v32, %v579_v43  ;;  %v17948_v43 = vld [vmem:[#allocation48_spill] sm:$0xff] }
 0x23e   :  { %17942 = vst [vmem:[#allocation10_spill] sm:$0xff] %v11286_v4  ;;  %v779_v30 = vpop.f32.mrf.mxu0  ;;  %v808_v6 = vpop.f32.mrf.mxu1 }
 0x23f   :  { %v11292_v25 = vadd.f32 %v779_v30, %v494_v55  ;;  %v11294_v28 = vadd.f32 %v808_v6, %v523_v41  ;;  %v17950_v55 = vld [vmem:[#allocation49_spill] sm:$0xff] }
 0x240   :  { %v593_v6 = vadd.f32 %v17950_v55, %v17949_v48  ;;  %v17952_v48 = vld [vmem:[#allocation20_spill] sm:$0xff]  ;;  %v17953_v55 = vld [vmem:[#allocation50_spill] sm:$0xff] }
 0x243   :  { %v837_v3 = vpop.f32.mrf.mxu2  ;;  %v866_v35 = vpop.f32.mrf.mxu3 }
 0x244   :  { %v11299_v32 = vadd.f32 %v837_v3, %v17948_v43  ;;  %v11301_v4 = vadd.f32 %v866_v35, %v581_v40  ;;  %v1670_v40 = vpop.permute.xlu2 %1669 }
 0x246   :  { %v878_v39 = vpop.f32.mrf.mxu0  ;;  %v1046_v24 = vpop.f32.mrf.mxu1 }
 0x247   :  { %v11312_v41 = vadd.f32 %v878_v39, %v593_v6  ;;  %v11315_v30 = vadd.f32 %v1046_v24, %v10998_v53  ;;  %v595_v6 = vadd.f32 %v17953_v55, %v17952_v48 }
 0x248   :  { %8694 = vmatmul.msk.bf16.vlgmr.msrb.gmra.mxu2 %vm118_vm2, %v11306_v12  ;;  %8698 = vmatmul.msk.bf16.vlgmr.msrb.gmra.mxu3 %vm118_vm2, %v11306_v12 }
 0x249   :  { %17951 = vst [vmem:[#allocation35_spill] sm:$0xff] %v11315_v30  ;;  %8686 = vmatmul.msk.bf16.vlgmr.msrb.gmra.mxu0 %vm118_vm2, %v11306_v12  ;;  %8690 = vmatmul.msk.bf16.vlgmr.msrb.gmra.mxu1 %vm118_vm2, %v11306_v12 }
 0x24b   :  { %v1075_v53 = vpop.f32.mrf.mxu2  ;;  %v1104_v3 = vpop.f32.mrf.mxu3 }
 0x24c   :  { %v11328_v35 = vadd.f32 %v1075_v53, %v11000_v52  ;;  %v11331_v43 = vadd.f32 %v1104_v3, %v11143_v16  ;;  %v11340_v57 = vpop.permute.xlu2 %1671  ;;  %v1682_v16 = vsel %vm1681_vm6, %v1668_v62, %v1670_v40 }
 0x24d   :  { %v1683_v52 = vsel %vm1681_vm6, %v1670_v40, %v11340_v57  ;;  %v1701_v56 = vsel %vm131_vm1, %v1682_v16, 0  ;;  %v17954_v40 = vld [vmem:[#allocation22_spill] sm:$0xff] }
 0x24e   :  { %v880_v39 = vpop.f32.mrf.mxu0  ;;  %v1048_v24 = vpop.f32.mrf.mxu1  ;;  %v1704_v53 = vsel %vm131_vm1, %v1683_v52, 0  ;;  %1728 = vmatpush.bf16.msra.mxu3 %v1701_v56  ;;  %v17956_v56 = vld [vmem:[#allocation24_spill] sm:$0xff] }
 0x24f   :  { %v11335_v30 = vadd.f32 %v880_v39, %v595_v6  ;;  %v11338_v8 = vadd.f32 %v1048_v24, %v11015_v10  ;;  %1757 = vmatpush.bf16.msrb.mxu0 %v1704_v53  ;;  %v11356_v6 = vld [vmem:[%s17730_s1 + $0x88] sm:$0xff]  ;;  %v598_v39 = vadd.f32 %v11026_v50, %v17954_v40  ;;  %v600_v53 = vadd.f32 %v11045_v5, %v17956_v56  ;;  %v17957_v5 = vld [vmem:[#allocation26_spill] sm:$0xff] }
 0x253   :  { %v1077_v3 = vpop.f32.mrf.mxu2  ;;  %v1106_v48 = vpop.f32.mrf.mxu3 }
 0x254   :  { %v11348_v10 = vadd.f32 %v1077_v3, %v11017_v58  ;;  %v11351_v55 = vadd.f32 %v1106_v48, %v11172_v45 }
 0x256   :  { %v883_v24 = vpop.f32.mrf.mxu0  ;;  %v1051_v62 = vpop.f32.mrf.mxu1 }
 0x257   :  { %v11360_v52 = vadd.f32 %v883_v24, %v598_v39  ;;  %v11363_v16 = vadd.f32 %v1051_v62, %v11039_v47 }
 0x258   :  { %8695 = vmatmul.msk.bf16.gmra.mxu2 %vm118_vm2, %v11356_v6  ;;  %8699 = vmatmul.msk.bf16.gmra.mxu3 %vm118_vm2, %v11356_v6 }
 0x259   :  { %17955 = vst [vmem:[#allocation23_spill] sm:$0xff] %v11363_v16  ;;  %8687 = vmatmul.msk.bf16.gmra.mxu0 %vm118_vm2, %v11356_v6  ;;  %8691 = vmatmul.msk.bf16.gmra.mxu1 %vm118_vm2, %v11356_v6 }
 0x25b   :  { %v1080_v58 = vpop.f32.mrf.mxu2  ;;  %v1109_v50 = vpop.f32.mrf.mxu3 }
 0x25c   :  { %v11374_v45 = vadd.f32 %v1080_v58, %v11041_v60  ;;  %v11377_v47 = vadd.f32 %v1109_v50, %v11193_v11  ;;  %v11395_v11 = vld [vmem:[%s17730_s1 + $0x90] sm:$0xff]  ;;  %v603_v58 = vadd.f32 %v11061_v1, %v17957_v5 }
 0x25e   :  { %v885_v3 = vpop.f32.mrf.mxu0  ;;  %v1053_v48 = vpop.f32.mrf.mxu1 }
 0x25f   :  { %v11381_v40 = vadd.f32 %v885_v3, %v600_v53  ;;  %v11384_v39 = vadd.f32 %v1053_v48, %v11050_v27  ;;  %v17958_v3 = vld [vmem:[#allocation28_spill] sm:$0xff] }
 0x260   :  { %v605_v48 = vadd.f32 %v11084_v59, %v17958_v3  ;;  %v17963_v3 = vld [vmem:[#allocation5_spill] sm:$0xff] }
 0x261   :  { %2362 = vrot.lane.b32.xlu1 %v17963_v3, %s10374_s23 }
 0x263   :  { %v1082_v24 = vpop.f32.mrf.mxu2  ;;  %v1111_v62 = vpop.f32.mrf.mxu3 }
 0x264   :  { %v11387_v16 = vadd.f32 %v1082_v24, %v11052_v19  ;;  %v11390_v60 = vadd.f32 %v1111_v62, %v11216_v13 }
 0x266   :  { %v888_v50 = vpop.f32.mrf.mxu0  ;;  %v1056_v56 = vpop.f32.mrf.mxu1 }
 0x267   :  { %v11399_v27 = vadd.f32 %v888_v50, %v603_v58  ;;  %v11402_v53 = vadd.f32 %v1056_v56, %v11074_v20  ;;  %v11438_v56 = vld [vmem:[%s17730_s1 + $0x98] sm:$0xff] }
 0x268   :  { %8696 = vmatmul.msk.bf16.gmra.mxu2 %vm118_vm2, %v11395_v11  ;;  %8700 = vmatmul.msk.bf16.gmra.mxu3 %vm118_vm2, %v11395_v11 }
 0x269   :  { %8688 = vmatmul.msk.bf16.gmra.mxu0 %vm118_vm2, %v11395_v11  ;;  %8692 = vmatmul.msk.bf16.gmra.mxu1 %vm118_vm2, %v11395_v11 }
 0x26b   :  { %v1085_v19 = vpop.f32.mrf.mxu2  ;;  %v1114_v1 = vpop.f32.mrf.mxu3 }
 0x26c   :  { %v11413_v13 = vadd.f32 %v1085_v19, %v11076_v9  ;;  %v11416_v20 = vadd.f32 %v1114_v1, %v11231_v49  ;;  %v17962_v19 = vld [vmem:[#allocation30_spill] sm:$0xff] }
 0x26d   :  { %v608_v1 = vadd.f32 %v11106_v36, %v17962_v19 }
 0x26e   :  { %v890_v24 = vpop.f32.mrf.mxu0  ;;  %v1058_v62 = vpop.f32.mrf.mxu1 }
 0x26f   :  { %v11424_v5 = vadd.f32 %v890_v24, %v605_v48  ;;  %v11427_v9 = vadd.f32 %v1058_v62, %v11091_v33  ;;  %v17964_v33 = vld [vmem:[#allocation3_spill] sm:$0xff] }
 0x270   :  { %2356 = vrot.lane.b32.xlu0 %v17964_v33, %s10374_s23 }
 0x271   :  { %17959 = vst [vmem:[#allocation36_spill] sm:$0xff] %v11427_v9 }
 0x273   :  { %v1087_v58 = vpop.f32.mrf.mxu2  ;;  %v1116_v49 = vpop.f32.mrf.mxu3 }
 0x274   :  { %v11430_v50 = vadd.f32 %v1087_v58, %v11093_v18  ;;  %v11433_v59 = vadd.f32 %v1116_v49, %v11254_v7  ;;  %v17965_v7 = vld [vmem:[#allocation51_spill] sm:$0xff]  ;;  %v17967_v49 = vld [vmem:[#allocation52_spill] sm:$0xff] }
 0x276   :  { %17960 = vst [vmem:[#allocation11_spill] sm:$0xff] %v11430_v50  ;;  %v893_v48 = vpop.f32.mrf.mxu0  ;;  %v1061_v18 = vpop.f32.mrf.mxu1 }
 0x277   :  { %17961 = vst [vmem:[#allocation37_spill] sm:$0xff] %v11433_v59  ;;  %v11446_v24 = vadd.f32 %v893_v48, %v608_v1  ;;  %v11449_v62 = vadd.f32 %v1061_v18, %v17965_v7  ;;  %v17969_v48 = vld [vmem:[#allocation32_spill] sm:$0xff]  ;;  %v17970_v18 = vld [vmem:[#allocation53_spill] sm:$0xff] }
 0x278   :  { %8697 = vmatmul.msk.bf16.gmra.mxu2 %vm118_vm2, %v11438_v56  ;;  %8701 = vmatmul.msk.bf16.gmra.mxu3 %vm118_vm2, %v11438_v56  ;;  %v610_v7 = vadd.f32 %v17970_v18, %v17969_v48  ;;  %v11485_v18 = vld [vmem:[%s17730_s1 + $0xa0] sm:$0xff] }
 0x279   :  { %17966 = vst [vmem:[#allocation12_spill] sm:$0xff] %v11449_v62  ;;  %8689 = vmatmul.msk.bf16.gmra.mxu0 %vm118_vm2, %v11438_v56  ;;  %8693 = vmatmul.msk.bf16.gmra.mxu1 %vm118_vm2, %v11438_v56  ;;  %v17971_v62 = vld [vmem:[#allocation4_spill] sm:$0xff] }
 0x27a   :  { %2364 = vrot.lane.b32.xlu1 %v17971_v62, %s10374_s23  ;;  %2368 = vrot.lane.b32.xlu0 %v17972_v22, %s10374_s23 }
 0x27b   :  { %v1090_v36 = vpop.f32.mrf.mxu2  ;;  %v1119_v58 = vpop.f32.mrf.mxu3 }
 0x27c   :  { %v11460_v19 = vadd.f32 %v1090_v36, %v17967_v49  ;;  %v11463_v1 = vadd.f32 %v1119_v58, %v11269_v26  ;;  %v1674_v36 = vpop.permute.xlu0 %1673 }
 0x27e   :  { %17968 = vst [vmem:[#allocation38_spill] sm:$0xff] %v11463_v1  ;;  %v895_v59 = vpop.f32.mrf.mxu0  ;;  %v1063_v50 = vpop.f32.mrf.mxu1 }
 0x27f   :  { %v11471_v9 = vadd.f32 %v895_v59, %v610_v7  ;;  %v11474_v33 = vadd.f32 %v1063_v50, %v11134_v0  ;;  %v1684_v0 = vsel %vm1681_vm6, %v11340_v57, %v1674_v36 }
 0x283   :  { %v1092_v49 = vpop.f32.mrf.mxu2  ;;  %v1121_v26 = vpop.f32.mrf.mxu3 }
 0x284   :  { %v11477_v58 = vadd.f32 %v1092_v49, %v11136_v14  ;;  %v11480_v48 = vadd.f32 %v1121_v26, %v11292_v25  ;;  %v1678_v14 = vpop.permute.xlu0 %1677  ;;  %v1676_v49 = vpop.permute.xlu1 %1675 }
 0x285   :  { %v1685_v25 = vsel %vm1681_vm6, %v1674_v36, %v1676_v49  ;;  %v1686_v36 = vsel %vm1681_vm6, %v1676_v49, %v1678_v14 }
 0x286   :  { %17973 = vst [vmem:[#allocation25_spill] sm:$0xff] %v11480_v48  ;;  %v1133_v1 = vpop.f32.mrf.mxu0  ;;  %v1162_v59 = vpop.f32.mrf.mxu1 }
 0x287   :  { %v11490_v50 = vadd.f32 %v1133_v1, %v11145_v44  ;;  %v11493_v7 = vadd.f32 %v1162_v59, %v11161_v61  ;;  %v1707_v44 = vsel %vm131_vm1, %v1684_v0, 0  ;;  %v1710_v61 = vsel %vm131_vm1, %v1685_v25, 0 }
 0x288   :  { %8710 = vmatmul.msk.bf16.vlgmr.msra.gmra.mxu2 %vm118_vm2, %v11306_v12  ;;  %8738 = vmatmul.msk.bf16.vlgmr.msra.gmra.mxu3 %vm118_vm2, %v11485_v18 }
 0x289   :  { %17974 = vst [vmem:[#allocation39_spill] sm:$0xff] %v11493_v7  ;;  %8702 = vmatmul.msk.bf16.vlgmr.msra.gmra.mxu0 %vm118_vm2, %v11306_v12  ;;  %8706 = vmatmul.msk.bf16.vlgmr.msra.gmra.mxu1 %vm118_vm2, %v11306_v12 }
 0x28a   :  { %1786 = vmatpush.bf16.msrb.mxu1 %v1707_v44  ;;  %1815 = vmatpush.bf16.msrb.mxu2 %v1710_v61  ;;  %v1713_v44 = vsel %vm131_vm1, %v1686_v36, 0 }
 0x28b   :  { %v1191_v57 = vpop.f32.mrf.mxu2  ;;  %v1220_v1 = vpop.f32.mrf.mxu3  ;;  %1844 = vmatpush.bf16.msrb.mxu3 %v1713_v44 }
 0x28c   :  { %v11507_v26 = vadd.f32 %v1191_v57, %v11163_v17  ;;  %v11510_v59 = vadd.f32 %v1220_v1, %v11312_v41  ;;  %v11519_v25 = vpop.permute.xlu0 %1679 }
 0x28d   :  { %v1687_v17 = vsel %vm1681_vm6, %v1678_v14, %v11519_v25 }
 0x28e   :  { %v1135_v7 = vpop.f32.mrf.mxu0  ;;  %v1164_v48 = vpop.f32.mrf.mxu1  ;;  %v1716_v41 = vsel %vm131_vm1, %v1687_v17, 0 }
 0x28f   :  { %v11514_v12 = vadd.f32 %v1135_v7, %v11174_v38  ;;  %v11517_v0 = vadd.f32 %v1164_v48, %v11185_v63  ;;  %1873 = vmatpush.bf16.msra.mxu0 %v1716_v41  ;;  %v11534_v63 = vld [vmem:[%s17730_s1 + $0xa8] sm:$0xff] }
 0x293   :  { %v1193_v49 = vpop.f32.mrf.mxu2  ;;  %v1222_v61 = vpop.f32.mrf.mxu3 }
 0x294   :  { %v11526_v57 = vadd.f32 %v1193_v49, %v11187_v23  ;;  %v11529_v38 = vadd.f32 %v1222_v61, %v11335_v30 }
 0x296   :  { %v1138_v48 = vpop.f32.mrf.mxu0  ;;  %v1167_v7 = vpop.f32.mrf.mxu1 }
 0x297   :  { %v11537_v14 = vadd.f32 %v1138_v48, %v11195_v29  ;;  %v11540_v1 = vadd.f32 %v1167_v7, %v11208_v2 }
 0x298   :  { %8711 = vmatmul.msk.bf16.gmra.mxu2 %vm118_vm2, %v11356_v6  ;;  %8739 = vmatmul.msk.bf16.gmra.mxu3 %vm118_vm2, %v11534_v63 }
 0x299   :  { %8703 = vmatmul.msk.bf16.gmra.mxu0 %vm118_vm2, %v11356_v6  ;;  %8707 = vmatmul.msk.bf16.gmra.mxu1 %vm118_vm2, %v11356_v6 }
 0x29b   :  { %v1196_v23 = vpop.f32.mrf.mxu2  ;;  %v1225_v30 = vpop.f32.mrf.mxu3 }
 0x29c   :  { %v11551_v29 = vadd.f32 %v1196_v23, %v11210_v37  ;;  %v11554_v2 = vadd.f32 %v1225_v30, %v11360_v52  ;;  %v11571_v37 = vld [vmem:[%s17730_s1 + $0xb0] sm:$0xff]  ;;  %v17977_v23 = vld [vmem:[#allocation21_spill] sm:$0xff] }
 0x29e   :  { %v1140_v36 = vpop.f32.mrf.mxu0  ;;  %v1169_v44 = vpop.f32.mrf.mxu1 }
 0x29f   :  { %v11557_v17 = vadd.f32 %v1140_v36, %v11218_v31  ;;  %v11560_v41 = vadd.f32 %v1169_v44, %v11223_v21 }
 0x2a3   :  { %v1198_v49 = vpop.f32.mrf.mxu2  ;;  %v1227_v61 = vpop.f32.mrf.mxu3 }
 0x2a4   :  { %v11563_v6 = vadd.f32 %v1198_v49, %v11225_v46  ;;  %v11566_v48 = vadd.f32 %v1227_v61, %v11381_v40  ;;  %v17978_v49 = vld [vmem:[#allocation33_spill] sm:$0xff] }
 0x2a6   :  { %17975 = vst [vmem:[#allocation13_spill] sm:$0xff] %v11566_v48  ;;  %v1143_v52 = vpop.f32.mrf.mxu0  ;;  %v1172_v7 = vpop.f32.mrf.mxu1 }
 0x2a7   :  { %v11574_v31 = vadd.f32 %v1143_v52, %v11233_v51  ;;  %v11577_v21 = vadd.f32 %v1172_v7, %v11246_v42 }
 0x2a8   :  { %8712 = vmatmul.msk.bf16.gmra.mxu2 %vm118_vm2, %v11395_v11  ;;  %8740 = vmatmul.msk.bf16.gmra.mxu3 %vm118_vm2, %v11571_v37 }
 0x2a9   :  { %17976 = vst [vmem:[#allocation40_spill] sm:$0xff] %v11577_v21  ;;  %8704 = vmatmul.msk.bf16.gmra.mxu0 %vm118_vm2, %v11395_v11  ;;  %8708 = vmatmul.msk.bf16.gmra.mxu1 %vm118_vm2, %v11395_v11  ;;  %v17979_v21 = vld [vmem:[#allocation9_spill] sm:$0xff] }
 0x2ab   :  { %v1201_v46 = vpop.f32.mrf.mxu2  ;;  %v1230_v40 = vpop.f32.mrf.mxu3 }
 0x2ac   :  { %v11588_v51 = vadd.f32 %v1201_v46, %v17977_v23  ;;  %v11591_v42 = vadd.f32 %v1230_v40, %v11399_v27  ;;  %v11608_v27 = vld [vmem:[%s17730_s1 + $0xb8] sm:$0xff]  ;;  %v17982_v46 = vld [vmem:[#allocation2_spill] sm:$0xff] }
 0x2ad   :  { %v2009_v40 = vunpack.c.h.b16 %v17982_v46 }
 0x2ae   :  { %v1145_v30 = vpop.f32.mrf.mxu0  ;;  %v1174_v36 = vpop.f32.mrf.mxu1 }
 0x2af   :  { %v11594_v44 = vadd.f32 %v1145_v30, %v11256_v54  ;;  %v11597_v61 = vadd.f32 %v1174_v36, %v17978_v49  ;;  %v11611_v30 = vpack.c.b16 %v2009_v40, %v2009_v40  ;;  %v17983_v36 = vld [vmem:[#allocation34_spill] sm:$0xff] }
 0x2b1   :  { %2025 = vrot.lane.b32.xlu2 %v11611_v30, %s10373_s13  ;;  %s10375_s13 = smov 66  }
 0x2b2   :  { %2707 = vrot.lane.b32.xlu1 %v17963_v3, %s10375_s13  ;;  %2705 = vrot.lane.b32.xlu0 %v10453_v15, %s10375_s13  ;;  %v17997_v15 = vld [vmem:[#allocation6_spill] sm:$0xff] }
 0x2b3   :  { %v1203_v52 = vpop.f32.mrf.mxu2  ;;  %v1232_v7 = vpop.f32.mrf.mxu3 }
 0x2b4   :  { %v11600_v11 = vadd.f32 %v1203_v52, %v17979_v21  ;;  %v11603_v48 = vadd.f32 %v1232_v7, %v11424_v5  ;;  %v17985_v7 = vld [vmem:[#allocation10_spill] sm:$0xff] }
 0x2b6   :  { %17980 = vst [vmem:[#allocation14_spill] sm:$0xff] %v11600_v11  ;;  %v1148_v54 = vpop.f32.mrf.mxu0  ;;  %v1177_v23 = vpop.f32.mrf.mxu1 }
 0x2b7   :  { %17981 = vst [vmem:[#allocation41_spill] sm:$0xff] %v11603_v48  ;;  %v11614_v49 = vadd.f32 %v1148_v54, %v17983_v36  ;;  %v11617_v21 = vadd.f32 %v1177_v23, %v11284_v34 }
 0x2b8   :  { %8713 = vmatmul.msk.bf16.gmra.mxu2 %vm118_vm2, %v11438_v56  ;;  %8741 = vmatmul.msk.bf16.gmra.mxu3 %vm118_vm2, %v11608_v27 }
 0x2b9   :  { %17984 = vst [vmem:[#allocation27_spill] sm:$0xff] %v11617_v21  ;;  %8705 = vmatmul.msk.bf16.gmra.mxu0 %vm118_vm2, %v11438_v56  ;;  %8709 = vmatmul.msk.bf16.gmra.mxu1 %vm118_vm2, %v11438_v56  ;;  %v2012_v56 = vpop.permute.xlu1 %2011  ;;  %v17987_v21 = vld [vmem:[#allocation8_spill] sm:$0xff] }
 0x2ba   :  { %2366 = vrot.lane.b32.xlu2 %v17987_v21, %s10374_s23  ;;  %2709 = vrot.lane.b32.xlu1 %v17971_v62, %s10375_s13 }
 0x2bb   :  { %v1206_v5 = vpop.f32.mrf.mxu2  ;;  %v1235_v52 = vpop.f32.mrf.mxu3  ;;  %2703 = vrot.lane.b32.xlu0 %v17997_v15, %s10375_s13 }
 0x2bc   :  { %v11630_v34 = vadd.f32 %v1206_v5, %v17985_v7  ;;  %v11633_v46 = vadd.f32 %v1235_v52, %v11446_v24 }
 0x2be   :  { %17986 = vst [vmem:[#allocation42_spill] sm:$0xff] %v11633_v46  ;;  %v1150_v40 = vpop.f32.mrf.mxu0  ;;  %v1179_v54 = vpop.f32.mrf.mxu1  ;;  %v17989_v46 = vld [vmem:[#allocation35_spill] sm:$0xff] }
 0x2bf   :  { %v11636_v23 = vadd.f32 %v1150_v40, %v11294_v28  ;;  %v11639_v36 = vadd.f32 %v1179_v54, %v11299_v32  ;;  %v2014_v40 = vpop.permute.xlu2 %2013 }
 0x2c1   :  { %v2016_v54 = vpop.permute.xlu1 %2015 }
 0x2c2   :  { %2370 = vrot.lane.b32.xlu2 %v11611_v30, %s10374_s23  ;;  %2711 = vrot.lane.b32.xlu1 %v17987_v21, %s10375_s13 }
 0x2c3   :  { %v1208_v48 = vpop.f32.mrf.mxu2  ;;  %v1237_v11 = vpop.f32.mrf.mxu3  ;;  %2715 = vrot.lane.b32.xlu0 %v11611_v30, %s10375_s13  ;;  %v11801_v30 = vld [vmem:[%s17730_s1 + $0xc0] sm:$0xff] }
 0x2c4   :  { %v11644_v5 = vadd.f32 %v1208_v48, %v11301_v4  ;;  %v11647_v24 = vadd.f32 %v1237_v11, %v11471_v9  ;;  %v2028_v4 = vsel %vm2027_vm7, %v2012_v56, %v2014_v40  ;;  %v2029_v56 = vsel %vm2027_vm7, %v2014_v40, %v2016_v54 }
 0x2c6   :  { %17988 = vst [vmem:[#allocation15_spill] sm:$0xff] %v11647_v24  ;;  %v1388_v52 = vpop.f32.mrf.mxu0  ;;  %v1417_v7 = vpop.f32.mrf.mxu1  ;;  %v2051_v24 = vsel %vm131_vm1, %v2029_v56, 0 }
 0x2c7   :  { %v11650_v28 = vadd.f32 %v1388_v52, %v17989_v46  ;;  %v11653_v32 = vadd.f32 %v1417_v7, %v11328_v35  ;;  %v2048_v35 = vsel %vm131_vm1, %v2028_v4, 0  ;;  %2104 = vmatpush.bf16.msra.mxu3 %v2051_v24  ;;  %v1719_v24 = vsel %vm131_vm1, %v11519_v25, 0  ;;  %v2020_v15 = vpop.permute.xlu2 %2019 }
 0x2c8   :  { %8750 = vmatmul.msk.bf16.vlgmr.msrb.gmra.mxu2 %vm118_vm2, %v11485_v18  ;;  %8754 = vmatmul.msk.bf16.vlgmr.msrb.gmra.mxu3 %vm118_vm2, %v11485_v18 }
 0x2c9   :  { %17990 = vst [vmem:[#allocation43_spill] sm:$0xff] %v11653_v32  ;;  %8742 = vmatmul.msk.bf16.vlgmr.msrb.gmra.mxu0 %vm118_vm2, %v11485_v18  ;;  %8746 = vmatmul.msk.bf16.vlgmr.msrb.gmra.mxu1 %vm118_vm2, %v11485_v18 }
 0x2ca   :  { %2075 = vmatpush.bf16.msra.mxu2 %v2048_v35  ;;  %v11680_v35 = vpop.permute.xlu1 %2017  ;;  %1902 = vmatpush.bf16.msra.mxu1 %v1719_v24 }
 0x2cb   :  { %v1446_v9 = vpop.f32.mrf.mxu2  ;;  %v1475_v48 = vpop.f32.mrf.mxu3 }
 0x2cc   :  { %v11668_v11 = vadd.f32 %v1446_v9, %v11331_v43  ;;  %v11671_v46 = vadd.f32 %v1475_v48, %v11490_v50  ;;  %v2030_v43 = vsel %vm2027_vm7, %v2016_v54, %v11680_v35 }
 0x2cd   :  { %v2054_v50 = vsel %vm131_vm1, %v2030_v43, 0 }
 0x2ce   :  { %v1390_v52 = vpop.f32.mrf.mxu0  ;;  %v1419_v7 = vpop.f32.mrf.mxu1  ;;  %2133 = vmatpush.bf16.msrb.mxu0 %v2054_v50 }
 0x2cf   :  { %v11675_v32 = vadd.f32 %v1390_v52, %v11338_v8  ;;  %v11678_v4 = vadd.f32 %v1419_v7, %v11348_v10  ;;  %v17992_v7 = vld [vmem:[#allocation23_spill] sm:$0xff] }
 0x2d1   :  { %17991 = vst [vmem:[#allocation16_spill] sm:$0xff] %v11678_v4 }
 0x2d3   :  { %v1448_v40 = vpop.f32.mrf.mxu2  ;;  %v1477_v9 = vpop.f32.mrf.mxu3 }
 0x2d4   :  { %v11687_v48 = vadd.f32 %v1448_v40, %v11351_v55  ;;  %v11690_v8 = vadd.f32 %v1477_v9, %v11514_v12 }
 0x2d6   :  { %v1393_v10 = vpop.f32.mrf.mxu0  ;;  %v1422_v52 = vpop.f32.mrf.mxu1 }
 0x2d7   :  { %v11693_v4 = vadd.f32 %v1393_v10, %v17992_v7  ;;  %v11696_v56 = vadd.f32 %v1422_v52, %v11374_v45 }
 0x2d8   :  { %8751 = vmatmul.msk.bf16.gmra.mxu2 %vm118_vm2, %v11534_v63  ;;  %8755 = vmatmul.msk.bf16.gmra.mxu3 %vm118_vm2, %v11534_v63 }
 0x2d9   :  { %8743 = vmatmul.msk.bf16.gmra.mxu0 %vm118_vm2, %v11534_v63  ;;  %8747 = vmatmul.msk.bf16.gmra.mxu1 %vm118_vm2, %v11534_v63 }
 0x2db   :  { %v1451_v55 = vpop.f32.mrf.mxu2  ;;  %v1480_v12 = vpop.f32.mrf.mxu3 }
 0x2dc   :  { %v11709_v45 = vadd.f32 %v1451_v55, %v11377_v47  ;;  %v11712_v25 = vadd.f32 %v1480_v12, %v11537_v14  ;;  %v17993_v12 = vld [vmem:[#allocation3_spill] sm:$0xff] }
 0x2dd   :  { %2701 = vrot.lane.b32.xlu2 %v17993_v12, %s10375_s13 }
 0x2de   :  { %v1395_v54 = vpop.f32.mrf.mxu0  ;;  %v1424_v43 = vpop.f32.mrf.mxu1 }
 0x2df   :  { %v11715_v50 = vadd.f32 %v1395_v54, %v11384_v39  ;;  %v11718_v40 = vadd.f32 %v1424_v43, %v11387_v16  ;;  %v17994_v54 = vld [vmem:[#allocation36_spill] sm:$0xff] }
 0x2e3   :  { %v1453_v9 = vpop.f32.mrf.mxu2  ;;  %v1482_v10 = vpop.f32.mrf.mxu3 }
 0x2e4   :  { %v11721_v52 = vadd.f32 %v1453_v9, %v11390_v60  ;;  %v11724_v7 = vadd.f32 %v1482_v10, %v11557_v17  ;;  %v17995_v9 = vld [vmem:[#allocation11_spill] sm:$0xff] }
 0x2e5   :  { %2713 = vrot.lane.b32.xlu2 %v17972_v22, %s10375_s13 }
 0x2e6   :  { %v1398_v47 = vpop.f32.mrf.mxu0  ;;  %v1427_v24 = vpop.f32.mrf.mxu1 }
 0x2e7   :  { %v11727_v14 = vadd.f32 %v1398_v47, %v11402_v53  ;;  %v11730_v55 = vadd.f32 %v1427_v24, %v11413_v13  ;;  %v17996_v24 = vld [vmem:[#allocation37_spill] sm:$0xff] }
 0x2e8   :  { %8752 = vmatmul.msk.bf16.gmra.mxu2 %vm118_vm2, %v11571_v37  ;;  %8756 = vmatmul.msk.bf16.gmra.mxu3 %vm118_vm2, %v11571_v37 }
 0x2e9   :  { %8744 = vmatmul.msk.bf16.gmra.mxu0 %vm118_vm2, %v11571_v37  ;;  %8748 = vmatmul.msk.bf16.gmra.mxu1 %vm118_vm2, %v11571_v37 }
 0x2eb   :  { %v1456_v16 = vpop.f32.mrf.mxu2  ;;  %v1485_v39 = vpop.f32.mrf.mxu3 }
 0x2ec   :  { %v11741_v60 = vadd.f32 %v1456_v16, %v11416_v20  ;;  %v11744_v53 = vadd.f32 %v1485_v39, %v11574_v31 }
 0x2ee   :  { %v1400_v13 = vpop.f32.mrf.mxu0  ;;  %v1429_v17 = vpop.f32.mrf.mxu1 }
 0x2ef   :  { %v11750_v43 = vadd.f32 %v1400_v13, %v17994_v54  ;;  %v11753_v10 = vadd.f32 %v1429_v17, %v17995_v9  ;;  %v17998_v13 = vld [vmem:[#allocation12_spill] sm:$0xff] }
 0x2f3   :  { %v1458_v20 = vpop.f32.mrf.mxu2  ;;  %v1487_v47 = vpop.f32.mrf.mxu3 }
 0x2f4   :  { %v11756_v31 = vadd.f32 %v1458_v20, %v17996_v24  ;;  %v11759_v16 = vadd.f32 %v1487_v47, %v11594_v44  ;;  %v17999_v44 = vld [vmem:[#allocation38_spill] sm:$0xff] }
 0x2f6   :  { %v1403_v3 = vpop.f32.mrf.mxu0  ;;  %v1432_v39 = vpop.f32.mrf.mxu1 }
 0x2f7   :  { %v11765_v12 = vadd.f32 %v1403_v3, %v17998_v13  ;;  %v11768_v17 = vadd.f32 %v1432_v39, %v11460_v19  ;;  %v18000_v13 = vld [vmem:[#allocation25_spill] sm:$0xff] }
 0x2f8   :  { %8753 = vmatmul.msk.bf16.gmra.mxu2 %vm118_vm2, %v11608_v27  ;;  %8757 = vmatmul.msk.bf16.gmra.mxu3 %vm118_vm2, %v11608_v27 }
 0x2f9   :  { %8745 = vmatmul.msk.bf16.gmra.mxu0 %vm118_vm2, %v11608_v27  ;;  %8749 = vmatmul.msk.bf16.gmra.mxu1 %vm118_vm2, %v11608_v27 }
 0x2fb   :  { %v1461_v62 = vpop.f32.mrf.mxu2  ;;  %v1490_v22 = vpop.f32.mrf.mxu3 }
 0x2fc   :  { %v11779_v54 = vadd.f32 %v1461_v62, %v17999_v44  ;;  %v11782_v19 = vadd.f32 %v1490_v22, %v11614_v49  ;;  %v18001_v22 = vld [vmem:[#allocation39_spill] sm:$0xff] }
 0x2fe   :  { %v1405_v9 = vpop.f32.mrf.mxu0  ;;  %v1434_v20 = vpop.f32.mrf.mxu1 }
 0x2ff   :  { %v11787_v47 = vadd.f32 %v1405_v9, %v11474_v33  ;;  %v11790_v24 = vadd.f32 %v1434_v20, %v11477_v58  ;;  %v2031_v58 = vsel %vm2027_vm7, %v11680_v35, %v2020_v15  ;;  %v2022_v20 = vpop.permute.xlu0 %2021 }
 0x300   :  { %v2057_v35 = vsel %vm131_vm1, %v2031_v58, 0 }
 0x301   :  { %2162 = vmatpush.bf16.msrb.mxu1 %v2057_v35 }
 0x303   :  { %v1463_v3 = vpop.f32.mrf.mxu2  ;;  %v1492_v39 = vpop.f32.mrf.mxu3 }
 0x304   :  { %v11793_v62 = vadd.f32 %v1463_v3, %v18000_v13  ;;  %v11796_v49 = vadd.f32 %v1492_v39, %v11636_v23  ;;  %v2032_v23 = vsel %vm2027_vm7, %v2020_v15, %v2022_v20  ;;  %v2024_v3 = vpop.permute.xlu2 %2023 }
 0x306   :  { %v1504_v21 = vpop.f32.mrf.mxu0  ;;  %v1533_v33 = vpop.f32.mrf.mxu1 }
 0x307   :  { %v11806_v44 = vadd.f32 %v1504_v21, %v18001_v22  ;;  %v11809_v9 = vadd.f32 %v1533_v33, %v11507_v26  ;;  %v2060_v26 = vsel %vm131_vm1, %v2032_v23, 0  ;;  %v2033_v33 = vsel %vm2027_vm7, %v2022_v20, %v2024_v3  ;;  %v11845_v20 = vld [vmem:[%s17730_s1 + $0xc8] sm:$0xff] }
 0x308   :  { %8790 = vmatmul.msk.bf16.vlgmr.msra.gmra.mxu2 %vm118_vm2, %v11801_v30  ;;  %8794 = vmatmul.msk.bf16.vlgmr.msra.gmra.mxu3 %vm118_vm2, %v11801_v30  ;;  %v2063_v23 = vsel %vm131_vm1, %v2033_v33, 0 }
 0x309   :  { %18002 = vst [vmem:[#allocation44_spill] sm:$0xff] %v11809_v9  ;;  %8758 = vmatmul.msk.bf16.vlgmr.msra.gmra.mxu0 %vm118_vm2, %v11485_v18  ;;  %8762 = vmatmul.msk.bf16.vlgmr.msra.gmra.mxu1 %vm118_vm2, %v11485_v18 }
 0x30a   :  { %2191 = vmatpush.bf16.msrb.mxu2 %v2060_v26  ;;  %2220 = vmatpush.bf16.msrb.mxu3 %v2063_v23 }
 0x30b   :  { %v1562_v39 = vpop.f32.mrf.mxu2  ;;  %v1730_v13 = vpop.f32.mrf.mxu3 }
 0x30c   :  { %v11823_v21 = vadd.f32 %v1562_v39, %v11510_v59  ;;  %v11826_v15 = vadd.f32 %v1730_v13, %v11650_v28 }
 0x30e   :  { %v1506_v22 = vpop.f32.mrf.mxu0  ;;  %v1535_v9 = vpop.f32.mrf.mxu1 }
 0x30f   :  { %v11830_v18 = vadd.f32 %v1506_v22, %v11517_v0  ;;  %v11833_v58 = vadd.f32 %v1535_v9, %v11526_v57  ;;  %v2026_v0 = vpop.permute.xlu2 %2025 }
 0x310   :  { %v2034_v57 = vsel %vm2027_vm7, %v2024_v3, %v2026_v0 }
 0x311   :  { %v2066_v13 = vsel %vm131_vm1, %v2034_v57, 0 }
 0x312   :  { %2249 = vmatpush.bf16.msra.mxu0 %v2066_v13 }
 0x313   :  { %v1564_v35 = vpop.f32.mrf.mxu2  ;;  %v1732_v26 = vpop.f32.mrf.mxu3 }
 0x314   :  { %v11837_v59 = vadd.f32 %v1564_v35, %v11529_v38  ;;  %v11840_v28 = vadd.f32 %v1732_v26, %v11675_v32 }
 0x316   :  { %v1509_v9 = vpop.f32.mrf.mxu0  ;;  %v1538_v39 = vpop.f32.mrf.mxu1 }
 0x317   :  { %v11850_v33 = vadd.f32 %v1509_v9, %v11540_v1  ;;  %v11853_v38 = vadd.f32 %v1538_v39, %v11551_v29  ;;  %v18003_v9 = vld [vmem:[#allocation13_spill] sm:$0xff] }
 0x318   :  { %8791 = vmatmul.msk.bf16.gmra.mxu2 %vm118_vm2, %v11845_v20  ;;  %8795 = vmatmul.msk.bf16.gmra.mxu3 %vm118_vm2, %v11845_v20 }
 0x319   :  { %8759 = vmatmul.msk.bf16.gmra.mxu0 %vm118_vm2, %v11534_v63  ;;  %8763 = vmatmul.msk.bf16.gmra.mxu1 %vm118_vm2, %v11534_v63 }
 0x31b   :  { %v1567_v32 = vpop.f32.mrf.mxu2  ;;  %v1735_v3 = vpop.f32.mrf.mxu3 }
 0x31c   :  { %v11864_v1 = vadd.f32 %v1567_v32, %v11554_v2  ;;  %v11867_v29 = vadd.f32 %v1735_v3, %v11693_v4  ;;  %v11884_v2 = vld [vmem:[%s17730_s1 + $0xd0] sm:$0xff] }
 0x31e   :  { %v1511_v22 = vpop.f32.mrf.mxu0  ;;  %v1540_v23 = vpop.f32.mrf.mxu1 }
 0x31f   :  { %v11870_v35 = vadd.f32 %v1511_v22, %v11560_v41  ;;  %v11873_v26 = vadd.f32 %v1540_v23, %v11563_v6  ;;  %v18005_v41 = vld [vmem:[#allocation40_spill] sm:$0xff] }
 0x323   :  { %v1569_v0 = vpop.f32.mrf.mxu2  ;;  %v1737_v57 = vpop.f32.mrf.mxu3 }
 0x324   :  { %v11876_v63 = vadd.f32 %v1569_v0, %v18003_v9  ;;  %v11879_v39 = vadd.f32 %v1737_v57, %v11715_v50  ;;  %v18007_v9 = vld [vmem:[#allocation14_spill] sm:$0xff] }
 0x326   :  { %18004 = vst [vmem:[#allocation29_spill] sm:$0xff] %v11879_v39  ;;  %v1514_v4 = vpop.f32.mrf.mxu0  ;;  %v1543_v13 = vpop.f32.mrf.mxu1 }
 0x327   :  { %v11887_v32 = vadd.f32 %v1514_v4, %v18005_v41  ;;  %v11890_v6 = vadd.f32 %v1543_v13, %v11588_v51 }
 0x328   :  { %8792 = vmatmul.msk.bf16.gmra.mxu2 %vm118_vm2, %v11884_v2  ;;  %8796 = vmatmul.msk.bf16.gmra.mxu3 %vm118_vm2, %v11884_v2 }
 0x329   :  { %18006 = vst [vmem:[#allocation45_spill] sm:$0xff] %v11890_v6  ;;  %8760 = vmatmul.msk.bf16.gmra.mxu0 %vm118_vm2, %v11571_v37  ;;  %8764 = vmatmul.msk.bf16.gmra.mxu1 %vm118_vm2, %v11571_v37  ;;  %v18008_v6 = vld [vmem:[#allocation41_spill] sm:$0xff] }
 0x32b   :  { %v1572_v50 = vpop.f32.mrf.mxu2  ;;  %v1740_v3 = vpop.f32.mrf.mxu3 }
 0x32c   :  { %v11901_v22 = vadd.f32 %v1572_v50, %v11591_v42  ;;  %v11904_v51 = vadd.f32 %v1740_v3, %v11727_v14  ;;  %v11921_v42 = vld [vmem:[%s17730_s1 + $0xd8] sm:$0xff] }
 0x32e   :  { %v1516_v23 = vpop.f32.mrf.mxu0  ;;  %v1545_v0 = vpop.f32.mrf.mxu1 }
 0x32f   :  { %v11907_v57 = vadd.f32 %v1516_v23, %v11597_v61  ;;  %v11910_v4 = vadd.f32 %v1545_v0, %v18007_v9  ;;  %v18011_v61 = vld [vmem:[#allocation27_spill] sm:$0xff]  ;;  %v18013_v0 = vld [vmem:[#allocation42_spill] sm:$0xff] }
 0x333   :  { %v1574_v13 = vpop.f32.mrf.mxu2  ;;  %v1742_v41 = vpop.f32.mrf.mxu3 }
 0x334   :  { %v11913_v37 = vadd.f32 %v1574_v13, %v18008_v6  ;;  %v11916_v39 = vadd.f32 %v1742_v41, %v11750_v43 }
 0x336   :  { %18009 = vst [vmem:[#allocation17_spill] sm:$0xff] %v11913_v37  ;;  %v1519_v14 = vpop.f32.mrf.mxu0  ;;  %v1548_v50 = vpop.f32.mrf.mxu1 }
 0x337   :  { %18010 = vst [vmem:[#allocation46_spill] sm:$0xff] %v11916_v39  ;;  %v11924_v3 = vadd.f32 %v1519_v14, %v18011_v61  ;;  %v11927_v23 = vadd.f32 %v1548_v50, %v11630_v34  ;;  %v2361_v61 = vpop.permute.xlu1 %2360 }
 0x338   :  { %8793 = vmatmul.msk.bf16.gmra.mxu2 %vm118_vm2, %v11921_v42  ;;  %8797 = vmatmul.msk.bf16.gmra.mxu3 %vm118_vm2, %v11921_v42 }
 0x339   :  { %18012 = vst [vmem:[#allocation18_spill] sm:$0xff] %v11927_v23  ;;  %8761 = vmatmul.msk.bf16.gmra.mxu0 %vm118_vm2, %v11608_v27  ;;  %8765 = vmatmul.msk.bf16.gmra.mxu1 %vm118_vm2, %v11608_v27  ;;  %v18016_v27 = vld [vmem:[#allocation15_spill] sm:$0xff] }
 0x33b   :  { %v1577_v43 = vpop.f32.mrf.mxu2  ;;  %v1745_v6 = vpop.f32.mrf.mxu3 }
 0x33c   :  { %v11938_v9 = vadd.f32 %v1577_v43, %v18013_v0  ;;  %v11941_v34 = vadd.f32 %v1745_v6, %v11765_v12  ;;  %v2359_v12 = vpop.permute.xlu0 %2358 }
 0x33e   :  { %18014 = vst [vmem:[#allocation47_spill] sm:$0xff] %v11941_v34  ;;  %v1521_v13 = vpop.f32.mrf.mxu0  ;;  %v1550_v41 = vpop.f32.mrf.mxu1  ;;  %v2374_v34 = vsel %vm2372_vm8, %v2359_v12, %v2361_v61 }
 0x33f   :  { %v11944_v14 = vadd.f32 %v1521_v13, %v11639_v36  ;;  %v11947_v50 = vadd.f32 %v1550_v41, %v11644_v5  ;;  %v18019_v36 = vld [vmem:[#allocation43_spill] sm:$0xff]  ;;  %v2363_v41 = vpop.permute.xlu1 %2362 }
 0x341   :  { %18015 = vst [vmem:[#allocation31_spill] sm:$0xff] %v11947_v50 }
 0x343   :  { %v1579_v23 = vpop.f32.mrf.mxu2  ;;  %v1747_v39 = vpop.f32.mrf.mxu3 }
 0x344   :  { %v11950_v37 = vadd.f32 %v1579_v23, %v18016_v27  ;;  %v11953_v43 = vadd.f32 %v1747_v39, %v11787_v47  ;;  %v2375_v47 = vsel %vm2372_vm8, %v2361_v61, %v2363_v41  ;;  %v2396_v39 = vsel %vm131_vm1, %v2374_v34, 0  ;;  %v2357_v61 = vpop.permute.xlu0 %2356  ;;  %v18021_v34 = vld [vmem:[#allocation16_spill] sm:$0xff] }
 0x345   :  { %2449 = vmatpush.bf16.msra.mxu2 %v2396_v39 }
 0x346   :  { %18017 = vst [vmem:[#allocation48_spill] sm:$0xff] %v11950_v37  ;;  %v1759_v6 = vpop.f32.mrf.mxu0  ;;  %v1788_v0 = vpop.f32.mrf.mxu1 }
 0x347   :  { %18018 = vst [vmem:[#allocation19_spill] sm:$0xff] %v11953_v43  ;;  %v11957_v13 = vadd.f32 %v1759_v6, %v18019_v36  ;;  %v11960_v5 = vadd.f32 %v1788_v0, %v11668_v11  ;;  %v2399_v11 = vsel %vm131_vm1, %v2375_v47, 0  ;;  %v2373_v36 = vsel %vm2372_vm8, %v2357_v61, %v2359_v12  ;;  %v11987_v39 = vpop.permute.xlu1 %2364 }
 0x348   :  { %8806 = vmatmul.msk.bf16.vlgmr.msrb.gmra.mxu2 %vm118_vm2, %v11801_v30  ;;  %8810 = vmatmul.msk.bf16.vlgmr.msrb.gmra.mxu3 %vm118_vm2, %v11801_v30  ;;  %v2393_v37 = vsel %vm131_vm1, %v2373_v36, 0 }
 0x349   :  { %18020 = vst [vmem:[#allocation49_spill] sm:$0xff] %v11960_v5  ;;  %8798 = vmatmul.msk.bf16.vlgmr.msrb.gmra.mxu0 %vm118_vm2, %v11801_v30  ;;  %8802 = vmatmul.msk.bf16.vlgmr.msrb.gmra.mxu1 %vm118_vm2, %v11801_v30 }
 0x34a   :  { %2478 = vmatpush.bf16.msra.mxu3 %v2399_v11  ;;  %2420 = vmatpush.bf16.msra.mxu1 %v2393_v37 }
 0x34b   :  { %v1817_v23 = vpop.f32.mrf.mxu2  ;;  %v1846_v27 = vpop.f32.mrf.mxu3 }
 0x34c   :  { %v11974_v6 = vadd.f32 %v1817_v23, %v11671_v46  ;;  %v11977_v0 = vadd.f32 %v1846_v27, %v11806_v44  ;;  %v2376_v46 = vsel %vm2372_vm8, %v2363_v41, %v11987_v39 }
 0x34d   :  { %v2402_v44 = vsel %vm131_vm1, %v2376_v46, 0 }
 0x34e   :  { %v1761_v5 = vpop.f32.mrf.mxu0  ;;  %v1790_v43 = vpop.f32.mrf.mxu1  ;;  %2507 = vmatpush.bf16.msrb.mxu0 %v2402_v44 }
 0x34f   :  { %v11982_v50 = vadd.f32 %v1761_v5, %v18021_v34  ;;  %v11985_v47 = vadd.f32 %v1790_v43, %v11687_v48 }
 0x353   :  { %v1819_v12 = vpop.f32.mrf.mxu2  ;;  %v1848_v11 = vpop.f32.mrf.mxu3 }
 0x354   :  { %v11993_v23 = vadd.f32 %v1819_v12, %v11690_v8  ;;  %v11996_v5 = vadd.f32 %v1848_v11, %v11830_v18 }
 0x356   :  { %v1764_v27 = vpop.f32.mrf.mxu0  ;;  %v1793_v48 = vpop.f32.mrf.mxu1 }
 0x357   :  { %v11999_v43 = vadd.f32 %v1764_v27, %v11696_v56  ;;  %v12002_v37 = vadd.f32 %v1793_v48, %v11709_v45 }
 0x358   :  { %8807 = vmatmul.msk.bf16.gmra.mxu2 %vm118_vm2, %v11845_v20  ;;  %8811 = vmatmul.msk.bf16.gmra.mxu3 %vm118_vm2, %v11845_v20 }
 0x359   :  { %8799 = vmatmul.msk.bf16.gmra.mxu0 %vm118_vm2, %v11845_v20  ;;  %8803 = vmatmul.msk.bf16.gmra.mxu1 %vm118_vm2, %v11845_v20 }
 0x35b   :  { %v1822_v8 = vpop.f32.mrf.mxu2  ;;  %v1851_v18 = vpop.f32.mrf.mxu3 }
 0x35c   :  { %v12013_v56 = vadd.f32 %v1822_v8, %v11712_v25  ;;  %v12016_v45 = vadd.f32 %v1851_v18, %v11850_v33 }
 0x35e   :  { %v1766_v41 = vpop.f32.mrf.mxu0  ;;  %v1795_v61 = vpop.f32.mrf.mxu1 }
 0x35f   :  { %v12019_v36 = vadd.f32 %v1766_v41, %v11718_v40  ;;  %v12022_v34 = vadd.f32 %v1795_v61, %v11721_v52 }
 0x363   :  { %v1824_v46 = vpop.f32.mrf.mxu2  ;;  %v1853_v44 = vpop.f32.mrf.mxu3 }
 0x364   :  { %v12025_v12 = vadd.f32 %v1824_v46, %v11724_v7  ;;  %v12028_v11 = vadd.f32 %v1853_v44, %v11870_v35 }
 0x366   :  { %v1769_v25 = vpop.f32.mrf.mxu0  ;;  %v1798_v27 = vpop.f32.mrf.mxu1 }
 0x367   :  { %v12031_v33 = vadd.f32 %v1769_v25, %v11730_v55  ;;  %v12034_v48 = vadd.f32 %v1798_v27, %v11741_v60 }
 0x368   :  { %8808 = vmatmul.msk.bf16.gmra.mxu2 %vm118_vm2, %v11884_v2  ;;  %8812 = vmatmul.msk.bf16.gmra.mxu3 %vm118_vm2, %v11884_v2 }
 0x369   :  { %8800 = vmatmul.msk.bf16.gmra.mxu0 %vm118_vm2, %v11884_v2  ;;  %8804 = vmatmul.msk.bf16.gmra.mxu1 %vm118_vm2, %v11884_v2 }
 0x36b   :  { %v1827_v40 = vpop.f32.mrf.mxu2  ;;  %v1856_v52 = vpop.f32.mrf.mxu3 }
 0x36c   :  { %v12045_v7 = vadd.f32 %v1827_v40, %v11744_v53  ;;  %v12048_v55 = vadd.f32 %v1856_v52, %v11887_v32 }
 0x36e   :  { %v1771_v60 = vpop.f32.mrf.mxu0  ;;  %v1800_v35 = vpop.f32.mrf.mxu1 }
 0x36f   :  { %v12051_v8 = vadd.f32 %v1771_v60, %v11753_v10  ;;  %v12054_v18 = vadd.f32 %v1800_v35, %v11756_v31 }
 0x373   :  { %v1829_v41 = vpop.f32.mrf.mxu2  ;;  %v1858_v61 = vpop.f32.mrf.mxu3 }
 0x374   :  { %v12057_v46 = vadd.f32 %v1829_v41, %v11759_v16  ;;  %v12060_v44 = vadd.f32 %v1858_v61, %v11907_v57 }
 0x376   :  { %v1774_v53 = vpop.f32.mrf.mxu0  ;;  %v1803_v25 = vpop.f32.mrf.mxu1 }
 0x377   :  { %v12063_v32 = vadd.f32 %v1774_v53, %v11768_v17  ;;  %v12066_v27 = vadd.f32 %v1803_v25, %v11779_v54 }
 0x378   :  { %8809 = vmatmul.msk.bf16.gmra.mxu2 %vm118_vm2, %v11921_v42  ;;  %8813 = vmatmul.msk.bf16.gmra.mxu3 %vm118_vm2, %v11921_v42 }
 0x379   :  { %8801 = vmatmul.msk.bf16.gmra.mxu0 %vm118_vm2, %v11921_v42  ;;  %8805 = vmatmul.msk.bf16.gmra.mxu1 %vm118_vm2, %v11921_v42 }
 0x37b   :  { %v1832_v10 = vpop.f32.mrf.mxu2  ;;  %v1861_v31 = vpop.f32.mrf.mxu3 }
 0x37c   :  { %v12077_v16 = vadd.f32 %v1832_v10, %v11782_v19  ;;  %v12080_v17 = vadd.f32 %v1861_v31, %v11924_v3  ;;  %v12097_v19 = vld [vmem:[%s17730_s1 + $0xe0] sm:$0xff]  ;;  %v2369_v10 = vpop.permute.xlu0 %2368  ;;  %v2367_v31 = vpop.permute.xlu2 %2366 }
 0x37e   :  { %v1776_v54 = vpop.f32.mrf.mxu0  ;;  %v1805_v57 = vpop.f32.mrf.mxu1 }
 0x37f   :  { %v12083_v40 = vadd.f32 %v1776_v54, %v11790_v24  ;;  %v12086_v52 = vadd.f32 %v1805_v57, %v11793_v62  ;;  %v18022_v24 = vld [vmem:[#allocation44_spill] sm:$0xff] }
 0x383   :  { %v1834_v60 = vpop.f32.mrf.mxu2  ;;  %v1863_v35 = vpop.f32.mrf.mxu3 }
 0x384   :  { %v12089_v41 = vadd.f32 %v1834_v60, %v11796_v49  ;;  %v12092_v61 = vadd.f32 %v1863_v35, %v11944_v14  ;;  %v2377_v49 = vsel %vm2372_vm8, %v11987_v39, %v2367_v31  ;;  %v2378_v14 = vsel %vm2372_vm8, %v2367_v31, %v2369_v10  ;;  %v2371_v31 = vpop.permute.xlu2 %2370 }
 0x385   :  { %v2408_v54 = vsel %vm131_vm1, %v2378_v14, 0 }
 0x386   :  { %v1875_v3 = vpop.f32.mrf.mxu0  ;;  %v1904_v53 = vpop.f32.mrf.mxu1  ;;  %2565 = vmatpush.bf16.msrb.mxu2 %v2408_v54 }
 0x387   :  { %v12100_v25 = vadd.f32 %v1875_v3, %v18022_v24  ;;  %v12103_v62 = vadd.f32 %v1904_v53, %v11823_v21  ;;  %v2405_v21 = vsel %vm131_vm1, %v2377_v49, 0  ;;  %v2379_v49 = vsel %vm2372_vm8, %v2369_v10, %v2371_v31 }
 0x388   :  { %8846 = vmatmul.msk.bf16.vlgmr.msra.gmra.mxu2 %vm118_vm2, %v12097_v19  ;;  %8850 = vmatmul.msk.bf16.vlgmr.msra.gmra.mxu3 %vm118_vm2, %v12097_v19  ;;  %v2411_v14 = vsel %vm131_vm1, %v2379_v49, 0 }
 0x389   :  { %8814 = vmatmul.msk.bf16.vlgmr.msra.gmra.mxu0 %vm118_vm2, %v11801_v30  ;;  %8842 = vmatmul.msk.bf16.vlgmr.msra.gmra.mxu1 %vm118_vm2, %v12097_v19 }
 0x38a   :  { %2536 = vmatpush.bf16.msrb.mxu1 %v2405_v21  ;;  %2594 = vmatpush.bf16.msrb.mxu3 %v2411_v14 }
 0x38b   :  { %v2077_v57 = vpop.f32.mrf.mxu2  ;;  %v2106_v60 = vpop.f32.mrf.mxu3 }
 0x38c   :  { %v12119_v35 = vadd.f32 %v2077_v57, %v11826_v15  ;;  %v12122_v39 = vadd.f32 %v2106_v60, %v11957_v13 }
 0x38e   :  { %v1877_v3 = vpop.f32.mrf.mxu0  ;;  %v1906_v53 = vpop.f32.mrf.mxu1 }
 0x38f   :  { %v12125_v30 = vadd.f32 %v1877_v3, %v11833_v58  ;;  %v12128_v24 = vadd.f32 %v1906_v53, %v11837_v59  ;;  %v12141_v58 = vld [vmem:[%s17730_s1 + $0xe8] sm:$0xff] }
 0x393   :  { %v2079_v21 = vpop.f32.mrf.mxu2  ;;  %v2108_v15 = vpop.f32.mrf.mxu3 }
 0x394   :  { %v12133_v54 = vadd.f32 %v2079_v21, %v11840_v28  ;;  %v12136_v13 = vadd.f32 %v2108_v15, %v11982_v50  ;;  %v18023_v21 = vld [vmem:[#allocation29_spill] sm:$0xff] }
 0x396   :  { %v1880_v59 = vpop.f32.mrf.mxu0  ;;  %v1909_v57 = vpop.f32.mrf.mxu1 }
 0x397   :  { %v12144_v10 = vadd.f32 %v1880_v59, %v11853_v38  ;;  %v12147_v60 = vadd.f32 %v1909_v57, %v11864_v1 }
 0x398   :  { %8847 = vmatmul.msk.bf16.gmra.mxu2 %vm118_vm2, %v12141_v58  ;;  %8851 = vmatmul.msk.bf16.gmra.mxu3 %vm118_vm2, %v12141_v58 }
 0x399   :  { %8815 = vmatmul.msk.bf16.gmra.mxu0 %vm118_vm2, %v11845_v20  ;;  %8843 = vmatmul.msk.bf16.gmra.mxu1 %vm118_vm2, %v12141_v58 }
 0x39b   :  { %v2082_v28 = vpop.f32.mrf.mxu2  ;;  %v2111_v50 = vpop.f32.mrf.mxu3 }
 0x39c   :  { %v12158_v38 = vadd.f32 %v2082_v28, %v11867_v29  ;;  %v12161_v1 = vadd.f32 %v2111_v50, %v11999_v43  ;;  %v12178_v29 = vld [vmem:[%s17730_s1 + $0xf0] sm:$0xff] }
 0x39e   :  { %v1882_v3 = vpop.f32.mrf.mxu0  ;;  %v1911_v53 = vpop.f32.mrf.mxu1 }
 0x39f   :  { %v12164_v31 = vadd.f32 %v1882_v3, %v11873_v26  ;;  %v12167_v49 = vadd.f32 %v1911_v53, %v11876_v63  ;;  %v18025_v26 = vld [vmem:[#allocation45_spill] sm:$0xff] }
 0x3a3   :  { %v2084_v20 = vpop.f32.mrf.mxu2  ;;  %v2113_v14 = vpop.f32.mrf.mxu3 }
 0x3a4   :  { %v12170_v15 = vadd.f32 %v2084_v20, %v18023_v21  ;;  %v12173_v59 = vadd.f32 %v2113_v14, %v12019_v36  ;;  %v18028_v21 = vld [vmem:[#allocation17_spill] sm:$0xff] }
 0x3a6   :  { %18024 = vst [vmem:[#allocation20_spill] sm:$0xff] %v12173_v59  ;;  %v1885_v43 = vpop.f32.mrf.mxu0  ;;  %v1914_v57 = vpop.f32.mrf.mxu1 }
 0x3a7   :  { %v12181_v28 = vadd.f32 %v1885_v43, %v18025_v26  ;;  %v12184_v63 = vadd.f32 %v1914_v57, %v11901_v22  ;;  %v18030_v26 = vld [vmem:[#allocation46_spill] sm:$0xff] }
 0x3a8   :  { %8848 = vmatmul.msk.bf16.gmra.mxu2 %vm118_vm2, %v12178_v29  ;;  %8852 = vmatmul.msk.bf16.gmra.mxu3 %vm118_vm2, %v12178_v29 }
 0x3a9   :  { %18026 = vst [vmem:[#allocation50_spill] sm:$0xff] %v12184_v63  ;;  %8816 = vmatmul.msk.bf16.gmra.mxu0 %vm118_vm2, %v11884_v2  ;;  %8844 = vmatmul.msk.bf16.gmra.mxu1 %vm118_vm2, %v12178_v29 }
 0x3ab   :  { %v2087_v36 = vpop.f32.mrf.mxu2  ;;  %v2116_v50 = vpop.f32.mrf.mxu3 }
 0x3ac   :  { %v12195_v3 = vadd.f32 %v2087_v36, %v11904_v51  ;;  %v12198_v22 = vadd.f32 %v2116_v50, %v12031_v33  ;;  %v12215_v51 = vld [vmem:[%s17730_s1 + $0xf8] sm:$0xff] }
 0x3ae   :  { %18027 = vst [vmem:[#allocation22_spill] sm:$0xff] %v12198_v22  ;;  %v1887_v53 = vpop.f32.mrf.mxu0  ;;  %v1916_v20 = vpop.f32.mrf.mxu1 }
 0x3af   :  { %v12201_v14 = vadd.f32 %v1887_v53, %v11910_v4  ;;  %v12204_v43 = vadd.f32 %v1916_v20, %v18028_v21  ;;  %v18033_v4 = vld [vmem:[#allocation18_spill] sm:$0xff]  ;;  %v18035_v21 = vld [vmem:[#allocation47_spill] sm:$0xff] }
 0x3b1   :  { %18029 = vst [vmem:[#allocation24_spill] sm:$0xff] %v12204_v43  ;;  %v18039_v43 = vld [vmem:[#allocation19_spill] sm:$0xff] }
 0x3b3   :  { %v2089_v2 = vpop.f32.mrf.mxu2  ;;  %v2118_v57 = vpop.f32.mrf.mxu3 }
 0x3b4   :  { %v12207_v63 = vadd.f32 %v2089_v2, %v18030_v26  ;;  %v12210_v59 = vadd.f32 %v2118_v57, %v12051_v8 }
 0x3b6   :  { %18031 = vst [vmem:[#allocation26_spill] sm:$0xff] %v12207_v63  ;;  %v1890_v33 = vpop.f32.mrf.mxu0  ;;  %v1919_v36 = vpop.f32.mrf.mxu1 }
 0x3b7   :  { %18032 = vst [vmem:[#allocation28_spill] sm:$0xff] %v12210_v59  ;;  %v12218_v50 = vadd.f32 %v1890_v33, %v18033_v4  ;;  %v12221_v53 = vadd.f32 %v1919_v36, %v11938_v9  ;;  %v18037_v33 = vld [vmem:[#allocation31_spill] sm:$0xff]  ;;  %v18038_v4 = vld [vmem:[#allocation48_spill] sm:$0xff] }
 0x3b8   :  { %8849 = vmatmul.msk.bf16.gmra.mxu2 %vm118_vm2, %v12215_v51  ;;  %8853 = vmatmul.msk.bf16.gmra.mxu3 %vm118_vm2, %v12215_v51 }
 0x3b9   :  { %18034 = vst [vmem:[#allocation30_spill] sm:$0xff] %v12221_v53  ;;  %8817 = vmatmul.msk.bf16.gmra.mxu0 %vm118_vm2, %v11921_v42  ;;  %8845 = vmatmul.msk.bf16.gmra.mxu1 %vm118_vm2, %v12215_v51  ;;  %v2708_v42 = vpop.permute.xlu1 %2707 }
 0x3bb   :  { %v2092_v8 = vpop.f32.mrf.mxu2  ;;  %v2121_v20 = vpop.f32.mrf.mxu3 }
 0x3bc   :  { %v12232_v2 = vadd.f32 %v2092_v8, %v18035_v21  ;;  %v12235_v9 = vadd.f32 %v2121_v20, %v12063_v32  ;;  %v2706_v32 = vpop.permute.xlu0 %2705 }
 0x3be   :  { %18036 = vst [vmem:[#allocation5_spill] sm:$0xff] %v12235_v9  ;;  %v1892_v57 = vpop.f32.mrf.mxu0  ;;  %v1921_v26 = vpop.f32.mrf.mxu1  ;;  %v2720_v9 = vsel %vm2717_vm9, %v2706_v32, %v2708_v42 }
 0x3bf   :  { %v12238_v36 = vadd.f32 %v1892_v57, %v18037_v33  ;;  %v12241_v53 = vadd.f32 %v1921_v26, %v18038_v4  ;;  %v18040_v57 = vld [vmem:[#allocation49_spill] sm:$0xff] }
 0x3c1   :  { %v2710_v4 = vpop.permute.xlu1 %2709 }
 0x3c3   :  { %v2094_v59 = vpop.f32.mrf.mxu2  ;;  %v2123_v63 = vpop.f32.mrf.mxu3 }
 0x3c4   :  { %v12244_v22 = vadd.f32 %v2094_v59, %v18039_v43  ;;  %v12247_v8 = vadd.f32 %v2123_v63, %v12083_v40  ;;  %v2721_v40 = vsel %vm2717_vm9, %v2708_v42, %v2710_v4  ;;  %v2744_v59 = vsel %vm131_vm1, %v2720_v9, 0  ;;  %v2704_v42 = vpop.permute.xlu0 %2703 }
 0x3c5   :  { %2823 = vmatpush.bf16.msra.mxu2 %v2744_v59 }
 0x3c6   :  { %v2135_v20 = vpop.f32.mrf.mxu0  ;;  %v2164_v21 = vpop.f32.mrf.mxu1 }
 0x3c7   :  { %v12251_v33 = vadd.f32 %v2135_v20, %v18040_v57  ;;  %v12254_v26 = vadd.f32 %v2164_v21, %v11974_v6  ;;  %v2747_v6 = vsel %vm131_vm1, %v2721_v40, 0  ;;  %v2702_v57 = vpop.permute.xlu2 %2701 }
 0x3c8   :  { %8862 = vmatmul.msk.bf16.vlgmr.msrb.gmra.mxu2 %vm118_vm2, %v12097_v19  ;;  %8866 = vmatmul.msk.bf16.vlgmr.msrb.gmra.mxu3 %vm118_vm2, %v12097_v19 }
 0x3c9   :  { %18041 = vst [vmem:[#allocation51_spill] sm:$0xff] %v12251_v33  ;;  %8854 = vmatmul.msk.bf16.vlgmr.msrb.gmra.mxu0 %vm118_vm2, %v12097_v19  ;;  %8858 = vmatmul.msk.bf16.vlgmr.msrb.gmra.mxu1 %vm118_vm2, %v12097_v19  ;;  %v2718_v19 = vsel %vm2717_vm9, %v2702_v57, %v2704_v42 }
 0x3ca   :  { %18042 = vst [vmem:[#allocation52_spill] sm:$0xff] %v12254_v26  ;;  %2852 = vmatpush.bf16.msra.mxu3 %v2747_v6  ;;  %v2719_v26 = vsel %vm2717_vm9, %v2704_v42, %v2706_v32  ;;  %v2738_v40 = vsel %vm131_vm1, %v2718_v19, 0 }
 0x3cb   :  { %v2193_v63 = vpop.f32.mrf.mxu2  ;;  %v2222_v43 = vpop.f32.mrf.mxu3  ;;  %2765 = vmatpush.bf16.msra.mxu0 %v2738_v40 }
 0x3cc   :  { %v12268_v20 = vadd.f32 %v2193_v63, %v11977_v0  ;;  %v12271_v21 = vadd.f32 %v2222_v43, %v12100_v25  ;;  %v12282_v0 = vpop.permute.xlu1 %2711  ;;  %v2741_v25 = vsel %vm131_vm1, %v2719_v26, 0 }
 0x3cd   :  { %v2722_v32 = vsel %vm2717_vm9, %v2710_v4, %v12282_v0  ;;  %2794 = vmatpush.bf16.msra.mxu1 %v2741_v25 }
 0x3ce   :  { %v2137_v33 = vpop.f32.mrf.mxu0  ;;  %v2166_v9 = vpop.f32.mrf.mxu1  ;;  %v2750_v63 = vsel %vm131_vm1, %v2722_v32, 0 }
 0x3cf   :  { %v12277_v59 = vadd.f32 %v2137_v33, %v11985_v47  ;;  %v12280_v6 = vadd.f32 %v2166_v9, %v11993_v23  ;;  %2881 = vmatpush.bf16.msrb.mxu0 %v2750_v63 }
 0x3d3   :  { %v2195_v43 = vpop.f32.mrf.mxu2  ;;  %v2224_v42 = vpop.f32.mrf.mxu3 }
 0x3d4   :  { %v12289_v47 = vadd.f32 %v2195_v43, %v11996_v5  ;;  %v12292_v23 = vadd.f32 %v2224_v42, %v12125_v30 }
 0x3d6   :  { %18043 = vst [vmem:[#allocation32_spill] sm:$0xff] %v12289_v47  ;;  %v2140_v33 = vpop.f32.mrf.mxu0  ;;  %v2169_v57 = vpop.f32.mrf.mxu1 }
 0x3d7   :  { %18044 = vst [vmem:[#allocation53_spill] sm:$0xff] %v12292_v23  ;;  %v12295_v26 = vadd.f32 %v2140_v33, %v12002_v37  ;;  %v12298_v19 = vadd.f32 %v2169_v57, %v12013_v56 }
 0x3d8   :  { %8863 = vmatmul.msk.bf16.gmra.mxu2 %vm118_vm2, %v12141_v58  ;;  %8867 = vmatmul.msk.bf16.gmra.mxu3 %vm118_vm2, %v12141_v58 }
 0x3d9   :  { %8855 = vmatmul.msk.bf16.gmra.mxu0 %vm118_vm2, %v12141_v58  ;;  %8859 = vmatmul.msk.bf16.gmra.mxu1 %vm118_vm2, %v12141_v58 }
 0x3db   :  { %v2198_v5 = vpop.f32.mrf.mxu2  ;;  %v2227_v30 = vpop.f32.mrf.mxu3 }
 0x3dc   :  { %v12309_v37 = vadd.f32 %v2198_v5, %v12016_v45  ;;  %v12312_v56 = vadd.f32 %v2227_v30, %v12144_v10  ;;  %v10376_v30 = vmov 0  }
 0x3dd   :  { %10044 = vset.pattern.permute.xlu2 %v10376_v30  ;;  %10045 = vset.pattern.permute.xlu0 %v10376_v30 }
 0x3de   :  { %18045 = vst [vmem:[#allocation4_spill] sm:$0xff] %v12309_v37  ;;  %v2142_v4 = vpop.f32.mrf.mxu0  ;;  %v2171_v9 = vpop.f32.mrf.mxu1  ;;  %10046 = vset.pattern.permute.xlu1 %v10376_v30 }
 0x3df   :  { %18046 = vst [vmem:[#allocation7_spill] sm:$0xff] %v12312_v56  ;;  %v12315_v40 = vadd.f32 %v2142_v4, %v12022_v34  ;;  %v12318_v25 = vadd.f32 %v2171_v9, %v12025_v12 }
 0x3e3   :  { %v2200_v32 = vpop.f32.mrf.mxu2  ;;  %v2229_v63 = vpop.f32.mrf.mxu3 }
 0x3e4   :  { %v12321_v58 = vadd.f32 %v2200_v32, %v12028_v11  ;;  %v12324_v43 = vadd.f32 %v2229_v63, %v12164_v31 }
 0x3e6   :  { %18047 = vst [vmem:[#allocation21_spill] sm:$0xff] %v12321_v58  ;;  %v2145_v45 = vpop.f32.mrf.mxu0  ;;  %v2174_v42 = vpop.f32.mrf.mxu1 }
 0x3e7   :  { %18048 = vst [vmem:[#allocation33_spill] sm:$0xff] %v12324_v43  ;;  %v12327_v10 = vadd.f32 %v2145_v45, %v12034_v48  ;;  %v12330_v33 = vadd.f32 %v2174_v42, %v12045_v7  ;;  %v3018_v42 = vld [vmem:[%s17731_s2 + $0x8] sm:$0xff] }
 0x3e8   :  { %8864 = vmatmul.msk.bf16.gmra.mxu2 %vm118_vm2, %v12178_v29  ;;  %8868 = vmatmul.msk.bf16.gmra.mxu3 %vm118_vm2, %v12178_v29 }
 0x3e9   :  { %8856 = vmatmul.msk.bf16.gmra.mxu0 %vm118_vm2, %v12178_v29  ;;  %8860 = vmatmul.msk.bf16.gmra.mxu1 %vm118_vm2, %v12178_v29  ;;  %v3017_v29 = vld [vmem:[%s17731_s2] sm:$0xff] }
 0x3ea   :  { %3027 = vperm.xlu2 %10044, %v3017_v29   ;;  %3032 = vperm.xlu0 %10045, %v3018_v42  }
 0x3eb   :  { %v2203_v34 = vpop.f32.mrf.mxu2  ;;  %v2232_v12 = vpop.f32.mrf.mxu3 }
 0x3ec   :  { %v12341_v11 = vadd.f32 %v2203_v34, %v12048_v55  ;;  %v12344_v48 = vadd.f32 %v2232_v12, %v12181_v28 }
 0x3ee   :  { %18049 = vst [vmem:[#allocation9_spill] sm:$0xff] %v12341_v11  ;;  %v2147_v7 = vpop.f32.mrf.mxu0  ;;  %v2176_v31 = vpop.f32.mrf.mxu1 }
 0x3ef   :  { %18050 = vst [vmem:[#allocation2_spill] sm:$0xff] %v12344_v48  ;;  %v12347_v57 = vadd.f32 %v2147_v7, %v12054_v18  ;;  %v12350_v5 = vadd.f32 %v2176_v31, %v12057_v46  ;;  %v18069_v48 = vld [vmem:[#allocation30_spill] sm:$0xff] }
 0x3f3   :  { %v2205_v55 = vpop.f32.mrf.mxu2  ;;  %v2234_v28 = vpop.f32.mrf.mxu3 }
 0x3f4   :  { %v12356_v4 = vadd.f32 %v2205_v55, %v12060_v44  ;;  %v12359_v18 = vadd.f32 %v2234_v28, %v12201_v14  ;;  %v3020_v44 = vld [vmem:[%s17731_s2 + $0x18] sm:$0xff] }
 0x3f5   :  { %3042 = vperm.xlu2 %10044, %v3020_v44  }
 0x3f6   :  { %18051 = vst [vmem:[#allocation34_spill] sm:$0xff] %v12356_v4  ;;  %v2150_v9 = vpop.f32.mrf.mxu0  ;;  %v2179_v46 = vpop.f32.mrf.mxu1  ;;  %v9957_v4 = vld [vmem:[%s17730_s1 + $0x118] sm:$0xff] }
 0x3f7   :  { %18052 = vst [vmem:[#allocation10_spill] sm:$0xff] %v12359_v18  ;;  %v12362_v32 = vadd.f32 %v2150_v9, %v12066_v27  ;;  %v12365_v63 = vadd.f32 %v2179_v46, %v12077_v16 }
 0x3f8   :  { %8865 = vmatmul.msk.bf16.gmra.mxu2 %vm118_vm2, %v12215_v51  ;;  %8869 = vmatmul.msk.bf16.gmra.mxu3 %vm118_vm2, %v12215_v51 }
 0x3f9   :  { %8857 = vmatmul.msk.bf16.gmra.mxu0 %vm118_vm2, %v12215_v51  ;;  %8861 = vmatmul.msk.bf16.gmra.mxu1 %vm118_vm2, %v12215_v51 }
 0x3fb   :  { %v2208_v27 = vpop.f32.mrf.mxu2  ;;  %v2237_v16 = vpop.f32.mrf.mxu3 }
 0x3fc   :  { %v12379_v14 = vadd.f32 %v2208_v27, %v12080_v17  ;;  %v12382_v45 = vadd.f32 %v2237_v16, %v12218_v50  ;;  %v3022_v17 = vld [vmem:[%s17731_s2 + $0x28] sm:$0xff] }
 0x3fd   :  { %3052 = vperm.xlu2 %10044, %v3022_v17  }
 0x3fe   :  { %18053 = vst [vmem:[#allocation8_spill] sm:$0xff] %v12379_v14  ;;  %v2152_v34 = vpop.f32.mrf.mxu0  ;;  %v2181_v51 = vpop.f32.mrf.mxu1  ;;  %v18068_v14 = vld [vmem:[#allocation28_spill] sm:$0xff] }
 0x3ff   :  { %18054 = vst [vmem:[#allocation35_spill] sm:$0xff] %v12382_v45  ;;  %v12388_v12 = vadd.f32 %v2152_v34, %v12086_v52  ;;  %v12391_v7 = vadd.f32 %v2181_v51, %v12089_v41  ;;  %v12405_v52 = vld [vmem:[%s17730_s1 + $0x100] sm:$0xff]  ;;  %v3019_v41 = vld [vmem:[%s17731_s2 + $0x10] sm:$0xff]  ;;  %v3024_v34 = vld [vmem:[%s17731_s2 + $0x38] sm:$0xff] }
 0x400   :  { %3037 = vperm.xlu1 %10046, %v3019_v41  }
 0x403   :  { %v2210_v50 = vpop.f32.mrf.mxu2  ;;  %v2239_v31 = vpop.f32.mrf.mxu3 }
 0x404   :  { %v12397_v29 = vadd.f32 %v2210_v50, %v12092_v61  ;;  %v12400_v30 = vadd.f32 %v2239_v31, %v12238_v36 }
 0x406   :  { %18055 = vst [vmem:[#allocation23_spill] sm:$0xff] %v12397_v29  ;;  %v2251_v55 = vpop.f32.mrf.mxu0  ;;  %v2422_v28 = vpop.f32.mrf.mxu1 }
 0x407   :  { %18056 = vst [vmem:[#allocation3_spill] sm:$0xff] %v12400_v30  ;;  %v12411_v9 = vadd.f32 %v2251_v55, %v12103_v62  ;;  %v12414_v61 = vadd.f32 %v2422_v28, %v12119_v35  ;;  %v3023_v62 = vld [vmem:[%s17731_s2 + $0x30] sm:$0xff] }
 0x408   :  { %8902 = vmatmul.msk.bf16.vlgmr.msra.gmra.mxu2 %vm118_vm2, %v12405_v52  ;;  %8906 = vmatmul.msk.bf16.vlgmr.msra.gmra.mxu3 %vm118_vm2, %v12405_v52 }
 0x409   :  { %18057 = vst [vmem:[#allocation36_spill] sm:$0xff] %v12411_v9  ;;  %8894 = vmatmul.msk.bf16.vlgmr.msra.gmra.mxu0 %vm118_vm2, %v12405_v52  ;;  %8898 = vmatmul.msk.bf16.vlgmr.msra.gmra.mxu1 %vm118_vm2, %v12405_v52 }
 0x40a   :  { %3057 = vperm.xlu2 %10044, %v3023_v62  }
 0x40b   :  { %v2451_v36 = vpop.f32.mrf.mxu2  ;;  %v12427_v35 = vpop.f32.mrf.mxu3 }
 0x40c   :  { %v12430_v46 = vadd.f32 %v2451_v36, %v12122_v39  ;;  %v12449_v39 = vld [vmem:[%s17730_s1 + $0x108] sm:$0xff] }
 0x40e   :  { %v2253_v44 = vpop.f32.mrf.mxu0  ;;  %v2424_v27 = vpop.f32.mrf.mxu1 }
 0x40f   :  { %v12433_v16 = vadd.f32 %v2253_v44, %v12128_v24  ;;  %v12436_v42 = vadd.f32 %v2424_v27, %v12133_v54  ;;  %v3021_v24 = vld [vmem:[%s17731_s2 + $0x20] sm:$0xff]  ;;  %v2716_v27 = vpop.permute.xlu0 %2715 }
 0x410   :  { %3047 = vperm.xlu1 %10046, %v3021_v24  }
 0x411   :  { %18058 = vst [vmem:[#allocation11_spill] sm:$0xff] %v12433_v16 }
 0x412   :  { %3062 = vperm.xlu2 %10044, %v3024_v34   ;;  %v2714_v34 = vpop.permute.xlu2 %2713 }
 0x413   :  { %v2453_v51 = vpop.f32.mrf.mxu2  ;;  %v12441_v17 = vpop.f32.mrf.mxu3  ;;  %v2724_v24 = vsel %vm2717_vm9, %v2714_v34, %v2716_v27 }
 0x414   :  { %v12444_v50 = vadd.f32 %v2453_v51, %v12136_v13  ;;  %v2723_v51 = vsel %vm2717_vm9, %v12282_v0, %v2714_v34  ;;  %v18062_v0 = vld [vmem:[#allocation50_spill] sm:$0xff] }
 0x416   :  { %v2256_v54 = vpop.f32.mrf.mxu0  ;;  %v2427_v31 = vpop.f32.mrf.mxu1 }
 0x417   :  { %v12455_v41 = vadd.f32 %v2256_v54, %v12147_v60  ;;  %v12458_v55 = vadd.f32 %v2427_v31, %v12158_v38 }
 0x418   :  { %8903 = vmatmul.msk.bf16.gmra.mxu2 %vm118_vm2, %v12449_v39  ;;  %8907 = vmatmul.msk.bf16.gmra.mxu3 %vm118_vm2, %v12449_v39 }
 0x419   :  { %18059 = vst [vmem:[#allocation37_spill] sm:$0xff] %v12455_v41  ;;  %8895 = vmatmul.msk.bf16.gmra.mxu0 %vm118_vm2, %v12449_v39  ;;  %8899 = vmatmul.msk.bf16.gmra.mxu1 %vm118_vm2, %v12449_v39 }
 0x41b   :  { %v2456_v13 = vpop.f32.mrf.mxu2  ;;  %v12468_v28 = vpop.f32.mrf.mxu3 }
 0x41c   :  { %v12471_v60 = vadd.f32 %v2456_v13, %v12161_v1  ;;  %v18061_v1 = vld [vmem:[#allocation20_spill] sm:$0xff] }
 0x41e   :  { %v2258_v38 = vpop.f32.mrf.mxu0  ;;  %v2429_v62 = vpop.f32.mrf.mxu1 }
 0x41f   :  { %v12474_v36 = vadd.f32 %v2258_v38, %v12167_v49  ;;  %v12477_v44 = vadd.f32 %v2429_v62, %v12170_v15  ;;  %v12490_v49 = vld [vmem:[%s17730_s1 + $0x110] sm:$0xff]  ;;  %v2753_v15 = vsel %vm131_vm1, %v2723_v51, 0  ;;  %v2756_v38 = vsel %vm131_vm1, %v2724_v24, 0  ;;  %s10380_s1 = smov 95  }
 0x420   :  { %2910 = vmatpush.bf16.msrb.mxu1 %v2753_v15  ;;  %2939 = vmatpush.bf16.msrb.mxu2 %v2756_v38  ;;  %v18065_v15 = vld [vmem:[#allocation24_spill] sm:$0xff]  ;;  %vm6348_vm1 = vcmask 777216  }
 0x421   :  { %18060 = vst [vmem:[#allocation6_spill] sm:$0xff] %v12474_v36 }
 0x423   :  { %v2458_v54 = vpop.f32.mrf.mxu2  ;;  %v12482_v31 = vpop.f32.mrf.mxu3 }
 0x424   :  { %v12485_v13 = vadd.f32 %v2458_v54, %v18061_v1  ;;  %v18064_v54 = vld [vmem:[#allocation22_spill] sm:$0xff] }
 0x426   :  { %v2261_v62 = vpop.f32.mrf.mxu0  ;;  %v2432_v30 = vpop.f32.mrf.mxu1 }
 0x427   :  { %v12495_v27 = vadd.f32 %v2261_v62, %v18062_v0  ;;  %v12498_v34 = vadd.f32 %v2432_v30, %v12195_v3  ;;  %v18067_v62 = vld [vmem:[#allocation26_spill] sm:$0xff] }
 0x428   :  { %8904 = vmatmul.msk.bf16.gmra.mxu2 %vm118_vm2, %v12490_v49  ;;  %8908 = vmatmul.msk.bf16.gmra.mxu3 %vm118_vm2, %v12490_v49 }
 0x429   :  { %18063 = vst [vmem:[#allocation12_spill] sm:$0xff] %v12495_v27  ;;  %8896 = vmatmul.msk.bf16.gmra.mxu0 %vm118_vm2, %v12490_v49  ;;  %8900 = vmatmul.msk.bf16.gmra.mxu1 %vm118_vm2, %v12490_v49 }
 0x42b   :  { %v2461_v51 = vpop.f32.mrf.mxu2  ;;  %v12508_v24 = vpop.f32.mrf.mxu3 }
 0x42c   :  { %v12511_v1 = vadd.f32 %v2461_v51, %v18064_v54 }
 0x42e   :  { %v2263_v3 = vpop.f32.mrf.mxu0  ;;  %v2434_v30 = vpop.f32.mrf.mxu1 }
 0x42f   :  { %v12514_v38 = vadd.f32 %v2263_v3, %v18065_v15  ;;  %v12517_v0 = vadd.f32 %v2434_v30, %v18067_v62  ;;  %v18071_v30 = vld [vmem:[#allocation5_spill] sm:$0xff] }
 0x431   :  { %18066 = vst [vmem:[#allocation38_spill] sm:$0xff] %v12514_v38 }
 0x433   :  { %v2463_v29 = vpop.f32.mrf.mxu2  ;;  %v12519_v45 = vpop.f32.mrf.mxu3 }
 0x434   :  { %v12522_v18 = vadd.f32 %v2463_v29, %v18068_v14 }
 0x436   :  { %v2266_v51 = vpop.f32.mrf.mxu0  ;;  %v2437_v54 = vpop.f32.mrf.mxu1 }
 0x437   :  { %v12528_v11 = vadd.f32 %v2266_v51, %v18069_v48  ;;  %v12531_v3 = vadd.f32 %v2437_v54, %v12232_v2 }
 0x438   :  { %8905 = vmatmul.msk.bf16.gmra.mxu2 %vm118_vm2, %v9957_v4  ;;  %8909 = vmatmul.msk.bf16.gmra.mxu3 %vm118_vm2, %v9957_v4 }
 0x439   :  { %18070 = vst [vmem:[#allocation25_spill] sm:$0xff] %v12528_v11  ;;  %8897 = vmatmul.msk.bf16.gmra.mxu0 %vm118_vm2, %v9957_v4  ;;  %8901 = vmatmul.msk.bf16.gmra.mxu1 %vm118_vm2, %v9957_v4 }
 0x43b   :  { %v2466_v14 = vpop.f32.mrf.mxu2  ;;  %v12537_v29 = vpop.f32.mrf.mxu3 }
 0x43c   :  { %v12540_v15 = vadd.f32 %v2466_v14, %v18071_v30 }
 0x43e   :  { %v2268_v62 = vpop.f32.mrf.mxu0  ;;  %v2439_v48 = vpop.f32.mrf.mxu1 }
 0x43f   :  { %v12543_v51 = vadd.f32 %v2268_v62, %v12241_v53  ;;  %v12546_v2 = vadd.f32 %v2439_v48, %v12244_v22 }
 0x441   :  { %18072 = vst [vmem:[#allocation39_spill] sm:$0xff] %v12543_v51 }
 0x443   :  { %v2468_v54 = vpop.f32.mrf.mxu2  ;;  %v12548_v11 = vpop.f32.mrf.mxu3 }
 0x444   :  { %v12551_v38 = vadd.f32 %v2468_v54, %v12247_v8 }
 0x446   :  { %v2509_v43 = vpop.f32.mrf.mxu0  ;;  %v12553_v58 = vpop.f32.mrf.mxu1 }
 0x448   :  { %8918 = vmatmul.msk.bf16.vlgmr.msrb.gmra.mxu2 %vm118_vm2, %v12405_v52 }
 0x449   :  { %8910 = vmatmul.msk.bf16.vlgmr.msrb.gmra.mxu0 %vm118_vm2, %v12405_v52  ;;  %8914 = vmatmul.msk.bf16.vlgmr.msrb.gmra.mxu1 %vm118_vm2, %v12405_v52 }
 0x44b   :  { %v12561_v22 = vpop.f32.mrf.mxu2  ;;  %v12563_v53 = vpop.f32.mrf.mxu3 }
 0x44c   :  { %18073 = vst [vmem:[#allocation13_spill] sm:$0xff] %v12563_v53 }
 0x44e   :  { %v12565_v14 = vpop.f32.mrf.mxu0  ;;  %v12567_v8 = vpop.f32.mrf.mxu1 }
 0x44f   :  { %18074 = vst [vmem:[#allocation40_spill] sm:$0xff] %v12567_v8 }
 0x453   :  { %v12569_v30 = vpop.f32.mrf.mxu2  ;;  %v12571_v62 = vpop.f32.mrf.mxu3 }
 0x454   :  { %18075 = vst [vmem:[#allocation14_spill] sm:$0xff] %v12569_v30 }
 0x455   :  { %18076 = vst [vmem:[#allocation41_spill] sm:$0xff] %v12571_v62  ;;  %v12638_v62 = vpop.permute.xlu2 %3027 }
 0x456   :  { %v12573_v48 = vpop.f32.mrf.mxu0  ;;  %v12575_v54 = vpop.f32.mrf.mxu1 }
 0x457   :  { %18077 = vst [vmem:[#allocation27_spill] sm:$0xff] %v12575_v54 }
 0x458   :  { %8919 = vmatmul.msk.bf16.gmra.mxu2 %vm118_vm2, %v12449_v39 }
 0x459   :  { %8911 = vmatmul.msk.bf16.gmra.mxu0 %vm118_vm2, %v12449_v39  ;;  %8915 = vmatmul.msk.bf16.gmra.mxu1 %vm118_vm2, %v12449_v39 }
 0x45b   :  { %v12583_v52 = vpop.f32.mrf.mxu2  ;;  %v12585_v51 = vpop.f32.mrf.mxu3 }
 0x45c   :  { %18078 = vst [vmem:[#allocation42_spill] sm:$0xff] %v12583_v52 }
 0x45d   :  { %18079 = vst [vmem:[#allocation15_spill] sm:$0xff] %v12585_v51 }
 0x45e   :  { %v12587_v56 = vpop.f32.mrf.mxu0  ;;  %v12589_v37 = vpop.f32.mrf.mxu1 }
 0x45f   :  { %18080 = vst [vmem:[#allocation43_spill] sm:$0xff] %v12589_v37 }
 0x463   :  { %v12591_v30 = vpop.f32.mrf.mxu2  ;;  %v12593_v54 = vpop.f32.mrf.mxu3 }
 0x464   :  { %18081 = vst [vmem:[#allocation16_spill] sm:$0xff] %v12591_v30 }
 0x465   :  { %18082 = vst [vmem:[#allocation44_spill] sm:$0xff] %v12593_v54 }
 0x466   :  { %v12595_v23 = vpop.f32.mrf.mxu0  ;;  %v12597_v8 = vpop.f32.mrf.mxu1 }
 0x467   :  { %18083 = vst [vmem:[#allocation29_spill] sm:$0xff] %v12597_v8 }
 0x468   :  { %8920 = vmatmul.msk.bf16.gmra.mxu2 %vm118_vm2, %v12490_v49 }
 0x469   :  { %8912 = vmatmul.msk.bf16.gmra.mxu0 %vm118_vm2, %v12490_v49  ;;  %8916 = vmatmul.msk.bf16.gmra.mxu1 %vm118_vm2, %v12490_v49 }
 0x46b   :  { %v12605_v39 = vpop.f32.mrf.mxu2  ;;  %v12607_v37 = vpop.f32.mrf.mxu3 }
 0x46c   :  { %18084 = vst [vmem:[#allocation45_spill] sm:$0xff] %v12605_v39 }
 0x46d   :  { %18085 = vst [vmem:[#allocation17_spill] sm:$0xff] %v12607_v37 }
 0x46e   :  { %v12609_v30 = vpop.f32.mrf.mxu0  ;;  %v12611_v52 = vpop.f32.mrf.mxu1 }
 0x46f   :  { %18086 = vst [vmem:[#allocation46_spill] sm:$0xff] %v12611_v52 }
 0x473   :  { %v12613_v47 = vpop.f32.mrf.mxu2  ;;  %v12615_v8 = vpop.f32.mrf.mxu3 }
 0x474   :  { %18087 = vst [vmem:[#allocation18_spill] sm:$0xff] %v12613_v47 }
 0x475   :  { %18088 = vst [vmem:[#allocation47_spill] sm:$0xff] %v12615_v8 }
 0x476   :  { %v12617_v27 = vpop.f32.mrf.mxu0  ;;  %v12619_v54 = vpop.f32.mrf.mxu1 }
 0x477   :  { %18089 = vst [vmem:[#allocation31_spill] sm:$0xff] %v12619_v54 }
 0x478   :  { %8921 = vmatmul.msk.bf16.gmra.mxu2 %vm118_vm2, %v9957_v4 }
 0x479   :  { %8913 = vmatmul.msk.bf16.gmra.mxu0 %vm118_vm2, %v9957_v4  ;;  %8917 = vmatmul.msk.bf16.gmra.mxu1 %vm118_vm2, %v9957_v4  ;;  %vm6588_vm2 = vcmask 769024  }
 0x47b   :  { %v12624_v49 = vpop.f32.mrf.mxu2  ;;  %v12626_v39 = vpop.f32.mrf.mxu3 }
 0x47c   :  { %18090 = vst [vmem:[#allocation48_spill] sm:$0xff] %v12624_v49  ;;  %v18095_v49 = vld [vmem:[#allocation51_spill] sm:$0xff] }
 0x47d   :  { %18091 = vst [vmem:[#allocation19_spill] sm:$0xff] %v12626_v39 }
 0x47e   :  { %v12628_v37 = vpop.f32.mrf.mxu0  ;;  %v12630_v52 = vpop.f32.mrf.mxu1 }
 0x47f   :  { %18092 = vst [vmem:[#allocation49_spill] sm:$0xff] %v12630_v52  ;;  %v2618_v52 = vadd.f32 %v12427_v35, %v18095_v49 }
 0x483   :  { %v12632_v47 = vpop.f32.mrf.mxu2  ;;  %v12634_v8 = vpop.f32.mrf.mxu3 }
 0x484   :  { %18093 = vst [vmem:[#allocation20_spill] sm:$0xff] %v12632_v47  ;;  %v18096_v47 = vld [vmem:[#allocation52_spill] sm:$0xff] }
 0x485   :  { %18094 = vst [vmem:[#allocation50_spill] sm:$0xff] %v12634_v8  ;;  %v2619_v16 = vadd.f32 %v2509_v43, %v18096_v47 }
 0x486   :  { %v2767_v36 = vpop.f32.mrf.mxu0  ;;  %v2796_v54 = vpop.f32.mrf.mxu1 }
 0x487   :  { %v2961_v51 = vadd.f32 %v2767_v36, %v12414_v61  ;;  %v2962_v41 = vadd.f32 %v2796_v54, %v12430_v46 }
 0x489   :  { %v12641_v4 = vadd.f32 %v12638_v62, %v2961_v51  ;;  %v12644_v39 = vadd.f32 %v12638_v62, %v2962_v41  ;;  %v12655_v41 = vpop.permute.xlu0 %3032 }
 0x48b   :  { %v3121_v8 = vmax.f32 %v12641_v4, 0.0  ;;  %v17750_v53 = vmax.f32 %v12644_v39, 0.0  ;;  %v2825_v61 = vpop.f32.mrf.mxu2  ;;  %v2854_v36 = vpop.f32.mrf.mxu3 }
 0x48c   :  { %v2963_v46 = vadd.f32 %v2825_v61, %v2618_v52  ;;  %v2964_v54 = vadd.f32 %v2854_v36, %v2619_v16 }
 0x48d   :  { %v10047_v51 = vpack.i.bf16 %v17750_v53, %v3121_v8 }
 0x48e   :  { %v12658_v9 = vadd.f32 %v12638_v62, %v2963_v46  ;;  %v12661_v47 = vadd.f32 %v12638_v62, %v2964_v54  ;;  %v2769_v43 = vpop.f32.mrf.mxu0  ;;  %v2798_v35 = vpop.f32.mrf.mxu1  ;;  %v2625_v54 = vadd.f32 %v12441_v17, %v12277_v59 }
 0x48f   :  { %v2968_v49 = vadd.f32 %v2769_v43, %v12436_v42  ;;  %v2969_v52 = vadd.f32 %v2798_v35, %v12444_v50  ;;  %10048 = vrot.lane.b32.xlu0 %v10047_v51, %s10368_s21  ;;  %v2626_v42 = vadd.f32 %v12565_v14, %v12280_v6  ;;  %v12689_v6 = vpop.permute.xlu1 %3037 }
 0x490   :  { %v17752_v16 = vmax.f32 %v12658_v9, 0.0  ;;  %v17751_v61 = vmax.f32 %v12661_v47, 0.0 }
 0x491   :  { %v12669_v36 = vadd.f32 %v12655_v41, %v2968_v49  ;;  %v12672_v46 = vadd.f32 %v12655_v41, %v2969_v52 }
 0x492   :  { %v10052_v50 = vpack.i.bf16 %v17751_v61, %v17752_v16 }
 0x493   :  { %v2827_v51 = vpop.f32.mrf.mxu2  ;;  %v2856_v43 = vpop.f32.mrf.mxu3  ;;  %v17787_v35 = vmax.f32 %v12669_v36, 0.0  ;;  %v17753_v49 = vmax.f32 %v12672_v46, 0.0 }
 0x494   :  { %v2970_v53 = vadd.f32 %v2827_v51, %v2625_v54  ;;  %v2971_v52 = vadd.f32 %v2856_v43, %v2626_v42  ;;  %10053 = vrot.lane.b32.xlu1 %v10052_v50, %s10368_s21 }
 0x495   :  { %v10057_v59 = vpack.i.bf16 %v17753_v49, %v17787_v35  ;;  %v18115_v35 = vld [vmem:[#allocation32_spill] sm:$0xff] }
 0x496   :  { %v12692_v17 = vadd.f32 %v12655_v41, %v2970_v53  ;;  %v12695_v14 = vadd.f32 %v12655_v41, %v2971_v52  ;;  %v2772_v61 = vpop.f32.mrf.mxu0  ;;  %v2801_v16 = vpop.f32.mrf.mxu1  ;;  %v2632_v52 = vadd.f32 %v12468_v28, %v12295_v26 }
 0x497   :  { %v2975_v54 = vadd.f32 %v2772_v61, %v12458_v55  ;;  %v2976_v42 = vadd.f32 %v2801_v16, %v12471_v60  ;;  %10058 = vrot.lane.b32.xlu0 %v10057_v59, %s10368_s21  ;;  %v2633_v55 = vadd.f32 %v12573_v48, %v12298_v19 }
 0x498   :  { %v17755_v50 = vmax.f32 %v12692_v17, 0.0  ;;  %v17754_v51 = vmax.f32 %v12695_v14, 0.0 }
 0x499   :  { %v12703_v43 = vadd.f32 %v12689_v6, %v2975_v54  ;;  %v12706_v53 = vadd.f32 %v12689_v6, %v2976_v42 }
 0x49a   :  { %v10062_v60 = vpack.i.bf16 %v17754_v51, %v17755_v50 }
 0x49b   :  { %v2830_v16 = vpop.f32.mrf.mxu2  ;;  %v2859_v61 = vpop.f32.mrf.mxu3  ;;  %v17786_v59 = vmax.f32 %v12703_v43, 0.0  ;;  %v17756_v54 = vmax.f32 %v12706_v53, 0.0 }
 0x49c   :  { %v2977_v49 = vadd.f32 %v2830_v16, %v2632_v52  ;;  %v2978_v42 = vadd.f32 %v2859_v61, %v2633_v55  ;;  %10063 = vrot.lane.b32.xlu1 %v10062_v60, %s10368_s21  ;;  %v12732_v55 = vpop.permute.xlu2 %3042 }
 0x49d   :  { %v10067_v26 = vpack.i.bf16 %v17756_v54, %v17786_v59 }
 0x49e   :  { %v12724_v19 = vadd.f32 %v12689_v6, %v2977_v49  ;;  %v12727_v28 = vadd.f32 %v12689_v6, %v2978_v42  ;;  %v2774_v48 = vpop.f32.mrf.mxu0  ;;  %v2803_v51 = vpop.f32.mrf.mxu1  ;;  %v2639_v42 = vadd.f32 %v12482_v31, %v12315_v40 }
 0x49f   :  { %v2982_v50 = vadd.f32 %v2774_v48, %v12477_v44  ;;  %v2983_v52 = vadd.f32 %v2803_v51, %v12485_v13  ;;  %10068 = vrot.lane.b32.xlu0 %v10067_v26, %s10368_s21  ;;  %v2640_v44 = vadd.f32 %v12587_v56, %v12318_v25  ;;  %v12757_v40 = vpop.permute.xlu1 %3047 }
 0x4a0   :  { %v17758_v60 = vmax.f32 %v12724_v19, 0.0  ;;  %v17757_v16 = vmax.f32 %v12727_v28, 0.0 }
 0x4a1   :  { %v12737_v49 = vadd.f32 %v12732_v55, %v2982_v50  ;;  %v12740_v61 = vadd.f32 %v12732_v55, %v2983_v52 }
 0x4a2   :  { %v10072_v13 = vpack.i.bf16 %v17757_v16, %v17758_v60 }
 0x4a3   :  { %v17760_v51 = vmax.f32 %v12737_v49, 0.0  ;;  %v17759_v26 = vmax.f32 %v12740_v61, 0.0  ;;  %v2832_v50 = vpop.f32.mrf.mxu2  ;;  %v2861_v48 = vpop.f32.mrf.mxu3 }
 0x4a4   :  { %v2984_v54 = vadd.f32 %v2832_v50, %v2639_v42  ;;  %v2985_v52 = vadd.f32 %v2861_v48, %v2640_v44  ;;  %10073 = vrot.lane.b32.xlu1 %v10072_v13, %s10368_s21 }
 0x4a5   :  { %v10077_v56 = vpack.i.bf16 %v17759_v26, %v17760_v51  ;;  %v12787_v51 = vpop.permute.xlu2 %3052 }
 0x4a6   :  { %v12760_v25 = vadd.f32 %v12732_v55, %v2984_v54  ;;  %v12763_v31 = vadd.f32 %v12732_v55, %v2985_v52  ;;  %v2777_v16 = vpop.f32.mrf.mxu0  ;;  %v2806_v60 = vpop.f32.mrf.mxu1  ;;  %v2646_v52 = vadd.f32 %v12508_v24, %v12327_v10 }
 0x4a7   :  { %v2989_v42 = vadd.f32 %v2777_v16, %v12498_v34  ;;  %v2990_v44 = vadd.f32 %v2806_v60, %v12511_v1  ;;  %10078 = vrot.lane.b32.xlu2 %v10077_v56, %s10368_s21  ;;  %v2647_v34 = vadd.f32 %v12595_v23, %v12330_v33 }
 0x4a8   :  { %18097 = vst [vmem:[#allocation22_spill] sm:$0xff] %v12763_v31  ;;  %v17785_v13 = vmax.f32 %v12760_v25, 0.0  ;;  %v17761_v50 = vmax.f32 %v12763_v31, 0.0  ;;  %v18121_v31 = vmax.f32 %v12692_v17, 0.0 }
 0x4a9   :  { %v12771_v48 = vadd.f32 %v12757_v40, %v2989_v42  ;;  %v12774_v54 = vadd.f32 %v12757_v40, %v2990_v44 }
 0x4aa   :  { %v10082_v1 = vpack.i.bf16 %v17761_v50, %v17785_v13 }
 0x4ab   :  { %v2835_v60 = vpop.f32.mrf.mxu2  ;;  %v2864_v16 = vpop.f32.mrf.mxu3  ;;  %v17783_v56 = vmax.f32 %v12771_v48, 0.0  ;;  %v17762_v42 = vmax.f32 %v12774_v54, 0.0 }
 0x4ac   :  { %v2991_v26 = vadd.f32 %v2835_v60, %v2646_v52  ;;  %v2992_v44 = vadd.f32 %v2864_v16, %v2647_v34  ;;  %10083 = vrot.lane.b32.xlu0 %v10082_v1, %s10368_s21 }
 0x4ad   :  { %v10087_v23 = vpack.i.bf16 %v17762_v42, %v17783_v56 }
 0x4ae   :  { %v12794_v10 = vadd.f32 %v12757_v40, %v2991_v26  ;;  %v12797_v33 = vadd.f32 %v12757_v40, %v2992_v44  ;;  %v2779_v24 = vpop.f32.mrf.mxu0  ;;  %v2808_v50 = vpop.f32.mrf.mxu1  ;;  %v2653_v44 = vadd.f32 %v12519_v45, %v12347_v57 }
 0x4af   :  { %v2996_v52 = vadd.f32 %v2779_v24, %v12517_v0  ;;  %v2997_v34 = vadd.f32 %v2808_v50, %v12522_v18  ;;  %10088 = vrot.lane.b32.xlu1 %v10087_v23, %s10368_s21  ;;  %v2654_v0 = vadd.f32 %v12609_v30, %v12350_v5 }
 0x4b0   :  { %18098 = vst [vmem:[#allocation24_spill] sm:$0xff] %v12797_v33  ;;  %v17764_v1 = vmax.f32 %v12794_v10, 0.0  ;;  %v17763_v60 = vmax.f32 %v12797_v33, 0.0 }
 0x4b1   :  { %v12805_v16 = vadd.f32 %v12787_v51, %v2996_v52  ;;  %v12808_v26 = vadd.f32 %v12787_v51, %v2997_v34 }
 0x4b2   :  { %v10092_v18 = vpack.i.bf16 %v17763_v60, %v17764_v1  ;;  %v12831_v1 = vpop.permute.xlu2 %3057 }
 0x4b3   :  { %v17782_v50 = vmax.f32 %v12805_v16, 0.0  ;;  %v17765_v23 = vmax.f32 %v12808_v26, 0.0  ;;  %v2837_v24 = vpop.f32.mrf.mxu2  ;;  %v2866_v52 = vpop.f32.mrf.mxu3 }
 0x4b4   :  { %v2998_v42 = vadd.f32 %v2837_v24, %v2653_v44  ;;  %v2999_v34 = vadd.f32 %v2866_v52, %v2654_v0  ;;  %10093 = vrot.lane.b32.xlu2 %v10092_v18, %s10368_s21 }
 0x4b5   :  { %v10097_v57 = vpack.i.bf16 %v17765_v23, %v17782_v50 }
 0x4b6   :  { %v12826_v5 = vadd.f32 %v12787_v51, %v2998_v42  ;;  %v12829_v45 = vadd.f32 %v12787_v51, %v2999_v34  ;;  %v2782_v30 = vpop.f32.mrf.mxu0  ;;  %v2811_v60 = vpop.f32.mrf.mxu1  ;;  %v2660_v34 = vadd.f32 %v12537_v29, %v12362_v32 }
 0x4b7   :  { %v3003_v44 = vadd.f32 %v2782_v30, %v12531_v3  ;;  %v3004_v0 = vadd.f32 %v2811_v60, %v12540_v15  ;;  %10098 = vrot.lane.b32.xlu0 %v10097_v57, %s10368_s21  ;;  %v2661_v3 = vadd.f32 %v12617_v27, %v12365_v63 }
 0x4b8   :  { %18099 = vst [vmem:[#allocation26_spill] sm:$0xff] %v12829_v45  ;;  %v17767_v18 = vmax.f32 %v12826_v5, 0.0  ;;  %v17766_v24 = vmax.f32 %v12829_v45, 0.0 }
 0x4b9   :  { %v12839_v42 = vadd.f32 %v12831_v1, %v3003_v44  ;;  %v12842_v52 = vadd.f32 %v12831_v1, %v3004_v0 }
 0x4ba   :  { %v10102_v15 = vpack.i.bf16 %v17766_v24, %v17767_v18 }
 0x4bb   :  { %v17781_v60 = vmax.f32 %v12839_v42, 0.0  ;;  %v17768_v57 = vmax.f32 %v12842_v52, 0.0  ;;  %v2840_v30 = vpop.f32.mrf.mxu2  ;;  %v2869_v44 = vpop.f32.mrf.mxu3 }
 0x4bc   :  { %v3005_v23 = vadd.f32 %v2840_v30, %v2660_v34  ;;  %v3006_v0 = vadd.f32 %v2869_v44, %v2661_v3  ;;  %10103 = vrot.lane.b32.xlu1 %v10102_v15, %s10368_s21  ;;  %v12870_v30 = vpop.permute.xlu2 %3062 }
 0x4bd   :  { %v10107_v32 = vpack.i.bf16 %v17768_v57, %v17781_v60 }
 0x4be   :  { %v12860_v63 = vadd.f32 %v12831_v1, %v3005_v23  ;;  %v12863_v27 = vadd.f32 %v12831_v1, %v3006_v0  ;;  %v2784_v29 = vpop.f32.mrf.mxu0  ;;  %v2813_v24 = vpop.f32.mrf.mxu1  ;;  %v2667_v23 = vadd.f32 %v12548_v11, %v12388_v12  ;;  %v2621_v11 = vadd.f32 %v12561_v22, %v12271_v21 }
 0x4bf   :  { %v3010_v18 = vadd.f32 %v2784_v29, %v12546_v2  ;;  %v3011_v34 = vadd.f32 %v2813_v24, %v12551_v38  ;;  %10108 = vrot.lane.b32.xlu0 %v10107_v32, %s10368_s21  ;;  %v2620_v32 = vadd.f32 %v12553_v58, %v12268_v20  ;;  %v18101_v58 = vld [vmem:[#allocation36_spill] sm:$0xff] }
 0x4c0   :  { %18100 = vst [vmem:[#allocation28_spill] sm:$0xff] %v12863_v27  ;;  %v17770_v3 = vmax.f32 %v12860_v63, 0.0  ;;  %v17769_v15 = vmax.f32 %v12863_v27, 0.0  ;;  %v18117_v27 = vld [vmem:[#allocation53_spill] sm:$0xff] }
 0x4c1   :  { %v12875_v44 = vadd.f32 %v12870_v30, %v3010_v18  ;;  %v12878_v0 = vadd.f32 %v12870_v30, %v3011_v34  ;;  %v2668_v18 = vadd.f32 %v12628_v37, %v12391_v7  ;;  %v18102_v7 = vld [vmem:[#allocation13_spill] sm:$0xff] }
 0x4c2   :  { %v10112_v38 = vpack.i.bf16 %v17769_v15, %v17770_v3  ;;  %v2622_v22 = vadd.f32 %v18102_v7, %v18101_v58  ;;  %v18104_v58 = vld [vmem:[#allocation11_spill] sm:$0xff] }
 0x4c3   :  { %v2842_v2 = vpop.f32.mrf.mxu2  ;;  %v2871_v12 = vpop.f32.mrf.mxu3  ;;  %v17777_v29 = vmax.f32 %v12875_v44, 0.0  ;;  %v17779_v34 = vmax.f32 %v12878_v0, 0.0 }
 0x4c4   :  { %v3012_v24 = vadd.f32 %v2842_v2, %v2667_v23  ;;  %10113 = vrot.lane.b32.xlu1 %v10112_v38, %s10368_s21  ;;  %v3013_v3 = vadd.f32 %v2871_v12, %v2668_v18 }
 0x4c5   :  { %v10117_v37 = vpack.i.bf16 %v17779_v34, %v17777_v29 }
 0x4c6   :  { %v2883_v57 = vpop.f32.mrf.mxu0  ;;  %v2912_v15 = vpop.f32.mrf.mxu1  ;;  %v12894_v23 = vadd.f32 %v12870_v30, %v3012_v24 }
 0x4c7   :  { %v2965_v38 = vadd.f32 %v2883_v57, %v2620_v32  ;;  %v2966_v2 = vadd.f32 %v2912_v15, %v2621_v11  ;;  %v12911_v32 = vadd.f32 %v12870_v30, %v3013_v3  ;;  %v18105_v3 = vld [vmem:[#allocation41_spill] sm:$0xff] }
 0x4c8   :  { %v17771_v24 = vmax.f32 %v12894_v23, 0.0  ;;  %v2629_v7 = vadd.f32 %v18105_v3, %v18104_v58  ;;  %v18107_v58 = vld [vmem:[#allocation15_spill] sm:$0xff] }
 0x4c9   :  { %v12897_v20 = vadd.f32 %v12638_v62, %v2965_v38  ;;  %v12900_v21 = vadd.f32 %v12638_v62, %v2966_v2  ;;  %18103 = vst [vmem:[#allocation30_spill] sm:$0xff] %v12911_v32  ;;  %v17772_v38 = vmax.f32 %v12911_v32, 0.0  ;;  %v18116_v32 = vld [vmem:[#allocation40_spill] sm:$0xff] }
 0x4cb   :  { %v17774_v57 = vmax.f32 %v12897_v20, 0.0  ;;  %v2941_v15 = vpop.f32.mrf.mxu2  ;;  %v17773_v18 = vmax.f32 %v12900_v21, 0.0 }
 0x4cc   :  { %10118 = vrot.lane.b32.xlu1 %v10117_v37, %s10368_s21  ;;  %v2967_v11 = vadd.f32 %v2941_v15, %v2622_v22 }
 0x4cd   :  { %v10122_v12 = vpack.i.bf16 %v17774_v57, %v17771_v24  ;;  %v10127_v37 = vpack.i.bf16 %v17772_v38, %v17773_v18  ;;  %v18108_v38 = vld [vmem:[#allocation6_spill] sm:$0xff]  ;;  %v18109_v18 = vld [vmem:[#allocation44_spill] sm:$0xff] }
 0x4ce   :  { %v12922_v2 = vadd.f32 %v12638_v62, %v2967_v11  ;;  %v18106_v11 = vld [vmem:[#allocation37_spill] sm:$0xff]  ;;  %v2643_v57 = vadd.f32 %v18109_v18, %v18108_v38  ;;  %v2885_v34 = vpop.f32.mrf.mxu0 }
 0x4cf   :  { %10123 = vrot.lane.b32.xlu2 %v10122_v12, %s10368_s21  ;;  %v2636_v3 = vadd.f32 %v18107_v58, %v18106_v11 }
 0x4d0   :  { %v17775_v24 = vmax.f32 %v12922_v2, 0.0 }
 0x4d3   :  { %v2943_v22 = vpop.f32.mrf.mxu2 }
 0x4d4   :  { %v2974_v15 = vadd.f32 %v2943_v22, %v2629_v7  ;;  %10128 = vrot.lane.b32.xlu1 %v10127_v37, %s10368_s21 }
 0x4d6   :  { %v12933_v12 = vadd.f32 %v12655_v41, %v2974_v15 }
 0x4d7   :  { %3245 = vrot.lane.b32.xlu2 %v17775_v24, %s10368_s21 }
 0x4d8   :  { %v17776_v62 = vmax.f32 %v12933_v12, 0.0 }
 0x4da   :  { %3259 = vrot.lane.b32.xlu0 %v17776_v62, %s10368_s21 }
 0x4db   :  { %v2946_v7 = vpop.f32.mrf.mxu2 }
 0x4dc   :  { %v2981_v37 = vadd.f32 %v2946_v7, %v2636_v3  ;;  %v18111_v3 = vld [vmem:[#allocation12_spill] sm:$0xff]  ;;  %v18112_v7 = vld [vmem:[#allocation17_spill] sm:$0xff] }
 0x4de   :  { %v12945_v22 = vadd.f32 %v12689_v6, %v2981_v37  ;;  %v2650_v37 = vadd.f32 %v18112_v7, %v18111_v3  ;;  %v2914_v3 = vpop.f32.mrf.mxu1 }
 0x4e0   :  { %v17778_v15 = vmax.f32 %v12945_v22, 0.0 }
 0x4e2   :  { %3273 = vrot.lane.b32.xlu0 %v17778_v15, %s10368_s21 }
 0x4e3   :  { %v2948_v24 = vpop.f32.mrf.mxu2 }
 0x4e4   :  { %v2988_v11 = vadd.f32 %v2948_v24, %v2643_v57 }
 0x4e6   :  { %v12954_v58 = vadd.f32 %v12732_v55, %v2988_v11 }
 0x4e8   :  { %18110 = vst [vmem:[#allocation5_spill] sm:$0xff] %v12954_v58  ;;  %v17780_v62 = vmax.f32 %v12954_v58, 0.0  ;;  %v18120_v58 = vmax.f32 %v12672_v46, 0.0 }
 0x4ea   :  { %3287 = vrot.lane.b32.xlu1 %v17780_v62, %s10368_s21 }
 0x4eb   :  { %v2951_v29 = vpop.f32.mrf.mxu2 }
 0x4ec   :  { %v2995_v18 = vadd.f32 %v2951_v29, %v2650_v37 }
 0x4ee   :  { %v12963_v38 = vadd.f32 %v12757_v40, %v2995_v18 }
 0x4f0   :  { %18113 = vst [vmem:[#allocation51_spill] sm:$0xff] %v12963_v38  ;;  %v17784_v15 = vmax.f32 %v12963_v38, 0.0 }
 0x4f2   :  { %3301 = vrot.lane.b32.xlu1 %v17784_v15, %s10368_s21  ;;  %v18114_v15 = vmax.f32 %v12644_v39, 0.0  ;;  %v2917_v39 = vpop.f32.mrf.mxu1 }
 0x501   :  { %v10049_v24 = vpop.permute.xlu0 %10048 }
 0x502   :  { %v10051_v57 = vunpack.i.h.bf16 %v10049_v24  ;;  %v10050_v11 = vunpack.i.l.bf16 %v10049_v24 }
 0x504   :  { %v3346_v29 = vsel %vm111_vm0, %v10050_v11, %v10051_v57 }
 0x505   :  { %v12976_v56 = vmax.f32 %v3121_v8, %v3346_v29  ;;  %v2888_v8 = vpop.f32.mrf.mxu0 }
 0x506   :  { %v12969_v7 = vpop.permute.xlu1 %10053 }
 0x507   :  { %v10055_v62 = vunpack.i.l.bf16 %v12969_v7  ;;  %v17796_v13 = vunpack.i.h.bf16 %v12969_v7 }
 0x509   :  { %v10059_v37 = vpop.permute.xlu0 %10058  ;;  %v3347_v18 = vsel %vm111_vm0, %v10051_v57, %v10055_v62  ;;  %v2627_v57 = vadd.f32 %v18116_v32, %v18115_v35  ;;  %v18119_v35 = vmax.f32 %v12669_v36, 0.0 }
 0x50a   :  { %v10061_v60 = vunpack.i.h.bf16 %v10059_v37  ;;  %v10060_v50 = vunpack.i.l.bf16 %v10059_v37  ;;  %v12980_v24 = vmax.f32 %v18114_v15, %v3347_v18  ;;  %v18118_v37 = vld [vmem:[#allocation14_spill] sm:$0xff] }
 0x50b   :  { %v2628_v38 = vadd.f32 %v18118_v37, %v18117_v27  ;;  %v2972_v18 = vadd.f32 %v2885_v34, %v2627_v57  ;;  %v18123_v34 = vmax.f32 %v12658_v9, 0.0 }
 0x50c   :  { %v10132_v59 = vpack.i.bf16 %v12980_v24, %v12976_v56  ;;  %v3352_v11 = vsel %vm111_vm0, %v10060_v50, %v10061_v60  ;;  %v3348_v50 = vsel %vm111_vm0, %v10055_v62, %v17796_v13 }
 0x50d   :  { %v2973_v45 = vadd.f32 %v2914_v3, %v2628_v38  ;;  %v13000_v32 = vmax.f32 %v18119_v35, %v3352_v11  ;;  %v13016_v36 = vmax.f32 %v18123_v34, %v3348_v50  ;;  %v18128_v50 = vld [vmem:[#allocation42_spill] sm:$0xff] }
 0x50e   :  { %v12990_v4 = vpop.permute.xlu1 %10063  ;;  %10133 = vrot.lane.b32.xlu2 %v10132_v59, %s10370_s30 }
 0x50f   :  { %v17795_v15 = vunpack.i.h.bf16 %v12990_v4  ;;  %v10065_v29 = vunpack.i.l.bf16 %v12990_v4  ;;  %18124 = vst [vmem:[#allocation36_spill] sm:$0xff] %v13016_v36  ;;  %v13022_v11 = vadd.f32 %v12655_v41, %v2973_v45  ;;  %v10137_v17 = vpack.i.bf16 %v13000_v32, %v13016_v36 }
 0x511   :  { %v10069_v27 = vpop.permute.xlu0 %10068  ;;  %v3353_v37 = vsel %vm111_vm0, %v10061_v60, %v10065_v29  ;;  %v3354_v59 = vsel %vm111_vm0, %v10065_v29, %v17795_v15  ;;  %v13019_v60 = vadd.f32 %v12655_v41, %v2972_v18  ;;  %v18127_v29 = vld [vmem:[#allocation7_spill] sm:$0xff]  ;;  %v10079_v41 = vpop.permute.xlu2 %10078 }
 0x512   :  { %v13008_v33 = vmax.f32 %v18120_v58, %v3353_v37  ;;  %v13012_v62 = vmax.f32 %v18121_v31, %v3354_v59  ;;  %v10071_v38 = vunpack.i.h.bf16 %v10069_v27  ;;  %v10070_v3 = vunpack.i.l.bf16 %v10069_v27  ;;  %v18125_v31 = vld [vmem:[#allocation4_spill] sm:$0xff]  ;;  %v18126_v58 = vld [vmem:[#allocation27_spill] sm:$0xff] }
 0x513   :  { %v2634_v57 = vadd.f32 %v18126_v58, %v18125_v31  ;;  %v2635_v18 = vadd.f32 %v18128_v50, %v18127_v29  ;;  %v17799_v27 = vmax.f32 %v13019_v60, 0.0  ;;  %v2890_v31 = vpop.f32.mrf.mxu0  ;;  %v2919_v58 = vpop.f32.mrf.mxu1  ;;  %v10081_v15 = vunpack.i.h.bf16 %v10079_v41 }
 0x514   :  { %18122 = vst [vmem:[#allocation52_spill] sm:$0xff] %v13012_v62  ;;  %v10152_v46 = vpack.i.bf16 %v13012_v62, %v13008_v33  ;;  %v3358_v35 = vsel %vm111_vm0, %v10070_v3, %v10071_v38  ;;  %v10080_v13 = vunpack.i.l.bf16 %v10079_v41  ;;  %v18129_v29 = vmax.f32 %v12703_v43, 0.0 }
 0x515   :  { %v2979_v59 = vadd.f32 %v2888_v8, %v2634_v57  ;;  %v2980_v34 = vadd.f32 %v2917_v39, %v2635_v18  ;;  %v18130_v3 = vmax.f32 %v12706_v53, 0.0  ;;  %v18131_v39 = vmax.f32 %v13022_v11, 0.0  ;;  %v18132_v57 = vld [vmem:[#allocation21_spill] sm:$0xff]  ;;  %v18133_v18 = vld [vmem:[#allocation43_spill] sm:$0xff] }
 0x516   :  { %v13030_v9 = vpop.permute.xlu1 %10073  ;;  %10153 = vrot.lane.b32.xlu0 %v10152_v46, %s10370_s30  ;;  %10138 = vrot.lane.b32.xlu2 %v10137_v17, %s10370_s30  ;;  %v13044_v50 = vmax.f32 %v18129_v29, %v3358_v35  ;;  %v2641_v43 = vadd.f32 %v18133_v18, %v18132_v57  ;;  %v18134_v35 = vld [vmem:[#allocation33_spill] sm:$0xff] }
 0x517   :  { %v10075_v45 = vunpack.i.l.bf16 %v13030_v9  ;;  %v17798_v46 = vunpack.i.h.bf16 %v13030_v9  ;;  %v13051_v37 = vadd.f32 %v12689_v6, %v2979_v59  ;;  %v13062_v41 = vadd.f32 %v12689_v6, %v2980_v34  ;;  %v18135_v59 = vld [vmem:[#allocation16_spill] sm:$0xff]  ;;  %v18144_v34 = vld [vmem:[#allocation47_spill] sm:$0xff] }
 0x519   :  { %v3359_v17 = vsel %vm111_vm0, %v10071_v38, %v10075_v45  ;;  %v10142_v38 = vpack.i.bf16 %v18131_v39, %v17799_v27  ;;  %v3360_v53 = vsel %vm111_vm0, %v10075_v45, %v17798_v46  ;;  %v2986_v39 = vadd.f32 %v2890_v31, %v2641_v43  ;;  %v13077_v45 = vpop.permute.xlu2 %10093 }
 0x51a   :  { %v13048_v62 = vmax.f32 %v18130_v3, %v3359_v17  ;;  %v2642_v17 = vadd.f32 %v18135_v59, %v18134_v35  ;;  %v3364_v3 = vsel %vm111_vm0, %v10080_v13, %v10081_v15  ;;  %v18137_v35 = vmax.f32 %v12724_v19, 0.0 }
 0x51b   :  { %v18139_v31 = vmax.f32 %v12737_v49, 0.0  ;;  %v18140_v19 = vmax.f32 %v12740_v61, 0.0  ;;  %v2893_v49 = vpop.f32.mrf.mxu0 }
 0x51c   :  { %v10157_v8 = vpack.i.bf16 %v13048_v62, %v13044_v50  ;;  %v2987_v18 = vadd.f32 %v2919_v58, %v2642_v17  ;;  %v13081_v59 = vmax.f32 %v18137_v35, %v3360_v53  ;;  %v2953_v58 = vpop.f32.mrf.mxu2  ;;  %v18141_v35 = vmax.f32 %v12760_v25, 0.0 }
 0x51d   :  { %v13090_v43 = vmax.f32 %v18139_v31, %v3364_v3  ;;  %v2922_v3 = vpop.f32.mrf.mxu1  ;;  %v10095_v31 = vunpack.i.l.bf16 %v13077_v45 }
 0x51e   :  { %v13069_v29 = vpop.permute.xlu0 %10083  ;;  %10158 = vrot.lane.b32.xlu0 %v10157_v8, %s10370_s30  ;;  %10143 = vrot.lane.b32.xlu2 %v10142_v38, %s10368_s21  ;;  %18138 = vst [vmem:[#allocation11_spill] sm:$0xff] %v13081_v59  ;;  %v13109_v61 = vadd.f32 %v12732_v55, %v2987_v18 }
 0x51f   :  { %18136 = vst [vmem:[#allocation13_spill] sm:$0xff] %v13069_v29  ;;  %v17801_v57 = vunpack.i.h.bf16 %v13069_v29  ;;  %v10085_v6 = vunpack.i.l.bf16 %v13069_v29 }
 0x521   :  { %v10089_v46 = vpop.permute.xlu1 %10088  ;;  %v3365_v38 = vsel %vm111_vm0, %v10081_v15, %v10085_v6  ;;  %v3366_v13 = vsel %vm111_vm0, %v10085_v6, %v17801_v57  ;;  %v18143_v15 = vld [vmem:[#allocation38_spill] sm:$0xff]  ;;  %v13103_v6 = vadd.f32 %v12732_v55, %v2986_v39  ;;  %v18145_v57 = vld [vmem:[#allocation9_spill] sm:$0xff]  ;;  %v18147_v39 = vmax.f32 %v13051_v37, 0.0 }
 0x522   :  { %v10091_v17 = vunpack.i.h.bf16 %v10089_v46  ;;  %v10090_v27 = vunpack.i.l.bf16 %v10089_v46  ;;  %v13094_v53 = vmax.f32 %v18140_v19, %v3365_v38  ;;  %v13098_v8 = vmax.f32 %v18141_v35, %v3366_v13  ;;  %v18146_v46 = vld [vmem:[#allocation29_spill] sm:$0xff] }
 0x523   :  { %v2657_v36 = vadd.f32 %v18144_v34, %v18143_v15  ;;  %v2648_v29 = vadd.f32 %v18146_v46, %v18145_v57  ;;  %v10162_v38 = vpack.i.bf16 %v13090_v43, %v13081_v59  ;;  %v18148_v13 = vmax.f32 %v13062_v41, 0.0  ;;  %v18149_v57 = vld [vmem:[#allocation2_spill] sm:$0xff]  ;;  %v18150_v46 = vld [vmem:[#allocation45_spill] sm:$0xff] }
 0x524   :  { %18142 = vst [vmem:[#allocation41_spill] sm:$0xff] %v13098_v8  ;;  %v10177_v25 = vpack.i.bf16 %v13098_v8, %v13094_v53  ;;  %v3370_v35 = vsel %vm111_vm0, %v10090_v27, %v10091_v17  ;;  %v3371_v15 = vsel %vm111_vm0, %v10091_v17, %v10095_v31  ;;  %v2649_v55 = vadd.f32 %v18150_v46, %v18149_v57 }
 0x525   :  { %v3002_v34 = vadd.f32 %v2953_v58, %v2657_v36  ;;  %v10147_v19 = vpack.i.bf16 %v18148_v13, %v18147_v39  ;;  %v17805_v18 = vmax.f32 %v13103_v6, 0.0  ;;  %v2993_v8 = vadd.f32 %v2893_v49, %v2648_v29 }
 0x526   :  { %10178 = vrot.lane.b32.xlu1 %v10177_v25, %s10370_s30  ;;  %10163 = vrot.lane.b32.xlu0 %v10162_v38, %s10370_s30  ;;  %v17804_v36 = vmax.f32 %v13109_v61, 0.0  ;;  %v2994_v58 = vadd.f32 %v2922_v3, %v2649_v55  ;;  %v18151_v39 = vmax.f32 %v12771_v48, 0.0  ;;  %v18152_v17 = vmax.f32 %v12774_v54, 0.0  ;;  %v18155_v55 = vld [vmem:[#allocation46_spill] sm:$0xff] }
 0x527   :  { %10148 = vrot.lane.b32.xlu2 %v10147_v19, %s10368_s21  ;;  %v13137_v25 = vadd.f32 %v12787_v51, %v3002_v34  ;;  %v13140_v29 = vadd.f32 %v12757_v40, %v2993_v8  ;;  %v2895_v34 = vpop.f32.mrf.mxu0  ;;  %v2924_v19 = vpop.f32.mrf.mxu1 }
 0x528   :  { %v13130_v27 = vmax.f32 %v18151_v39, %v3370_v35  ;;  %v13134_v13 = vmax.f32 %v18152_v17, %v3371_v15  ;;  %v13144_v3 = vadd.f32 %v12757_v40, %v2994_v58  ;;  %v10167_v54 = vpack.i.bf16 %v17804_v36, %v17805_v18  ;;  %v18154_v15 = vld [vmem:[#allocation34_spill] sm:$0xff] }
 0x529   :  { %18153 = vst [vmem:[#allocation37_spill] sm:$0xff] %v13137_v25  ;;  %v10099_v38 = vpop.permute.xlu0 %10098  ;;  %v17806_v35 = vmax.f32 %v13137_v25, 0.0  ;;  %v2655_v39 = vadd.f32 %v18155_v55, %v18154_v15  ;;  %v18156_v17 = vld [vmem:[#allocation10_spill] sm:$0xff]  ;;  %v18159_v36 = vmax.f32 %v12805_v16, 0.0  ;;  %v3861_v25 = vld [vmem:[%s17732_s5 + $0xd0] sm:$0xff]  ;;  %v18161_v55 = vmax.f32 %v12794_v10, 0.0 }
 0x52a   :  { %v10101_v57 = vunpack.i.h.bf16 %v10099_v38  ;;  %v10100_v46 = vunpack.i.l.bf16 %v10099_v38  ;;  %v10182_v48 = vpack.i.bf16 %v13134_v13, %v13130_v27  ;;  %v18157_v40 = vld [vmem:[#allocation18_spill] sm:$0xff]  ;;  %v18163_v16 = vmax.f32 %v12808_v26, 0.0 }
 0x52b   :  { %v2656_v58 = vadd.f32 %v18157_v40, %v18156_v17  ;;  %v3000_v17 = vadd.f32 %v2895_v34, %v2655_v39  ;;  %v18166_v26 = vmax.f32 %v13140_v29, 0.0 }
 0x52c   :  { %v3376_v8 = vsel %vm111_vm0, %v10100_v46, %v10101_v57  ;;  %v18158_v46 = vunpack.i.h.bf16 %v13077_v45 }
 0x52d   :  { %v3001_v40 = vadd.f32 %v2924_v19, %v2656_v58  ;;  %v13180_v18 = vmax.f32 %v18159_v36, %v3376_v8 }
 0x52e   :  { %v13158_v38 = vpop.permute.xlu1 %10103  ;;  %10183 = vrot.lane.b32.xlu1 %v10182_v48, %s10370_s30  ;;  %10168 = vrot.lane.b32.xlu0 %v10167_v54, %s10368_s21  ;;  %v3372_v15 = vsel %vm111_vm0, %v10095_v31, %v18158_v46  ;;  %v3865_v48 = vld [vmem:[%s17732_s5 + $0xf0] sm:$0xff]  ;;  %v3863_v54 = vld [vmem:[%s17732_s5 + $0xe0] sm:$0xff] }
 0x52f   :  { %v10105_v49 = vunpack.i.l.bf16 %v13158_v38  ;;  %3315 = vrot.lane.b32.xlu2 %v17806_v35, %s10368_s21  ;;  %4069 = vmatpush.msrb.mxu3 %v3865_v48  ;;  %v18160_v46 = vunpack.i.h.bf16 %v13158_v38  ;;  %v13191_v34 = vmax.f32 %v18161_v55, %v3372_v15  ;;  %v13205_v58 = vadd.f32 %v12787_v51, %v3001_v40  ;;  %v3897_v55 = vld [vmem:[%s17732_s5 + $0x1f0] sm:$0xff] }
 0x530   :  { %v18167_v15 = vmax.f32 %v13144_v3, 0.0  ;;  %4110 = vmatpush.msra.mxu0 %v3897_v55  ;;  %v3891_v55 = vld [vmem:[%s17732_s5 + $0x1c0] sm:$0xff] }
 0x531   :  { %v10109_v35 = vpop.permute.xlu0 %10108  ;;  %v3377_v31 = vsel %vm111_vm0, %v10101_v57, %v10105_v49  ;;  %v3378_v59 = vsel %vm111_vm0, %v10105_v49, %v18160_v46  ;;  %18162 = vst [vmem:[#allocation15_spill] sm:$0xff] %v13191_v34  ;;  %4070 = vmatpush.msrb.mxu3 %v3863_v54  ;;  %v18164_v57 = vmax.f32 %v12826_v5, 0.0  ;;  %v13202_v49 = vadd.f32 %v12787_v51, %v3000_v17  ;;  %v3855_v46 = vld [vmem:[%s17732_s5 + $0xa0] sm:$0xff] }
 0x532   :  { %v13195_v36 = vmax.f32 %v18163_v16, %v3377_v31  ;;  %v10111_v19 = vunpack.i.h.bf16 %v10109_v35  ;;  %v10110_v8 = vunpack.i.l.bf16 %v10109_v35  ;;  %v10187_v10 = vpack.i.bf16 %v13180_v18, %v13191_v34  ;;  %v13233_v31 = vpop.permute.xlu2 %10123  ;;  %v3895_v16 = vld [vmem:[%s17732_s5 + $0x1e0] sm:$0xff] }
 0x533   :  { %v13199_v39 = vmax.f32 %v18164_v57, %v3378_v59  ;;  %v10172_v48 = vpack.i.bf16 %v18167_v15, %v18166_v26  ;;  %4071 = vmatpush.msrb.mxu3 %v3861_v25  ;;  %v3859_v59 = vld [vmem:[%s17732_s5 + $0xc0] sm:$0xff]  ;;  %v3857_v25 = vld [vmem:[%s17732_s5 + $0xb0] sm:$0xff]  ;;  %v17810_v17 = vmax.f32 %v13202_v49, 0.0  ;;  %v17809_v40 = vmax.f32 %v13205_v58, 0.0  ;;  %4111 = vmatpush.msra.mxu0 %v3895_v16  ;;  %v18172_v16 = vld [vmem:[#allocation31_spill] sm:$0xff] }
 0x534   :  { %v3382_v54 = vsel %vm111_vm0, %v10110_v8, %v10111_v19  ;;  %v3893_v57 = vld [vmem:[%s17732_s5 + $0x1d0] sm:$0xff]  ;;  %v18169_v15 = vmax.f32 %v12842_v52, 0.0 }
 0x535   :  { %18165 = vst [vmem:[#allocation6_spill] sm:$0xff] %v13199_v39  ;;  %v10197_v5 = vpack.i.bf16 %v13199_v39, %v13195_v36  ;;  %4072 = vmatpush.msrb.mxu3 %v3859_v59  ;;  %4112 = vmatpush.msra.mxu0 %v3893_v57  ;;  %v3887_v59 = vld [vmem:[%s17732_s5 + $0x1a0] sm:$0xff] }
 0x536   :  { %v13218_v35 = vpop.permute.xlu1 %10113  ;;  %10188 = vrot.lane.b32.xlu1 %v10187_v10, %s10370_s30  ;;  %10173 = vrot.lane.b32.xlu0 %v10172_v48, %s10368_s21  ;;  %v18168_v10 = vmax.f32 %v12839_v42, 0.0  ;;  %v10192_v42 = vpack.i.bf16 %v17809_v40, %v17810_v17  ;;  %v2927_v17 = vpop.f32.mrf.mxu1 }
 0x537   :  { %v10115_v51 = vunpack.i.l.bf16 %v13218_v35  ;;  %10198 = vrot.lane.b32.xlu2 %v10197_v5, %s10370_s30  ;;  %4073 = vmatpush.msrb.mxu3 %v3857_v25  ;;  %v3853_v5 = vld [vmem:[%s17732_s5 + $0x90] sm:$0xff]  ;;  %v3851_v25 = vld [vmem:[%s17732_s5 + $0x80] sm:$0xff] }
 0x538   :  { %v13247_v26 = vmax.f32 %v18168_v10, %v3382_v54  ;;  %v2898_v54 = vpop.f32.mrf.mxu0  ;;  %v18173_v10 = vld [vmem:[#allocation35_spill] sm:$0xff]  ;;  %4113 = vmatpush.msra.mxu0 %v3891_v55 }
 0x539   :  { %v3383_v8 = vsel %vm111_vm0, %v10111_v19, %v10115_v51  ;;  %4074 = vmatpush.msrb.mxu3 %v3855_v46  ;;  %v18171_v46 = vld [vmem:[#allocation8_spill] sm:$0xff] }
 0x53a   :  { %v13251_v48 = vmax.f32 %v18169_v15, %v3383_v8  ;;  %v2662_v8 = vadd.f32 %v18172_v16, %v18171_v46  ;;  %v18174_v15 = vld [vmem:[#allocation48_spill] sm:$0xff]  ;;  %v18175_v16 = vunpack.i.h.bf16 %v13233_v31 }
 0x53b   :  { %4075 = vmatpush.msrb.mxu3 %v3853_v5  ;;  %v2663_v40 = vadd.f32 %v18174_v15, %v18173_v10  ;;  %v3849_v5 = vld [vmem:[%s17732_s5 + $0x70] sm:$0xff]  ;;  %v18176_v10 = vunpack.i.h.bf16 %v12969_v7  ;;  %v18178_v7 = vunpack.i.l.bf16 %v13233_v31 }
 0x53c   :  { %18170 = vst [vmem:[#allocation44_spill] sm:$0xff] %v13251_v48  ;;  %v10202_v52 = vpack.i.bf16 %v13251_v48, %v13247_v26  ;;  %v3889_v19 = vld [vmem:[%s17732_s5 + $0x1b0] sm:$0xff] }
 0x53d   :  { %v3349_v15 = vsel %vm111_vm0, %v18176_v10, %v18175_v16  ;;  %4076 = vmatpush.msrb.mxu3 %v3851_v25  ;;  %4114 = vmatpush.msra.mxu0 %v3889_v19  ;;  %v3008_v34 = vadd.f32 %v2927_v17, %v2663_v40  ;;  %v18179_v25 = vmax.f32 %v12661_v47, 0.0  ;;  %v18181_v17 = vmax.f32 %v12860_v63, 0.0 }
 0x53e   :  { %v10119_v57 = vpop.permute.xlu1 %10118  ;;  %10193 = vrot.lane.b32.xlu1 %v10192_v42, %s10368_s21  ;;  %v18177_v42 = vunpack.i.h.bf16 %v13218_v35 }
 0x53f   :  { %v10121_v39 = vunpack.i.h.bf16 %v10119_v57  ;;  %v10120_v46 = vunpack.i.l.bf16 %v10119_v57  ;;  %10203 = vrot.lane.b32.xlu2 %v10202_v52, %s10370_s30  ;;  %v3847_v52 = vld [vmem:[%s17732_s5 + $0x60] sm:$0xff]  ;;  %v3007_v57 = vadd.f32 %v2898_v54, %v2662_v8  ;;  %4077 = vmatpush.msrb.mxu3 %v3849_v5  ;;  %v13306_v19 = vmax.f32 %v18179_v25, %v3349_v15  ;;  %v3845_v8 = vld [vmem:[%s17732_s5 + $0x50] sm:$0xff] }
 0x540   :  { %v3384_v55 = vsel %vm111_vm0, %v10115_v51, %v18177_v42  ;;  %v3885_v51 = vld [vmem:[%s17732_s5 + $0x190] sm:$0xff]  ;;  %v18180_v42 = vmax.f32 %v12878_v0, 0.0  ;;  %v18182_v54 = vmax.f32 %v12875_v44, 0.0  ;;  %4115 = vmatpush.msra.mxu0 %v3887_v59  ;;  %v13331_v44 = vadd.f32 %v12831_v1, %v3008_v34  ;;  %v3843_v59 = vld [vmem:[%s17732_s5 + $0x40] sm:$0xff] }
 0x541   :  { %v3389_v16 = vsel %vm111_vm0, %v10121_v39, %v18178_v7  ;;  %v3388_v10 = vsel %vm111_vm0, %v10120_v46, %v10121_v39  ;;  %v13314_v40 = vmax.f32 %v18181_v17, %v3384_v55  ;;  %4078 = vmatpush.msrb.mxu3 %v3847_v52  ;;  %v13328_v63 = vadd.f32 %v12831_v1, %v3007_v57  ;;  %v3883_v5 = vld [vmem:[%s17732_s5 + $0x180] sm:$0xff]  ;;  %v3841_v15 = vld [vmem:[%s17732_s5 + $0x30] sm:$0xff]  ;;  %v3246_v52 = vpop.permute.xlu2 %3245  ;;  %v18185_v17 = vld [vmem:[#allocation19_spill] sm:$0xff] }
 0x542   :  { %v13310_v48 = vmax.f32 %v18180_v42, %v3389_v16  ;;  %v13318_v39 = vmax.f32 %v18182_v54, %v3388_v10  ;;  %4116 = vmatpush.msra.mxu0 %v3885_v51  ;;  %v3881_v34 = vld [vmem:[%s17732_s5 + $0x170] sm:$0xff]  ;;  %v17814_v7 = vmax.f32 %v13331_v44, 0.0  ;;  %v2956_v16 = vpop.f32.mrf.mxu2  ;;  %v18183_v10 = vunpack.i.h.bf16 %v13233_v31  ;;  %v18184_v42 = vld [vmem:[#allocation25_spill] sm:$0xff] }
 0x543   :  { %4079 = vmatpush.msrb.mxu3 %v3845_v8  ;;  %v17815_v57 = vmax.f32 %v13328_v63, 0.0  ;;  %v2664_v54 = vadd.f32 %v18185_v17, %v18184_v42  ;;  %v18186_v8 = vmax.f32 %v12897_v20, 0.0  ;;  %v3875_v42 = vld [vmem:[%s17732_s5 + $0x140] sm:$0xff]  ;;  %v18188_v17 = vld [vmem:[#allocation23_spill] sm:$0xff] }
 0x544   :  { %v10217_v47 = vpack.i.bf16 %v13306_v19, %v13310_v48  ;;  %v10207_v0 = vpack.i.bf16 %v13318_v39, %v13314_v40  ;;  %4117 = vmatpush.msra.mxu0 %v3883_v5  ;;  %v3839_v5 = vld [vmem:[%s17732_s5 + $0x20] sm:$0xff] }
 0x545   :  { %4080 = vmatpush.msrb.mxu3 %v3843_v59 }
 0x546   :  { %v13339_v46 = vpop.permute.xlu1 %10128  ;;  %10218 = vrot.lane.b32.xlu0 %v10217_v47, %s10370_s30  ;;  %4118 = vmatpush.msra.mxu0 %v3881_v34  ;;  %v3879_v34 = vld [vmem:[%s17732_s5 + $0x160] sm:$0xff] }
 0x547   :  { %v10130_v55 = vunpack.i.l.bf16 %v13339_v46  ;;  %10208 = vrot.lane.b32.xlu2 %v10207_v0, %s10370_s30  ;;  %4081 = vmatpush.msrb.mxu3 %v3841_v15  ;;  %v18187_v0 = vmax.f32 %v12900_v21, 0.0  ;;  %v3009_v15 = vadd.f32 %v2956_v16, %v2664_v54  ;;  %v3837_v21 = vld [vmem:[%s17732_s5 + $0x10] sm:$0xff]  ;;  %v10212_v16 = vpack.i.bf16 %v17814_v7, %v17815_v57  ;;  %v18189_v54 = vld [vmem:[#allocation49_spill] sm:$0xff] }
 0x548   :  { %4119 = vmatpush.msra.mxu0 %v3879_v34 }
 0x549   :  { %v3350_v51 = vsel %vm111_vm0, %v18183_v10, %v10130_v55  ;;  %v3351_v25 = vsel %vm111_vm0, %v10130_v55, %v3246_v52  ;;  %4082 = vmatpush.msrb.mxu3 %v3839_v5  ;;  %v3877_v55 = vld [vmem:[%s17732_s5 + $0x150] sm:$0xff]  ;;  %v3835_v10 = vld [vmem:[%s17732_s5] sm:$0xff] }
 0x54a   :  { %v13360_v47 = vmax.f32 %v18186_v8, %v3350_v51  ;;  %v13364_v59 = vmax.f32 %v18187_v0, %v3351_v25  ;;  %v2900_v51 = vpop.f32.mrf.mxu0  ;;  %v2929_v25 = vpop.f32.mrf.mxu1  ;;  %4120 = vmatpush.msra.mxu0 %v3877_v55  ;;  %v2669_v8 = vadd.f32 %v18189_v54, %v18188_v17  ;;  %v18190_v0 = vld [vmem:[#allocation3_spill] sm:$0xff]  ;;  %v18191_v5 = vld [vmem:[#allocation20_spill] sm:$0xff]  ;;  %v13400_v55 = vadd.f32 %v12831_v1, %v3009_v15  ;;  %v3871_v17 = vld [vmem:[%s17732_s5 + $0x120] sm:$0xff] }
 0x54b   :  { %4083 = vmatpush.msrb.mxu3 %v3837_v21  ;;  %v2670_v34 = vadd.f32 %v18191_v5, %v18190_v0  ;;  %v3873_v21 = vld [vmem:[%s17732_s5 + $0x130] sm:$0xff]  ;;  %v18192_v15 = vmax.f32 %v12922_v2, 0.0 }
 0x54c   :  { %v10222_v20 = vpack.i.bf16 %v13364_v59, %v13360_v47  ;;  %v3014_v7 = vadd.f32 %v2900_v51, %v2669_v8  ;;  %4121 = vmatpush.msra.mxu0 %v3875_v42  ;;  %v3869_v1 = vld [vmem:[%s17732_s5 + $0x110] sm:$0xff]  ;;  %v18193_v42 = vmax.f32 %v12933_v12, 0.0 }
 0x54d   :  { %4084 = vmatpush.msrb.mxu3 %v3835_v10  ;;  %v3015_v57 = vadd.f32 %v2929_v25, %v2670_v34  ;;  %v13417_v51 = vmax.f32 %v18192_v15, %v3246_v52  ;;  %v3867_v25 = vld [vmem:[%s17732_s5 + $0x100] sm:$0xff]  ;;  %v3260_v52 = vpop.permute.xlu0 %3259 }
 0x54e   :  { %10223 = vrot.lane.b32.xlu0 %v10222_v20, %s10370_s30  ;;  %4122 = vmatpush.msra.mxu0 %v3873_v21  ;;  %v13406_v20 = vadd.f32 %v12870_v30, %v3014_v7  ;;  %v13436_v54 = vmax.f32 %v18193_v42, %v3260_v52  ;;  %v17820_v42 = vunpack.i.h.bf16 %v13339_v46 }
 0x54f   :  { %10213 = vrot.lane.b32.xlu2 %v10212_v16, %s10368_s21  ;;  %v13409_v10 = vadd.f32 %v12870_v30, %v3015_v57  ;;  %v17818_v16 = vmax.f32 %v13400_v55, 0.0 }
 0x550   :  { %4123 = vmatpush.msra.mxu0 %v3871_v17  ;;  %v17816_v57 = vmax.f32 %v13406_v20, 0.0  ;;  %18194 = vst [vmem:[#allocation12_spill] sm:$0xff] %v13436_v54  ;;  %v18195_v17 = vmax.f32 %v12945_v22, 0.0 }
 0x551   :  { %v17817_v7 = vmax.f32 %v13409_v10, 0.0 }
 0x552   :  { %4124 = vmatpush.msra.mxu0 %v3869_v1 }
 0x553   :  { %v10227_v2 = vpack.i.bf16 %v17817_v7, %v17816_v57  ;;  %v18200_v57 = vunpack.i.h.bf16 %v12990_v4  ;;  %v18202_v7 = vmax.f32 %v12894_v23, 0.0 }
 0x554   :  { %4125 = vmatpush.msra.mxu0 %v3867_v25 }
 0x555   :  { %v13440_v0 = vpop.permute.xlu0 %3273 }
 0x556   :  { %3329 = vrot.lane.b32.xlu0 %v17818_v16, %s10368_s21  ;;  %v13446_v1 = vmax.f32 %v18195_v17, %v13440_v0 }
 0x557   :  { %3574 = vrot.lane.b32.xlu2 %v13417_v51, %s10370_s30 }
 0x558   :  { %18196 = vst [vmem:[#allocation17_spill] sm:$0xff] %v13446_v1 }
 0x55e   :  { %10228 = vrot.lane.b32.xlu0 %v10227_v2, %s10368_s21 }
 0x566   :  { %3588 = vrot.lane.b32.xlu0 %v13436_v54, %s10370_s30 }
 0x568   :  { %v10134_v8 = vpop.permute.xlu2 %10133 }
 0x569   :  { %v10136_v5 = vunpack.i.h.bf16 %v10134_v8  ;;  %v10135_v34 = vunpack.i.l.bf16 %v10134_v8 }
 0x56b   :  { %v3675_v21 = vsel %vm997_vm4, %v10135_v34, %v10136_v5  ;;  %v18199_v34 = vunpack.i.l.bf16 %v13233_v31  ;;  %v3929_v31 = vld [vmem:[%s17732_s5 + $0x2f0] sm:$0xff] }
 0x56c   :  { %v13449_v15 = vmax.f32 %v12976_v56, %v3675_v21  ;;  %4151 = vmatpush.msra.mxu1 %v3929_v31 }
 0x56d   :  { %v3390_v21 = vsel %vm111_vm0, %v18199_v34, %v17820_v42 }
 0x56e   :  { %18197 = vst [vmem:[#allocation32_spill] sm:$0xff] %v13449_v15  ;;  %3602 = vrot.lane.b32.xlu0 %v13446_v1, %s10370_s30  ;;  %4085 = vmatmul.f32.vlgmr.msrb.gmra.mxu3 %v13449_v15  ;;  %v13479_v16 = vmax.f32 %v18202_v7, %v3390_v21  ;;  %v18203_v7 = vmax.f32 %v13019_v60, 0.0  ;;  %v18204_v21 = vmax.f32 %v13022_v11, 0.0  ;;  %v18207_v60 = vunpack.i.h.bf16 %v13030_v9 }
 0x570   :  { %v13454_v12 = vpop.permute.xlu2 %10138 }
 0x571   :  { %v17819_v25 = vunpack.i.l.bf16 %v13454_v12 }
 0x573   :  { %v3676_v2 = vsel %vm997_vm4, %v10136_v5, %v17819_v25 }
 0x574   :  { %v13461_v22 = vmax.f32 %v12980_v24, %v3676_v2  ;;  %v18201_v24 = vmax.f32 %v12695_v14, 0.0 }
 0x576   :  { %18198 = vst [vmem:[#allocation40_spill] sm:$0xff] %v13461_v22  ;;  %4126 = vmatmul.f32.vlgmr.msra.gmra.mxu0 %v13461_v22 }
 0x578   :  { %v10144_v56 = vpop.permute.xlu2 %10143 }
 0x579   :  { %v10145_v8 = vunpack.i.l.bf16 %v10144_v56  ;;  %v10146_v17 = vunpack.i.h.bf16 %v10144_v56 }
 0x57b   :  { %v3355_v5 = vsel %vm111_vm0, %v18200_v57, %v10145_v8  ;;  %v3356_v56 = vsel %vm111_vm0, %v10145_v8, %v10146_v17  ;;  %v3357_v4 = vsel %vm111_vm0, %v10146_v17, %v3260_v52  ;;  %v3927_v52 = vld [vmem:[%s17732_s5 + $0x2e0] sm:$0xff]  ;;  %v2958_v8 = vpop.f32.mrf.mxu2  ;;  %v18205_v17 = vld [vmem:[#allocation39_spill] sm:$0xff] }
 0x57c   :  { %v13475_v2 = vmax.f32 %v18201_v24, %v3355_v5  ;;  %v13495_v34 = vmax.f32 %v18203_v7, %v3356_v56  ;;  %v13499_v5 = vmax.f32 %v18204_v21, %v3357_v4  ;;  %4152 = vmatpush.msra.mxu1 %v3927_v52  ;;  %v18206_v24 = vld [vmem:[#allocation50_spill] sm:$0xff]  ;;  %v18208_v7 = vmax.f32 %v12727_v28, 0.0  ;;  %v3961_v28 = vld [vmem:[%s17732_s5 + $0x3f0] sm:$0xff] }
 0x57d   :  { %v2671_v31 = vadd.f32 %v18206_v24, %v18205_v17  ;;  %v3923_v4 = vld [vmem:[%s17732_s5 + $0x2c0] sm:$0xff]  ;;  %v18209_v52 = vmax.f32 %v13051_v37, 0.0  ;;  %v13526_v17 = vpop.permute.xlu1 %3287  ;;  %v3993_v37 = vld [vmem:[%s17732_s5 + $0x4f0] sm:$0xff]  ;;  %4192 = vmatpush.msra.mxu2 %v3961_v28 }
 0x57e   :  { %v10232_v25 = vpack.i.bf16 %v13475_v2, %v13479_v16  ;;  %v10237_v24 = vpack.i.bf16 %v13499_v5, %v13495_v34  ;;  %4233 = vmatpush.msra.mxu3 %v3993_v37 }
 0x57f   :  { %v3016_v9 = vadd.f32 %v2958_v8, %v2671_v31  ;;  %v10141_v31 = vunpack.i.h.bf16 %v13454_v12 }
 0x580   :  { %10233 = vrot.lane.b32.xlu1 %v10232_v25, %s10370_s30  ;;  %v3925_v25 = vld [vmem:[%s17732_s5 + $0x2d0] sm:$0xff] }
 0x581   :  { %v13489_v14 = vpop.permute.xlu2 %10148  ;;  %4153 = vmatpush.msra.mxu1 %v3925_v25 }
 0x582   :  { %v17823_v23 = vunpack.i.h.bf16 %v13489_v14  ;;  %v10150_v57 = vunpack.i.l.bf16 %v13489_v14 }
 0x583   :  { %4154 = vmatpush.msra.mxu1 %v3923_v4  ;;  %v3919_v4 = vld [vmem:[%s17732_s5 + $0x2a0] sm:$0xff] }
 0x584   :  { %v3361_v56 = vsel %vm111_vm0, %v18207_v60, %v10150_v57  ;;  %v3362_v11 = vsel %vm111_vm0, %v10150_v57, %v17823_v23  ;;  %v3921_v57 = vld [vmem:[%s17732_s5 + $0x2b0] sm:$0xff] }
 0x585   :  { %v13520_v21 = vmax.f32 %v18208_v7, %v3361_v56  ;;  %v13524_v42 = vmax.f32 %v18209_v52, %v3362_v11  ;;  %4155 = vmatpush.msra.mxu1 %v3921_v57  ;;  %v13551_v7 = vadd.f32 %v12870_v30, %v3016_v9  ;;  %v3959_v52 = vld [vmem:[%s17732_s5 + $0x3e0] sm:$0xff]  ;;  %v3917_v30 = vld [vmem:[%s17732_s5 + $0x290] sm:$0xff] }
 0x586   :  { %4193 = vmatpush.msra.mxu2 %v3959_v52  ;;  %v3957_v9 = vld [vmem:[%s17732_s5 + $0x3d0] sm:$0xff] }
 0x587   :  { %v10242_v25 = vpack.i.bf16 %v13524_v42, %v13520_v21  ;;  %4156 = vmatpush.msra.mxu1 %v3919_v4  ;;  %v3955_v4 = vld [vmem:[%s17732_s5 + $0x3c0] sm:$0xff]  ;;  %v3913_v52 = vld [vmem:[%s17732_s5 + $0x270] sm:$0xff] }
 0x588   :  { %v13541_v8 = vpop.permute.xlu0 %10153  ;;  %10238 = vrot.lane.b32.xlu1 %v10237_v24, %s10370_s30  ;;  %v3991_v24 = vld [vmem:[%s17732_s5 + $0x4e0] sm:$0xff]  ;;  %4194 = vmatpush.msra.mxu2 %v3957_v9 }
 0x589   :  { %v17821_v60 = vunpack.i.h.bf16 %v13541_v8  ;;  %v10155_v56 = vunpack.i.l.bf16 %v13541_v8  ;;  %v13547_v11 = vpop.permute.xlu2 %3315  ;;  %10243 = vrot.lane.b32.xlu2 %v10242_v25, %s10370_s30  ;;  %4234 = vmatpush.msra.mxu3 %v3991_v24  ;;  %v3953_v24 = vld [vmem:[%s17732_s5 + $0x3b0] sm:$0xff] }
 0x58a   :  { %4157 = vmatpush.msra.mxu1 %v3917_v30  ;;  %4195 = vmatpush.msra.mxu2 %v3955_v4  ;;  %v3985_v30 = vld [vmem:[%s17732_s5 + $0x4b0] sm:$0xff]  ;;  %v3983_v4 = vld [vmem:[%s17732_s5 + $0x4a0] sm:$0xff] }
 0x58b   :  { %v3681_v28 = vsel %vm997_vm4, %v10141_v31, %v10155_v56  ;;  %v3682_v57 = vsel %vm997_vm4, %v10155_v56, %v17821_v60  ;;  %v3989_v31 = vld [vmem:[%s17732_s5 + $0x4d0] sm:$0xff]  ;;  %v3915_v56 = vld [vmem:[%s17732_s5 + $0x280] sm:$0xff] }
 0x58c   :  { %v13573_v37 = vmax.f32 %v13000_v32, %v3681_v28  ;;  %v13576_v25 = vmax.f32 %v13008_v33, %v3682_v57  ;;  %v17822_v33 = vmax.f32 %v13551_v7, 0.0  ;;  %v3987_v32 = vld [vmem:[%s17732_s5 + $0x4c0] sm:$0xff]  ;;  %4235 = vmatpush.msra.mxu3 %v3989_v31  ;;  %4158 = vmatpush.msra.mxu1 %v3915_v56  ;;  %v13599_v28 = vpop.permute.xlu1 %3301 }
 0x58d   :  { %4196 = vmatpush.msra.mxu2 %v3953_v24  ;;  %v3911_v56 = vld [vmem:[%s17732_s5 + $0x260] sm:$0xff] }
 0x58e   :  { %18210 = vst [vmem:[#allocation53_spill] sm:$0xff] %v13573_v37  ;;  %4088 = vmatmul.f32.gmra.mxu3 %v13573_v37  ;;  %4129 = vmatmul.f32.gmra.mxu0 %v13576_v25  ;;  %v3901_v37 = vld [vmem:[%s17732_s5 + $0x210] sm:$0xff] }
 0x58f   :  { %18211 = vst [vmem:[#allocation14_spill] sm:$0xff] %v13576_v25  ;;  %4236 = vmatpush.msra.mxu3 %v3987_v32  ;;  %4159 = vmatpush.msra.mxu1 %v3913_v52  ;;  %v3909_v32 = vld [vmem:[%s17732_s5 + $0x250] sm:$0xff]  ;;  %v3975_v25 = vld [vmem:[%s17732_s5 + $0x460] sm:$0xff] }
 0x590   :  { %v10159_v57 = vpop.permute.xlu0 %10158  ;;  %3343 = vrot.lane.b32.xlu1 %v17822_v33, %s10368_s21  ;;  %v3951_v33 = vld [vmem:[%s17732_s5 + $0x3a0] sm:$0xff]  ;;  %v3949_v52 = vld [vmem:[%s17732_s5 + $0x390] sm:$0xff] }
 0x591   :  { %v10161_v9 = vunpack.i.h.bf16 %v10159_v57  ;;  %v10160_v60 = vunpack.i.l.bf16 %v10159_v57  ;;  %v13607_v31 = vpop.permute.xlu2 %10198  ;;  %4237 = vmatpush.msra.mxu3 %v3985_v30  ;;  %4160 = vmatpush.msra.mxu1 %v3911_v56  ;;  %v3981_v57 = vld [vmem:[%s17732_s5 + $0x490] sm:$0xff]  ;;  %v3947_v30 = vld [vmem:[%s17732_s5 + $0x380] sm:$0xff] }
 0x592   :  { %4197 = vmatpush.msra.mxu2 %v3951_v33  ;;  %v3945_v33 = vld [vmem:[%s17732_s5 + $0x370] sm:$0xff] }
 0x593   :  { %v3687_v23 = vsel %vm997_vm4, %v10160_v60, %v10161_v9  ;;  %v3907_v60 = vld [vmem:[%s17732_s5 + $0x240] sm:$0xff]  ;;  %4238 = vmatpush.msra.mxu3 %v3983_v4  ;;  %4161 = vmatpush.msra.mxu1 %v3909_v32  ;;  %v3977_v32 = vld [vmem:[%s17732_s5 + $0x470] sm:$0xff] }
 0x594   :  { %v13626_v24 = vmax.f32 %v13044_v50, %v3687_v23  ;;  %4198 = vmatpush.msra.mxu2 %v3949_v52  ;;  %v3979_v50 = vld [vmem:[%s17732_s5 + $0x480] sm:$0xff]  ;;  %v3905_v23 = vld [vmem:[%s17732_s5 + $0x230] sm:$0xff] }
 0x595   :  { %4239 = vmatpush.msra.mxu3 %v3981_v57  ;;  %4162 = vmatpush.msra.mxu1 %v3907_v60  ;;  %v3903_v60 = vld [vmem:[%s17732_s5 + $0x220] sm:$0xff] }
 0x596   :  { %18212 = vst [vmem:[#allocation4_spill] sm:$0xff] %v13626_v24  ;;  %4091 = vmatmul.f32.gmra.mxu3 %v13626_v24  ;;  %4199 = vmatpush.msra.mxu2 %v3947_v30  ;;  %v3943_v30 = vld [vmem:[%s17732_s5 + $0x360] sm:$0xff] }
 0x597   :  { %4240 = vmatpush.msra.mxu3 %v3979_v50  ;;  %4163 = vmatpush.msra.mxu1 %v3905_v23 }
 0x598   :  { %v13647_v56 = vpop.permute.xlu1 %10178  ;;  %v13649_v4 = vpop.permute.xlu0 %10163  ;;  %4200 = vmatpush.msra.mxu2 %v3945_v33 }
 0x599   :  { %v10180_v52 = vunpack.i.l.bf16 %v13647_v56  ;;  %v10166_v24 = vunpack.i.h.bf16 %v13649_v4  ;;  %v17829_v57 = vunpack.i.l.bf16 %v13649_v4  ;;  %v13667_v22 = vpop.permute.xlu2 %10203  ;;  %4241 = vmatpush.msra.mxu3 %v3977_v32  ;;  %4164 = vmatpush.msra.mxu1 %v3903_v60  ;;  %v3971_v32 = vld [vmem:[%s17732_s5 + $0x440] sm:$0xff]  ;;  %v18215_v60 = vunpack.i.h.bf16 %v13647_v56 }
 0x59a   :  { %4201 = vmatpush.msra.mxu2 %v3943_v30 }
 0x59b   :  { %v3693_v50 = vsel %vm997_vm4, %v10166_v24, %v10180_v52  ;;  %v3688_v23 = vsel %vm997_vm4, %v10161_v9, %v17829_v57  ;;  %v3941_v24 = vld [vmem:[%s17732_s5 + $0x350] sm:$0xff]  ;;  %4242 = vmatpush.msra.mxu3 %v3975_v25  ;;  %4165 = vmatpush.msra.mxu1 %v3901_v37  ;;  %v3694_v37 = vsel %vm997_vm4, %v10180_v52, %v18215_v60  ;;  %v18216_v25 = vunpack.i.h.bf16 %v13489_v14 }
 0x59c   :  { %v13674_v33 = vmax.f32 %v13090_v43, %v3693_v50  ;;  %v13677_v15 = vmax.f32 %v13048_v62, %v3688_v23  ;;  %v3973_v9 = vld [vmem:[%s17732_s5 + $0x450] sm:$0xff]  ;;  %v3899_v62 = vld [vmem:[%s17732_s5 + $0x200] sm:$0xff]  ;;  %4202 = vmatpush.msra.mxu2 %v3941_v24  ;;  %v18218_v52 = vmax.f32 %v13062_v41, 0.0 }
 0x59d   :  { %v3939_v43 = vld [vmem:[%s17732_s5 + $0x340] sm:$0xff]  ;;  %v3363_v30 = vsel %vm111_vm0, %v18216_v25, %v13440_v0  ;;  %4243 = vmatpush.msra.mxu3 %v3973_v9  ;;  %4166 = vmatpush.msra.mxu1 %v3899_v62  ;;  %v3937_v57 = vld [vmem:[%s17732_s5 + $0x330] sm:$0xff]  ;;  %v13713_v0 = vmax.f32 %v13094_v53, %v3694_v37  ;;  %v18222_v37 = vmax.f32 %v13103_v6, 0.0 }
 0x59e   :  { %18213 = vst [vmem:[#allocation27_spill] sm:$0xff] %v13674_v33  ;;  %4094 = vmatmul.f32.gmra.mxu3 %v13674_v33  ;;  %4132 = vmatmul.f32.gmra.mxu0 %v13677_v15  ;;  %v3969_v14 = vld [vmem:[%s17732_s5 + $0x430] sm:$0xff]  ;;  %v13717_v24 = vmax.f32 %v18218_v52, %v3363_v30  ;;  %v3935_v53 = vld [vmem:[%s17732_s5 + $0x320] sm:$0xff]  ;;  %v18223_v30 = vmax.f32 %v13109_v61, 0.0 }
 0x59f   :  { %18214 = vst [vmem:[#allocation7_spill] sm:$0xff] %v13677_v15  ;;  %4203 = vmatpush.msra.mxu2 %v3939_v43  ;;  %4244 = vmatpush.msra.mxu3 %v3971_v32  ;;  %v18219_v43 = vld [vmem:[#allocation13_spill] sm:$0xff] }
 0x5a0   :  { %v10184_v50 = vpop.permute.xlu1 %10183  ;;  %v10169_v23 = vpop.permute.xlu0 %10168  ;;  %18217 = vst [vmem:[#allocation42_spill] sm:$0xff] %v13713_v0  ;;  %v18220_v32 = vunpack.i.h.bf16 %v18219_v43 }
 0x5a1   :  { %v10186_v33 = vunpack.i.h.bf16 %v10184_v50  ;;  %v10185_v15 = vunpack.i.l.bf16 %v10184_v50  ;;  %v10171_v1 = vunpack.i.h.bf16 %v10169_v23  ;;  %v10170_v54 = vunpack.i.l.bf16 %v10169_v23  ;;  %4204 = vmatpush.msra.mxu2 %v3937_v57  ;;  %4245 = vmatpush.msra.mxu3 %v3969_v14  ;;  %v13750_v6 = vpop.permute.xlu2 %10208  ;;  %v3965_v14 = vld [vmem:[%s17732_s5 + $0x410] sm:$0xff] }
 0x5a3   :  { %v3699_v9 = vsel %vm997_vm4, %v10185_v15, %v10186_v33  ;;  %v3368_v62 = vsel %vm111_vm0, %v10170_v54, %v10171_v1  ;;  %v3369_v60 = vsel %vm111_vm0, %v10171_v1, %v13526_v17  ;;  %v3367_v25 = vsel %vm111_vm0, %v18220_v32, %v10170_v54  ;;  %v18224_v1 = vld [vmem:[#allocation22_spill] sm:$0xff]  ;;  %4205 = vmatpush.msra.mxu2 %v3935_v53 }
 0x5a4   :  { %v13730_v41 = vmax.f32 %v13130_v27, %v3699_v9  ;;  %v13734_v15 = vmax.f32 %v18222_v37, %v3368_v62  ;;  %v13738_v50 = vmax.f32 %v18223_v30, %v3369_v60  ;;  %v18225_v23 = vmax.f32 %v18224_v1, 0.0  ;;  %v3967_v54 = vld [vmem:[%s17732_s5 + $0x420] sm:$0xff]  ;;  %v3933_v27 = vld [vmem:[%s17732_s5 + $0x310] sm:$0xff] }
 0x5a5   :  { %v3931_v9 = vld [vmem:[%s17732_s5 + $0x300] sm:$0xff]  ;;  %4246 = vmatpush.msra.mxu3 %v3967_v54  ;;  %4206 = vmatpush.msra.mxu2 %v3933_v27  ;;  %v10200_v62 = vunpack.i.l.bf16 %v13607_v31  ;;  %v10205_v54 = vunpack.i.l.bf16 %v13667_v22 }
 0x5a6   :  { %18221 = vst [vmem:[#allocation21_spill] sm:$0xff] %v13730_v41  ;;  %v13742_v52 = vmax.f32 %v18225_v23, %v3367_v25  ;;  %4097 = vmatmul.f32.gmra.mxu3 %v13730_v41  ;;  %4135 = vmatmul.f32.gmra.mxu0 %v13713_v0  ;;  %v10252_v61 = vpack.i.bf16 %v13738_v50, %v13734_v15  ;;  %v3963_v32 = vld [vmem:[%s17732_s5 + $0x400] sm:$0xff]  ;;  %v10206_v23 = vunpack.i.h.bf16 %v13667_v22  ;;  %v18227_v22 = vld [vmem:[#allocation24_spill] sm:$0xff]  ;;  %v18229_v0 = vmax.f32 %v13140_v29, 0.0 }
 0x5a7   :  { %4247 = vmatpush.msra.mxu3 %v3965_v14  ;;  %4207 = vmatpush.msra.mxu2 %v3931_v9  ;;  %v18228_v1 = vmax.f32 %v18227_v22, 0.0  ;;  %v18232_v29 = vunpack.i.h.bf16 %v13607_v31 }
 0x5a8   :  { %v10247_v57 = vpack.i.bf16 %v13742_v52, %v13717_v24  ;;  %v13765_v60 = vpop.permute.xlu1 %10188  ;;  %v10174_v43 = vpop.permute.xlu0 %10173  ;;  %10253 = vrot.lane.b32.xlu2 %v10252_v61, %s10370_s30 }
 0x5a9   :  { %v10191_v25 = vunpack.i.h.bf16 %v13765_v60  ;;  %v17836_v53 = vunpack.i.l.bf16 %v13765_v60  ;;  %v10176_v37 = vunpack.i.h.bf16 %v10174_v43  ;;  %v10175_v30 = vunpack.i.l.bf16 %v10174_v43  ;;  %4248 = vmatpush.msra.mxu3 %v3963_v32 }
 0x5aa   :  { %10248 = vrot.lane.b32.xlu1 %v10247_v57, %s10370_s30  ;;  %v18226_v57 = vunpack.i.h.bf16 %v13077_v45  ;;  %v18230_v45 = vld [vmem:[#allocation5_spill] sm:$0xff] }
 0x5ab   :  { %v3705_v27 = vsel %vm997_vm4, %v10191_v25, %v10200_v62  ;;  %v3700_v61 = vsel %vm997_vm4, %v10186_v33, %v17836_v53  ;;  %v3374_v43 = vsel %vm111_vm0, %v10175_v30, %v10176_v37 }
 0x5ac   :  { %v3373_v41 = vsel %vm111_vm0, %v18226_v57, %v10175_v30  ;;  %v13786_v14 = vmax.f32 %v13180_v18, %v3705_v27  ;;  %v13789_v9 = vmax.f32 %v13134_v13, %v3700_v61  ;;  %v13797_v33 = vmax.f32 %v18229_v0, %v3374_v43  ;;  %v13808_v13 = vpop.permute.xlu2 %10213 }
 0x5ad   :  { %v13793_v25 = vmax.f32 %v18228_v1, %v3373_v41  ;;  %v18231_v57 = vmax.f32 %v18230_v45, 0.0  ;;  %v3711_v41 = vsel %vm997_vm4, %v10205_v54, %v10206_v23  ;;  %v3706_v0 = vsel %vm997_vm4, %v10200_v62, %v18232_v29 }
 0x5ae   :  { %4100 = vmatmul.f32.gmra.mxu3 %v13786_v14  ;;  %4138 = vmatmul.f32.gmra.mxu0 %v13789_v9  ;;  %v3375_v1 = vsel %vm111_vm0, %v10176_v37, %v13599_v28  ;;  %v17837_v27 = vunpack.i.h.bf16 %v13808_v13  ;;  %v13821_v61 = vmax.f32 %v13247_v26, %v3711_v41  ;;  %v13824_v54 = vmax.f32 %v13195_v36, %v3706_v0  ;;  %v18235_v26 = vld [vmem:[#allocation26_spill] sm:$0xff] }
 0x5af   :  { %v13802_v53 = vmax.f32 %v18231_v57, %v13526_v17  ;;  %v10257_v18 = vpack.i.bf16 %v13797_v33, %v13793_v25  ;;  %v10215_v62 = vunpack.i.l.bf16 %v13808_v13  ;;  %v18233_v43 = vunpack.i.h.bf16 %v13158_v38 }
 0x5b0   :  { %v10194_v32 = vpop.permute.xlu1 %10193  ;;  %v18234_v37 = vmax.f32 %v13144_v3, 0.0  ;;  %v18236_v41 = vmax.f32 %v18235_v26, 0.0  ;;  %v18237_v36 = vmax.f32 %v13202_v49, 0.0  ;;  %v18238_v38 = vmax.f32 %v13205_v58, 0.0 }
 0x5b1   :  { %3616 = vrot.lane.b32.xlu2 %v13802_v53, %s10370_s30  ;;  %v10196_v17 = vunpack.i.h.bf16 %v10194_v32  ;;  %v10195_v30 = vunpack.i.l.bf16 %v10194_v32  ;;  %v18241_v58 = vunpack.i.h.bf16 %v13218_v35 }
 0x5b2   :  { %10258 = vrot.lane.b32.xlu1 %v10257_v18, %s10370_s30  ;;  %v13835_v18 = vmax.f32 %v18234_v37, %v3375_v1 }
 0x5b3   :  { %v3379_v22 = vsel %vm111_vm0, %v18233_v43, %v10195_v30  ;;  %v3380_v45 = vsel %vm111_vm0, %v10195_v30, %v10196_v17  ;;  %v3381_v57 = vsel %vm111_vm0, %v10196_v17, %v13547_v11  ;;  %v17838_v30 = vunpack.i.l.bf16 %v13750_v6  ;;  %v18239_v17 = vld [vmem:[#allocation51_spill] sm:$0xff] }
 0x5b4   :  { %v13839_v29 = vmax.f32 %v18236_v41, %v3379_v22  ;;  %v13843_v0 = vmax.f32 %v18237_v36, %v3380_v45  ;;  %v13847_v32 = vmax.f32 %v18238_v38, %v3381_v57  ;;  %v18240_v43 = vmax.f32 %v18239_v17, 0.0 }
 0x5b5   :  { %v3385_v22 = vsel %vm111_vm0, %v18241_v58, %v10215_v62  ;;  %v3386_v45 = vsel %vm111_vm0, %v10215_v62, %v17837_v27  ;;  %v10211_v57 = vunpack.i.h.bf16 %v13750_v6  ;;  %v3712_v35 = vsel %vm997_vm4, %v10206_v23, %v17838_v30  ;;  %v18242_v62 = vld [vmem:[#allocation28_spill] sm:$0xff] }
 0x5b6   :  { %v13853_v3 = vmax.f32 %v18240_v43, %v13599_v28  ;;  %4103 = vmatmul.f32.gmra.mxu3 %v13821_v61  ;;  %4141 = vmatmul.f32.gmra.mxu0 %v13824_v54  ;;  %v10262_v49 = vpack.i.bf16 %v13839_v29, %v13835_v18  ;;  %v10267_v1 = vpack.i.bf16 %v13847_v32, %v13843_v0  ;;  %v18243_v41 = vmax.f32 %v18242_v62, 0.0  ;;  %v18246_v58 = vld [vmem:[#allocation36_spill] sm:$0xff] }
 0x5b7   :  { %v18244_v38 = vmax.f32 %v13328_v63, 0.0  ;;  %v18245_v43 = vunpack.i.l.bf16 %v13454_v12  ;;  %v18249_v12 = vld [vmem:[#allocation37_spill] sm:$0xff] }
 0x5b8   :  { %v13867_v28 = vpop.permute.xlu0 %10218  ;;  %10263 = vrot.lane.b32.xlu0 %v10262_v49, %s10370_s30  ;;  %v13881_v36 = vmax.f32 %v18243_v41, %v3385_v22  ;;  %v18248_v22 = vld [vmem:[#allocation44_spill] sm:$0xff] }
 0x5b9   :  { %3630 = vrot.lane.b32.xlu2 %v13853_v3, %s10370_s30  ;;  %v10221_v37 = vunpack.i.h.bf16 %v13867_v28  ;;  %v10220_v26 = vunpack.i.l.bf16 %v13867_v28  ;;  %v13885_v17 = vmax.f32 %v18244_v38, %v3386_v45  ;;  %v13900_v62 = vmax.f32 %v18248_v22, %v3712_v35  ;;  %v4025_v38 = vld [vmem:[%s17732_s5 + $0x5f0] sm:$0xff] }
 0x5ba   :  { %10268 = vrot.lane.b32.xlu1 %v10267_v1, %s10370_s30  ;;  %v18250_v45 = vmax.f32 %v18249_v12, 0.0  ;;  %4274 = vmatpush.msrb.mxu0 %v4025_v38  ;;  %v4021_v22 = vld [vmem:[%s17732_s5 + $0x5d0] sm:$0xff] }
 0x5bb   :  { %v3677_v49 = vsel %vm997_vm4, %v18245_v43, %v10221_v37  ;;  %v3717_v1 = vsel %vm997_vm4, %v10211_v57, %v10220_v26  ;;  %v10272_v63 = vpack.i.bf16 %v13885_v17, %v13881_v36 }
 0x5bc   :  { %v13894_v27 = vmax.f32 %v18246_v58, %v3677_v49  ;;  %v13897_v23 = vmax.f32 %v13318_v39, %v3717_v1  ;;  %v13909_v57 = vmax.f32 %v18250_v45, %v13547_v11  ;;  %v4023_v58 = vld [vmem:[%s17732_s5 + $0x5e0] sm:$0xff] }
 0x5bd   :  { %4275 = vmatpush.msrb.mxu0 %v4023_v58  ;;  %v4015_v45 = vld [vmem:[%s17732_s5 + $0x5a0] sm:$0xff] }
 0x5be   :  { %18247 = vst [vmem:[#allocation43_spill] sm:$0xff] %v13897_v23  ;;  %4106 = vmatmul.f32.gmra.mxu3 %v13897_v23  ;;  %4144 = vmatmul.f32.gmra.mxu0 %v13900_v62 }
 0x5bf   :  { %4167 = vmatmul.f32.vlgmr.msra.gmra.mxu1 %v13894_v27  ;;  %4276 = vmatpush.msrb.mxu0 %v4021_v22  ;;  %v4009_v22 = vld [vmem:[%s17732_s5 + $0x570] sm:$0xff] }
 0x5c0   :  { %v13912_v41 = vpop.permute.xlu0 %10223  ;;  %10273 = vrot.lane.b32.xlu0 %v10272_v63, %s10370_s30  ;;  %v18252_v63 = vmax.f32 %v13400_v55, 0.0  ;;  %v4011_v55 = vld [vmem:[%s17732_s5 + $0x580] sm:$0xff] }
 0x5c1   :  { %v17839_v39 = vunpack.i.h.bf16 %v13912_v41  ;;  %v10225_v35 = vunpack.i.l.bf16 %v13912_v41 }
 0x5c2   :  { %3644 = vrot.lane.b32.xlu1 %v13909_v57, %s10370_s30 }
 0x5c3   :  { %v3678_v11 = vsel %vm997_vm4, %v10221_v37, %v10225_v35  ;;  %v3679_v43 = vsel %vm997_vm4, %v10225_v35, %v17839_v39  ;;  %v4017_v37 = vld [vmem:[%s17732_s5 + $0x5b0] sm:$0xff] }
 0x5c4   :  { %v13927_v49 = vmax.f32 %v13306_v19, %v3678_v11  ;;  %v13930_v1 = vmax.f32 %v13360_v47, %v3679_v43  ;;  %v4019_v19 = vld [vmem:[%s17732_s5 + $0x5c0] sm:$0xff]  ;;  %v4013_v35 = vld [vmem:[%s17732_s5 + $0x590] sm:$0xff]  ;;  %v18253_v11 = vunpack.i.h.bf16 %v13808_v13 }
 0x5c5   :  { %4277 = vmatpush.msrb.mxu0 %v4019_v19  ;;  %v18254_v19 = vunpack.i.h.bf16 %v13339_v46 }
 0x5c6   :  { %18251 = vst [vmem:[#allocation33_spill] sm:$0xff] %v13930_v1  ;;  %4208 = vmatmul.f32.vlgmr.msra.gmra.mxu2 %v13927_v49  ;;  %4249 = vmatmul.f32.vlgmr.msra.gmra.mxu3 %v13930_v1 }
 0x5c7   :  { %4278 = vmatpush.msrb.mxu0 %v4017_v37 }
 0x5c8   :  { %v3330_v47 = vpop.permute.xlu0 %3329 }
 0x5c9   :  { %v13948_v12 = vmax.f32 %v18252_v63, %v3330_v47  ;;  %4279 = vmatpush.msrb.mxu0 %v4015_v45  ;;  %v3387_v43 = vsel %vm111_vm0, %v18253_v11, %v3330_v47  ;;  %v18255_v63 = vmax.f32 %v13331_v44, 0.0  ;;  %v4007_v47 = vld [vmem:[%s17732_s5 + $0x560] sm:$0xff] }
 0x5ca   :  { %v4003_v44 = vld [vmem:[%s17732_s5 + $0x540] sm:$0xff] }
 0x5cb   :  { %3658 = vrot.lane.b32.xlu1 %v13948_v12, %s10370_s30  ;;  %4280 = vmatpush.msrb.mxu0 %v4013_v35  ;;  %v13972_v45 = vmax.f32 %v18255_v63, %v3387_v43  ;;  %v18256_v35 = vld [vmem:[#allocation30_spill] sm:$0xff]  ;;  %v3997_v43 = vld [vmem:[%s17732_s5 + $0x510] sm:$0xff] }
 0x5cc   :  { %v18257_v30 = vmax.f32 %v18256_v35, 0.0  ;;  %v3999_v11 = vld [vmem:[%s17732_s5 + $0x520] sm:$0xff] }
 0x5cd   :  { %4281 = vmatpush.msrb.mxu0 %v4011_v55  ;;  %v4005_v55 = vld [vmem:[%s17732_s5 + $0x550] sm:$0xff] }
 0x5cf   :  { %4282 = vmatpush.msrb.mxu0 %v4009_v22  ;;  %v3995_v22 = vld [vmem:[%s17732_s5 + $0x500] sm:$0xff] }
 0x5d0   :  { %v10229_v38 = vpop.permute.xlu0 %10228 }
 0x5d1   :  { %v10230_v58 = vunpack.i.l.bf16 %v10229_v38  ;;  %4283 = vmatpush.msrb.mxu0 %v4007_v47 }
 0x5d3   :  { %v3391_v37 = vsel %vm111_vm0, %v18254_v19, %v10230_v58  ;;  %4284 = vmatpush.msrb.mxu0 %v4005_v55  ;;  %v14002_v19 = vpop.permute.xlu2 %3574 }
 0x5d4   :  { %v13976_v13 = vmax.f32 %v18257_v30, %v3391_v37  ;;  %v4001_v30 = vld [vmem:[%s17732_s5 + $0x530] sm:$0xff] }
 0x5d5   :  { %4285 = vmatpush.msrb.mxu0 %v4003_v44 }
 0x5d6   :  { %v10277_v46 = vpack.i.bf16 %v13976_v13, %v13972_v45 }
 0x5d7   :  { %4286 = vmatpush.msrb.mxu0 %v4001_v30 }
 0x5d8   :  { %10278 = vrot.lane.b32.xlu2 %v10277_v46, %s10370_s30  ;;  %v18258_v46 = vunpack.i.h.bf16 %v13541_v8 }
 0x5d9   :  { %4287 = vmatpush.msrb.mxu0 %v3999_v11  ;;  %v18260_v11 = vld [vmem:[#allocation52_spill] sm:$0xff] }
 0x5db   :  { %4288 = vmatpush.msrb.mxu0 %v3997_v43 }
 0x5dd   :  { %4289 = vmatpush.msrb.mxu0 %v3995_v22 }
 0x5e3   :  { %v10244_v47 = vpop.permute.xlu2 %10243 }
 0x5e4   :  { %v10245_v22 = vunpack.i.l.bf16 %v10244_v47 }
 0x5f2   :  { %v14004_v37 = vpop.permute.xlu1 %10233 }
 0x5f3   :  { %v10236_v63 = vunpack.i.h.bf16 %v14004_v37  ;;  %v17841_v35 = vunpack.i.l.bf16 %v14004_v37 }
 0x5f5   :  { %v3718_v55 = vsel %vm997_vm4, %v10220_v26, %v17841_v35  ;;  %v3683_v44 = vsel %vm997_vm4, %v18258_v46, %v10236_v63  ;;  %v18261_v26 = vunpack.i.l.bf16 %v13649_v4  ;;  %v18262_v46 = vunpack.i.h.bf16 %v13912_v41  ;;  %v18263_v35 = vld [vmem:[#allocation11_spill] sm:$0xff] }
 0x5f6   :  { %v14017_v30 = vmax.f32 %v13310_v48, %v3718_v55  ;;  %v14020_v43 = vmax.f32 %v18260_v11, %v3683_v44  ;;  %v10231_v55 = vunpack.i.h.bf16 %v10229_v38  ;;  %v10246_v41 = vunpack.i.h.bf16 %v10244_v47 }
 0x5f7   :  { %v3689_v8 = vsel %vm997_vm4, %v18261_v26, %v10245_v22  ;;  %v3680_v48 = vsel %vm997_vm4, %v18262_v46, %v14002_v19 }
 0x5f8   :  { %18259 = vst [vmem:[#allocation16_spill] sm:$0xff] %v14017_v30  ;;  %4147 = vmatmul.f32.gmra.mxu0 %v14017_v30  ;;  %4170 = vmatmul.f32.gmra.mxu1 %v14020_v43  ;;  %v14034_v30 = vmax.f32 %v18263_v35, %v3689_v8  ;;  %v3392_v38 = vsel %vm111_vm0, %v10230_v58, %v10231_v55  ;;  %v18264_v35 = vmax.f32 %v13551_v7, 0.0  ;;  %v18266_v58 = vmax.f32 %v13406_v20, 0.0  ;;  %v14080_v20 = vpop.f32.mrf.mxu3 }
 0x5f9   :  { %v3690_v47 = vsel %vm997_vm4, %v10245_v22, %v10246_v41 }
 0x5fa   :  { %v10239_v39 = vpop.permute.xlu1 %10238  ;;  %v14064_v8 = vmax.f32 %v18266_v58, %v3392_v38  ;;  %v18269_v58 = vld [vmem:[#allocation41_spill] sm:$0xff] }
 0x5fb   :  { %v10241_v1 = vunpack.i.h.bf16 %v10239_v39  ;;  %v10240_v28 = vunpack.i.l.bf16 %v10239_v39  ;;  %v14043_v39 = vmax.f32 %v13364_v59, %v3680_v48  ;;  %v14073_v48 = vmax.f32 %v13520_v21, %v3690_v47 }
 0x5fd   :  { %v3684_v44 = vsel %vm997_vm4, %v10236_v63, %v10240_v28  ;;  %v3685_v11 = vsel %vm997_vm4, %v10240_v28, %v10241_v1  ;;  %v18265_v28 = vmax.f32 %v13409_v10, 0.0 }
 0x5fe   :  { %v14037_v23 = vmax.f32 %v13475_v2, %v3684_v44  ;;  %v14040_v4 = vmax.f32 %v13495_v34, %v3685_v11  ;;  %v14050_v2 = vpop.permute.xlu0 %3588 }
 0x5ff   :  { %v3686_v46 = vsel %vm997_vm4, %v10241_v1, %v14050_v2 }
 0x600   :  { %4173 = vmatmul.f32.gmra.mxu1 %v14034_v30  ;;  %4211 = vmatmul.f32.gmra.mxu2 %v14037_v23  ;;  %v14076_v10 = vmax.f32 %v13499_v5, %v3686_v46  ;;  %v18268_v5 = vunpack.i.h.bf16 %v13647_v56 }
 0x601   :  { %4252 = vmatmul.f32.gmra.mxu3 %v14040_v4  ;;  %4290 = vmatmul.f32.vlgmr.msrb.gmra.mxu0 %v14043_v39 }
 0x602   :  { %v3344_v63 = vpop.permute.xlu1 %3343  ;;  %v10254_v22 = vpop.permute.xlu2 %10253 }
 0x603   :  { %v3393_v34 = vsel %vm111_vm0, %v10231_v55, %v3344_v63  ;;  %v14055_v59 = vmax.f32 %v18264_v35, %v3344_v63  ;;  %v10255_v11 = vunpack.i.l.bf16 %v10254_v22 }
 0x604   :  { %v14060_v26 = vmax.f32 %v18265_v28, %v3393_v34 }
 0x605   :  { %3672 = vrot.lane.b32.xlu2 %v14055_v59, %s10370_s30 }
 0x606   :  { %v10282_v7 = vpack.i.bf16 %v14060_v26, %v14064_v8  ;;  %v14087_v63 = vpop.permute.xlu0 %3602 }
 0x608   :  { %10283 = vrot.lane.b32.xlu0 %v10282_v7, %s10370_s30  ;;  %4214 = vmatmul.f32.gmra.mxu2 %v14073_v48 }
 0x609   :  { %4293 = vmatmul.f32.gmra.mxu0 %v14076_v10 }
 0x611   :  { %v14083_v1 = vpop.f32.mrf.mxu3 }
 0x612   :  { %18267 = vst [vmem:[#allocation38_spill] sm:$0xff] %v14083_v1 }
 0x619   :  { %v14085_v55 = vpop.f32.mrf.mxu3 }
 0x61c   :  { %v10249_v44 = vpop.permute.xlu1 %10248 }
 0x61d   :  { %v10251_v21 = vunpack.i.h.bf16 %v10249_v44  ;;  %v10250_v38 = vunpack.i.l.bf16 %v10249_v44 }
 0x61f   :  { %v3695_v34 = vsel %vm997_vm4, %v18268_v5, %v10251_v21  ;;  %v3696_v35 = vsel %vm997_vm4, %v10251_v21, %v10255_v11  ;;  %v3691_v47 = vsel %vm997_vm4, %v10246_v41, %v10250_v38  ;;  %v3692_v28 = vsel %vm997_vm4, %v10250_v38, %v14087_v63  ;;  %v4035_v21 = vld [vmem:[%s17732_s5 + $0x640] sm:$0x7f]  ;;  %v14113_v38 = vpop.permute.xlu2 %3616 }
 0x620   :  { %v14097_v46 = vmax.f32 %v18269_v58, %v3695_v34  ;;  %v14100_v7 = vmax.f32 %v13742_v52, %v3696_v35  ;;  %v14103_v44 = vmax.f32 %v13524_v42, %v3691_v47  ;;  %v14106_v56 = vmax.f32 %v13717_v24, %v3692_v28  ;;  %8922 = vmatpush.msk.msrb.mxu1 %vm4062_vm10, %v4035_v21  ;;  %v4033_v52 = vld [vmem:[%s17732_s5 + $0x630] sm:$0xff]  ;;  %v4031_v34 = vld [vmem:[%s17732_s5 + $0x620] sm:$0xff] }
 0x621   :  { %v10256_v41 = vunpack.i.h.bf16 %v10254_v22  ;;  %v14117_v42 = vpop.f32.mrf.mxu3  ;;  %v18273_v28 = vunpack.i.l.bf16 %v13765_v60  ;;  %v4029_v60 = vld [vmem:[%s17732_s5 + $0x610] sm:$0xff] }
 0x622   :  { %18270 = vst [vmem:[#allocation47_spill] sm:$0xff] %v14103_v44  ;;  %4176 = vmatmul.f32.gmra.mxu1 %v14097_v46  ;;  %4217 = vmatmul.f32.gmra.mxu2 %v14100_v7 }
 0x623   :  { %18271 = vst [vmem:[#allocation9_spill] sm:$0xff] %v14106_v56  ;;  %4255 = vmatmul.f32.gmra.mxu3 %v14103_v44  ;;  %4296 = vmatmul.f32.gmra.mxu0 %v14106_v56  ;;  %v3698_v35 = vsel %vm997_vm4, %v10256_v41, %v14113_v38  ;;  %v3697_v47 = vsel %vm997_vm4, %v10255_v11, %v10256_v41 }
 0x624   :  { %18272 = vst [vmem:[#allocation29_spill] sm:$0xff] %v14117_v42  ;;  %v10259_v24 = vpop.permute.xlu1 %10258  ;;  %4327 = vmatpush.msrb.mxu1 %v4033_v52  ;;  %v18274_v42 = vld [vmem:[#allocation15_spill] sm:$0xff]  ;;  %v14140_v56 = vmax.f32 %v13738_v50, %v3698_v35  ;;  %v14143_v44 = vmax.f32 %v13734_v15, %v3697_v47  ;;  %v4027_v50 = vld [vmem:[%s17732_s5 + $0x600] sm:$0xff] }
 0x625   :  { %v10261_v22 = vunpack.i.h.bf16 %v10259_v24  ;;  %v10260_v5 = vunpack.i.l.bf16 %v10259_v24 }
 0x626   :  { %4328 = vmatpush.msrb.mxu1 %v4031_v34  ;;  %18275 = vst [vmem:[#allocation2_spill] sm:$0xff] %v14140_v56  ;;  %v18276_v34 = vunpack.i.h.bf16 %v13607_v31 }
 0x627   :  { %v3701_v58 = vsel %vm997_vm4, %v18273_v28, %v10260_v5  ;;  %v3702_v21 = vsel %vm997_vm4, %v10260_v5, %v10261_v22  ;;  %v14157_v52 = vpop.permute.xlu2 %3630 }
 0x628   :  { %v14134_v1 = vmax.f32 %v18274_v42, %v3701_v58  ;;  %v14137_v24 = vmax.f32 %v13793_v25, %v3702_v21  ;;  %4329 = vmatpush.msrb.mxu1 %v4029_v60  ;;  %v18277_v58 = vld [vmem:[#allocation6_spill] sm:$0xff] }
 0x629   :  { %v14152_v25 = vpop.f32.mrf.mxu3 }
 0x62a   :  { %4179 = vmatmul.f32.gmra.mxu1 %v14134_v1  ;;  %4220 = vmatmul.f32.gmra.mxu2 %v14137_v24  ;;  %v10264_v15 = vpop.permute.xlu0 %10263 }
 0x62b   :  { %4258 = vmatmul.f32.gmra.mxu3 %v14143_v44  ;;  %4299 = vmatmul.f32.gmra.mxu0 %v14140_v56  ;;  %v10266_v11 = vunpack.i.h.bf16 %v10264_v15  ;;  %v10265_v41 = vunpack.i.l.bf16 %v10264_v15 }
 0x62c   :  { %v10269_v42 = vpop.permute.xlu1 %10268  ;;  %4330 = vmatpush.msrb.mxu1 %v4027_v50 }
 0x62d   :  { %v10270_v5 = vunpack.i.l.bf16 %v10269_v42  ;;  %v3707_v35 = vsel %vm997_vm4, %v18276_v34, %v10266_v11  ;;  %v3703_v47 = vsel %vm997_vm4, %v10261_v22, %v10265_v41  ;;  %v3704_v28 = vsel %vm997_vm4, %v10265_v41, %v14157_v52 }
 0x62e   :  { %v14166_v21 = vmax.f32 %v18277_v58, %v3707_v35  ;;  %v14170_v15 = vmax.f32 %v13797_v33, %v3703_v47  ;;  %v14173_v56 = vmax.f32 %v13835_v18, %v3704_v28  ;;  %v10271_v50 = vunpack.i.h.bf16 %v10269_v42  ;;  %v4127_v42 = vpop.f32.mrf.mxu0 }
 0x62f   :  { %v3708_v60 = vsel %vm997_vm4, %v10266_v11, %v10270_v5  ;;  %v18280_v47 = vunpack.i.l.bf16 %v13750_v6  ;;  %v18281_v6 = vunpack.i.l.bf16 %v14004_v37 }
 0x630   :  { %18278 = vst [vmem:[#allocation45_spill] sm:$0xff] %v14173_v56  ;;  %v14176_v31 = vmax.f32 %v13839_v29, %v3708_v60  ;;  %v3709_v29 = vsel %vm997_vm4, %v10270_v5, %v10271_v50 }
 0x631   :  { %v14181_v22 = vpop.f32.mrf.mxu3  ;;  %v14203_v5 = vmax.f32 %v13843_v0, %v3709_v29 }
 0x632   :  { %4182 = vmatmul.f32.gmra.mxu1 %v14166_v21  ;;  %4223 = vmatmul.f32.gmra.mxu2 %v14176_v31  ;;  %18279 = vst [vmem:[#allocation34_spill] sm:$0xff] %v14181_v22  ;;  %v10274_v11 = vpop.permute.xlu0 %10273  ;;  %v14186_v18 = vpop.permute.xlu2 %10278 }
 0x633   :  { %4261 = vmatmul.f32.gmra.mxu3 %v14170_v15  ;;  %4302 = vmatmul.f32.gmra.mxu0 %v14173_v56  ;;  %v10276_v33 = vunpack.i.h.bf16 %v10274_v11  ;;  %v10275_v41 = vunpack.i.l.bf16 %v10274_v11  ;;  %v17848_v22 = vunpack.i.h.bf16 %v14186_v18  ;;  %v10280_v56 = vunpack.i.l.bf16 %v14186_v18 }
 0x634   :  { %v14184_v34 = vpop.permute.xlu1 %3644 }
 0x635   :  { %v3710_v35 = vsel %vm997_vm4, %v10271_v50, %v14184_v34  ;;  %v3713_v28 = vsel %vm997_vm4, %v18280_v47, %v10275_v41  ;;  %v3714_v58 = vsel %vm997_vm4, %v10275_v41, %v10276_v33  ;;  %v3719_v0 = vsel %vm997_vm4, %v18281_v6, %v17848_v22  ;;  %v3898_v6 = vld [vmem:[%s17732_s5 + $0x1f8] sm:$0xff]  ;;  %v18282_v22 = vld [vmem:[#allocation12_spill] sm:$0xff] }
 0x636   :  { %v14196_v60 = vmax.f32 %v13314_v40, %v3713_v28  ;;  %v14199_v11 = vmax.f32 %v13881_v36, %v3714_v58  ;;  %v14207_v50 = vmax.f32 %v13847_v32, %v3710_v35  ;;  %v3715_v36 = vsel %vm997_vm4, %v10276_v33, %v10280_v56  ;;  %v14221_v32 = vpop.f32.mrf.mxu0  ;;  %v3866_v58 = vld [vmem:[%s17732_s5 + $0xf8] sm:$0xff]  ;;  %4397 = vmatpush.msrb.mxu3 %v3898_v6 }
 0x637   :  { %v14228_v35 = vmax.f32 %v13479_v16, %v3719_v0  ;;  %v14234_v28 = vmax.f32 %v13885_v17, %v3715_v36  ;;  %v14245_v16 = vmax.f32 %v13417_v51, %v14002_v19  ;;  %v3930_v0 = vld [vmem:[%s17732_s5 + $0x2f8] sm:$0xff]  ;;  %4356 = vmatpush.msrb.mxu2 %v3866_v58 }
 0x638   :  { %v3962_v19 = vld [vmem:[%s17732_s5 + $0x3f8] sm:$0xff]  ;;  %4438 = vmatpush.msra.mxu0 %v3930_v0 }
 0x639   :  { %v14212_v40 = vpop.f32.mrf.mxu3  ;;  %4479 = vmatpush.msra.mxu1 %v3962_v19  ;;  %v3926_v6 = vld [vmem:[%s17732_s5 + $0x2d8] sm:$0xff]  ;;  %v3860_v19 = vld [vmem:[%s17732_s5 + $0xc8] sm:$0xff] }
 0x63a   :  { %4185 = vmatmul.f32.gmra.mxu1 %v14196_v60  ;;  %4226 = vmatmul.f32.gmra.mxu2 %v14199_v11  ;;  %v3958_v0 = vld [vmem:[%s17732_s5 + $0x3d8] sm:$0xff] }
 0x63b   :  { %4264 = vmatmul.f32.gmra.mxu3 %v14203_v5  ;;  %4305 = vmatmul.f32.gmra.mxu0 %v14207_v50 }
 0x63d   :  { %v14223_v41 = vpop.permute.xlu1 %3658 }
 0x63e   :  { %v3716_v29 = vsel %vm997_vm4, %v10280_v56, %v14223_v41  ;;  %v14241_v33 = vpop.f32.mrf.mxu0  ;;  %v4168_v56 = vpop.f32.mrf.mxu1 }
 0x63f   :  { %v14231_v47 = vmax.f32 %v13972_v45, %v3716_v29  ;;  %v4128_v45 = vadd.f32 %v4127_v42, %v14080_v20  ;;  %v3864_v20 = vld [vmem:[%s17732_s5 + $0xe8] sm:$0xff] }
 0x640   :  { %v3896_v42 = vld [vmem:[%s17732_s5 + $0x1e8] sm:$0xff]  ;;  %4357 = vmatpush.msrb.mxu2 %v3864_v20 }
 0x641   :  { %v14238_v37 = vpop.f32.mrf.mxu3  ;;  %v4169_v17 = vadd.f32 %v4168_v56, %v4128_v45  ;;  %v3928_v29 = vld [vmem:[%s17732_s5 + $0x2e8] sm:$0xff]  ;;  %v3862_v45 = vld [vmem:[%s17732_s5 + $0xd8] sm:$0xff]  ;;  %4398 = vmatpush.msrb.mxu3 %v3896_v42 }
 0x642   :  { %4188 = vmatmul.f32.gmra.mxu1 %v14228_v35  ;;  %v3960_v56 = vld [vmem:[%s17732_s5 + $0x3e8] sm:$0xff]  ;;  %4439 = vmatpush.msra.mxu0 %v3928_v29 }
 0x643   :  { %4267 = vmatmul.f32.gmra.mxu3 %v14234_v28  ;;  %4308 = vmatmul.f32.gmra.mxu0 %v14231_v47  ;;  %v3892_v20 = vld [vmem:[%s17732_s5 + $0x1c8] sm:$0xff] }
 0x644   :  { %4480 = vmatpush.msra.mxu1 %v3960_v56  ;;  %4358 = vmatpush.msrb.mxu2 %v3862_v45  ;;  %v3924_v42 = vld [vmem:[%s17732_s5 + $0x2c8] sm:$0xff]  ;;  %v3858_v45 = vld [vmem:[%s17732_s5 + $0xb8] sm:$0xff] }
 0x645   :  { %4440 = vmatpush.msra.mxu0 %v3926_v6  ;;  %v3956_v29 = vld [vmem:[%s17732_s5 + $0x3c8] sm:$0xff] }
 0x646   :  { %4481 = vmatpush.msra.mxu1 %v3958_v0  ;;  %v14304_v56 = vpop.f32.mrf.mxu0  ;;  %4359 = vmatpush.msrb.mxu2 %v3860_v19  ;;  %v3888_v6 = vld [vmem:[%s17732_s5 + $0x1a8] sm:$0xff] }
 0x647   :  { %18283 = vst [vmem:[#allocation46_spill] sm:$0xff] %v14304_v56  ;;  %4441 = vmatpush.msra.mxu0 %v3924_v42  ;;  %v3920_v0 = vld [vmem:[%s17732_s5 + $0x2a8] sm:$0xff] }
 0x648   :  { %4482 = vmatpush.msra.mxu1 %v3956_v29  ;;  %4360 = vmatpush.msrb.mxu2 %v3858_v45  ;;  %v3952_v19 = vld [vmem:[%s17732_s5 + $0x3a8] sm:$0xff]  ;;  %v3854_v29 = vld [vmem:[%s17732_s5 + $0x98] sm:$0xff] }
 0x649   :  { %v4209_v51 = vpop.f32.mrf.mxu2  ;;  %v4250_v58 = vpop.f32.mrf.mxu3  ;;  %v3886_v45 = vld [vmem:[%s17732_s5 + $0x198] sm:$0xff] }
 0x64a   :  { %8923 = vmatmul.msk.f32.vlgmr.msrb.gmra.mxu1 %vm4037_vm11, %v14245_v16  ;;  %v4210_v36 = vadd.f32 %v4209_v51, %v4169_v17  ;;  %v3894_v17 = vld [vmem:[%s17732_s5 + $0x1d8] sm:$0xff] }
 0x64b   :  { %4399 = vmatpush.msrb.mxu3 %v3894_v17  ;;  %v3856_v17 = vld [vmem:[%s17732_s5 + $0xa8] sm:$0xff] }
 0x64c   :  { %v14286_v51 = vadd.f32 %v4250_v58, %v4210_v36  ;;  %v14299_v36 = vmax.f32 %v18282_v22, %v14050_v2  ;;  %v3890_v2 = vld [vmem:[%s17732_s5 + $0x1b8] sm:$0xff]  ;;  %4361 = vmatpush.msrb.mxu2 %v3856_v17  ;;  %v3916_v17 = vld [vmem:[%s17732_s5 + $0x288] sm:$0xff] }
 0x64d   :  { %4400 = vmatpush.msrb.mxu3 %v3892_v20  ;;  %v3922_v22 = vld [vmem:[%s17732_s5 + $0x2b8] sm:$0xff] }
 0x64e   :  { %v3954_v58 = vld [vmem:[%s17732_s5 + $0x3b8] sm:$0xff]  ;;  %4442 = vmatpush.msra.mxu0 %v3922_v22  ;;  %4362 = vmatpush.msrb.mxu2 %v3854_v29 }
 0x64f   :  { %4401 = vmatpush.msrb.mxu3 %v3890_v2  ;;  %4483 = vmatpush.msra.mxu1 %v3954_v58  ;;  %v18284_v20 = vld [vmem:[#allocation17_spill] sm:$0xff]  ;;  %v3884_v58 = vld [vmem:[%s17732_s5 + $0x188] sm:$0xff] }
 0x650   :  { %4443 = vmatpush.msra.mxu0 %v3920_v0  ;;  %v14334_v42 = vmax.f32 %v18284_v20, %v14087_v63  ;;  %v3918_v2 = vld [vmem:[%s17732_s5 + $0x298] sm:$0xff]  ;;  %v3852_v63 = vld [vmem:[%s17732_s5 + $0x88] sm:$0xff] }
 0x651   :  { %4402 = vmatpush.msrb.mxu3 %v3888_v6  ;;  %4484 = vmatpush.msra.mxu1 %v3952_v19  ;;  %v3950_v22 = vld [vmem:[%s17732_s5 + $0x398] sm:$0xff]  ;;  %v3948_v6 = vld [vmem:[%s17732_s5 + $0x388] sm:$0xff]  ;;  %v14365_v19 = vpop.f32.mrf.mxu0 }
 0x652   :  { %8924 = vmatmul.msk.f32.gmra.mxu1 %vm4037_vm11, %v14299_v36  ;;  %4444 = vmatpush.msra.mxu0 %v3918_v2  ;;  %v3850_v0 = vld [vmem:[%s17732_s5 + $0x78] sm:$0xff]  ;;  %v3848_v2 = vld [vmem:[%s17732_s5 + $0x68] sm:$0xff] }
 0x653   :  { %4403 = vmatpush.msrb.mxu3 %v3886_v45  ;;  %4485 = vmatpush.msra.mxu1 %v3950_v22  ;;  %v3882_v20 = vld [vmem:[%s17732_s5 + $0x178] sm:$0xff]  ;;  %v3880_v22 = vld [vmem:[%s17732_s5 + $0x168] sm:$0xff] }
 0x654   :  { %4363 = vmatpush.msrb.mxu2 %v3852_v63  ;;  %v3914_v29 = vld [vmem:[%s17732_s5 + $0x278] sm:$0xff]  ;;  %4445 = vmatpush.msra.mxu0 %v3916_v17  ;;  %v3912_v63 = vld [vmem:[%s17732_s5 + $0x268] sm:$0xff]  ;;  %v14390_v17 = vmax.f32 %v13802_v53, %v14113_v38 }
 0x655   :  { %4404 = vmatpush.msrb.mxu3 %v3884_v58  ;;  %v3946_v45 = vld [vmem:[%s17732_s5 + $0x378] sm:$0xff]  ;;  %4486 = vmatpush.msra.mxu1 %v3948_v6  ;;  %v3944_v58 = vld [vmem:[%s17732_s5 + $0x368] sm:$0xff] }
 0x656   :  { %4364 = vmatpush.msrb.mxu2 %v3850_v0  ;;  %4446 = vmatpush.msra.mxu0 %v3914_v29  ;;  %v3846_v6 = vld [vmem:[%s17732_s5 + $0x58] sm:$0xff]  ;;  %v3844_v38 = vld [vmem:[%s17732_s5 + $0x48] sm:$0xff] }
 0x657   :  { %4405 = vmatpush.msrb.mxu3 %v3882_v20  ;;  %4487 = vmatpush.msra.mxu1 %v3946_v45  ;;  %v3878_v0 = vld [vmem:[%s17732_s5 + $0x158] sm:$0xff]  ;;  %v3876_v29 = vld [vmem:[%s17732_s5 + $0x148] sm:$0xff] }
 0x658   :  { %4365 = vmatpush.msrb.mxu2 %v3848_v2  ;;  %4447 = vmatpush.msra.mxu0 %v3912_v63  ;;  %v3910_v20 = vld [vmem:[%s17732_s5 + $0x258] sm:$0xff]  ;;  %v3908_v45 = vld [vmem:[%s17732_s5 + $0x248] sm:$0xff] }
 0x659   :  { %4406 = vmatpush.msrb.mxu3 %v3880_v22  ;;  %4488 = vmatpush.msra.mxu1 %v3944_v58  ;;  %v3942_v53 = vld [vmem:[%s17732_s5 + $0x358] sm:$0xff]  ;;  %v3940_v2 = vld [vmem:[%s17732_s5 + $0x348] sm:$0xff] }
 0x65a   :  { %8925 = vmatmul.msk.f32.gmra.mxu1 %vm4037_vm11, %v14334_v42  ;;  %4366 = vmatpush.msrb.mxu2 %v3846_v6  ;;  %v3842_v22 = vld [vmem:[%s17732_s5 + $0x38] sm:$0xff]  ;;  %v14427_v6 = vpop.f32.mrf.mxu0 }
 0x65b   :  { %4407 = vmatpush.msrb.mxu3 %v3878_v0  ;;  %4448 = vmatpush.msra.mxu0 %v3910_v20  ;;  %v3874_v63 = vld [vmem:[%s17732_s5 + $0x138] sm:$0xff]  ;;  %v3840_v20 = vld [vmem:[%s17732_s5 + $0x28] sm:$0xff] }
 0x65c   :  { %4489 = vmatpush.msra.mxu1 %v3942_v53  ;;  %4367 = vmatpush.msrb.mxu2 %v3844_v38  ;;  %v3906_v58 = vld [vmem:[%s17732_s5 + $0x238] sm:$0xff]  ;;  %v3872_v53 = vld [vmem:[%s17732_s5 + $0x128] sm:$0xff] }
 0x65d   :  { %4408 = vmatpush.msrb.mxu3 %v3876_v29  ;;  %4449 = vmatpush.msra.mxu0 %v3908_v45  ;;  %v3938_v0 = vld [vmem:[%s17732_s5 + $0x338] sm:$0xff]  ;;  %v3904_v38 = vld [vmem:[%s17732_s5 + $0x228] sm:$0xff]  ;;  %v14443_v29 = vmax.f32 %v13853_v3, %v14157_v52 }
 0x65e   :  { %4490 = vmatpush.msra.mxu1 %v3940_v2  ;;  %4368 = vmatpush.msrb.mxu2 %v3842_v22  ;;  %v3936_v45 = vld [vmem:[%s17732_s5 + $0x328] sm:$0xff]  ;;  %v3838_v2 = vld [vmem:[%s17732_s5 + $0x18] sm:$0xff] }
 0x65f   :  { %4409 = vmatpush.msrb.mxu3 %v3874_v63  ;;  %4450 = vmatpush.msra.mxu0 %v3906_v58  ;;  %v3870_v22 = vld [vmem:[%s17732_s5 + $0x118] sm:$0xff]  ;;  %v3836_v63 = vld [vmem:[%s17732_s5 + $0x8] sm:$0xff] }
 0x660   :  { %4491 = vmatpush.msra.mxu1 %v3938_v0  ;;  %4369 = vmatpush.msrb.mxu2 %v3840_v20  ;;  %v3902_v3 = vld [vmem:[%s17732_s5 + $0x218] sm:$0xff]  ;;  %v3868_v58 = vld [vmem:[%s17732_s5 + $0x108] sm:$0xff] }
 0x661   :  { %4410 = vmatpush.msrb.mxu3 %v3872_v53  ;;  %4451 = vmatpush.msra.mxu0 %v3904_v38  ;;  %v3934_v52 = vld [vmem:[%s17732_s5 + $0x318] sm:$0xff]  ;;  %v3900_v0 = vld [vmem:[%s17732_s5 + $0x208] sm:$0xff]  ;;  %v14478_v38 = vmax.f32 %v13909_v57, %v14184_v34  ;;  %v18286_v57 = vunpack.i.h.bf16 %v14186_v18 }
 0x662   :  { %8926 = vmatmul.msk.f32.gmra.mxu1 %vm4037_vm11, %v14390_v17  ;;  %4370 = vmatpush.msrb.mxu2 %v3838_v2  ;;  %v3932_v20 = vld [vmem:[%s17732_s5 + $0x308] sm:$0xff]  ;;  %v14474_v53 = vpop.f32.mrf.mxu0  ;;  %v14486_v2 = vmax.f32 %v13948_v12, %v14223_v41 }
 0x663   :  { %4492 = vmatpush.msra.mxu1 %v3936_v45  ;;  %4411 = vmatpush.msrb.mxu3 %v3870_v22 }
 0x664   :  { %4452 = vmatpush.msra.mxu0 %v3902_v3  ;;  %4371 = vmatpush.msrb.mxu2 %v3836_v63  ;;  %v3673_v63 = vpop.permute.xlu2 %3672 }
 0x665   :  { %4493 = vmatpush.msra.mxu1 %v3934_v52  ;;  %4412 = vmatpush.msrb.mxu3 %v3868_v58 }
 0x666   :  { %4453 = vmatpush.msra.mxu0 %v3900_v0 }
 0x667   :  { %4494 = vmatpush.msra.mxu1 %v3932_v20 }
 0x66a   :  { %8927 = vmatmul.msk.f32.gmra.mxu1 %vm4037_vm11, %v14443_v29 }
 0x672   :  { %8928 = vmatmul.msk.f32.gmra.mxu1 %vm4037_vm11, %v14478_v38 }
 0x675   :  { %v14482_v45 = vpop.f32.mrf.mxu0  ;;  %v14490_v58 = vpop.f32.mrf.mxu1 }
 0x676   :  { %18285 = vst [vmem:[#allocation10_spill] sm:$0xff] %v14490_v58  ;;  %v14507_v58 = vmax.f32 %v14055_v59, %v3673_v63  ;;  %v18287_v59 = vld [vmem:[#allocation32_spill] sm:$0xff] }
 0x67a   :  { %8929 = vmatmul.msk.f32.gmra.mxu1 %vm4037_vm11, %v14486_v2  ;;  %v10284_v22 = vpop.permute.xlu0 %10283 }
 0x67b   :  { %v10286_v3 = vunpack.i.h.bf16 %v10284_v22  ;;  %v10285_v52 = vunpack.i.l.bf16 %v10284_v22 }
 0x67d   :  { %v3720_v34 = vsel %vm997_vm4, %v18286_v57, %v10285_v52  ;;  %v3721_v0 = vsel %vm997_vm4, %v10285_v52, %v10286_v3  ;;  %v3722_v20 = vsel %vm997_vm4, %v10286_v3, %v3673_v63  ;;  %v18288_v3 = vld [vmem:[#allocation40_spill] sm:$0xff]  ;;  %v3992_v63 = vld [vmem:[%s17732_s5 + $0x4e8] sm:$0xff]  ;;  %v4022_v57 = vld [vmem:[%s17732_s5 + $0x5d8] sm:$0xff]  ;;  %vm7321_vm4 = vcmask 629760  }
 0x67e   :  { %v4291_v56 = vpop.f32.mrf.mxu0  ;;  %v14498_v12 = vmax.f32 %v13976_v13, %v3720_v34  ;;  %v14501_v41 = vmax.f32 %v14064_v8, %v3721_v0  ;;  %v14504_v22 = vmax.f32 %v14060_v26, %v3722_v20  ;;  %v4174_v8 = vpop.f32.mrf.mxu1  ;;  %v4134_v26 = vadd.f32 %v14241_v33, %v14085_v55  ;;  %v18289_v34 = vld [vmem:[#allocation53_spill] sm:$0xff]  ;;  %v18290_v0 = vld [vmem:[#allocation14_spill] sm:$0xff]  ;;  %v3988_v20 = vld [vmem:[%s17732_s5 + $0x4c8] sm:$0xff] }
 0x67f   :  { %v14510_v18 = vadd.f32 %v4291_v56, %v14286_v51  ;;  %v3994_v51 = vld [vmem:[%s17732_s5 + $0x4f8] sm:$0xff] }
 0x680   :  { %4229 = vmatmul.f32.gmra.mxu2 %v14498_v12  ;;  %4270 = vmatmul.f32.gmra.mxu3 %v14501_v41  ;;  %v4026_v56 = vld [vmem:[%s17732_s5 + $0x5f8] sm:$0xff]  ;;  %v4175_v52 = vadd.f32 %v4174_v8, %v4134_v26  ;;  %v4020_v8 = vld [vmem:[%s17732_s5 + $0x5c8] sm:$0xff] }
 0x681   :  { %4311 = vmatmul.f32.gmra.mxu0 %v14504_v22  ;;  %4520 = vmatpush.msra.mxu2 %v3994_v51  ;;  %v3986_v26 = vld [vmem:[%s17732_s5 + $0x4b8] sm:$0xff]  ;;  %v18291_v51 = vld [vmem:[#allocation4_spill] sm:$0xff] }
 0x682   :  { %8930 = vmatmul.msk.f32.gmra.mxu1 %vm4037_vm11, %v14507_v58  ;;  %4561 = vmatpush.msra.mxu3 %v4026_v56  ;;  %v18292_v56 = vld [vmem:[#allocation7_spill] sm:$0xff] }
 0x683   :  { %v14517_v13 = vpop.f32.mrf.mxu2  ;;  %4521 = vmatpush.msra.mxu2 %v3992_v63  ;;  %v3980_v63 = vld [vmem:[%s17732_s5 + $0x488] sm:$0xff] }
 0x688   :  { %4372 = vmatmul.f32.vlgmr.msrb.gmra.mxu2 %v18287_v59  ;;  %4413 = vmatmul.f32.vlgmr.msrb.gmra.mxu3 %v18288_v3  ;;  %v3984_v59 = vld [vmem:[%s17732_s5 + $0x4a8] sm:$0xff] }
 0x689   :  { %4454 = vmatmul.f32.vlgmr.msra.gmra.mxu0 %v13894_v27  ;;  %v4024_v27 = vld [vmem:[%s17732_s5 + $0x5e8] sm:$0xff] }
 0x68a   :  { %4495 = vmatmul.f32.vlgmr.msra.gmra.mxu1 %v13927_v49  ;;  %4562 = vmatpush.msra.mxu3 %v4024_v27  ;;  %v3990_v49 = vld [vmem:[%s17732_s5 + $0x4d8] sm:$0xff]  ;;  %v4016_v3 = vld [vmem:[%s17732_s5 + $0x5a8] sm:$0xff]  ;;  %v14583_v27 = vpop.f32.mrf.mxu3 }
 0x68b   :  { %v4215_v55 = vpop.f32.mrf.mxu2  ;;  %4522 = vmatpush.msra.mxu2 %v3990_v49  ;;  %v4036_v49 = vld [vmem:[%s17732_s5 + $0x648] sm:$0x7f] }
 0x68c   :  { %v4216_v33 = vadd.f32 %v4215_v55, %v4175_v52  ;;  %4563 = vmatpush.msra.mxu3 %v4022_v57  ;;  %v3982_v52 = vld [vmem:[%s17732_s5 + $0x498] sm:$0xff]  ;;  %8931 = vmatpush.msk.msrb.mxu0 %vm4062_vm10, %v4036_v49 }
 0x68d   :  { %4523 = vmatpush.msra.mxu2 %v3988_v20  ;;  %v4014_v55 = vld [vmem:[%s17732_s5 + $0x598] sm:$0xff]  ;;  %v18293_v20 = vld [vmem:[#allocation27_spill] sm:$0xff] }
 0x68e   :  { %4564 = vmatpush.msra.mxu3 %v4020_v8  ;;  %v18294_v8 = vld [vmem:[#allocation42_spill] sm:$0xff] }
 0x68f   :  { %4524 = vmatpush.msra.mxu2 %v3986_v26  ;;  %v3976_v26 = vld [vmem:[%s17732_s5 + $0x468] sm:$0xff] }
 0x690   :  { %4375 = vmatmul.f32.gmra.mxu2 %v18289_v34  ;;  %4416 = vmatmul.f32.gmra.mxu3 %v18290_v0  ;;  %v3978_v34 = vld [vmem:[%s17732_s5 + $0x478] sm:$0xff] }
 0x691   :  { %4457 = vmatmul.f32.gmra.mxu0 %v14020_v43  ;;  %v4018_v43 = vld [vmem:[%s17732_s5 + $0x5b8] sm:$0xff]  ;;  %4525 = vmatpush.msra.mxu2 %v3984_v59 }
 0x692   :  { %4498 = vmatmul.f32.gmra.mxu1 %v14037_v23  ;;  %v14559_v23 = vpop.f32.mrf.mxu0  ;;  %4565 = vmatpush.msra.mxu3 %v4018_v43  ;;  %v4010_v0 = vld [vmem:[%s17732_s5 + $0x578] sm:$0xff]  ;;  %v4008_v43 = vld [vmem:[%s17732_s5 + $0x568] sm:$0xff] }
 0x693   :  { %4526 = vmatpush.msra.mxu2 %v3982_v52  ;;  %v4034_v59 = vld [vmem:[%s17732_s5 + $0x638] sm:$0xff] }
 0x694   :  { %4566 = vmatpush.msra.mxu3 %v4016_v3  ;;  %4614 = vmatpush.msrb.mxu0 %v4034_v59 }
 0x695   :  { %4527 = vmatpush.msra.mxu2 %v3980_v63  ;;  %v3972_v63 = vld [vmem:[%s17732_s5 + $0x448] sm:$0xff] }
 0x696   :  { %4567 = vmatpush.msra.mxu3 %v4014_v55  ;;  %v4032_v55 = vld [vmem:[%s17732_s5 + $0x628] sm:$0xff] }
 0x697   :  { %4528 = vmatpush.msra.mxu2 %v3978_v34  ;;  %4615 = vmatpush.msrb.mxu0 %v4032_v55 }
 0x698   :  { %4378 = vmatmul.f32.gmra.mxu2 %v18291_v51  ;;  %4419 = vmatmul.f32.gmra.mxu3 %v18292_v56 }
 0x699   :  { %4460 = vmatmul.f32.gmra.mxu0 %v14034_v30  ;;  %v4012_v30 = vld [vmem:[%s17732_s5 + $0x588] sm:$0xff]  ;;  %4529 = vmatpush.msra.mxu2 %v3976_v26 }
 0x69a   :  { %4501 = vmatmul.f32.gmra.mxu1 %v14073_v48  ;;  %4568 = vmatpush.msra.mxu3 %v4012_v30  ;;  %v4004_v30 = vld [vmem:[%s17732_s5 + $0x548] sm:$0xff] }
 0x69c   :  { %4569 = vmatpush.msra.mxu3 %v4010_v0  ;;  %v18295_v0 = vld [vmem:[#allocation21_spill] sm:$0xff] }
 0x69e   :  { %4570 = vmatpush.msra.mxu3 %v4008_v43 }
 0x69f   :  { %v14585_v48 = vpop.f32.mrf.mxu1 }
 0x6a0   :  { %v4297_v57 = vpop.f32.mrf.mxu0  ;;  %4381 = vmatmul.f32.gmra.mxu2 %v18293_v20  ;;  %4422 = vmatmul.f32.gmra.mxu3 %v18294_v8  ;;  %v4030_v20 = vld [vmem:[%s17732_s5 + $0x618] sm:$0xff] }
 0x6a1   :  { %4463 = vmatmul.f32.gmra.mxu0 %v14097_v46  ;;  %v3974_v46 = vld [vmem:[%s17732_s5 + $0x458] sm:$0xff] }
 0x6a2   :  { %4504 = vmatmul.f32.gmra.mxu1 %v14100_v7  ;;  %v4006_v7 = vld [vmem:[%s17732_s5 + $0x558] sm:$0xff]  ;;  %4530 = vmatpush.msra.mxu2 %v3974_v46 }
 0x6a3   :  { %4571 = vmatpush.msra.mxu3 %v4006_v7  ;;  %4616 = vmatpush.msrb.mxu0 %v4030_v20  ;;  %v3966_v46 = vld [vmem:[%s17732_s5 + $0x418] sm:$0xff] }
 0x6a4   :  { %4531 = vmatpush.msra.mxu2 %v3972_v63  ;;  %v3998_v7 = vld [vmem:[%s17732_s5 + $0x518] sm:$0xff] }
 0x6a5   :  { %v14610_v3 = vpop.f32.mrf.mxu2  ;;  %4572 = vmatpush.msra.mxu3 %v4004_v30 }
 0x6a6   :  { %v4256_v51 = vpop.f32.mrf.mxu3 }
 0x6a7   :  { %v4257_v56 = vadd.f32 %v4256_v51, %v4216_v33  ;;  %v4180_v52 = vpop.f32.mrf.mxu1  ;;  %v4140_v33 = vadd.f32 %v14365_v19, %v14152_v25  ;;  %v4002_v25 = vld [vmem:[%s17732_s5 + $0x538] sm:$0xff]  ;;  %v3964_v51 = vld [vmem:[%s17732_s5 + $0x408] sm:$0xff] }
 0x6a8   :  { %v14631_v34 = vpop.f32.mrf.mxu0  ;;  %4384 = vmatmul.f32.gmra.mxu2 %v18295_v0  ;;  %4425 = vmatmul.f32.gmra.mxu3 %v13789_v9  ;;  %v4028_v9 = vld [vmem:[%s17732_s5 + $0x608] sm:$0xff]  ;;  %v4146_v0 = vadd.f32 %v14474_v53, %v14212_v40  ;;  %v18298_v40 = vld [vmem:[#allocation33_spill] sm:$0xff] }
 0x6a9   :  { %v14627_v49 = vadd.f32 %v4297_v57, %v4257_v56  ;;  %4466 = vmatmul.f32.gmra.mxu0 %v14134_v1  ;;  %v3970_v57 = vld [vmem:[%s17732_s5 + $0x438] sm:$0xff]  ;;  %v4181_v19 = vadd.f32 %v4180_v52, %v4140_v33  ;;  %v3968_v1 = vld [vmem:[%s17732_s5 + $0x428] sm:$0xff]  ;;  %4573 = vmatpush.msra.mxu3 %v4002_v25  ;;  %v18297_v25 = vld [vmem:[#allocation16_spill] sm:$0xff] }
 0x6aa   :  { %4507 = vmatmul.f32.gmra.mxu1 %v14137_v24  ;;  %v4000_v24 = vld [vmem:[%s17732_s5 + $0x528] sm:$0xff]  ;;  %4532 = vmatpush.msra.mxu2 %v3970_v57 }
 0x6ab   :  { %4617 = vmatpush.msrb.mxu0 %v4028_v9  ;;  %4574 = vmatpush.msra.mxu3 %v4000_v24  ;;  %v3996_v56 = vld [vmem:[%s17732_s5 + $0x508] sm:$0xff]  ;;  %v18300_v24 = vld [vmem:[#allocation9_spill] sm:$0xff]  ;;  %s10377_s5 = smov 112  }
 0x6ac   :  { %4533 = vmatpush.msra.mxu2 %v3968_v1  ;;  %v18296_v57 = vld [vmem:[#allocation43_spill] sm:$0xff] }
 0x6ad   :  { %v4221_v8 = vpop.f32.mrf.mxu2  ;;  %4575 = vmatpush.msra.mxu3 %v3998_v7 }
 0x6ae   :  { %v4222_v26 = vadd.f32 %v4221_v8, %v4181_v19  ;;  %v14655_v43 = vpop.f32.mrf.mxu3  ;;  %4534 = vmatpush.msra.mxu2 %v3966_v46 }
 0x6af   :  { %v14657_v59 = vpop.f32.mrf.mxu1  ;;  %4576 = vmatpush.msra.mxu3 %v3996_v56 }
 0x6b0   :  { %4387 = vmatmul.f32.gmra.mxu2 %v13786_v14  ;;  %4428 = vmatmul.f32.gmra.mxu3 %v13824_v54  ;;  %v4303_v52 = vpop.f32.mrf.mxu0 }
 0x6b1   :  { %4469 = vmatmul.f32.gmra.mxu0 %v14166_v21  ;;  %4535 = vmatpush.msra.mxu2 %v3964_v51 }
 0x6b2   :  { %4510 = vmatmul.f32.gmra.mxu1 %v14176_v31 }
 0x6b5   :  { %v14675_v63 = vpop.f32.mrf.mxu2 }
 0x6b6   :  { %v4262_v55 = vpop.f32.mrf.mxu3 }
 0x6b7   :  { %v4263_v14 = vadd.f32 %v4262_v55, %v4222_v26  ;;  %v4186_v54 = vpop.f32.mrf.mxu1 }
 0x6b8   :  { %4390 = vmatmul.f32.gmra.mxu2 %v13821_v61  ;;  %4431 = vmatmul.f32.gmra.mxu3 %v13900_v62  ;;  %v14681_v31 = vpop.f32.mrf.mxu0  ;;  %v4187_v61 = vadd.f32 %v4186_v54, %v4146_v0 }
 0x6b9   :  { %v4304_v21 = vadd.f32 %v4303_v52, %v4263_v14  ;;  %4472 = vmatmul.f32.gmra.mxu0 %v14196_v60 }
 0x6ba   :  { %4513 = vmatmul.f32.gmra.mxu1 %v14199_v11 }
 0x6bd   :  { %v4227_v20 = vpop.f32.mrf.mxu2 }
 0x6be   :  { %v14683_v30 = vpop.f32.mrf.mxu3  ;;  %v4228_v62 = vadd.f32 %v4227_v20, %v4187_v61 }
 0x6bf   :  { %v14685_v33 = vpop.f32.mrf.mxu1 }
 0x6c0   :  { %4393 = vmatmul.f32.gmra.mxu2 %v18296_v57  ;;  %4434 = vmatmul.f32.gmra.mxu3 %v18297_v25  ;;  %v4309_v9 = vpop.f32.mrf.mxu0 }
 0x6c1   :  { %4475 = vmatmul.f32.gmra.mxu0 %v14228_v35 }
 0x6c2   :  { %4516 = vmatmul.f32.gmra.mxu1 %v14498_v12 }
 0x6c6   :  { %v4268_v60 = vpop.f32.mrf.mxu3 }
 0x6c7   :  { %v4269_v11 = vadd.f32 %v4268_v60, %v4228_v62  ;;  %v4332_v19 = vpop.f32.mrf.mxu1 }
 0x6c8   :  { %v14694_v8 = vadd.f32 %v4332_v19, %v14510_v18  ;;  %4536 = vmatmul.f32.vlgmr.msra.gmra.mxu2 %v18298_v40  ;;  %4577 = vmatmul.f32.vlgmr.msra.gmra.mxu3 %v14043_v39  ;;  %v18299_v18 = vld [vmem:[#allocation47_spill] sm:$0xff] }
 0x6c9   :  { %v4310_v1 = vadd.f32 %v4309_v9, %v4269_v11  ;;  %8932 = vmatmul.msk.f32.vlgmr.msrb.gmra.mxu0 %vm4037_vm11, %v14245_v16 }
 0x6cf   :  { %v14700_v53 = vpop.f32.mrf.mxu1 }
 0x6d0   :  { %4539 = vmatmul.f32.gmra.mxu2 %v14040_v4  ;;  %4580 = vmatmul.f32.gmra.mxu3 %v14076_v10  ;;  %v18301_v4 = vld [vmem:[#allocation2_spill] sm:$0xff] }
 0x6d1   :  { %8933 = vmatmul.msk.f32.gmra.mxu0 %vm4037_vm11, %v14299_v36  ;;  %v18302_v36 = vld [vmem:[#allocation45_spill] sm:$0xff] }
 0x6d7   :  { %v4338_v35 = vpop.f32.mrf.mxu1 }
 0x6d8   :  { %v14707_v12 = vadd.f32 %v4338_v35, %v14627_v49  ;;  %4542 = vmatmul.f32.gmra.mxu2 %v18299_v18  ;;  %4583 = vmatmul.f32.gmra.mxu3 %v18300_v24 }
 0x6d9   :  { %8934 = vmatmul.msk.f32.gmra.mxu0 %vm4037_vm11, %v14334_v42 }
 0x6df   :  { %v14713_v39 = vpop.f32.mrf.mxu1 }
 0x6e0   :  { %4545 = vmatmul.f32.gmra.mxu2 %v14143_v44  ;;  %4586 = vmatmul.f32.gmra.mxu3 %v18301_v4 }
 0x6e1   :  { %8935 = vmatmul.msk.f32.gmra.mxu0 %vm4037_vm11, %v14390_v17 }
 0x6e7   :  { %v4344_v10 = vpop.f32.mrf.mxu1 }
 0x6e8   :  { %v14719_v16 = vadd.f32 %v4344_v10, %v4304_v21  ;;  %4548 = vmatmul.f32.gmra.mxu2 %v14170_v15  ;;  %4589 = vmatmul.f32.gmra.mxu3 %v18302_v36 }
 0x6e9   :  { %8936 = vmatmul.msk.f32.gmra.mxu0 %vm4037_vm11, %v14443_v29 }
 0x6ef   :  { %v14725_v42 = vpop.f32.mrf.mxu1 }
 0x6f0   :  { %4551 = vmatmul.f32.gmra.mxu2 %v14203_v5  ;;  %4592 = vmatmul.f32.gmra.mxu3 %v14207_v50 }
 0x6f1   :  { %8937 = vmatmul.msk.f32.gmra.mxu0 %vm4037_vm11, %v14478_v38 }
 0x6f7   :  { %v4350_v44 = vpop.f32.mrf.mxu1 }
 0x6f8   :  { %v14731_v17 = vadd.f32 %v4350_v44, %v4310_v1  ;;  %4554 = vmatmul.f32.gmra.mxu2 %v14234_v28  ;;  %4595 = vmatmul.f32.gmra.mxu3 %v14231_v47 }
 0x6f9   :  { %8938 = vmatmul.msk.f32.gmra.mxu0 %vm4037_vm11, %v14486_v2 }
 0x6fe   :  { %v14737_v15 = vpop.f32.mrf.mxu0 }
 0x6ff   :  { %v14759_v25 = vpop.f32.mrf.mxu1 }
 0x700   :  { %4557 = vmatmul.f32.gmra.mxu2 %v14501_v41  ;;  %4598 = vmatmul.f32.gmra.mxu3 %v14504_v22 }
 0x701   :  { %8939 = vmatmul.msk.f32.gmra.mxu0 %vm4037_vm11, %v14507_v58 }
 0x703   :  { %v14743_v5 = vpop.f32.mrf.mxu2  ;;  %v14745_v50 = vpop.f32.mrf.mxu3 }
 0x706   :  { %v4455_v29 = vpop.f32.mrf.mxu0 }
 0x707   :  { %v4496_v11 = vpop.f32.mrf.mxu1 }
 0x70b   :  { %v4373_v28 = vpop.f32.mrf.mxu2  ;;  %v4414_v38 = vpop.f32.mrf.mxu3 }
 0x70c   :  { %v4415_v47 = vadd.f32 %v4414_v38, %v4373_v28 }
 0x70e   :  { %v4456_v49 = vadd.f32 %v4455_v29, %v4415_v47  ;;  %v14747_v26 = vpop.f32.mrf.mxu0 }
 0x70f   :  { %v4499_v4 = vpop.f32.mrf.mxu1 }
 0x710   :  { %v4497_v36 = vadd.f32 %v4496_v11, %v4456_v49 }
 0x713   :  { %v14749_v2 = vpop.f32.mrf.mxu2  ;;  %v14751_v46 = vpop.f32.mrf.mxu3 }
 0x716   :  { %v4461_v41 = vpop.f32.mrf.mxu0 }
 0x717   :  { %v4502_v38 = vpop.f32.mrf.mxu1 }
 0x71b   :  { %v4379_v22 = vpop.f32.mrf.mxu2  ;;  %v4420_v7 = vpop.f32.mrf.mxu3 }
 0x71c   :  { %v4421_v51 = vadd.f32 %v4420_v7, %v4379_v22 }
 0x71e   :  { %v4462_v58 = vadd.f32 %v4461_v41, %v4421_v51  ;;  %v14753_v56 = vpop.f32.mrf.mxu0 }
 0x723   :  { %v14755_v52 = vpop.f32.mrf.mxu2  ;;  %v14757_v55 = vpop.f32.mrf.mxu3 }
 0x726   :  { %v4467_v14 = vpop.f32.mrf.mxu0 }
 0x72b   :  { %v4385_v54 = vpop.f32.mrf.mxu2  ;;  %v4426_v21 = vpop.f32.mrf.mxu3 }
 0x72c   :  { %v4427_v0 = vadd.f32 %v4426_v21, %v4385_v54  ;;  %v14770_v21 = vpop.f32.mrf.mxu1 }
 0x72e   :  { %v4468_v20 = vadd.f32 %v4467_v14, %v4427_v0  ;;  %v4470_v57 = vpop.f32.mrf.mxu0  ;;  %v4503_v0 = vadd.f32 %v4502_v38, %v4462_v58  ;;  %v18305_v38 = vld [vmem:[#allocation34_spill] sm:$0xff] }
 0x733   :  { %v4388_v61 = vpop.f32.mrf.mxu2  ;;  %v4429_v62 = vpop.f32.mrf.mxu3 }
 0x736   :  { %v4473_v60 = vpop.f32.mrf.mxu0 }
 0x73b   :  { %v4391_v19 = vpop.f32.mrf.mxu2  ;;  %v4432_v9 = vpop.f32.mrf.mxu3 }
 0x73c   :  { %v4433_v1 = vadd.f32 %v4432_v9, %v4391_v19 }
 0x73e   :  { %v14761_v40 = vadd.f32 %v4473_v60, %v4433_v1  ;;  %v14763_v35 = vpop.f32.mrf.mxu0 }
 0x743   :  { %v4394_v18 = vpop.f32.mrf.mxu2  ;;  %v4435_v24 = vpop.f32.mrf.mxu3 }
 0x746   :  { %v4619_v10 = vpop.f32.mrf.mxu0 }
 0x74b   :  { %v4537_v44 = vpop.f32.mrf.mxu2  ;;  %v4578_v29 = vpop.f32.mrf.mxu3 }
 0x74c   :  { %v4538_v28 = vadd.f32 %v4537_v44, %v4497_v36  ;;  %v4508_v36 = vpop.f32.mrf.mxu1 }
 0x74e   :  { %v4579_v47 = vadd.f32 %v4578_v29, %v4538_v28  ;;  %v14765_v41 = vpop.f32.mrf.mxu0  ;;  %v4430_v28 = vadd.f32 %v4429_v62, %v4388_v61 }
 0x750   :  { %v4620_v22 = vadd.f32 %v4619_v10, %v4579_v47  ;;  %v4509_v47 = vadd.f32 %v4508_v36, %v4468_v20 }
 0x752   :  { %v14768_v7 = vpack.c.bf16 %v4620_v22, %v14694_v8 }
 0x753   :  { %v4540_v51 = vpop.f32.mrf.mxu2  ;;  %v4581_v14 = vpop.f32.mrf.mxu3 }
 0x754   :  { %18303 = vst [vmem:[#allocation18_spill] sm:$0xff] %v14768_v7 }
 0x756   :  { %v4625_v54 = vpop.f32.mrf.mxu0 }
 0x75b   :  { %v4543_v60 = vpop.f32.mrf.mxu2  ;;  %v4584_v19 = vpop.f32.mrf.mxu3 }
 0x75c   :  { %v4544_v49 = vadd.f32 %v4543_v60, %v4503_v0  ;;  %v4143_v0 = vadd.f32 %v14427_v6, %v18305_v38  ;;  %v4511_v60 = vpop.f32.mrf.mxu1  ;;  %v4436_v38 = vadd.f32 %v4435_v24, %v4394_v18 }
 0x75e   :  { %v4585_v11 = vadd.f32 %v4584_v19, %v4544_v49  ;;  %v14772_v9 = vpop.f32.mrf.mxu0  ;;  %v4471_v49 = vadd.f32 %v4470_v57, %v4430_v28 }
 0x760   :  { %v4626_v1 = vadd.f32 %v4625_v54, %v4585_v11  ;;  %v4184_v54 = vadd.f32 %v14657_v59, %v4143_v0  ;;  %v4512_v36 = vadd.f32 %v4511_v60, %v4471_v49  ;;  %v18306_v59 = vld [vmem:[#allocation38_spill] sm:$0xff] }
 0x761   :  { %v4131_v57 = vadd.f32 %v14221_v32, %v18306_v59 }
 0x762   :  { %v14775_v44 = vpack.c.bf16 %v4626_v1, %v14707_v12  ;;  %v4225_v12 = vadd.f32 %v14675_v63, %v4184_v54  ;;  %v4418_v1 = vadd.f32 %v14751_v46, %v14749_v2  ;;  %v4149_v2 = vadd.f32 %v14482_v45, %v14238_v37 }
 0x763   :  { %v14777_v10 = vpop.f32.mrf.mxu2  ;;  %v14779_v8 = vpop.f32.mrf.mxu3 }
 0x764   :  { %18304 = vst [vmem:[#allocation8_spill] sm:$0xff] %v14775_v44  ;;  %v4266_v61 = vadd.f32 %v14683_v30, %v4225_v12  ;;  %v4514_v28 = vpop.f32.mrf.mxu1  ;;  %v18307_v30 = vld [vmem:[#allocation10_spill] sm:$0xff]  ;;  %v4190_v32 = vadd.f32 %v14685_v33, %v4149_v2 }
 0x765   :  { %v4172_v46 = vadd.f32 %v18307_v30, %v4131_v57  ;;  %v4515_v60 = vadd.f32 %v4514_v28, %v14761_v40  ;;  %v18309_v40 = vld [vmem:[#allocation46_spill] sm:$0xff] }
 0x766   :  { %v4631_v29 = vpop.f32.mrf.mxu0  ;;  %v4307_v63 = vadd.f32 %v14681_v31, %v4266_v61  ;;  %v4231_v37 = vadd.f32 %v14743_v5, %v4190_v32  ;;  %v18310_v30 = vld [vmem:[#allocation18_spill] sm:$0xff] }
 0x768   :  { %v4272_v5 = vadd.f32 %v14745_v50, %v4231_v37 }
 0x76b   :  { %v4549_v22 = vpop.f32.mrf.mxu2  ;;  %v4590_v58 = vpop.f32.mrf.mxu3 }
 0x76c   :  { %v4550_v19 = vadd.f32 %v4549_v22, %v4509_v47  ;;  %v4459_v47 = vadd.f32 %v14747_v26, %v4418_v1  ;;  %v4517_v12 = vpop.f32.mrf.mxu1 }
 0x76e   :  { %v4591_v11 = vadd.f32 %v4590_v58, %v4550_v19  ;;  %v4634_v62 = vpop.f32.mrf.mxu0 }
 0x770   :  { %v4632_v44 = vadd.f32 %v4631_v29, %v4591_v11  ;;  %v4500_v29 = vadd.f32 %v4499_v4, %v4459_v47 }
 0x772   :  { %v4647_v20 = vpack.c.bf16 %v4632_v44, %v14719_v16  ;;  %v4348_v16 = vadd.f32 %v14725_v42, %v4307_v63  ;;  %v4424_v44 = vadd.f32 %v14757_v55, %v14755_v52  ;;  %v4541_v31 = vadd.f32 %v4540_v51, %v4500_v29  ;;  %v18308_v51 = vld [vmem:[#allocation29_spill] sm:$0xff] }
 0x773   :  { %v4552_v7 = vpop.f32.mrf.mxu2  ;;  %v4593_v6 = vpop.f32.mrf.mxu3  ;;  %v4137_v11 = vadd.f32 %v18309_v40, %v18308_v51 }
 0x774   :  { %v4553_v22 = vadd.f32 %v4552_v7, %v4512_v36  ;;  %v4213_v7 = vadd.f32 %v14517_v13, %v4172_v46  ;;  %v4465_v42 = vadd.f32 %v14753_v56, %v4424_v44  ;;  %v4741_v54 = vunpack.c.h.b16 %v4647_v20 }
 0x775   :  { %v4477_v13 = vadd.f32 %v14763_v35, %v4436_v38  ;;  %v4582_v33 = vadd.f32 %v4581_v14, %v4541_v31  ;;  %v4178_v35 = vadd.f32 %v14585_v48, %v4137_v11  ;;  %v4740_v59 = vunpack.c.l.b16 %v4647_v20  ;;  %v9960_v11 = vld [vmem:[%s17733_s3 + $0x10] sm:$0xff] }
 0x776   :  { %v4594_v58 = vadd.f32 %v4593_v6, %v4553_v22  ;;  %v4254_v55 = vadd.f32 %v14583_v27, %v4213_v7  ;;  %v4637_v4 = vpop.f32.mrf.mxu0  ;;  %v4506_v56 = vadd.f32 %v14770_v21, %v4465_v42  ;;  %v4313_v22 = vadd.f32 %v14737_v15, %v4272_v5  ;;  %v9958_v42 = vld [vmem:[%s17733_s3] sm:$0xff] }
 0x777   :  { %v4518_v14 = vadd.f32 %v4517_v12, %v4477_v13  ;;  %v4623_v61 = vadd.f32 %v14765_v41, %v4582_v33  ;;  %v4219_v50 = vadd.f32 %v14610_v3, %v4178_v35 }
 0x778   :  { %v4635_v26 = vadd.f32 %v4634_v62, %v4594_v58  ;;  %v4295_v27 = vadd.f32 %v14559_v23, %v4254_v55  ;;  %v4547_v62 = vadd.f32 %v14777_v10, %v4506_v56  ;;  %v9959_v55 = vld [vmem:[%s17733_s3 + $0x8] sm:$0xff] }
 0x779   :  { %v4260_v23 = vadd.f32 %v14655_v43, %v4219_v50 }
 0x77a   :  { %v4648_v0 = vpack.c.bf16 %v4635_v26, %v4348_v16  ;;  %v4336_v21 = vadd.f32 %v14700_v53, %v4295_v27  ;;  %v4588_v41 = vadd.f32 %v14779_v8, %v4547_v62  ;;  %v4732_v8 = vunpack.c.l.b16 %v18310_v30  ;;  %v9966_v27 = vld [vmem:[%s17733_s3 + $0x40] sm:$0xff] }
 0x77b   :  { %v4555_v45 = vpop.f32.mrf.mxu2  ;;  %v4596_v19 = vpop.f32.mrf.mxu3  ;;  %v4301_v53 = vadd.f32 %v14631_v34, %v4260_v23 }
 0x77c   :  { %v4743_v49 = vunpack.c.h.b16 %v4648_v0  ;;  %v4556_v52 = vadd.f32 %v4555_v45, %v4515_v60  ;;  %v4742_v36 = vunpack.c.l.b16 %v4648_v0  ;;  %v4644_v63 = vpack.c.bf16 %v4623_v61, %v4336_v21 }
 0x77d   :  { %v4629_v20 = vadd.f32 %v14772_v9, %v4588_v41  ;;  %v4342_v2 = vadd.f32 %v14713_v39, %v4301_v53  ;;  %v18311_v9 = vld [vmem:[#allocation8_spill] sm:$0xff]  ;;  %v4733_v0 = vunpack.c.h.b16 %v18310_v30  ;;  %v6756_v41 = vld [vmem:[%s17734_s4 + $0x8] sm:$0xff] }
 0x77e   :  { %v14806_v18 = vpack.c.b16 %v4743_v49, %v4741_v54  ;;  %v4597_v24 = vadd.f32 %v4596_v19, %v4556_v52  ;;  %v14824_v28 = vpack.c.b16 %v4742_v36, %v4740_v59  ;;  %v4640_v58 = vpop.f32.mrf.mxu0  ;;  %v4734_v15 = vunpack.c.l.b16 %v4644_v63  ;;  %v9961_v36 = vld [vmem:[%s17733_s3 + $0x18] sm:$0xff] }
 0x77f   :  { %v4735_v39 = vunpack.c.h.b16 %v4644_v63  ;;  %v4737_v38 = vunpack.c.h.b16 %v18311_v9  ;;  %v4736_v60 = vunpack.c.l.b16 %v18311_v9  ;;  %v9962_v63 = vld [vmem:[%s17733_s3 + $0x20] sm:$0xff]  ;;  %v6758_v9 = vld [vmem:[%s17734_s4 + $0x18] sm:$0xff] }
 0x780   :  { %v4638_v1 = vadd.f32 %v4637_v4, %v4597_v24  ;;  %4766 = vrot.lane.b32.xlu1 %v14806_v18, %s10368_s21  ;;  %v14833_v26 = vpack.c.b16 %v4734_v15, %v4732_v8  ;;  %v9968_v15 = vld [vmem:[%s17733_s3 + $0x50] sm:$0xff]  ;;  %v9963_v8 = vld [vmem:[%s17733_s3 + $0x28] sm:$0xff] }
 0x781   :  { %v14854_v45 = vpack.c.b16 %v4735_v39, %v4733_v0  ;;  %v9964_v39 = vld [vmem:[%s17733_s3 + $0x30] sm:$0xff] }
 0x782   :  { %v4649_v6 = vpack.c.bf16 %v4638_v1, %v14731_v17  ;;  %v4354_v17 = vadd.f32 %v14759_v25, %v4313_v22  ;;  %v4646_v25 = vpack.c.bf16 %v4629_v20, %v4342_v2  ;;  %v9967_v22 = vld [vmem:[%s17733_s3 + $0x48] sm:$0xff] }
 0x783   :  { %v4558_v47 = vpop.f32.mrf.mxu2  ;;  %v4599_v48 = vpop.f32.mrf.mxu3 }
 0x784   :  { %v4559_v57 = vadd.f32 %v4558_v47, %v4518_v14  ;;  %v4744_v46 = vunpack.c.l.b16 %v4649_v6  ;;  %v4745_v16 = vunpack.c.h.b16 %v4649_v6  ;;  %v4739_v34 = vunpack.c.h.b16 %v4646_v25 }
 0x785   :  { %v4738_v31 = vunpack.c.l.b16 %v4646_v25 }
 0x786   :  { %v4600_v10 = vadd.f32 %v4599_v48, %v4559_v57  ;;  %v14851_v37 = vpack.c.b16 %v4739_v34, %v4737_v38 }
 0x787   :  { %v14856_v19 = vpack.c.b16 %v4738_v31, %v4736_v60 }
 0x788   :  { %v4641_v3 = vadd.f32 %v4640_v58, %v4600_v10  ;;  %4764 = vrot.lane.b32.xlu1 %v14824_v28, %s10368_s21 }
 0x78a   :  { %v4650_v43 = vpack.c.bf16 %v4641_v3, %v4354_v17 }
 0x78c   :  { %v4746_v44 = vunpack.c.l.b16 %v4650_v43  ;;  %v4747_v29 = vunpack.c.h.b16 %v4650_v43 }
 0x78e   :  { %v14835_v7 = vpack.c.b16 %v4746_v44, %v4744_v46  ;;  %v14837_v32 = vpack.c.b16 %v4747_v29, %v4745_v16 }
 0x790   :  { %4756 = vrot.lane.b32.xlu1 %v14833_v26, %s10368_s21  ;;  %4770 = vrot.lane.b32.xlu0 %v14837_v32, %s10368_s21 }
 0x791   :  { %5032 = vmatpush.bf16.msra.mxu0 %v14837_v32  ;;  %4768 = vrot.lane.b32.xlu2 %v14835_v7, %s10368_s21 }
 0x792   :  { %4983 = vmatpush.bf16.msrb.mxu3 %v14835_v7 }
 0x795   :  { %5033 = vmatpush.bf16.msra.mxu0 %v14806_v18 }
 0x796   :  { %4984 = vmatpush.bf16.msrb.mxu3 %v14824_v28 }
 0x798   :  { %4762 = vrot.lane.b32.xlu0 %v14851_v37, %s10368_s21  ;;  %5146 = vrot.lane.b32.xlu1 %v14835_v7, %s10369_s0 }
 0x799   :  { %5034 = vmatpush.bf16.msra.mxu0 %v14851_v37  ;;  %4758 = vrot.lane.b32.xlu2 %v14854_v45, %s10368_s21 }
 0x79a   :  { %4985 = vmatpush.bf16.msrb.mxu3 %v14856_v19 }
 0x79d   :  { %5035 = vmatpush.bf16.msra.mxu0 %v14854_v45 }
 0x79e   :  { %4986 = vmatpush.bf16.msrb.mxu3 %v14833_v26 }
 0x7a0   :  { %4760 = vrot.lane.b32.xlu0 %v14856_v19, %s10368_s21  ;;  %5136 = vrot.lane.b32.xlu1 %v14854_v45, %s10369_s0 }
 0x7a1   :  { %5148 = vrot.lane.b32.xlu2 %v14837_v32, %s10369_s0  ;;  %9044 = vmatmul.msk.bf16.vlgmr.msra.gmra.mxu0 %vm4784_vm12, %v9958_v42 }
 0x7a2   :  { %9036 = vmatmul.msk.bf16.vlgmr.msrb.gmra.mxu3 %vm4784_vm12, %v9958_v42 }
 0x7a8   :  { %5144 = vrot.lane.b32.xlu0 %v14806_v18, %s10369_s0  ;;  %5381 = vrot.lane.b32.xlu1 %v14824_v28, %s10377_s5 }
 0x7a9   :  { %5140 = vrot.lane.b32.xlu2 %v14851_v37, %s10369_s0 }
 0x7b0   :  { %5142 = vrot.lane.b32.xlu0 %v14824_v28, %s10369_s0  ;;  %5377 = vrot.lane.b32.xlu1 %v14856_v19, %s10377_s5 }
 0x7b1   :  { %5138 = vrot.lane.b32.xlu2 %v14856_v19, %s10369_s0  ;;  %9045 = vmatmul.msk.bf16.gmra.mxu0 %vm4784_vm12, %v9959_v55 }
 0x7b2   :  { %9037 = vmatmul.msk.bf16.gmra.mxu3 %vm4784_vm12, %v9959_v55 }
 0x7b8   :  { %5134 = vrot.lane.b32.xlu0 %v14833_v26, %s10369_s0  ;;  %5385 = vrot.lane.b32.xlu1 %v14835_v7, %s10377_s5  ;;  %s10379_s0 = smov 110  }
 0x7b9   :  { %5383 = vrot.lane.b32.xlu2 %v14806_v18, %s10377_s5 }
 0x7c0   :  { %5623 = vrot.lane.b32.xlu0 %v14806_v18, %s10378_s12  ;;  %5619 = vrot.lane.b32.xlu1 %v14851_v37, %s10378_s12 }
 0x7c1   :  { %5379 = vrot.lane.b32.xlu2 %v14851_v37, %s10377_s5  ;;  %9046 = vmatmul.msk.bf16.gmra.mxu0 %vm4784_vm12, %v9960_v11 }
 0x7c2   :  { %9038 = vmatmul.msk.bf16.gmra.mxu3 %vm4784_vm12, %v9960_v11  ;;  %v9982_v11 = vld [vmem:[%s17733_s3 + $0xc0] sm:$0xff] }
 0x7c8   :  { %5375 = vrot.lane.b32.xlu0 %v14854_v45, %s10377_s5  ;;  %5621 = vrot.lane.b32.xlu1 %v14824_v28, %s10378_s12 }
 0x7c9   :  { %5387 = vrot.lane.b32.xlu2 %v14837_v32, %s10377_s5 }
 0x7d0   :  { %5627 = vrot.lane.b32.xlu0 %v14837_v32, %s10378_s12  ;;  %5613 = vrot.lane.b32.xlu1 %v14833_v26, %s10378_s12 }
 0x7d1   :  { %5373 = vrot.lane.b32.xlu2 %v14833_v26, %s10377_s5  ;;  %9047 = vmatmul.msk.bf16.gmra.mxu0 %vm4784_vm12, %v9961_v36 }
 0x7d2   :  { %9039 = vmatmul.msk.bf16.gmra.mxu3 %vm4784_vm12, %v9961_v36 }
 0x7d8   :  { %5625 = vrot.lane.b32.xlu0 %v14835_v7, %s10378_s12  ;;  %6103 = vrot.lane.b32.xlu1 %v14806_v18, %s10372_s27 }
 0x7d9   :  { %5615 = vrot.lane.b32.xlu2 %v14854_v45, %s10378_s12 }
 0x7e0   :  { %5617 = vrot.lane.b32.xlu0 %v14856_v19, %s10378_s12  ;;  %5855 = vrot.lane.b32.xlu1 %v14854_v45, %s10379_s0 }
 0x7e1   :  { %5861 = vrot.lane.b32.xlu2 %v14824_v28, %s10379_s0  ;;  %9048 = vmatmul.msk.bf16.gmra.mxu0 %vm4784_vm12, %v9962_v63 }
 0x7e2   :  { %9040 = vmatmul.msk.bf16.gmra.mxu3 %vm4784_vm12, %v9962_v63 }
 0x7e8   :  { %5863 = vrot.lane.b32.xlu0 %v14806_v18, %s10379_s0  ;;  %6107 = vrot.lane.b32.xlu1 %v14837_v32, %s10372_s27 }
 0x7e9   :  { %5857 = vrot.lane.b32.xlu2 %v14856_v19, %s10379_s0 }
 0x7eb   :  { %v4769_v54 = vpop.permute.xlu2 %4768 }
 0x7f0   :  { %5859 = vrot.lane.b32.xlu0 %v14851_v37, %s10379_s0  ;;  %6105 = vrot.lane.b32.xlu1 %v14835_v7, %s10372_s27 }
 0x7f1   :  { %5865 = vrot.lane.b32.xlu2 %v14835_v7, %s10379_s0  ;;  %9049 = vmatmul.msk.bf16.gmra.mxu0 %vm4784_vm12, %v9963_v8 }
 0x7f2   :  { %v4767_v49 = vpop.permute.xlu1 %4766  ;;  %9041 = vmatmul.msk.bf16.gmra.mxu3 %vm4784_vm12, %v9963_v8 }
 0x7f3   :  { %v4759_v52 = vpop.permute.xlu2 %4758 }
 0x7f8   :  { %5867 = vrot.lane.b32.xlu0 %v14837_v32, %s10379_s0  ;;  %6097 = vrot.lane.b32.xlu1 %v14856_v19, %s10372_s27 }
 0x7f9   :  { %6099 = vrot.lane.b32.xlu2 %v14851_v37, %s10372_s27 }
 0x7fa   :  { %v4765_v13 = vpop.permute.xlu1 %4764 }
 0x7fb   :  { %v5149_v4 = vpop.permute.xlu2 %5148  ;;  %v4774_v5 = vsel %vm111_vm0, %v4765_v13, %v4767_v49 }
 0x800   :  { %5853 = vrot.lane.b32.xlu0 %v14833_v26, %s10379_s0  ;;  %6342 = vrot.lane.b32.xlu1 %v14806_v18, %s10380_s1 }
 0x801   :  { %6101 = vrot.lane.b32.xlu2 %v14824_v28, %s10372_s27  ;;  %9050 = vmatmul.msk.bf16.gmra.mxu0 %vm4784_vm12, %v9964_v39 }
 0x802   :  { %v4757_v33 = vpop.permute.xlu1 %4756  ;;  %v4771_v24 = vpop.permute.xlu0 %4770  ;;  %9042 = vmatmul.msk.bf16.gmra.mxu3 %vm4784_vm12, %v9964_v39 }
 0x803   :  { %v4775_v51 = vsel %vm111_vm0, %v4769_v54, %v4771_v24  ;;  %v14941_v40 = vpop.permute.xlu2 %5140  ;;  %4862 = vmatpush.bf16.msrb.mxu2 %v4771_v24  ;;  %v9971_v24 = vld [vmem:[%s17733_s3 + $0x68] sm:$0xff] }
 0x804   :  { %4813 = vmatpush.bf16.msrb.mxu1 %v4775_v51 }
 0x807   :  { %4863 = vmatpush.bf16.msrb.mxu2 %v4767_v49 }
 0x808   :  { %6095 = vrot.lane.b32.xlu0 %v14854_v45, %s10372_s27  ;;  %6338 = vrot.lane.b32.xlu1 %v14851_v37, %s10380_s1 }
 0x809   :  { %6093 = vrot.lane.b32.xlu2 %v14833_v26, %s10372_s27  ;;  %4814 = vmatpush.bf16.msrb.mxu1 %v4774_v5 }
 0x80a   :  { %v4763_v12 = vpop.permute.xlu0 %4762  ;;  %v5147_v56 = vpop.permute.xlu1 %5146 }
 0x80b   :  { %v5139_v1 = vpop.permute.xlu2 %5138  ;;  %4864 = vmatpush.bf16.msrb.mxu2 %v4763_v12  ;;  %v5153_v6 = vsel %vm655_vm3, %v5147_v56, %v5149_v4 }
 0x80c   :  { %v5151_v10 = vsel %vm655_vm3, %v5139_v1, %v14941_v40 }
 0x80f   :  { %4865 = vmatpush.bf16.msrb.mxu2 %v4759_v52 }
 0x810   :  { %6340 = vrot.lane.b32.xlu0 %v14824_v28, %s10380_s1  ;;  %6346 = vrot.lane.b32.xlu1 %v14837_v32, %s10380_s1 }
 0x811   :  { %6582 = vrot.lane.b32.xlu2 %v14806_v18, %s10381_s19  ;;  %v4772_v18 = vsel %vm111_vm0, %v4757_v33, %v4759_v52  ;;  %v9965_v52 = vld [vmem:[%s17733_s3 + $0x38] sm:$0xff] }
 0x812   :  { %v4761_v35 = vpop.permute.xlu0 %4760  ;;  %v5137_v14 = vpop.permute.xlu1 %5136  ;;  %8996 = vmatmul.msk.bf16.vlgmr.msrb.gmra.mxu2 %vm4784_vm12, %v9966_v27  ;;  %9051 = vmatmul.msk.bf16.gmra.mxu0 %vm4784_vm12, %v9965_v52 }
 0x813   :  { %5239 = vmatpush.bf16.msra.mxu2 %v5149_v4  ;;  %v5384_v61 = vpop.permute.xlu2 %5383  ;;  %v4773_v62 = vsel %vm111_vm0, %v4761_v35, %v4763_v12  ;;  %9043 = vmatmul.msk.bf16.gmra.mxu3 %vm4784_vm12, %v9965_v52 }
 0x814   :  { %4815 = vmatpush.bf16.msrb.mxu1 %v4773_v62 }
 0x818   :  { %6336 = vrot.lane.b32.xlu0 %v14856_v19, %s10380_s1  ;;  %6332 = vrot.lane.b32.xlu1 %v14833_v26, %s10380_s1 }
 0x819   :  { %6334 = vrot.lane.b32.xlu2 %v14854_v45, %s10380_s1  ;;  %4816 = vmatpush.bf16.msrb.mxu1 %v4772_v18 }
 0x81a   :  { %v5145_v50 = vpop.permute.xlu0 %5144  ;;  %v5382_v47 = vpop.permute.xlu1 %5381 }
 0x81b   :  { %v5380_v21 = vpop.permute.xlu2 %5379  ;;  %5240 = vmatpush.bf16.msra.mxu2 %v5145_v50  ;;  %v5392_v20 = vsel %vm5389_vm13, %v5382_v47, %v5384_v61 }
 0x81c   :  { %8988 = vmatmul.msk.bf16.vlgmr.msrb.gmra.mxu1 %vm4784_vm12, %v9966_v27  ;;  %v9972_v27 = vld [vmem:[%s17733_s3 + $0x70] sm:$0xff] }
 0x81d   :  { %5190 = vmatpush.bf16.msra.mxu1 %v5153_v6 }
 0x81e   :  { %v5037_v6 = vpop.f32.mrf.mxu0 }
 0x81f   :  { %5241 = vmatpush.bf16.msra.mxu2 %v14941_v40 }
 0x820   :  { %6344 = vrot.lane.b32.xlu0 %v14835_v7, %s10380_s1  ;;  %6574 = vrot.lane.b32.xlu1 %v14854_v45, %s10381_s19 }
 0x821   :  { %6586 = vrot.lane.b32.xlu2 %v14837_v32, %s10381_s19  ;;  %v9969_v32 = vld [vmem:[%s17733_s3 + $0x58] sm:$0xff] }
 0x822   :  { %v5143_v59 = vpop.permute.xlu0 %5142  ;;  %v5378_v57 = vpop.permute.xlu1 %5377  ;;  %8997 = vmatmul.msk.bf16.gmra.mxu2 %vm4784_vm12, %v9967_v22 }
 0x823   :  { %v5388_v23 = vpop.permute.xlu2 %5387  ;;  %5242 = vmatpush.bf16.msra.mxu2 %v5137_v14  ;;  %v5152_v48 = vsel %vm655_vm3, %v5143_v59, %v5145_v50  ;;  %v5391_v46 = vsel %vm5389_vm13, %v5378_v57, %v5380_v21  ;;  %v9973_v59 = vld [vmem:[%s17733_s3 + $0x78] sm:$0xff] }
 0x824   :  { %5479 = vmatpush.bf16.msrb.mxu0 %v5388_v23  ;;  %5191 = vmatpush.bf16.msra.mxu1 %v5152_v48 }
 0x826   :  { %v5039_v57 = vpop.f32.mrf.mxu0 }
 0x828   :  { %5480 = vmatpush.bf16.msrb.mxu0 %v5384_v61  ;;  %6578 = vrot.lane.b32.xlu0 %v14851_v37, %s10381_s19  ;;  %v9970_v37 = vld [vmem:[%s17733_s3 + $0x60] sm:$0xff] }
 0x829   :  { %6778 = vperm.xlu1 %10046, %v6756_v41   ;;  %6584 = vrot.lane.b32.xlu2 %v14835_v7, %s10381_s19  ;;  %v6757_v7 = vld [vmem:[%s17734_s4 + $0x10] sm:$0xff] }
 0x82a   :  { %5192 = vmatpush.bf16.msra.mxu1 %v5151_v10  ;;  %v5135_v58 = vpop.permute.xlu0 %5134  ;;  %v5386_v17 = vpop.permute.xlu1 %5385  ;;  %v9983_v10 = vld [vmem:[%s17733_s3 + $0xc8] sm:$0xff] }
 0x82b   :  { %v5393_v3 = vsel %vm5389_vm13, %v5386_v17, %v5388_v23  ;;  %v5150_v53 = vsel %vm655_vm3, %v5135_v58, %v5137_v14  ;;  %v5374_v30 = vpop.permute.xlu2 %5373  ;;  %vm7325_vm3 = vcmask 1044480  }
 0x82c   :  { %8989 = vmatmul.msk.bf16.gmra.mxu1 %vm4784_vm12, %v9967_v22  ;;  %5481 = vmatpush.bf16.msrb.mxu0 %v5380_v21  ;;  %v4988_v22 = vpop.f32.mrf.mxu3 }
 0x82d   :  { %5430 = vmatpush.bf16.msra.mxu3 %v5393_v3 }
 0x82e   :  { %5193 = vmatpush.bf16.msra.mxu1 %v5150_v53  ;;  %v5042_v58 = vpop.f32.mrf.mxu0 }
 0x830   :  { %6580 = vrot.lane.b32.xlu0 %v14824_v28, %s10381_s19  ;;  %v6755_v28 = vld [vmem:[%s17734_s4] sm:$0xff] }
 0x831   :  { %6576 = vrot.lane.b32.xlu2 %v14856_v19, %s10381_s19  ;;  %5431 = vmatpush.bf16.msra.mxu3 %v5392_v20 }
 0x832   :  { %v5624_v43 = vpop.permute.xlu0 %5623  ;;  %v5620_v2 = vpop.permute.xlu1 %5619  ;;  %8998 = vmatmul.msk.bf16.gmra.mxu2 %vm4784_vm12, %v9968_v15 }
 0x833   :  { %v5616_v25 = vpop.permute.xlu2 %5615 }
 0x834   :  { %v4990_v63 = vpop.f32.mrf.mxu3 }
 0x835   :  { %5432 = vmatpush.bf16.msra.mxu3 %v5391_v46 }
 0x836   :  { %v5044_v20 = vpop.f32.mrf.mxu0 }
 0x838   :  { %6572 = vrot.lane.b32.xlu0 %v14833_v26, %s10381_s19 }
 0x839   :  { %6773 = vperm.xlu2 %10044, %v6755_v28   ;;  %v9984_v28 = vld [vmem:[%s17733_s3 + $0xd0] sm:$0xff] }
 0x83a   :  { %v5376_v16 = vpop.permute.xlu0 %5375  ;;  %v5622_v44 = vpop.permute.xlu1 %5621 }
 0x83b   :  { %5482 = vmatpush.bf16.msrb.mxu0 %v5376_v16  ;;  %v5390_v29 = vsel %vm5389_vm13, %v5374_v30, %v5376_v16  ;;  %v5862_v38 = vpop.permute.xlu2 %5861  ;;  %v5632_v45 = vsel %vm5629_vm14, %v5622_v44, %v5624_v43 }
 0x83c   :  { %8990 = vmatmul.msk.bf16.gmra.mxu1 %vm4784_vm12, %v9968_v15  ;;  %5433 = vmatpush.bf16.msra.mxu3 %v5390_v29  ;;  %v4993_v3 = vpop.f32.mrf.mxu3  ;;  %v9974_v15 = vld [vmem:[%s17733_s3 + $0x80] sm:$0xff] }
 0x83e   :  { %9172 = vmatmul.msk.bf16.vlgmr.msrb.gmra.mxu0 %vm4784_vm12, %v9982_v11  ;;  %v5047_v44 = vpop.f32.mrf.mxu0 }
 0x83f   :  { %9164 = vmatmul.msk.bf16.vlgmr.msra.gmra.mxu3 %vm4784_vm12, %v9982_v11  ;;  %v9976_v11 = vld [vmem:[%s17733_s3 + $0x90] sm:$0xff] }
 0x840   :  { %6783 = vperm.xlu0 %10045, %v6757_v7  }
 0x842   :  { %v5628_v26 = vpop.permute.xlu0 %5627  ;;  %v5614_v34 = vpop.permute.xlu1 %5613  ;;  %8999 = vmatmul.msk.bf16.gmra.mxu2 %vm4784_vm12, %v9969_v32 }
 0x843   :  { %5719 = vmatpush.bf16.msrb.mxu2 %v5628_v26  ;;  %v5858_v19 = vpop.permute.xlu2 %5857  ;;  %v5630_v55 = vsel %vm5629_vm14, %v5614_v34, %v5616_v25 }
 0x844   :  { %v4995_v30 = vpop.f32.mrf.mxu3 }
 0x847   :  { %5720 = vmatpush.bf16.msrb.mxu2 %v5624_v43 }
 0x848   :  { %6788 = vperm.xlu0 %10045, %v6758_v9  }
 0x84a   :  { %v5626_v31 = vpop.permute.xlu0 %5625  ;;  %v15046_v0 = vpop.permute.xlu1 %6103 }
 0x84b   :  { %v5633_v60 = vsel %vm5629_vm14, %v5626_v31, %v5628_v26  ;;  %5721 = vmatpush.bf16.msrb.mxu2 %v5620_v2  ;;  %v5866_v33 = vpop.permute.xlu2 %5865 }
 0x84c   :  { %8991 = vmatmul.msk.bf16.gmra.mxu1 %vm4784_vm12, %v9969_v32  ;;  %v4998_v32 = vpop.f32.mrf.mxu3 }
 0x84d   :  { %5670 = vmatpush.bf16.msrb.mxu1 %v5633_v60  ;;  %v5049_v60 = vpop.f32.mrf.mxu0 }
 0x84e   :  { %9173 = vmatmul.msk.bf16.gmra.mxu0 %vm4784_vm12, %v9983_v10 }
 0x84f   :  { %5722 = vmatpush.bf16.msrb.mxu2 %v5616_v25  ;;  %9165 = vmatmul.msk.bf16.gmra.mxu3 %vm4784_vm12, %v9983_v10 }
 0x851   :  { %5671 = vmatpush.bf16.msrb.mxu1 %v5632_v45 }
 0x852   :  { %v5618_v42 = vpop.permute.xlu0 %5617  ;;  %v5856_v54 = vpop.permute.xlu1 %5855  ;;  %9000 = vmatmul.msk.bf16.gmra.mxu2 %vm4784_vm12, %v9970_v37 }
 0x853   :  { %v5631_v49 = vsel %vm5629_vm14, %v5618_v42, %v5620_v2  ;;  %v15074_v5 = vpop.permute.xlu2 %6099 }
 0x854   :  { %v5000_v42 = vpop.f32.mrf.mxu3 }
 0x855   :  { %5672 = vmatpush.bf16.msrb.mxu1 %v5631_v49 }
 0x859   :  { %5673 = vmatpush.bf16.msrb.mxu1 %v5630_v55  ;;  %v5052_v55 = vpop.f32.mrf.mxu0 }
 0x85a   :  { %v5864_v13 = vpop.permute.xlu0 %5863  ;;  %v15062_v4 = vpop.permute.xlu1 %6107 }
 0x85b   :  { %v15085_v35 = vpop.permute.xlu2 %6101  ;;  %v5872_v14 = vsel %vm5869_vm15, %v5862_v38, %v5864_v13  ;;  %v9975_v38 = vld [vmem:[%s17733_s3 + $0x88] sm:$0xff] }
 0x85c   :  { %8992 = vmatmul.msk.bf16.gmra.mxu1 %vm4784_vm12, %v9970_v37  ;;  %v6111_v37 = vsel %vm1681_vm6, %v15085_v35, %v15046_v0 }
 0x85e   :  { %9174 = vmatmul.msk.bf16.gmra.mxu0 %vm4784_vm12, %v9984_v28 }
 0x85f   :  { %9166 = vmatmul.msk.bf16.gmra.mxu3 %vm4784_vm12, %v9984_v28 }
 0x862   :  { %v5860_v51 = vpop.permute.xlu0 %5859  ;;  %v15068_v40 = vpop.permute.xlu1 %6105  ;;  %9001 = vmatmul.msk.bf16.gmra.mxu2 %vm4784_vm12, %v9971_v24 }
 0x863   :  { %v5871_v36 = vsel %vm5869_vm15, %v5858_v19, %v5860_v51  ;;  %v15091_v50 = vpop.permute.xlu2 %6093  ;;  %v6112_v26 = vsel %vm1681_vm6, %v15068_v40, %v15062_v4 }
 0x86a   :  { %v5868_v12 = vpop.permute.xlu0 %5867  ;;  %v15078_v56 = vpop.permute.xlu1 %6097 }
 0x86b   :  { %v5873_v1 = vsel %vm5869_vm15, %v5866_v33, %v5868_v12  ;;  %5959 = vmatpush.bf16.msra.mxu0 %v5868_v12  ;;  %v15100_v41 = vpop.permute.xlu2 %6582 }
 0x86c   :  { %8993 = vmatmul.msk.bf16.gmra.mxu1 %vm4784_vm12, %v9971_v24  ;;  %5910 = vmatpush.bf16.msrb.mxu3 %v5873_v1  ;;  %v5003_v24 = vpop.f32.mrf.mxu3 }
 0x86f   :  { %5960 = vmatpush.bf16.msra.mxu0 %v5864_v13 }
 0x870   :  { %5911 = vmatpush.bf16.msrb.mxu3 %v5872_v14  ;;  %v9986_v14 = vld [vmem:[%s17733_s3 + $0xe0] sm:$0xff] }
 0x872   :  { %v5854_v61 = vpop.permute.xlu0 %5853  ;;  %v6343_v62 = vpop.permute.xlu1 %6342  ;;  %9002 = vmatmul.msk.bf16.gmra.mxu2 %vm4784_vm12, %v9972_v27 }
 0x873   :  { %5961 = vmatpush.bf16.msra.mxu0 %v5860_v51  ;;  %v5870_v18 = vsel %vm5869_vm15, %v5854_v61, %v5856_v54  ;;  %v6335_v53 = vpop.permute.xlu2 %6334 }
 0x874   :  { %5912 = vmatpush.bf16.msrb.mxu3 %v5871_v36  ;;  %v5005_v1 = vpop.f32.mrf.mxu3 }
 0x877   :  { %5962 = vmatpush.bf16.msra.mxu0 %v5856_v54  ;;  %v6110_v54 = vsel %vm1681_vm6, %v15078_v56, %v15074_v5 }
 0x878   :  { %5913 = vmatpush.bf16.msrb.mxu3 %v5870_v18 }
 0x87a   :  { %v15093_v47 = vpop.permute.xlu0 %6095  ;;  %v6339_v21 = vpop.permute.xlu1 %6338 }
 0x87b   :  { %v6109_v13 = vsel %vm1681_vm6, %v15091_v50, %v15093_v47 }
 0x87c   :  { %8994 = vmatmul.msk.bf16.gmra.mxu1 %vm4784_vm12, %v9972_v27  ;;  %v5008_v18 = vpop.f32.mrf.mxu3 }
 0x882   :  { %v6341_v23 = vpop.permute.xlu0 %6340  ;;  %v6347_v48 = vpop.permute.xlu1 %6346  ;;  %9003 = vmatmul.msk.bf16.gmra.mxu2 %vm4784_vm12, %v9973_v59 }
 0x883   :  { %6438 = vmatpush.bf16.msrb.mxu0 %v6347_v48  ;;  %v6351_v16 = vsel %vm6348_vm1, %v6341_v23, %v6343_v62 }
 0x887   :  { %6439 = vmatpush.bf16.msrb.mxu0 %v6343_v62 }
 0x88a   :  { %v6337_v17 = vpop.permute.xlu0 %6336  ;;  %v6333_v34 = vpop.permute.xlu1 %6332 }
 0x88b   :  { %6440 = vmatpush.bf16.msrb.mxu0 %v6339_v21  ;;  %v6350_v7 = vsel %vm6348_vm1, %v6337_v17, %v6339_v21  ;;  %v6349_v31 = vsel %vm6348_vm1, %v6333_v34, %v6335_v53 }
 0x88c   :  { %8995 = vmatmul.msk.bf16.gmra.mxu1 %vm4784_vm12, %v9973_v59 }
 0x88f   :  { %6441 = vmatpush.bf16.msrb.mxu0 %v6335_v53 }
 0x892   :  { %v6345_v43 = vpop.permute.xlu0 %6344  ;;  %9108 = vmatmul.msk.bf16.vlgmr.msra.gmra.mxu2 %vm4784_vm12, %v9974_v15 }
 0x893   :  { %v6352_v2 = vsel %vm6348_vm1, %v6345_v43, %v6347_v48  ;;  %6198 = vmatpush.bf16.msra.mxu2 %v15062_v4 }
 0x894   :  { %6389 = vmatpush.bf16.msra.mxu3 %v6352_v2 }
 0x895   :  { %v4867_v8 = vpop.f32.mrf.mxu2 }
 0x896   :  { %v15114_v46 = vadd.f32 %v5037_v6, %v4867_v8 }
 0x897   :  { %6199 = vmatpush.bf16.msra.mxu2 %v15046_v0  ;;  %v9985_v0 = vld [vmem:[%s17733_s3 + $0xd8] sm:$0xff] }
 0x898   :  { %6390 = vmatpush.bf16.msra.mxu3 %v6351_v16  ;;  %9175 = vmatmul.msk.bf16.gmra.mxu0 %vm4784_vm12, %v9985_v0 }
 0x899   :  { %v4818_v29 = vpop.f32.mrf.mxu1  ;;  %9167 = vmatmul.msk.bf16.gmra.mxu3 %vm4784_vm12, %v9985_v0 }
 0x89a   :  { %v15123_v25 = vadd.f32 %v4988_v22, %v4818_v29 }
 0x89b   :  { %6200 = vmatpush.bf16.msra.mxu2 %v15074_v5  ;;  %v5054_v5 = vpop.f32.mrf.mxu0 }
 0x89c   :  { %9100 = vmatmul.msk.bf16.vlgmr.msra.gmra.mxu1 %vm4784_vm12, %v9974_v15  ;;  %6391 = vmatpush.bf16.msra.mxu3 %v6350_v7 }
 0x89d   :  { %6149 = vmatpush.bf16.msra.mxu1 %v6112_v26  ;;  %v4869_v39 = vpop.f32.mrf.mxu2 }
 0x89e   :  { %v15131_v9 = vadd.f32 %v5039_v57, %v4869_v39  ;;  %v5010_v57 = vpop.f32.mrf.mxu3 }
 0x89f   :  { %6201 = vmatpush.bf16.msra.mxu2 %v15093_v47  ;;  %v9977_v47 = vld [vmem:[%s17733_s3 + $0x98] sm:$0xff] }
 0x8a0   :  { %6392 = vmatpush.bf16.msra.mxu3 %v6349_v31 }
 0x8a1   :  { %6150 = vmatpush.bf16.msra.mxu1 %v6111_v37  ;;  %v4820_v45 = vpop.f32.mrf.mxu1 }
 0x8a2   :  { %v15141_v19 = vadd.f32 %v4990_v63, %v4820_v45  ;;  %9109 = vmatmul.msk.bf16.gmra.mxu2 %vm4784_vm12, %v9975_v38  ;;  %v9987_v63 = vld [vmem:[%s17733_s3 + $0xe8] sm:$0xff] }
 0x8a3   :  { %v5057_v61 = vpop.f32.mrf.mxu0 }
 0x8a5   :  { %6151 = vmatpush.bf16.msra.mxu1 %v6110_v54  ;;  %v4872_v49 = vpop.f32.mrf.mxu2 }
 0x8a6   :  { %v15147_v52 = vadd.f32 %v5042_v58, %v4872_v49  ;;  %v9989_v49 = vld [vmem:[%s17733_s3 + $0xf8] sm:$0xff] }
 0x8a8   :  { %9176 = vmatmul.msk.bf16.gmra.mxu0 %vm4784_vm12, %v9986_v14 }
 0x8a9   :  { %6152 = vmatpush.bf16.msra.mxu1 %v6109_v13  ;;  %v4823_v4 = vpop.f32.mrf.mxu1  ;;  %9168 = vmatmul.msk.bf16.gmra.mxu3 %vm4784_vm12, %v9986_v14 }
 0x8aa   :  { %v15157_v33 = vadd.f32 %v4993_v3, %v4823_v4  ;;  %v5013_v3 = vpop.f32.mrf.mxu3 }
 0x8ab   :  { %v5059_v21 = vpop.f32.mrf.mxu0 }
 0x8ac   :  { %9101 = vmatmul.msk.bf16.gmra.mxu1 %vm4784_vm12, %v9975_v38  ;;  %v9979_v38 = vld [vmem:[%s17733_s3 + $0xa8] sm:$0xff] }
 0x8ad   :  { %v4874_v51 = vpop.f32.mrf.mxu2 }
 0x8ae   :  { %v15160_v40 = vadd.f32 %v5044_v20, %v4874_v51  ;;  %v9978_v20 = vld [vmem:[%s17733_s3 + $0xa0] sm:$0xff] }
 0x8b1   :  { %v4825_v12 = vpop.f32.mrf.mxu1 }
 0x8b2   :  { %v15165_v56 = vadd.f32 %v4995_v30, %v4825_v12  ;;  %9110 = vmatmul.msk.bf16.gmra.mxu2 %vm4784_vm12, %v9976_v11  ;;  %v5015_v8 = vpop.f32.mrf.mxu3 }
 0x8b3   :  { %v5062_v10 = vpop.f32.mrf.mxu0 }
 0x8b5   :  { %v4877_v27 = vpop.f32.mrf.mxu2 }
 0x8b6   :  { %v15168_v35 = vadd.f32 %v5047_v44, %v4877_v27  ;;  %v9988_v44 = vld [vmem:[%s17733_s3 + $0xf0] sm:$0xff] }
 0x8b8   :  { %9177 = vmatmul.msk.bf16.gmra.mxu0 %vm4784_vm12, %v9987_v63 }
 0x8b9   :  { %v4828_v62 = vpop.f32.mrf.mxu1  ;;  %9169 = vmatmul.msk.bf16.gmra.mxu3 %vm4784_vm12, %v9987_v63 }
 0x8ba   :  { %v15175_v36 = vadd.f32 %v4998_v32, %v4828_v62  ;;  %v5018_v26 = vpop.f32.mrf.mxu3 }
 0x8bb   :  { %v5064_v43 = vpop.f32.mrf.mxu0 }
 0x8bc   :  { %9102 = vmatmul.msk.bf16.gmra.mxu1 %vm4784_vm12, %v9976_v11  ;;  %v9980_v11 = vld [vmem:[%s17733_s3 + $0xb0] sm:$0xff] }
 0x8bd   :  { %v4879_v6 = vpop.f32.mrf.mxu2 }
 0x8be   :  { %v15178_v50 = vadd.f32 %v5049_v60, %v4879_v6 }
 0x8c1   :  { %v4830_v22 = vpop.f32.mrf.mxu1 }
 0x8c2   :  { %v15183_v59 = vadd.f32 %v5000_v42, %v4830_v22  ;;  %9111 = vmatmul.msk.bf16.gmra.mxu2 %vm4784_vm12, %v9977_v47  ;;  %v5020_v45 = vpop.f32.mrf.mxu3 }
 0x8c3   :  { %v5067_v29 = vpop.f32.mrf.mxu0 }
 0x8c5   :  { %v4882_v23 = vpop.f32.mrf.mxu2 }
 0x8c6   :  { %v15186_v48 = vadd.f32 %v5052_v55, %v4882_v23  ;;  %v9981_v23 = vld [vmem:[%s17733_s3 + $0xb8] sm:$0xff] }
 0x8c8   :  { %9178 = vmatmul.msk.bf16.gmra.mxu0 %vm4784_vm12, %v9988_v44 }
 0x8c9   :  { %v4833_v58 = vpop.f32.mrf.mxu1  ;;  %9170 = vmatmul.msk.bf16.gmra.mxu3 %vm4784_vm12, %v9988_v44 }
 0x8ca   :  { %v15193_v17 = vadd.f32 %v5003_v24, %v4833_v58  ;;  %v5023_v4 = vpop.f32.mrf.mxu3 }
 0x8cb   :  { %v5069_v31 = vpop.f32.mrf.mxu0 }
 0x8cc   :  { %9103 = vmatmul.msk.bf16.gmra.mxu1 %vm4784_vm12, %v9977_v47 }
 0x8cd   :  { %v4884_v53 = vpop.f32.mrf.mxu2 }
 0x8ce   :  { %v15196_v15 = vadd.f32 %v5054_v5, %v4884_v53 }
 0x8d1   :  { %v4835_v2 = vpop.f32.mrf.mxu1 }
 0x8d2   :  { %v15201_v30 = vadd.f32 %v5005_v1, %v4835_v2  ;;  %9112 = vmatmul.msk.bf16.gmra.mxu2 %vm4784_vm12, %v9978_v20  ;;  %v5025_v27 = vpop.f32.mrf.mxu3  ;;  %v9999_v2 = vld [vmem:[%s17733_s3 + $0x148] sm:$0xff] }
 0x8d3   :  { %v5072_v0 = vpop.f32.mrf.mxu0 }
 0x8d5   :  { %v4887_v28 = vpop.f32.mrf.mxu2 }
 0x8d6   :  { %v15204_v16 = vadd.f32 %v5057_v61, %v4887_v28 }
 0x8d8   :  { %9179 = vmatmul.msk.bf16.gmra.mxu0 %vm4784_vm12, %v9989_v49 }
 0x8d9   :  { %v4838_v7 = vpop.f32.mrf.mxu1  ;;  %9171 = vmatmul.msk.bf16.gmra.mxu3 %vm4784_vm12, %v9989_v49 }
 0x8da   :  { %v15211_v32 = vadd.f32 %v5008_v18, %v4838_v7  ;;  %v9998_v18 = vld [vmem:[%s17733_s3 + $0x140] sm:$0xff] }
 0x8db   :  { %v5074_v5 = vpop.f32.mrf.mxu0 }
 0x8dc   :  { %9104 = vmatmul.msk.bf16.gmra.mxu1 %vm4784_vm12, %v9978_v20 }
 0x8dd   :  { %v4889_v34 = vpop.f32.mrf.mxu2 }
 0x8de   :  { %v15214_v39 = vadd.f32 %v5059_v21, %v4889_v34  ;;  %v5435_v21 = vpop.f32.mrf.mxu3  ;;  %v6587_v34 = vpop.permute.xlu2 %6586 }
 0x8e1   :  { %v4840_v60 = vpop.f32.mrf.mxu1 }
 0x8e2   :  { %v15219_v37 = vadd.f32 %v5010_v57, %v4840_v60  ;;  %9113 = vmatmul.msk.bf16.gmra.mxu2 %vm4784_vm12, %v9979_v38 }
 0x8e3   :  { %v5484_v62 = vpop.f32.mrf.mxu0 }
 0x8e5   :  { %v4892_v42 = vpop.f32.mrf.mxu2 }
 0x8e6   :  { %v15222_v54 = vadd.f32 %v5062_v10, %v4892_v42 }
 0x8e8   :  { %9300 = vmatmul.msk.bf16.vlgmr.msra.gmra.mxu0 %vm4784_vm12, %v9998_v18 }
 0x8e9   :  { %v4843_v55 = vpop.f32.mrf.mxu1  ;;  %9292 = vmatmul.msk.bf16.vlgmr.msrb.gmra.mxu3 %vm4784_vm12, %v9998_v18 }
 0x8ea   :  { %v15229_v13 = vadd.f32 %v5013_v3, %v4843_v55  ;;  %v5437_v3 = vpop.f32.mrf.mxu3 }
 0x8eb   :  { %v5486_v63 = vpop.f32.mrf.mxu0 }
 0x8ec   :  { %9105 = vmatmul.msk.bf16.gmra.mxu1 %vm4784_vm12, %v9979_v38 }
 0x8ed   :  { %v4894_v24 = vpop.f32.mrf.mxu2 }
 0x8ee   :  { %v15232_v51 = vadd.f32 %v5064_v43, %v4894_v24  ;;  %v10000_v24 = vld [vmem:[%s17733_s3 + $0x150] sm:$0xff] }
 0x8f1   :  { %v4845_v12 = vpop.f32.mrf.mxu1 }
 0x8f2   :  { %v15237_v1 = vadd.f32 %v5015_v8, %v4845_v12  ;;  %9114 = vmatmul.msk.bf16.gmra.mxu2 %vm4784_vm12, %v9980_v11  ;;  %v5440_v44 = vpop.f32.mrf.mxu3 }
 0x8f3   :  { %v5489_v43 = vpop.f32.mrf.mxu0 }
 0x8f5   :  { %v4897_v14 = vpop.f32.mrf.mxu2 }
 0x8f6   :  { %v15240_v61 = vadd.f32 %v5067_v29, %v4897_v14 }
 0x8f8   :  { %9301 = vmatmul.msk.bf16.gmra.mxu0 %vm4784_vm12, %v9999_v2 }
 0x8f9   :  { %v4848_v6 = vpop.f32.mrf.mxu1  ;;  %9293 = vmatmul.msk.bf16.gmra.mxu3 %vm4784_vm12, %v9999_v2 }
 0x8fa   :  { %v15245_v47 = vadd.f32 %v5018_v26, %v4848_v6  ;;  %v9990_v26 = vld [vmem:[%s17733_s3 + $0x100] sm:$0xff]  ;;  %v5442_v42 = vpop.f32.mrf.mxu3  ;;  %v6575_v6 = vpop.permute.xlu1 %6574 }
 0x8fb   :  { %v5491_v38 = vpop.f32.mrf.mxu0 }
 0x8fc   :  { %9106 = vmatmul.msk.bf16.gmra.mxu1 %vm4784_vm12, %v9980_v11  ;;  %v6585_v11 = vpop.permute.xlu2 %6584 }
 0x8fd   :  { %v4899_v22 = vpop.f32.mrf.mxu2 }
 0x8fe   :  { %v15250_v57 = vadd.f32 %v5069_v31, %v4899_v22  ;;  %v6579_v31 = vpop.permute.xlu0 %6578 }
 0x901   :  { %v4850_v10 = vpop.f32.mrf.mxu1 }
 0x902   :  { %v15255_v58 = vadd.f32 %v5020_v45, %v4850_v10  ;;  %9115 = vmatmul.msk.bf16.gmra.mxu2 %vm4784_vm12, %v9981_v23 }
 0x903   :  { %v5494_v55 = vpop.f32.mrf.mxu0 }
 0x905   :  { %v4902_v53 = vpop.f32.mrf.mxu2 }
 0x906   :  { %v15258_v20 = vadd.f32 %v5072_v0, %v4902_v53 }
 0x908   :  { %9302 = vmatmul.msk.bf16.gmra.mxu0 %vm4784_vm12, %v10000_v24 }
 0x909   :  { %v4853_v8 = vpop.f32.mrf.mxu1  ;;  %9294 = vmatmul.msk.bf16.gmra.mxu3 %vm4784_vm12, %v10000_v24 }
 0x90a   :  { %v15263_v28 = vadd.f32 %v5023_v4, %v4853_v8  ;;  %v6577_v8 = vpop.permute.xlu2 %6576 }
 0x90c   :  { %9107 = vmatmul.msk.bf16.gmra.mxu1 %vm4784_vm12, %v9981_v23  ;;  %v5496_v23 = vpop.f32.mrf.mxu0 }
 0x90d   :  { %v4904_v29 = vpop.f32.mrf.mxu2 }
 0x90e   :  { %v15268_v7 = vadd.f32 %v5074_v5, %v4904_v29 }
 0x911   :  { %v4855_v60 = vpop.f32.mrf.mxu1 }
 0x912   :  { %v15273_v45 = vadd.f32 %v5025_v27, %v4855_v60  ;;  %9236 = vmatmul.msk.bf16.vlgmr.msrb.gmra.mxu2 %vm4784_vm12, %v9990_v26  ;;  %v6581_v27 = vpop.permute.xlu0 %6580 }
 0x913   :  { %6678 = vmatpush.bf16.msrb.mxu2 %v6587_v34 }
 0x915   :  { %v5244_v49 = vpop.f32.mrf.mxu2 }
 0x916   :  { %v5285_v0 = vadd.f32 %v5244_v49, %v15114_v46  ;;  %v6592_v46 = vsel %vm6588_vm2, %v6585_v11, %v6587_v34  ;;  %v5499_v49 = vpop.f32.mrf.mxu0 }
 0x917   :  { %6679 = vmatpush.bf16.msrb.mxu2 %v15100_v41 }
 0x918   :  { %v15278_v4 = vadd.f32 %v5484_v62, %v5285_v0  ;;  %v5445_v62 = vpop.f32.mrf.mxu3 }
 0x919   :  { %v5195_v5 = vpop.f32.mrf.mxu1 }
 0x91a   :  { %v5284_v12 = vadd.f32 %v5195_v5, %v15123_v25  ;;  %v9991_v25 = vld [vmem:[%s17733_s3 + $0x108] sm:$0xff]  ;;  %v6573_v34 = vpop.permute.xlu0 %6572  ;;  %v9992_v5 = vld [vmem:[%s17733_s3 + $0x110] sm:$0xff] }
 0x91b   :  { %6680 = vmatpush.bf16.msrb.mxu2 %v6579_v31 }
 0x91c   :  { %v15287_v14 = vadd.f32 %v5435_v21, %v5284_v12  ;;  %9228 = vmatmul.msk.bf16.vlgmr.msrb.gmra.mxu1 %vm4784_vm12, %v9990_v26  ;;  %v6591_v21 = vsel %vm6588_vm2, %v6581_v27, %v15100_v41  ;;  %v6589_v41 = vsel %vm6588_vm2, %v6573_v34, %v6575_v6 }
 0x91d   :  { %6629 = vmatpush.bf16.msrb.mxu1 %v6592_v46  ;;  %v5246_v18 = vpop.f32.mrf.mxu2 }
 0x91e   :  { %v5287_v22 = vadd.f32 %v5246_v18, %v15131_v9  ;;  %v6590_v9 = vsel %vm6588_vm2, %v6577_v8, %v6579_v31  ;;  %v5501_v12 = vpop.f32.mrf.mxu0 }
 0x91f   :  { %6681 = vmatpush.bf16.msrb.mxu2 %v6575_v6 }
 0x920   :  { %v15294_v10 = vadd.f32 %v5486_v63, %v5287_v22  ;;  %v5447_v26 = vpop.f32.mrf.mxu3 }
 0x921   :  { %6630 = vmatpush.bf16.msrb.mxu1 %v6591_v21  ;;  %v5197_v53 = vpop.f32.mrf.mxu1  ;;  %v10002_v21 = vld [vmem:[%s17733_s3 + $0x160] sm:$0xff] }
 0x922   :  { %v5286_v2 = vadd.f32 %v5197_v53, %v15141_v19  ;;  %9237 = vmatmul.msk.bf16.gmra.mxu2 %vm4784_vm12, %v9991_v25  ;;  %v10001_v19 = vld [vmem:[%s17733_s3 + $0x158] sm:$0xff] }
 0x923   :  { %9295 = vmatmul.msk.bf16.gmra.mxu3 %vm4784_vm12, %v10001_v19  ;;  %9303 = vmatmul.msk.bf16.gmra.mxu0 %vm4784_vm12, %v10001_v19 }
 0x924   :  { %v15300_v29 = vadd.f32 %v5437_v3, %v5286_v2  ;;  %v9993_v2 = vld [vmem:[%s17733_s3 + $0x118] sm:$0xff] }
 0x925   :  { %6631 = vmatpush.bf16.msrb.mxu1 %v6590_v9  ;;  %v5249_v60 = vpop.f32.mrf.mxu2 }
 0x926   :  { %v5289_v63 = vadd.f32 %v5249_v60, %v15147_v52 }
 0x928   :  { %v15304_v0 = vadd.f32 %v5489_v43, %v5289_v63  ;;  %v5450_v52 = vpop.f32.mrf.mxu3 }
 0x929   :  { %6632 = vmatpush.bf16.msrb.mxu1 %v6589_v41  ;;  %v5200_v3 = vpop.f32.mrf.mxu1 }
 0x92a   :  { %v5288_v24 = vadd.f32 %v5200_v3, %v15157_v33  ;;  %v10003_v3 = vld [vmem:[%s17733_s3 + $0x168] sm:$0xff] }
 0x92c   :  { %v15313_v31 = vadd.f32 %v5440_v44, %v5288_v24  ;;  %9229 = vmatmul.msk.bf16.gmra.mxu1 %vm4784_vm12, %v9991_v25  ;;  %v5504_v25 = vpop.f32.mrf.mxu0 }
 0x92d   :  { %v5251_v43 = vpop.f32.mrf.mxu2 }
 0x92e   :  { %v5291_v11 = vadd.f32 %v5251_v43, %v15160_v40 }
 0x930   :  { %v15320_v27 = vadd.f32 %v5491_v38, %v5291_v11  ;;  %v5452_v18 = vpop.f32.mrf.mxu3 }
 0x931   :  { %v5202_v33 = vpop.f32.mrf.mxu1 }
 0x932   :  { %v5290_v46 = vadd.f32 %v5202_v33, %v15165_v56  ;;  %9238 = vmatmul.msk.bf16.gmra.mxu2 %vm4784_vm12, %v9992_v5 }
 0x933   :  { %9296 = vmatmul.msk.bf16.gmra.mxu3 %vm4784_vm12, %v10002_v21  ;;  %9304 = vmatmul.msk.bf16.gmra.mxu0 %vm4784_vm12, %v10002_v21  ;;  %v10004_v21 = vld [vmem:[%s17733_s3 + $0x170] sm:$0xff] }
 0x934   :  { %v15324_v44 = vadd.f32 %v5442_v42, %v5290_v46  ;;  %v5506_v8 = vpop.f32.mrf.mxu0 }
 0x935   :  { %v5254_v6 = vpop.f32.mrf.mxu2 }
 0x936   :  { %v5293_v22 = vadd.f32 %v5254_v6, %v15168_v35 }
 0x938   :  { %v15327_v40 = vadd.f32 %v5494_v55, %v5293_v22  ;;  %v5455_v42 = vpop.f32.mrf.mxu3 }
 0x939   :  { %v5205_v38 = vpop.f32.mrf.mxu1 }
 0x93a   :  { %v5292_v53 = vadd.f32 %v5205_v38, %v15175_v36 }
 0x93c   :  { %v15335_v56 = vadd.f32 %v5445_v62, %v5292_v53  ;;  %9230 = vmatmul.msk.bf16.gmra.mxu1 %vm4784_vm12, %v9992_v5  ;;  %v5509_v19 = vpop.f32.mrf.mxu0 }
 0x93d   :  { %v5256_v35 = vpop.f32.mrf.mxu2 }
 0x93e   :  { %v5295_v55 = vadd.f32 %v5256_v35, %v15178_v50 }
 0x940   :  { %v15342_v9 = vadd.f32 %v5496_v23, %v5295_v55  ;;  %v5457_v63 = vpop.f32.mrf.mxu3 }
 0x941   :  { %v5207_v36 = vpop.f32.mrf.mxu1 }
 0x942   :  { %v5294_v34 = vadd.f32 %v5207_v36, %v15183_v59  ;;  %9239 = vmatmul.msk.bf16.gmra.mxu2 %vm4784_vm12, %v9993_v2 }
 0x943   :  { %9297 = vmatmul.msk.bf16.gmra.mxu3 %vm4784_vm12, %v10003_v3  ;;  %9305 = vmatmul.msk.bf16.gmra.mxu0 %vm4784_vm12, %v10003_v3  ;;  %v10005_v3 = vld [vmem:[%s17733_s3 + $0x178] sm:$0xff] }
 0x944   :  { %v15346_v62 = vadd.f32 %v5447_v26, %v5294_v34  ;;  %v5511_v11 = vpop.f32.mrf.mxu0 }
 0x945   :  { %v5259_v60 = vpop.f32.mrf.mxu2 }
 0x946   :  { %v5297_v41 = vadd.f32 %v5259_v60, %v15186_v48 }
 0x948   :  { %v15349_v50 = vadd.f32 %v5499_v49, %v5297_v41  ;;  %v9994_v49 = vld [vmem:[%s17733_s3 + $0x120] sm:$0xff]  ;;  %v5460_v43 = vpop.f32.mrf.mxu3 }
 0x949   :  { %v5210_v23 = vpop.f32.mrf.mxu1 }
 0x94a   :  { %v5296_v24 = vadd.f32 %v5210_v23, %v15193_v17 }
 0x94c   :  { %v15357_v59 = vadd.f32 %v5450_v52, %v5296_v24  ;;  %9231 = vmatmul.msk.bf16.gmra.mxu1 %vm4784_vm12, %v9993_v2  ;;  %v5514_v22 = vpop.f32.mrf.mxu0  ;;  %v9996_v24 = vld [vmem:[%s17733_s3 + $0x130] sm:$0xff] }
 0x94d   :  { %v5261_v26 = vpop.f32.mrf.mxu2 }
 0x94e   :  { %v5299_v48 = vadd.f32 %v5261_v26, %v15196_v15 }
 0x950   :  { %v15364_v5 = vadd.f32 %v5501_v12, %v5299_v48  ;;  %v5462_v12 = vpop.f32.mrf.mxu3 }
 0x951   :  { %v5212_v17 = vpop.f32.mrf.mxu1 }
 0x952   :  { %v5298_v33 = vadd.f32 %v5212_v17, %v15201_v30  ;;  %9240 = vmatmul.msk.bf16.gmra.mxu2 %vm4784_vm12, %v9994_v49 }
 0x953   :  { %9298 = vmatmul.msk.bf16.gmra.mxu3 %vm4784_vm12, %v10004_v21  ;;  %9306 = vmatmul.msk.bf16.gmra.mxu0 %vm4784_vm12, %v10004_v21  ;;  %v10014_v21 = vld [vmem:[%s17733_s3 + $0x1c0] sm:$0xff] }
 0x954   :  { %v15368_v52 = vadd.f32 %v5452_v18, %v5298_v33  ;;  %v5516_v35 = vpop.f32.mrf.mxu0 }
 0x955   :  { %v5264_v46 = vpop.f32.mrf.mxu2 }
 0x956   :  { %v5301_v6 = vadd.f32 %v5264_v46, %v15204_v16 }
 0x958   :  { %v15371_v15 = vadd.f32 %v5504_v25, %v5301_v6  ;;  %v9995_v25 = vld [vmem:[%s17733_s3 + $0x128] sm:$0xff]  ;;  %v5465_v36 = vpop.f32.mrf.mxu3 }
 0x959   :  { %v5215_v38 = vpop.f32.mrf.mxu1 }
 0x95a   :  { %v5300_v53 = vadd.f32 %v5215_v38, %v15211_v32 }
 0x95c   :  { %v15379_v30 = vadd.f32 %v5455_v42, %v5300_v53  ;;  %9232 = vmatmul.msk.bf16.gmra.mxu1 %vm4784_vm12, %v9994_v49  ;;  %v5519_v41 = vpop.f32.mrf.mxu0 }
 0x95d   :  { %v5266_v16 = vpop.f32.mrf.mxu2 }
 0x95e   :  { %v5303_v18 = vadd.f32 %v5266_v16, %v15214_v39 }
 0x960   :  { %v15386_v55 = vadd.f32 %v5506_v8, %v5303_v18 }
 0x961   :  { %v5217_v2 = vpop.f32.mrf.mxu1 }
 0x962   :  { %v5302_v32 = vadd.f32 %v5217_v2, %v15219_v37  ;;  %9241 = vmatmul.msk.bf16.gmra.mxu2 %vm4784_vm12, %v9995_v25 }
 0x963   :  { %9299 = vmatmul.msk.bf16.gmra.mxu3 %vm4784_vm12, %v10005_v3  ;;  %9307 = vmatmul.msk.bf16.gmra.mxu0 %vm4784_vm12, %v10005_v3 }
 0x964   :  { %v15390_v42 = vadd.f32 %v5457_v63, %v5302_v32  ;;  %v5521_v26 = vpop.f32.mrf.mxu0 }
 0x965   :  { %v5269_v34 = vpop.f32.mrf.mxu2 }
 0x966   :  { %v5305_v60 = vadd.f32 %v5269_v34, %v15222_v54  ;;  %v5467_v54 = vpop.f32.mrf.mxu3 }
 0x968   :  { %v15393_v39 = vadd.f32 %v5509_v19, %v5305_v60  ;;  %v10015_v60 = vld [vmem:[%s17733_s3 + $0x1c8] sm:$0xff] }
 0x969   :  { %v5220_v8 = vpop.f32.mrf.mxu1 }
 0x96a   :  { %v5304_v23 = vadd.f32 %v5220_v8, %v15229_v13 }
 0x96c   :  { %v15401_v37 = vadd.f32 %v5460_v43, %v5304_v23  ;;  %9233 = vmatmul.msk.bf16.gmra.mxu1 %vm4784_vm12, %v9995_v25  ;;  %v5964_v6 = vpop.f32.mrf.mxu0  ;;  %v10006_v23 = vld [vmem:[%s17733_s3 + $0x180] sm:$0xff] }
 0x96d   :  { %v5271_v63 = vpop.f32.mrf.mxu2 }
 0x96e   :  { %v5307_v19 = vadd.f32 %v5271_v63, %v15232_v51  ;;  %v5470_v46 = vpop.f32.mrf.mxu3 }
 0x970   :  { %v15408_v48 = vadd.f32 %v5511_v11, %v5307_v19 }
 0x971   :  { %v5222_v13 = vpop.f32.mrf.mxu1 }
 0x972   :  { %v5306_v49 = vadd.f32 %v5222_v13, %v15237_v1  ;;  %9242 = vmatmul.msk.bf16.gmra.mxu2 %vm4784_vm12, %v9996_v24 }
 0x973   :  { %9420 = vmatmul.msk.bf16.vlgmr.msra.gmra.mxu3 %vm4784_vm12, %v10014_v21  ;;  %9428 = vmatmul.msk.bf16.vlgmr.msrb.gmra.mxu0 %vm4784_vm12, %v10014_v21 }
 0x974   :  { %v15412_v43 = vadd.f32 %v5462_v12, %v5306_v49  ;;  %v5966_v53 = vpop.f32.mrf.mxu0 }
 0x975   :  { %v5274_v17 = vpop.f32.mrf.mxu2 }
 0x976   :  { %v5309_v33 = vadd.f32 %v5274_v17, %v15240_v61 }
 0x978   :  { %v15415_v51 = vadd.f32 %v5514_v22, %v5309_v33  ;;  %v9997_v22 = vld [vmem:[%s17733_s3 + $0x138] sm:$0xff] }
 0x979   :  { %v5225_v11 = vpop.f32.mrf.mxu1 }
 0x97a   :  { %v5308_v38 = vadd.f32 %v5225_v11, %v15245_v47  ;;  %v5472_v47 = vpop.f32.mrf.mxu3 }
 0x97c   :  { %v15423_v1 = vadd.f32 %v5465_v36, %v5308_v38  ;;  %9234 = vmatmul.msk.bf16.gmra.mxu1 %vm4784_vm12, %v9996_v24  ;;  %v5969_v34 = vpop.f32.mrf.mxu0 }
 0x97d   :  { %v5276_v61 = vpop.f32.mrf.mxu2 }
 0x97e   :  { %v5311_v12 = vadd.f32 %v5276_v61, %v15250_v57 }
 0x980   :  { %v15430_v16 = vadd.f32 %v5516_v35, %v5311_v12 }
 0x981   :  { %v5227_v18 = vpop.f32.mrf.mxu1 }
 0x982   :  { %v5310_v25 = vadd.f32 %v5227_v18, %v15255_v58  ;;  %9243 = vmatmul.msk.bf16.gmra.mxu2 %vm4784_vm12, %v9997_v22  ;;  %v5915_v58 = vpop.f32.mrf.mxu3 }
 0x983   :  { %9421 = vmatmul.msk.bf16.gmra.mxu3 %vm4784_vm12, %v10015_v60  ;;  %9429 = vmatmul.msk.bf16.gmra.mxu0 %vm4784_vm12, %v10015_v60 }
 0x984   :  { %v15434_v2 = vadd.f32 %v5467_v54, %v5310_v25  ;;  %v5971_v63 = vpop.f32.mrf.mxu0 }
 0x985   :  { %v5279_v32 = vpop.f32.mrf.mxu2 }
 0x986   :  { %v5313_v36 = vadd.f32 %v5279_v32, %v15258_v20 }
 0x988   :  { %v15437_v57 = vadd.f32 %v5519_v41, %v5313_v36  ;;  %v10017_v36 = vld [vmem:[%s17733_s3 + $0x1d8] sm:$0xff] }
 0x989   :  { %v5230_v35 = vpop.f32.mrf.mxu1 }
 0x98a   :  { %v5312_v3 = vadd.f32 %v5230_v35, %v15263_v28  ;;  %v5917_v49 = vpop.f32.mrf.mxu3 }
 0x98c   :  { %v15445_v8 = vadd.f32 %v5470_v46, %v5312_v3  ;;  %9235 = vmatmul.msk.bf16.gmra.mxu1 %vm4784_vm12, %v9997_v22  ;;  %v5974_v33 = vpop.f32.mrf.mxu0  ;;  %v10016_v46 = vld [vmem:[%s17733_s3 + $0x1d0] sm:$0xff] }
 0x98d   :  { %v5281_v20 = vpop.f32.mrf.mxu2  ;;  %v10008_v3 = vld [vmem:[%s17733_s3 + $0x190] sm:$0xff] }
 0x98e   :  { %v5315_v41 = vadd.f32 %v5281_v20, %v15268_v7 }
 0x990   :  { %v15452_v54 = vadd.f32 %v5521_v26, %v5315_v41 }
 0x991   :  { %v5232_v28 = vpop.f32.mrf.mxu1 }
 0x992   :  { %v5314_v19 = vadd.f32 %v5232_v28, %v15273_v45  ;;  %9364 = vmatmul.msk.bf16.vlgmr.msra.gmra.mxu2 %vm4784_vm12, %v10006_v23  ;;  %v5920_v38 = vpop.f32.mrf.mxu3 }
 0x993   :  { %9422 = vmatmul.msk.bf16.gmra.mxu3 %vm4784_vm12, %v10016_v46  ;;  %9430 = vmatmul.msk.bf16.gmra.mxu0 %vm4784_vm12, %v10016_v46 }
 0x994   :  { %v15456_v24 = vadd.f32 %v5472_v47, %v5314_v19  ;;  %v5976_v61 = vpop.f32.mrf.mxu0 }
 0x995   :  { %v5724_v13 = vpop.f32.mrf.mxu2 }
 0x996   :  { %v5765_v17 = vadd.f32 %v5724_v13, %v15278_v4 }
 0x998   :  { %v15459_v7 = vadd.f32 %v5964_v6, %v5765_v17  ;;  %v10007_v6 = vld [vmem:[%s17733_s3 + $0x188] sm:$0xff] }
 0x999   :  { %v5675_v26 = vpop.f32.mrf.mxu1 }
 0x99a   :  { %v5764_v21 = vadd.f32 %v5675_v26, %v15287_v14 }
 0x99c   :  { %v15467_v45 = vadd.f32 %v5915_v58, %v5764_v21  ;;  %9356 = vmatmul.msk.bf16.vlgmr.msra.gmra.mxu1 %vm4784_vm12, %v10006_v23  ;;  %v10009_v21 = vld [vmem:[%s17733_s3 + $0x198] sm:$0xff] }
 0x99d   :  { %v5726_v11 = vpop.f32.mrf.mxu2 }
 0x99e   :  { %v5767_v4 = vadd.f32 %v5726_v11, %v15294_v10 }
 0x9a0   :  { %v15474_v12 = vadd.f32 %v5966_v53, %v5767_v4  ;;  %v5979_v32 = vpop.f32.mrf.mxu0  ;;  %v5922_v53 = vpop.f32.mrf.mxu3 }
 0x9a1   :  { %v5677_v14 = vpop.f32.mrf.mxu1 }
 0x9a2   :  { %v5766_v22 = vadd.f32 %v5677_v14, %v15300_v29  ;;  %9365 = vmatmul.msk.bf16.gmra.mxu2 %vm4784_vm12, %v10007_v6 }
 0x9a3   :  { %9423 = vmatmul.msk.bf16.gmra.mxu3 %vm4784_vm12, %v10017_v36  ;;  %9431 = vmatmul.msk.bf16.gmra.mxu0 %vm4784_vm12, %v10017_v36 }
 0x9a4   :  { %v15478_v18 = vadd.f32 %v5917_v49, %v5766_v22 }
 0x9a5   :  { %v5729_v47 = vpop.f32.mrf.mxu2 }
 0x9a6   :  { %v5769_v25 = vadd.f32 %v5729_v47, %v15304_v0 }
 0x9a8   :  { %v15481_v10 = vadd.f32 %v5969_v34, %v5769_v25  ;;  %v5981_v58 = vpop.f32.mrf.mxu0  ;;  %v5925_v23 = vpop.f32.mrf.mxu3 }
 0x9a9   :  { %v5680_v60 = vpop.f32.mrf.mxu1 }
 0x9aa   :  { %v5768_v35 = vadd.f32 %v5680_v60, %v15313_v31 }
 0x9ac   :  { %v15489_v29 = vadd.f32 %v5920_v38, %v5768_v35  ;;  %9357 = vmatmul.msk.bf16.gmra.mxu1 %vm4784_vm12, %v10007_v6 }
 0x9ad   :  { %v5731_v0 = vpop.f32.mrf.mxu2 }
 0x9ae   :  { %v5771_v34 = vadd.f32 %v5731_v0, %v15320_v27 }
 0x9b0   :  { %v15496_v20 = vadd.f32 %v5971_v63, %v5771_v34  ;;  %v15503_v49 = vpop.f32.mrf.mxu0  ;;  %v10018_v63 = vld [vmem:[%s17733_s3 + $0x1e0] sm:$0xff]  ;;  %v5927_v26 = vpop.f32.mrf.mxu3 }
 0x9b1   :  { %v5682_v41 = vpop.f32.mrf.mxu1 }
 0x9b2   :  { %v5770_v31 = vadd.f32 %v5682_v41, %v15324_v44  ;;  %9366 = vmatmul.msk.bf16.gmra.mxu2 %vm4784_vm12, %v10008_v3 }
 0x9b3   :  { %9424 = vmatmul.msk.bf16.gmra.mxu3 %vm4784_vm12, %v10018_v63  ;;  %9432 = vmatmul.msk.bf16.gmra.mxu0 %vm4784_vm12, %v10018_v63  ;;  %v10011_v63 = vld [vmem:[%s17733_s3 + $0x1a8] sm:$0xff] }
 0x9b4   :  { %v15500_v28 = vadd.f32 %v5922_v53, %v5770_v31 }
 0x9b5   :  { %v5734_v19 = vpop.f32.mrf.mxu2 }
 0x9b6   :  { %v5773_v13 = vadd.f32 %v5734_v19, %v15327_v40 }
 0x9b8   :  { %v15505_v27 = vadd.f32 %v5974_v33, %v5773_v13  ;;  %v15520_v11 = vpop.f32.mrf.mxu0  ;;  %v5930_v47 = vpop.f32.mrf.mxu3 }
 0x9b9   :  { %v5685_v17 = vpop.f32.mrf.mxu1 }
 0x9ba   :  { %v5772_v46 = vadd.f32 %v5685_v17, %v15335_v56 }
 0x9bc   :  { %v15513_v44 = vadd.f32 %v5925_v23, %v5772_v46  ;;  %9358 = vmatmul.msk.bf16.gmra.mxu1 %vm4784_vm12, %v10008_v3 }
 0x9bd   :  { %v5736_v40 = vpop.f32.mrf.mxu2 }
 0x9be   :  { %v5775_v33 = vadd.f32 %v5736_v40, %v15342_v9 }
 0x9c0   :  { %v15522_v4 = vadd.f32 %v5976_v61, %v5775_v33  ;;  %v15529_v9 = vpop.f32.mrf.mxu0  ;;  %v10019_v61 = vld [vmem:[%s17733_s3 + $0x1e8] sm:$0xff]  ;;  %v5932_v34 = vpop.f32.mrf.mxu3 }
 0x9c1   :  { %v5687_v56 = vpop.f32.mrf.mxu1 }
 0x9c2   :  { %v5774_v6 = vadd.f32 %v5687_v56, %v15346_v62  ;;  %9367 = vmatmul.msk.bf16.gmra.mxu2 %vm4784_vm12, %v10009_v21 }
 0x9c3   :  { %9425 = vmatmul.msk.bf16.gmra.mxu3 %vm4784_vm12, %v10019_v61  ;;  %9433 = vmatmul.msk.bf16.gmra.mxu0 %vm4784_vm12, %v10019_v61 }
 0x9c4   :  { %v15526_v38 = vadd.f32 %v5927_v26, %v5774_v6  ;;  %v10012_v6 = vld [vmem:[%s17733_s3 + $0x1b0] sm:$0xff] }
 0x9c5   :  { %v5739_v14 = vpop.f32.mrf.mxu2 }
 0x9c6   :  { %v5777_v22 = vadd.f32 %v5739_v14, %v15349_v50 }
 0x9c8   :  { %v15531_v25 = vadd.f32 %v5979_v32, %v5777_v22  ;;  %v10010_v32 = vld [vmem:[%s17733_s3 + $0x1a0] sm:$0xff]  ;;  %v15546_v35 = vpop.f32.mrf.mxu0 }
 0x9c9   :  { %v5690_v36 = vpop.f32.mrf.mxu1 }
 0x9ca   :  { %v5776_v60 = vadd.f32 %v5690_v36, %v15357_v59 }
 0x9cc   :  { %v15539_v62 = vadd.f32 %v5930_v47, %v5776_v60  ;;  %9359 = vmatmul.msk.bf16.gmra.mxu1 %vm4784_vm12, %v10009_v21 }
 0x9cd   :  { %v5741_v50 = vpop.f32.mrf.mxu2 }
 0x9ce   :  { %v5779_v53 = vadd.f32 %v5741_v50, %v15364_v5  ;;  %v10020_v5 = vld [vmem:[%s17733_s3 + $0x1f0] sm:$0xff] }
 0x9d0   :  { %v15548_v0 = vadd.f32 %v5981_v58, %v5779_v53  ;;  %v15560_v13 = vpop.f32.mrf.mxu0 }
 0x9d1   :  { %v5692_v59 = vpop.f32.mrf.mxu1  ;;  %18312 = vst [vmem:[#allocation31_spill] sm:$0xff] %v15560_v13 }
 0x9d2   :  { %v5778_v3 = vadd.f32 %v5692_v59, %v15368_v52  ;;  %9368 = vmatmul.msk.bf16.gmra.mxu2 %vm4784_vm12, %v10010_v32 }
 0x9d3   :  { %9426 = vmatmul.msk.bf16.gmra.mxu3 %vm4784_vm12, %v10020_v5  ;;  %9434 = vmatmul.msk.bf16.gmra.mxu0 %vm4784_vm12, %v10020_v5 }
 0x9d4   :  { %v15552_v41 = vadd.f32 %v5932_v34, %v5778_v3 }
 0x9d5   :  { %v5744_v31 = vpop.f32.mrf.mxu2 }
 0x9d6   :  { %v15555_v23 = vadd.f32 %v5744_v31, %v15371_v15 }
 0x9d9   :  { %v5695_v19 = vpop.f32.mrf.mxu1 }
 0x9da   :  { %v15563_v58 = vadd.f32 %v5695_v19, %v15379_v30  ;;  %v15578_v30 = vpop.f32.mrf.mxu0 }
 0x9db   :  { %18313 = vst [vmem:[#allocation35_spill] sm:$0xff] %v15578_v30 }
 0x9dc   :  { %9360 = vmatmul.msk.bf16.gmra.mxu1 %vm4784_vm12, %v10010_v32 }
 0x9dd   :  { %v5746_v52 = vpop.f32.mrf.mxu2 }
 0x9de   :  { %v15569_v15 = vadd.f32 %v5746_v52, %v15386_v55  ;;  %v10021_v55 = vld [vmem:[%s17733_s3 + $0x1f8] sm:$0xff] }
 0x9e1   :  { %v5697_v17 = vpop.f32.mrf.mxu1 }
 0x9e2   :  { %v15575_v46 = vadd.f32 %v5697_v17, %v15390_v42  ;;  %9369 = vmatmul.msk.bf16.gmra.mxu2 %vm4784_vm12, %v10011_v63  ;;  %v15592_v56 = vpop.f32.mrf.mxu0 }
 0x9e3   :  { %9427 = vmatmul.msk.bf16.gmra.mxu3 %vm4784_vm12, %v10021_v55  ;;  %9435 = vmatmul.msk.bf16.gmra.mxu0 %vm4784_vm12, %v10021_v55 }
 0x9e5   :  { %v5749_v40 = vpop.f32.mrf.mxu2 }
 0x9e6   :  { %v15581_v26 = vadd.f32 %v5749_v40, %v15393_v39 }
 0x9e9   :  { %v5700_v33 = vpop.f32.mrf.mxu1 }
 0x9ea   :  { %v15587_v21 = vadd.f32 %v5700_v33, %v15401_v37  ;;  %v15607_v61 = vpop.f32.mrf.mxu0 }
 0x9ec   :  { %9361 = vmatmul.msk.bf16.gmra.mxu1 %vm4784_vm12, %v10011_v63 }
 0x9ed   :  { %v5751_v42 = vpop.f32.mrf.mxu2 }
 0x9ee   :  { %v15595_v39 = vadd.f32 %v5751_v42, %v15408_v48 }
 0x9f1   :  { %v5702_v14 = vpop.f32.mrf.mxu1 }
 0x9f2   :  { %v15601_v37 = vadd.f32 %v5702_v14, %v15412_v43  ;;  %9370 = vmatmul.msk.bf16.gmra.mxu2 %vm4784_vm12, %v10012_v6  ;;  %v10013_v43 = vld [vmem:[%s17733_s3 + $0x1b8] sm:$0xff]  ;;  %v15619_v32 = vpop.f32.mrf.mxu0 }
 0x9f5   :  { %v5754_v22 = vpop.f32.mrf.mxu2 }
 0x9f6   :  { %v15605_v47 = vadd.f32 %v5754_v22, %v15415_v51 }
 0x9f8   :  { %18314 = vst [vmem:[#allocation48_spill] sm:$0xff] %v15605_v47  ;;  %v10028_v47 = vld [vmem:[%s17733_s3 + $0x230] sm:$0xff] }
 0x9f9   :  { %v5705_v36 = vpop.f32.mrf.mxu1 }
 0x9fa   :  { %v15610_v48 = vadd.f32 %v5705_v36, %v15423_v1  ;;  %v15631_v3 = vpop.f32.mrf.mxu0 }
 0x9fc   :  { %18315 = vst [vmem:[#allocation25_spill] sm:$0xff] %v15610_v48  ;;  %9362 = vmatmul.msk.bf16.gmra.mxu1 %vm4784_vm12, %v10012_v6 }
 0x9fd   :  { %v5756_v60 = vpop.f32.mrf.mxu2 }
 0x9fe   :  { %v15614_v50 = vadd.f32 %v5756_v60, %v15430_v16 }
 0xa00   :  { %18316 = vst [vmem:[#allocation19_spill] sm:$0xff] %v15614_v50 }
 0xa01   :  { %v5707_v53 = vpop.f32.mrf.mxu1 }
 0xa02   :  { %v15622_v51 = vadd.f32 %v5707_v53, %v15434_v2  ;;  %9371 = vmatmul.msk.bf16.gmra.mxu2 %vm4784_vm12, %v10013_v43  ;;  %v10022_v2 = vld [vmem:[%s17733_s3 + $0x200] sm:$0xff]  ;;  %v15644_v52 = vpop.f32.mrf.mxu0 }
 0xa04   :  { %18317 = vst [vmem:[#allocation23_spill] sm:$0xff] %v15622_v51 }
 0xa05   :  { %v5759_v1 = vpop.f32.mrf.mxu2 }
 0xa06   :  { %v15626_v59 = vadd.f32 %v5759_v1, %v15437_v57 }
 0xa09   :  { %v5710_v34 = vpop.f32.mrf.mxu1 }
 0xa0a   :  { %v15629_v16 = vadd.f32 %v5710_v34, %v15445_v8  ;;  %v15659_v33 = vpop.f32.mrf.mxu0 }
 0xa0c   :  { %9363 = vmatmul.msk.bf16.gmra.mxu1 %vm4784_vm12, %v10013_v43 }
 0xa0d   :  { %v5761_v31 = vpop.f32.mrf.mxu2 }
 0xa0e   :  { %v15635_v5 = vadd.f32 %v5761_v31, %v15452_v54 }
 0xa11   :  { %v5712_v19 = vpop.f32.mrf.mxu1 }
 0xa12   :  { %v15641_v57 = vadd.f32 %v5712_v19, %v15456_v24  ;;  %9492 = vmatmul.msk.bf16.vlgmr.msrb.gmra.mxu2 %vm4784_vm12, %v10022_v2  ;;  %v10023_v24 = vld [vmem:[%s17733_s3 + $0x208] sm:$0xff]  ;;  %v15668_v22 = vpop.f32.mrf.mxu0  ;;  %v10025_v19 = vld [vmem:[%s17733_s3 + $0x218] sm:$0xff] }
 0xa15   :  { %v6203_v8 = vpop.f32.mrf.mxu2 }
 0xa16   :  { %v15647_v63 = vadd.f32 %v6203_v8, %v15459_v7  ;;  %v15701_v8 = vpop.f32.mrf.mxu3 }
 0xa19   :  { %v6154_v17 = vpop.f32.mrf.mxu1 }
 0xa1a   :  { %v15650_v54 = vadd.f32 %v6154_v17, %v15467_v45  ;;  %v15684_v53 = vpop.f32.mrf.mxu0 }
 0xa1c   :  { %9484 = vmatmul.msk.bf16.vlgmr.msrb.gmra.mxu1 %vm4784_vm12, %v10022_v2 }
 0xa1d   :  { %v6205_v40 = vpop.f32.mrf.mxu2 }
 0xa1e   :  { %v15654_v55 = vadd.f32 %v6205_v40, %v15474_v12 }
 0xa21   :  { %v6156_v42 = vpop.f32.mrf.mxu1 }
 0xa22   :  { %v15662_v7 = vadd.f32 %v6156_v42, %v15478_v18  ;;  %9493 = vmatmul.msk.bf16.gmra.mxu2 %vm4784_vm12, %v10023_v24  ;;  %v10024_v18 = vld [vmem:[%s17733_s3 + $0x210] sm:$0xff]  ;;  %v15693_v2 = vpop.f32.mrf.mxu0 }
 0xa25   :  { %v6208_v45 = vpop.f32.mrf.mxu2 }
 0xa26   :  { %v15666_v6 = vadd.f32 %v6208_v45, %v15481_v10 }
 0xa29   :  { %v6159_v14 = vpop.f32.mrf.mxu1 }
 0xa2a   :  { %v15671_v12 = vadd.f32 %v6159_v14, %v15489_v29 }
 0xa2c   :  { %9485 = vmatmul.msk.bf16.gmra.mxu1 %vm4784_vm12, %v10023_v24  ;;  %v15710_v24 = vpop.f32.mrf.mxu0 }
 0xa2d   :  { %v6210_v36 = vpop.f32.mrf.mxu2 }
 0xa2e   :  { %v15675_v60 = vadd.f32 %v6210_v36, %v15496_v20  ;;  %v10026_v36 = vld [vmem:[%s17733_s3 + $0x220] sm:$0xff] }
 0xa31   :  { %v6161_v43 = vpop.f32.mrf.mxu1 }
 0xa32   :  { %v15681_v10 = vadd.f32 %v6161_v43, %v15500_v28  ;;  %9494 = vmatmul.msk.bf16.gmra.mxu2 %vm4784_vm12, %v10024_v18 }
 0xa35   :  { %v6213_v29 = vpop.f32.mrf.mxu2 }
 0xa36   :  { %v15687_v1 = vadd.f32 %v6213_v29, %v15505_v27 }
 0xa39   :  { %v6164_v34 = vpop.f32.mrf.mxu1 }
 0xa3a   :  { %v15690_v20 = vadd.f32 %v6164_v34, %v15513_v44 }
 0xa3c   :  { %9486 = vmatmul.msk.bf16.gmra.mxu1 %vm4784_vm12, %v10024_v18  ;;  %v15724_v18 = vpop.f32.mrf.mxu0 }
 0xa3d   :  { %v6215_v31 = vpop.f32.mrf.mxu2  ;;  %18318 = vst [vmem:[#allocation49_spill] sm:$0xff] %v15724_v18 }
 0xa3e   :  { %v15696_v28 = vadd.f32 %v6215_v31, %v15522_v4  ;;  %v15712_v4 = vpop.f32.mrf.mxu3 }
 0xa41   :  { %v6166_v27 = vpop.f32.mrf.mxu1 }
 0xa42   :  { %v15704_v17 = vadd.f32 %v6166_v27, %v15526_v38  ;;  %9495 = vmatmul.msk.bf16.gmra.mxu2 %vm4784_vm12, %v10025_v19 }
 0xa45   :  { %v6218_v44 = vpop.f32.mrf.mxu2 }
 0xa46   :  { %v15708_v40 = vadd.f32 %v6218_v44, %v15531_v25  ;;  %v6025_v44 = vadd.f32 %v15529_v9, %v15581_v26 }
 0xa49   :  { %v6169_v42 = vpop.f32.mrf.mxu1 }
 0xa4a   :  { %v15715_v45 = vadd.f32 %v6169_v42, %v15539_v62  ;;  %v15730_v62 = vpop.f32.mrf.mxu3 }
 0xa4c   :  { %9487 = vmatmul.msk.bf16.gmra.mxu1 %vm4784_vm12, %v10025_v19 }
 0xa4d   :  { %v6220_v14 = vpop.f32.mrf.mxu2 }
 0xa4e   :  { %v15719_v38 = vadd.f32 %v6220_v14, %v15548_v0  ;;  %v15736_v0 = vpop.f32.mrf.mxu0 }
 0xa51   :  { %v6171_v25 = vpop.f32.mrf.mxu1 }
 0xa52   :  { %v15727_v43 = vadd.f32 %v6171_v25, %v15552_v41  ;;  %9496 = vmatmul.msk.bf16.gmra.mxu2 %vm4784_vm12, %v10026_v36  ;;  %v15739_v31 = vpop.f32.mrf.mxu3  ;;  %v10027_v41 = vld [vmem:[%s17733_s3 + $0x228] sm:$0xff] }
 0xa55   :  { %v15732_v29 = vpop.f32.mrf.mxu2 }
 0xa56   :  { %18319 = vst [vmem:[#allocation3_spill] sm:$0xff] %v15732_v29  ;;  %v6468_v14 = vpop.f32.mrf.mxu0 }
 0xa59   :  { %v15734_v34 = vpop.f32.mrf.mxu1 }
 0xa5a   :  { %v15751_v30 = vpop.f32.mrf.mxu3 }
 0xa5b   :  { %18320 = vst [vmem:[#allocation20_spill] sm:$0xff] %v15751_v30  ;;  %v6033_v30 = vadd.f32 %v15592_v56, %v15626_v59 }
 0xa5c   :  { %9488 = vmatmul.msk.bf16.gmra.mxu1 %vm4784_vm12, %v10026_v36 }
 0xa5d   :  { %v15741_v19 = vpop.f32.mrf.mxu2 }
 0xa61   :  { %v15746_v27 = vpop.f32.mrf.mxu1 }
 0xa62   :  { %9497 = vmatmul.msk.bf16.gmra.mxu2 %vm4784_vm12, %v10027_v41  ;;  %v15763_v48 = vpop.f32.mrf.mxu3 }
 0xa63   :  { %18322 = vst [vmem:[#allocation50_spill] sm:$0xff] %v15763_v48 }
 0xa65   :  { %v6228_v42 = vpop.f32.mrf.mxu2 }
 0xa66   :  { %v6264_v25 = vadd.f32 %v6228_v42, %v6025_v44 }
 0xa68   :  { %v15753_v36 = vadd.f32 %v6468_v14, %v6264_v25  ;;  %v10029_v14 = vld [vmem:[%s17733_s3 + $0x238] sm:$0xff] }
 0xa69   :  { %v15755_v50 = vpop.f32.mrf.mxu1 }
 0xa6a   :  { %v5950_v42 = vpop.f32.mrf.mxu3 }
 0xa6c   :  { %9489 = vmatmul.msk.bf16.gmra.mxu1 %vm4784_vm12, %v10027_v41 }
 0xa6d   :  { %v15758_v13 = vpop.f32.mrf.mxu2 }
 0xa6e   :  { %18321 = vst [vmem:[#allocation39_spill] sm:$0xff] %v15758_v13 }
 0xa71   :  { %v15765_v9 = vpop.f32.mrf.mxu1 }
 0xa72   :  { %18323 = vst [vmem:[#allocation13_spill] sm:$0xff] %v15765_v9  ;;  %9498 = vmatmul.msk.bf16.gmra.mxu2 %vm4784_vm12, %v10028_v47  ;;  %v5952_v48 = vpop.f32.mrf.mxu3 }
 0xa73   :  { %v6034_v56 = vadd.f32 %v5952_v48, %v15641_v57  ;;  %v6486_v48 = vadd.f32 %v15631_v3, %v15654_v55 }
 0xa75   :  { %v15768_v26 = vpop.f32.mrf.mxu2 }
 0xa76   :  { %18324 = vst [vmem:[#allocation22_spill] sm:$0xff] %v15768_v26 }
 0xa79   :  { %v15770_v44 = vpop.f32.mrf.mxu1 }
 0xa7a   :  { %18325 = vst [vmem:[#allocation24_spill] sm:$0xff] %v15770_v44  ;;  %v6032_v44 = vadd.f32 %v5950_v42, %v15629_v16  ;;  %v6394_v9 = vpop.f32.mrf.mxu3 }
 0xa7c   :  { %9490 = vmatmul.msk.bf16.gmra.mxu1 %vm4784_vm12, %v10028_v47 }
 0xa7d   :  { %v15773_v41 = vpop.f32.mrf.mxu2 }
 0xa7e   :  { %18326 = vst [vmem:[#allocation5_spill] sm:$0xff] %v15773_v41  ;;  %v6035_v41 = vadd.f32 %v15607_v61, %v15635_v5 }
 0xa81   :  { %v15778_v25 = vpop.f32.mrf.mxu1 }
 0xa82   :  { %18327 = vst [vmem:[#allocation26_spill] sm:$0xff] %v15778_v25  ;;  %9499 = vmatmul.msk.bf16.gmra.mxu2 %vm4784_vm12, %v10029_v14  ;;  %v6396_v61 = vpop.f32.mrf.mxu3 }
 0xa85   :  { %v6238_v26 = vpop.f32.mrf.mxu2 }
 0xa86   :  { %v15783_v51 = vadd.f32 %v6238_v26, %v6033_v30  ;;  %v6484_v30 = vadd.f32 %v15619_v32, %v15647_v63 }
 0xa88   :  { %18328 = vst [vmem:[#allocation51_spill] sm:$0xff] %v15783_v51 }
 0xa89   :  { %v6189_v47 = vpop.f32.mrf.mxu1 }
 0xa8a   :  { %v15786_v18 = vadd.f32 %v6189_v47, %v6032_v44  ;;  %v6774_v44 = vpop.permute.xlu2 %6773  ;;  %v6485_v47 = vadd.f32 %v6396_v61, %v15662_v7 }
 0xa8c   :  { %18329 = vst [vmem:[#allocation28_spill] sm:$0xff] %v15786_v18  ;;  %9491 = vmatmul.msk.bf16.gmra.mxu1 %vm4784_vm12, %v10029_v14 }
 0xa8d   :  { %v6240_v25 = vpop.f32.mrf.mxu2 }
 0xa8e   :  { %v15791_v29 = vadd.f32 %v6240_v25, %v6035_v41  ;;  %v6483_v41 = vadd.f32 %v6394_v9, %v15650_v54  ;;  %v6779_v25 = vpop.permute.xlu1 %6778  ;;  %v6763_v54 = vld [vmem:[%s17734_s4 + $0x40] sm:$0xff] }
 0xa90   :  { %18330 = vst [vmem:[#allocation36_spill] sm:$0xff] %v15791_v29 }
 0xa91   :  { %v6191_v59 = vpop.f32.mrf.mxu1 }
 0xa92   :  { %v15794_v13 = vadd.f32 %v6191_v59, %v6034_v56 }
 0xa94   :  { %18331 = vst [vmem:[#allocation44_spill] sm:$0xff] %v15794_v13 }
 0xa95   :  { %v6683_v16 = vpop.f32.mrf.mxu2 }
 0xa96   :  { %v6724_v26 = vadd.f32 %v6683_v16, %v6484_v30  ;;  %v6399_v30 = vpop.f32.mrf.mxu3  ;;  %v6488_v16 = vadd.f32 %v15644_v52, %v15666_v6  ;;  %v6759_v6 = vld [vmem:[%s17734_s4 + $0x20] sm:$0xff] }
 0xa98   :  { %v15798_v42 = vadd.f32 %v6774_v44, %v6724_v26 }
 0xa99   :  { %v6634_v5 = vpop.f32.mrf.mxu1 }
 0xa9a   :  { %v17855_v14 = vmax.f32 %v15798_v42, 0.0  ;;  %v6723_v32 = vadd.f32 %v6634_v5, %v6483_v41 }
 0xa9c   :  { %6949 = vrot.lane.b32.xlu0 %v17855_v14, %s10368_s21  ;;  %v15813_v9 = vadd.f32 %v6774_v44, %v6723_v32  ;;  %v6784_v44 = vpop.permute.xlu0 %6783 }
 0xa9d   :  { %v6685_v57 = vpop.f32.mrf.mxu2 }
 0xa9e   :  { %v6726_v63 = vadd.f32 %v6685_v57, %v6486_v48  ;;  %v17857_v61 = vmax.f32 %v15813_v9, 0.0  ;;  %v18335_v51 = vmax.f32 %v15813_v9, 0.0 }
 0xaa0   :  { %v15808_v56 = vadd.f32 %v6779_v25, %v6726_v63  ;;  %v6487_v63 = vadd.f32 %v6399_v30, %v15671_v12 }
 0xaa1   :  { %v6636_v59 = vpop.f32.mrf.mxu1 }
 0xaa2   :  { %v6886_v3 = vmax.f32 %v15808_v56, 0.0  ;;  %v6725_v55 = vadd.f32 %v6636_v59, %v6485_v47  ;;  %v6760_v59 = vld [vmem:[%s17734_s4 + $0x28] sm:$0xff] }
 0xaa4   :  { %v15818_v26 = vadd.f32 %v6779_v25, %v6725_v55  ;;  %6953 = vrot.lane.b32.xlu2 %v6886_v3, %s10368_s21  ;;  %6813 = vperm.xlu0 %10045, %v6763_v54   ;;  %v6401_v25 = vpop.f32.mrf.mxu3  ;;  %v6789_v12 = vpop.permute.xlu0 %6788 }
 0xaa5   :  { %v6688_v7 = vpop.f32.mrf.mxu2  ;;  %v6489_v54 = vadd.f32 %v6401_v25, %v15681_v10  ;;  %v6762_v10 = vld [vmem:[%s17734_s4 + $0x38] sm:$0xff] }
 0xaa6   :  { %v17856_v5 = vmax.f32 %v15818_v26, 0.0  ;;  %v6728_v41 = vadd.f32 %v6688_v7, %v6488_v16  ;;  %v18336_v29 = vmax.f32 %v15818_v26, 0.0 }
 0xaa8   :  { %v10287_v48 = vpack.i.bf16 %v17857_v61, %v17856_v5  ;;  %v15827_v57 = vadd.f32 %v6784_v44, %v6728_v41 }
 0xaa9   :  { %v6639_v52 = vpop.f32.mrf.mxu1 }
 0xaaa   :  { %v17854_v32 = vmax.f32 %v15827_v57, 0.0  ;;  %10288 = vrot.lane.b32.xlu1 %v10287_v48, %s10368_s21  ;;  %v6727_v56 = vadd.f32 %v6639_v52, %v6487_v63  ;;  %v6490_v48 = vadd.f32 %v15659_v33, %v15675_v60  ;;  %v6761_v60 = vld [vmem:[%s17734_s4 + $0x30] sm:$0xff] }
 0xaac   :  { %6793 = vperm.xlu2 %10044, %v6759_v6   ;;  %6957 = vrot.lane.b32.xlu0 %v17854_v32, %s10368_s21  ;;  %v15842_v16 = vadd.f32 %v6784_v44, %v6727_v56 }
 0xaad   :  { %v6690_v47 = vpop.f32.mrf.mxu2 }
 0xaae   :  { %v17853_v52 = vmax.f32 %v15842_v16, 0.0  ;;  %v6730_v44 = vadd.f32 %v6690_v47, %v6490_v48 }
 0xab0   :  { %v15860_v25 = vadd.f32 %v6789_v12, %v6730_v44 }
 0xab1   :  { %v6641_v55 = vpop.f32.mrf.mxu1 }
 0xab2   :  { %v6729_v7 = vadd.f32 %v6641_v55, %v6489_v54  ;;  %6798 = vperm.xlu1 %10046, %v6760_v59   ;;  %v17851_v56 = vmax.f32 %v15860_v25, 0.0  ;;  %v6764_v59 = vld [vmem:[%s17734_s4 + $0x48] sm:$0xff]  ;;  %v6766_v55 = vld [vmem:[%s17734_s4 + $0x58] sm:$0xff] }
 0xab4   :  { %v15844_v30 = vadd.f32 %v6789_v12, %v6729_v7  ;;  %v6765_v12 = vld [vmem:[%s17734_s4 + $0x50] sm:$0xff] }
 0xab5   :  { %v15846_v41 = vpop.f32.mrf.mxu2 }
 0xab6   :  { %v17852_v6 = vmax.f32 %v15844_v30, 0.0 }
 0xab8   :  { %v10292_v63 = vpack.i.bf16 %v17852_v6, %v17853_v52 }
 0xaba   :  { %10293 = vrot.lane.b32.xlu2 %v10292_v63, %s10368_s21  ;;  %6808 = vperm.xlu1 %10046, %v6762_v10  }
 0xabd   :  { %v6695_v33 = vpop.f32.mrf.mxu2 }
 0xac2   :  { %6961 = vrot.lane.b32.xlu2 %v17851_v56, %s10368_s21  ;;  %6803 = vperm.xlu1 %10046, %v6761_v60  }
 0xac5   :  { %v15869_v47 = vpop.f32.mrf.mxu2 }
 0xaca   :  { %6818 = vperm.xlu1 %10046, %v6764_v59   ;;  %v6404_v59 = vpop.f32.mrf.mxu3 }
 0xacb   :  { %v6491_v13 = vadd.f32 %v6404_v59, %v15690_v20 }
 0xacd   :  { %v15874_v54 = vpop.f32.mrf.mxu2 }
 0xad2   :  { %6828 = vperm.xlu1 %10046, %v6766_v55   ;;  %v6644_v55 = vpop.f32.mrf.mxu1  ;;  %v6406_v56 = vpop.f32.mrf.mxu3 }
 0xad5   :  { %v15879_v7 = vpop.f32.mrf.mxu2 }
 0xad6   :  { %18332 = vst [vmem:[#allocation37_spill] sm:$0xff] %v15879_v7  ;;  %v6731_v7 = vadd.f32 %v6644_v55, %v6491_v13 }
 0xada   :  { %6823 = vperm.xlu1 %10046, %v6765_v12   ;;  %v6646_v6 = vpop.f32.mrf.mxu1  ;;  %v6409_v52 = vpop.f32.mrf.mxu3 }
 0xadd   :  { %v15884_v48 = vpop.f32.mrf.mxu2 }
 0xae2   :  { %v6649_v14 = vpop.f32.mrf.mxu1 }
 0xae5   :  { %v6708_v10 = vpop.f32.mrf.mxu2 }
 0xae6   :  { %v15887_v44 = vadd.f32 %v6708_v10, %v15753_v36 }
 0xae8   :  { %18333 = vst [vmem:[#allocation30_spill] sm:$0xff] %v15887_v44 }
 0xafe   :  { %v6954_v63 = vpop.permute.xlu2 %6953 }
 0xaff   :  { %v15889_v60 = vmax.f32 %v6886_v3, %v6954_v63 }
 0xb01   :  { %18334 = vst [vmem:[#allocation52_spill] sm:$0xff] %v15889_v60  ;;  %7129 = vrot.lane.b32.xlu0 %v15889_v60, %s10377_s5  ;;  %v6494_v60 = vadd.f32 %v15684_v53, %v15696_v28 }
 0xb03   :  { %v6734_v59 = vadd.f32 %v6695_v33, %v6494_v60 }
 0xb06   :  { %v6794_v10 = vpop.permute.xlu2 %6793 }
 0xb0e   :  { %v6950_v61 = vpop.permute.xlu0 %6949 }
 0xb1c   :  { %v10289_v32 = vpop.permute.xlu1 %10288 }
 0xb1d   :  { %v10291_v12 = vunpack.i.h.bf16 %v10289_v32  ;;  %v10290_v5 = vunpack.i.l.bf16 %v10289_v32  ;;  %v6493_v32 = vadd.f32 %v6406_v56, %v15704_v17 }
 0xb1f   :  { %v7011_v36 = vsel %vm111_vm0, %v10291_v12, %v6950_v61  ;;  %v7012_v3 = vsel %vm111_vm0, %v10290_v5, %v6954_v63  ;;  %v6733_v5 = vadd.f32 %v6646_v6, %v6493_v32  ;;  %v15909_v63 = vadd.f32 %v6794_v10, %v6731_v7  ;;  %v6651_v12 = vpop.f32.mrf.mxu1 }
 0xb20   :  { %v15898_v18 = vmax.f32 %v18335_v51, %v7011_v36  ;;  %v15902_v44 = vmax.f32 %v18336_v29, %v7012_v3  ;;  %v6411_v51 = vpop.f32.mrf.mxu3  ;;  %v6492_v6 = vadd.f32 %v15668_v22, %v15687_v1  ;;  %v18337_v36 = vmax.f32 %v15798_v42, 0.0  ;;  %v9515_v22 = vld [vmem:[%s17735_s6 + $0x148] sm:$0xff] }
 0xb21   :  { %v6891_v53 = vmax.f32 %v15909_v63, 0.0  ;;  %v6497_v60 = vadd.f32 %v6411_v51, %v15727_v43  ;;  %v6495_v32 = vadd.f32 %v6409_v52, %v15715_v45  ;;  %v6498_v1 = vadd.f32 %v15710_v24, %v15719_v38  ;;  %7329 = vmatpush.msrb.mxu3 %v9515_v22  ;;  %v9514_v45 = vld [vmem:[%s17735_s6 + $0x140] sm:$0xff]  ;;  %v9513_v24 = vld [vmem:[%s17735_s6 + $0x138] sm:$0xff] }
 0xb22   :  { %v10297_v20 = vpack.i.bf16 %v15898_v18, %v15902_v44  ;;  %v6732_v33 = vadd.f32 %v15846_v41, %v6492_v6  ;;  %v15935_v3 = vmax.f32 %v18337_v36, %v6950_v61 }
 0xb23   :  { %v6735_v42 = vadd.f32 %v6649_v14, %v6495_v32  ;;  %v6738_v41 = vadd.f32 %v15874_v54, %v6498_v1  ;;  %7330 = vmatpush.msrb.mxu3 %v9514_v45  ;;  %v9512_v14 = vld [vmem:[%s17735_s6 + $0x130] sm:$0xff]  ;;  %v6768_v54 = vld [vmem:[%s17734_s4 + $0x68] sm:$0xff] }
 0xb24   :  { %v6799_v9 = vpop.permute.xlu1 %6798  ;;  %10298 = vrot.lane.b32.xlu2 %v10297_v20, %s10377_s5  ;;  %v15930_v7 = vadd.f32 %v6794_v10, %v6732_v33  ;;  %v6737_v20 = vadd.f32 %v6651_v12, %v6497_v60  ;;  %v6020_v12 = vadd.f32 %v15701_v8, %v15563_v58  ;;  %v9508_v32 = vld [vmem:[%s17735_s6 + $0x110] sm:$0xff]  ;;  %v9507_v45 = vld [vmem:[%s17735_s6 + $0x108] sm:$0xff] }
 0xb25   :  { %v15912_v26 = vadd.f32 %v6799_v9, %v6733_v5  ;;  %v15914_v29 = vadd.f32 %v6799_v9, %v6734_v59  ;;  %7331 = vmatpush.msrb.mxu3 %v9513_v24  ;;  %v6022_v5 = vadd.f32 %v15712_v4, %v15575_v46  ;;  %v9511_v46 = vld [vmem:[%s17735_s6 + $0x128] sm:$0xff] }
 0xb26   :  { %v6892_v43 = vmax.f32 %v15930_v7, 0.0  ;;  %v6259_v58 = vadd.f32 %v15734_v34, %v6020_v12  ;;  %v9509_v34 = vld [vmem:[%s17735_s6 + $0x118] sm:$0xff]  ;;  %v7274_v7 = vld [vmem:[%s17735_s6 + $0x30] sm:$0xff] }
 0xb27   :  { %v6893_v13 = vmax.f32 %v15912_v26, 0.0  ;;  %v6894_v28 = vmax.f32 %v15914_v29, 0.0  ;;  %v6654_v59 = vpop.f32.mrf.mxu1  ;;  %7332 = vmatpush.msrb.mxu3 %v9512_v14  ;;  %v6261_v6 = vadd.f32 %v15746_v27, %v6022_v5  ;;  %v6770_v14 = vld [vmem:[%s17734_s4 + $0x78] sm:$0xff]  ;;  %v7269_v29 = vld [vmem:[%s17735_s6 + $0x8] sm:$0xff] }
 0xb28   :  { %v6414_v55 = vpop.f32.mrf.mxu3  ;;  %v9505_v12 = vld [vmem:[%s17735_s6 + $0xf8] sm:$0xff] }
 0xb29   :  { %v10302_v17 = vpack.i.bf16 %v6891_v53, %v6893_v13  ;;  %6969 = vrot.lane.b32.xlu0 %v6894_v28, %s10368_s21  ;;  %7333 = vmatpush.msrb.mxu3 %v9511_v46  ;;  %v6499_v22 = vadd.f32 %v6414_v55, %v6259_v58  ;;  %v9506_v55 = vld [vmem:[%s17735_s6 + $0x100] sm:$0xff] }
 0xb2c   :  { %v6809_v56 = vpop.permute.xlu1 %6808  ;;  %10303 = vrot.lane.b32.xlu2 %v10302_v17, %s10368_s21  ;;  %v6496_v17 = vadd.f32 %v15693_v2, %v15708_v40  ;;  %v9510_v40 = vld [vmem:[%s17735_s6 + $0x120] sm:$0xff] }
 0xb2d   :  { %v15946_v61 = vadd.f32 %v6809_v56, %v6737_v20  ;;  %v15963_v10 = vadd.f32 %v6809_v56, %v6738_v41  ;;  %7334 = vmatpush.msrb.mxu3 %v9510_v40  ;;  %v6767_v20 = vld [vmem:[%s17734_s4 + $0x60] sm:$0xff]  ;;  %v6739_v41 = vadd.f32 %v6654_v59, %v6499_v22  ;;  %v6027_v40 = vadd.f32 %v15546_v35, %v15595_v39 }
 0xb2e   :  { %v6736_v2 = vadd.f32 %v15869_v47, %v6496_v17  ;;  %v15999_v47 = vpop.permute.xlu0 %6813  ;;  %v18338_v39 = vmax.f32 %v15827_v57, 0.0 }
 0xb2f   :  { %v6897_v9 = vmax.f32 %v15946_v61, 0.0  ;;  %v6898_v4 = vmax.f32 %v15963_v10, 0.0  ;;  %v6656_v8 = vpop.f32.mrf.mxu1  ;;  %7335 = vmatpush.msrb.mxu3 %v9509_v34  ;;  %v16025_v59 = vadd.f32 %v15999_v47, %v6739_v41  ;;  %v6026_v34 = vadd.f32 %v15739_v31, %v15601_v37  ;;  %v18339_v31 = vld [vmem:[#allocation39_spill] sm:$0xff]  ;;  %v9563_v61 = vld [vmem:[%s17735_s6 + $0x298] sm:$0xff] }
 0xb30   :  { %v6416_v33 = vpop.f32.mrf.mxu3 }
 0xb31   :  { %7125 = vrot.lane.b32.xlu0 %v15935_v3, %s10377_s5  ;;  %v6501_v60 = vadd.f32 %v6416_v33, %v6261_v6  ;;  %7336 = vmatpush.msrb.mxu3 %v9508_v32  ;;  %v6899_v46 = vmax.f32 %v16025_v59, 0.0 }
 0xb33   :  { %v6741_v1 = vadd.f32 %v6656_v8, %v6501_v60  ;;  %7337 = vmatpush.msrb.mxu3 %v9507_v45  ;;  %v9501_v45 = vld [vmem:[%s17735_s6 + $0xd8] sm:$0xff] }
 0xb34   :  { %v6804_v52 = vpop.permute.xlu1 %6803  ;;  %6965 = vrot.lane.b32.xlu2 %v6892_v43, %s10368_s21 }
 0xb35   :  { %v15958_v38 = vadd.f32 %v6804_v52, %v6735_v42  ;;  %v16001_v36 = vadd.f32 %v6804_v52, %v6736_v2  ;;  %v10294_v42 = vpop.permute.xlu2 %10293  ;;  %7338 = vmatpush.msrb.mxu3 %v9506_v55  ;;  %v6024_v2 = vadd.f32 %v15730_v62, %v15587_v21  ;;  %v9502_v21 = vld [vmem:[%s17735_s6 + $0xe0] sm:$0xff] }
 0xb36   :  { %v6958_v58 = vpop.permute.xlu0 %6957  ;;  %v10295_v8 = vunpack.i.l.bf16 %v10294_v42  ;;  %v10296_v22 = vunpack.i.h.bf16 %v10294_v42  ;;  %v18340_v42 = vld [vmem:[#allocation13_spill] sm:$0xff] }
 0xb37   :  { %v6895_v51 = vmax.f32 %v15958_v38, 0.0  ;;  %v6896_v52 = vmax.f32 %v16001_v36, 0.0  ;;  %v6659_v6 = vpop.f32.mrf.mxu1  ;;  %7339 = vmatpush.msrb.mxu3 %v9505_v12  ;;  %v6263_v62 = vadd.f32 %v15755_v50, %v6024_v2  ;;  %v16065_v37 = vmax.f32 %v18338_v39, %v6958_v58  ;;  %v6470_v50 = vpop.f32.mrf.mxu0 }
 0xb38   :  { %v6419_v5 = vpop.f32.mrf.mxu3  ;;  %v7013_v35 = vsel %vm111_vm0, %v10295_v8, %v6958_v58  ;;  %v6265_v41 = vadd.f32 %v18340_v42, %v6026_v34  ;;  %v9525_v58 = vld [vmem:[%s17735_s6 + $0x198] sm:$0x1f] }
 0xb39   :  { %v10307_v56 = vpack.i.bf16 %v6895_v51, %v6897_v9  ;;  %6838 = vperm.xlu0 %10045, %v6768_v54   ;;  %v6023_v54 = vadd.f32 %v15520_v11, %v15569_v15  ;;  %v9504_v15 = vld [vmem:[%s17735_s6 + $0xf0] sm:$0xff] }
 0xb3a   :  { %7340 = vmatpush.msrb.mxu3 %v9504_v15  ;;  %v6503_v15 = vadd.f32 %v6419_v5, %v6263_v62 }
 0xb3b   :  { %10308 = vrot.lane.b32.xlu1 %v10307_v56, %s10368_s21  ;;  %v6262_v17 = vadd.f32 %v15741_v19, %v6023_v54  ;;  %v6769_v56 = vld [vmem:[%s17734_s4 + $0x70] sm:$0xff]  ;;  %v9503_v19 = vld [vmem:[%s17735_s6 + $0xe8] sm:$0xff]  ;;  %v18342_v54 = vmax.f32 %v15842_v16, 0.0  ;;  %v18343_v16 = vmax.f32 %v15844_v30, 0.0 }
 0xb3c   :  { %v15991_v27 = vpop.permute.xlu1 %6818  ;;  %6977 = vrot.lane.b32.xlu2 %v6898_v4, %s10368_s21  ;;  %7341 = vmatpush.msrb.mxu3 %v9503_v19 }
 0xb3d   :  { %v16014_v24 = vadd.f32 %v15991_v27, %v6741_v1  ;;  %v6502_v60 = vadd.f32 %v15736_v0, %v6262_v17  ;;  %v6962_v32 = vpop.permute.xlu2 %6961  ;;  %v6021_v0 = vadd.f32 %v15503_v49, %v15555_v23  ;;  %v6266_v1 = vadd.f32 %v18339_v31, %v6027_v40  ;;  %v18341_v49 = vld [vmem:[#allocation3_spill] sm:$0xff]  ;;  %v9500_v17 = vld [vmem:[%s17735_s6 + $0xd0] sm:$0xff] }
 0xb3e   :  { %v7014_v57 = vsel %vm111_vm0, %v10296_v22, %v6962_v32  ;;  %7342 = vmatpush.msrb.mxu3 %v9502_v21  ;;  %v16082_v12 = vmax.f32 %v18342_v54, %v7013_v35  ;;  %v18344_v40 = vmax.f32 %v15860_v25, 0.0  ;;  %v18345_v21 = vld [vmem:[#allocation49_spill] sm:$0xff] }
 0xb3f   :  { %v6901_v33 = vmax.f32 %v16014_v24, 0.0  ;;  %v6260_v23 = vadd.f32 %v18341_v49, %v6021_v0  ;;  %v6506_v19 = vadd.f32 %v6470_v50, %v6266_v1  ;;  %v6661_v2 = vpop.f32.mrf.mxu1  ;;  %v16095_v8 = vmax.f32 %v18343_v16, %v7014_v57  ;;  %v18346_v35 = vld [vmem:[#allocation37_spill] sm:$0xff]  ;;  %v9523_v1 = vld [vmem:[%s17735_s6 + $0x188] sm:$0xff]  ;;  %v9520_v57 = vld [vmem:[%s17735_s6 + $0x170] sm:$0xff] }
 0xb40   :  { %v6421_v55 = vpop.f32.mrf.mxu3  ;;  %7343 = vmatpush.msrb.mxu3 %v9501_v45  ;;  %v16099_v34 = vmax.f32 %v18344_v40, %v6962_v32  ;;  %v9522_v45 = vld [vmem:[%s17735_s6 + $0x180] sm:$0xff]  ;;  %v9517_v54 = vld [vmem:[%s17735_s6 + $0x158] sm:$0xff] }
 0xb41   :  { %6833 = vperm.xlu0 %10045, %v6767_v20   ;;  %v10312_v20 = vpack.i.bf16 %v6899_v46, %v6901_v33  ;;  %v6500_v62 = vadd.f32 %v18345_v21, %v6260_v23  ;;  %v10317_v30 = vpack.i.bf16 %v16095_v8, %v16082_v12  ;;  %v9519_v23 = vld [vmem:[%s17735_s6 + $0x168] sm:$0xff]  ;;  %v7288_v16 = vld [vmem:[%s17735_s6 + $0xa0] sm:$0xff]  ;;  %v7287_v40 = vld [vmem:[%s17735_s6 + $0x98] sm:$0xff] }
 0xb42   :  { %7344 = vmatpush.msrb.mxu3 %v9500_v17  ;;  %v9516_v17 = vld [vmem:[%s17735_s6 + $0x150] sm:$0xff]  ;;  %v9555_v21 = vld [vmem:[%s17735_s6 + $0x268] sm:$0x1f] }
 0xb43   :  { %6973 = vrot.lane.b32.xlu1 %v6896_v52, %s10368_s21  ;;  %v6740_v39 = vadd.f32 %v18346_v35, %v6500_v62  ;;  %v9554_v62 = vld [vmem:[%s17735_s6 + $0x260] sm:$0xff] }
 0xb44   :  { %6848 = vperm.xlu2 %10044, %v6770_v14   ;;  %v16035_v11 = vpop.permute.xlu1 %6828  ;;  %v6742_v14 = vadd.f32 %v15884_v48, %v6502_v60  ;;  %v6743_v60 = vadd.f32 %v6659_v6, %v6503_v15  ;;  %9526 = vmatpush.msk.msra.mxu3 %vm7325_vm3, %v9525_v58  ;;  %v7293_v15 = vld [vmem:[%s17735_s6 + $0xc8] sm:$0x1f]  ;;  %v7291_v58 = vld [vmem:[%s17735_s6 + $0xb8] sm:$0xff] }
 0xb45   :  { %v16134_v50 = vadd.f32 %v15999_v47, %v6740_v39  ;;  %9528 = vmatpush.msk.msra.mxu0 %vm7325_vm3, %v7293_v15  ;;  %v9552_v39 = vld [vmem:[%s17735_s6 + $0x250] sm:$0xff] }
 0xb46   :  { %v16088_v48 = vadd.f32 %v15991_v27, %v6742_v14  ;;  %v6505_v27 = vadd.f32 %v6421_v55, %v6265_v41  ;;  %v9518_v55 = vld [vmem:[%s17735_s6 + $0x160] sm:$0xff]  ;;  %v9548_v15 = vld [vmem:[%s17735_s6 + $0x230] sm:$0xff] }
 0xb47   :  { %v6900_v49 = vmax.f32 %v16134_v50, 0.0  ;;  %v16324_v26 = vpop.f32.mrf.mxu1  ;;  %v9695_v50 = vld [vmem:[%s17735_s6 + $0x678] sm:$0x1f] }
 0xb48   :  { %v6745_v25 = vadd.f32 %v6661_v2, %v6505_v27  ;;  %v6902_v32 = vmax.f32 %v16088_v48, 0.0  ;;  %v7289_v2 = vld [vmem:[%s17735_s6 + $0xa8] sm:$0xff]  ;;  %v7286_v27 = vld [vmem:[%s17735_s6 + $0x90] sm:$0xff]  ;;  %v9619_v48 = vld [vmem:[%s17735_s6 + $0x438] sm:$0xff] }
 0xb49   :  { %6843 = vperm.xlu0 %10045, %v6769_v56   ;;  %v6710_v56 = vpop.f32.mrf.mxu2 }
 0xb4a   :  { %v6746_v22 = vadd.f32 %v6710_v56, %v6506_v19  ;;  %v16122_v31 = vadd.f32 %v16035_v11, %v6745_v25  ;;  %v7292_v56 = vld [vmem:[%s17735_s6 + $0xc0] sm:$0xff]  ;;  %v7290_v19 = vld [vmem:[%s17735_s6 + $0xb0] sm:$0xff] }
 0xb4b   :  { %10313 = vrot.lane.b32.xlu1 %v10312_v20, %s10368_s21  ;;  %v9524_v20 = vld [vmem:[%s17735_s6 + $0x190] sm:$0xff]  ;;  %7402 = vmatpush.msra.mxu0 %v7292_v56  ;;  %v9547_v56 = vld [vmem:[%s17735_s6 + $0x228] sm:$0xff] }
 0xb4c   :  { %7133 = vrot.lane.b32.xlu2 %v16065_v37, %s10377_s5  ;;  %v16101_v5 = vpop.permute.xlu1 %6823  ;;  %v16118_v0 = vadd.f32 %v16035_v11, %v6746_v22  ;;  %7356 = vmatpush.msra.mxu3 %v9524_v20  ;;  %v9521_v11 = vld [vmem:[%s17735_s6 + $0x178] sm:$0xff]  ;;  %v6905_v14 = vmax.f32 %v16122_v31, 0.0  ;;  %v7284_v20 = vld [vmem:[%s17735_s6 + $0x80] sm:$0xff] }
 0xb4d   :  { %v16114_v6 = vadd.f32 %v16101_v5, %v6743_v60  ;;  %7403 = vmatpush.msra.mxu0 %v7291_v58  ;;  %v7285_v60 = vld [vmem:[%s17735_s6 + $0x88] sm:$0xff]  ;;  %v18347_v58 = vld [vmem:[#allocation52_spill] sm:$0xff] }
 0xb4e   :  { %7357 = vmatpush.msra.mxu3 %v9523_v1  ;;  %v6906_v41 = vmax.f32 %v16118_v0, 0.0 }
 0xb4f   :  { %v17859_v42 = vmax.f32 %v16114_v6, 0.0  ;;  %7404 = vmatpush.msra.mxu0 %v7290_v19 }
 0xb50   :  { %7358 = vmatpush.msra.mxu3 %v9522_v45  ;;  %v9551_v45 = vld [vmem:[%s17735_s6 + $0x248] sm:$0xff] }
 0xb51   :  { %7137 = vrot.lane.b32.xlu0 %v16099_v34, %s10377_s5  ;;  %v10322_v47 = vpack.i.bf16 %v17859_v42, %v6905_v14  ;;  %7405 = vmatpush.msra.mxu0 %v7289_v2  ;;  %v7279_v2 = vld [vmem:[%s17735_s6 + $0x58] sm:$0xff] }
 0xb52   :  { %7359 = vmatpush.msra.mxu3 %v9521_v11 }
 0xb53   :  { %10318 = vrot.lane.b32.xlu1 %v10317_v30, %s10377_s5  ;;  %7406 = vmatpush.msra.mxu0 %v7288_v16  ;;  %v9553_v30 = vld [vmem:[%s17735_s6 + $0x258] sm:$0xff]  ;;  %v9546_v16 = vld [vmem:[%s17735_s6 + $0x220] sm:$0xff] }
 0xb54   :  { %6985 = vrot.lane.b32.xlu2 %v6902_v32, %s10368_s21  ;;  %7360 = vmatpush.msra.mxu3 %v9520_v57  ;;  %v7283_v57 = vld [vmem:[%s17735_s6 + $0x78] sm:$0xff] }
 0xb55   :  { %7407 = vmatpush.msra.mxu0 %v7287_v40  ;;  %v7278_v40 = vld [vmem:[%s17735_s6 + $0x50] sm:$0xff] }
 0xb56   :  { %7361 = vmatpush.msra.mxu3 %v9519_v23  ;;  %v7282_v23 = vld [vmem:[%s17735_s6 + $0x70] sm:$0xff] }
 0xb57   :  { %7408 = vmatpush.msra.mxu0 %v7286_v27 }
 0xb58   :  { %7362 = vmatpush.msra.mxu3 %v9518_v55 }
 0xb59   :  { %6993 = vrot.lane.b32.xlu0 %v6906_v41, %s10368_s21  ;;  %7409 = vmatpush.msra.mxu0 %v7285_v60  ;;  %v7277_v60 = vld [vmem:[%s17735_s6 + $0x48] sm:$0xff] }
 0xb5a   :  { %7363 = vmatpush.msra.mxu3 %v9517_v54  ;;  %v9549_v54 = vld [vmem:[%s17735_s6 + $0x238] sm:$0xff] }
 0xb5b   :  { %6981 = vrot.lane.b32.xlu1 %v6900_v49, %s10368_s21  ;;  %7410 = vmatpush.msra.mxu0 %v7284_v20 }
 0xb5c   :  { %10323 = vrot.lane.b32.xlu2 %v10322_v47, %s10368_s21  ;;  %7364 = vmatpush.msra.mxu3 %v9516_v17  ;;  %v9550_v47 = vld [vmem:[%s17735_s6 + $0x240] sm:$0xff] }
 0xb5d   :  { %9556 = vmatpush.msk.msrb.mxu0 %vm7325_vm3, %v9555_v21  ;;  %v7280_v17 = vld [vmem:[%s17735_s6 + $0x60] sm:$0xff] }
 0xb5e   :  { %v7276_v21 = vld [vmem:[%s17735_s6 + $0x40] sm:$0xff] }
 0xb5f   :  { %7475 = vmatpush.msrb.mxu0 %v9554_v62  ;;  %v7275_v62 = vld [vmem:[%s17735_s6 + $0x38] sm:$0xff] }
 0xb61   :  { %7476 = vmatpush.msrb.mxu0 %v9553_v30  ;;  %v16271_v30 = vpop.f32.mrf.mxu0 }
 0xb63   :  { %7477 = vmatpush.msrb.mxu0 %v9552_v39 }
 0xb65   :  { %7478 = vmatpush.msrb.mxu0 %v9551_v45  ;;  %v7272_v45 = vld [vmem:[%s17735_s6 + $0x20] sm:$0xff] }
 0xb67   :  { %7479 = vmatpush.msrb.mxu0 %v9550_v47  ;;  %v7271_v47 = vld [vmem:[%s17735_s6 + $0x18] sm:$0xff] }
 0xb69   :  { %7480 = vmatpush.msrb.mxu0 %v9549_v54 }
 0xb6b   :  { %7481 = vmatpush.msrb.mxu0 %v9548_v15  ;;  %v16313_v15 = vpop.f32.mrf.mxu0 }
 0xb6d   :  { %7482 = vmatpush.msrb.mxu0 %v9547_v56  ;;  %v9545_v56 = vld [vmem:[%s17735_s6 + $0x218] sm:$0xff] }
 0xb6f   :  { %7483 = vmatpush.msrb.mxu0 %v9546_v16 }
 0xb73   :  { %v7130_v35 = vpop.permute.xlu0 %7129 }
 0xb74   :  { %v7239_v19 = vmax.f32 %v18347_v58, %v7130_v35 }
 0xb7e   :  { %v16207_v22 = vpop.permute.xlu2 %10298 }
 0xb7f   :  { %v10300_v25 = vunpack.i.l.bf16 %v16207_v22  ;;  %v10301_v58 = vunpack.i.h.bf16 %v16207_v22 }
 0xb81   :  { %v7189_v1 = vsel %vm5389_vm13, %v10300_v25, %v7130_v35  ;;  %v7273_v25 = vld [vmem:[%s17735_s6 + $0x28] sm:$0xff]  ;;  %v16281_v35 = vpop.f32.mrf.mxu2 }
 0xb82   :  { %v7238_v11 = vmax.f32 %v15902_v44, %v7189_v1  ;;  %v7281_v44 = vld [vmem:[%s17735_s6 + $0x68] sm:$0xff] }
 0xb84   :  { %7345 = vmatmul.f32.vlgmr.msrb.gmra.mxu3 %v7238_v11 }
 0xb85   :  { %7375 = vmatpush.msrb.mxu3 %v7283_v57 }
 0xb86   :  { %v10304_v55 = vpop.permute.xlu2 %10303 }
 0xb87   :  { %7376 = vmatpush.msrb.mxu3 %v7282_v23  ;;  %v10306_v1 = vunpack.i.h.bf16 %v10304_v55  ;;  %v10305_v11 = vunpack.i.l.bf16 %v10304_v55 }
 0xb89   :  { %7377 = vmatpush.msrb.mxu3 %v7281_v44  ;;  %v7270_v44 = vld [vmem:[%s17735_s6 + $0x10] sm:$0xff] }
 0xb8b   :  { %7378 = vmatpush.msrb.mxu3 %v7280_v17  ;;  %v6424_v17 = vpop.f32.mrf.mxu3 }
 0xb8c   :  { %9527 = vmatmul.msk.f32.vlgmr.msra.gmra.mxu3 %vm7321_vm4, %v7239_v19  ;;  %v18348_v19 = vld [vmem:[#allocation30_spill] sm:$0xff] }
 0xb8d   :  { %7379 = vmatpush.msrb.mxu3 %v7279_v2  ;;  %v16338_v2 = vadd.f32 %v16101_v5, %v18348_v19  ;;  %v9543_v5 = vld [vmem:[%s17735_s6 + $0x208] sm:$0xff] }
 0xb8e   :  { %v6966_v27 = vpop.permute.xlu2 %6965 }
 0xb8f   :  { %v16261_v20 = vmax.f32 %v6892_v43, %v6966_v27  ;;  %7380 = vmatpush.msrb.mxu3 %v7278_v40  ;;  %v7015_v57 = vsel %vm111_vm0, %v10306_v1, %v6966_v27  ;;  %v9544_v40 = vld [vmem:[%s17735_s6 + $0x210] sm:$0xff] }
 0xb90   :  { %v16307_v55 = vmax.f32 %v6891_v53, %v7015_v57  ;;  %v9571_v57 = vld [vmem:[%s17735_s6 + $0x2d8] sm:$0xff] }
 0xb91   :  { %7381 = vmatpush.msrb.mxu3 %v7277_v60  ;;  %7141 = vrot.lane.b32.xlu0 %v16261_v20, %s10377_s5 }
 0xb93   :  { %7382 = vmatpush.msrb.mxu3 %v7276_v21  ;;  %v9573_v21 = vld [vmem:[%s17735_s6 + $0x2e8] sm:$0xff] }
 0xb95   :  { %7383 = vmatpush.msrb.mxu3 %v7275_v62  ;;  %v9572_v62 = vld [vmem:[%s17735_s6 + $0x2e0] sm:$0xff] }
 0xb96   :  { %v16276_v43 = vpop.permute.xlu2 %6977 }
 0xb97   :  { %v16286_v39 = vmax.f32 %v6898_v4, %v16276_v43  ;;  %7384 = vmatpush.msrb.mxu3 %v7274_v7  ;;  %v9542_v7 = vld [vmem:[%s17735_s6 + $0x200] sm:$0xff] }
 0xb99   :  { %7385 = vmatpush.msrb.mxu3 %v7273_v25  ;;  %7153 = vrot.lane.b32.xlu0 %v16286_v39, %s10377_s5  ;;  %v18350_v25 = vld [vmem:[#allocation50_spill] sm:$0xff] }
 0xb9b   :  { %7386 = vmatpush.msrb.mxu3 %v7272_v45  ;;  %v6970_v10 = vpop.permute.xlu0 %6969  ;;  %v6426_v45 = vpop.f32.mrf.mxu3 }
 0xb9c   :  { %v7016_v4 = vsel %vm111_vm0, %v10305_v11, %v6970_v10  ;;  %v16300_v23 = vmax.f32 %v6894_v28, %v6970_v10  ;;  %v16329_v28 = vpop.f32.mrf.mxu2  ;;  %v16362_v11 = vpop.f32.mrf.mxu0  ;;  %v9541_v10 = vld [vmem:[%s17735_s6 + $0x1f8] sm:$0xff] }
 0xb9d   :  { %v16311_v54 = vmax.f32 %v6893_v13, %v7016_v4  ;;  %7387 = vmatpush.msrb.mxu3 %v7271_v47  ;;  %v7268_v13 = vld [vmem:[%s17735_s6] sm:$0xff]  ;;  %v18351_v4 = vld [vmem:[#allocation25_spill] sm:$0xff] }
 0xb9e   :  { %7145 = vrot.lane.b32.xlu2 %v16300_v23, %s10377_s5  ;;  %v16322_v53 = vpop.permute.xlu2 %6848 }
 0xb9f   :  { %v10327_v63 = vpack.i.bf16 %v16307_v55, %v16311_v54  ;;  %7388 = vmatpush.msrb.mxu3 %v7270_v44  ;;  %v18352_v44 = vld [vmem:[#allocation20_spill] sm:$0xff] }
 0xba1   :  { %7389 = vmatpush.msrb.mxu3 %v7269_v29  ;;  %10328 = vrot.lane.b32.xlu1 %v10327_v63, %s10377_s5  ;;  %v6028_v29 = vadd.f32 %v18352_v44, %v18351_v4  ;;  %v18353_v63 = vld [vmem:[#allocation26_spill] sm:$0xff]  ;;  %v18355_v4 = vld [vmem:[#allocation48_spill] sm:$0xff]  ;;  %v18356_v44 = vld [vmem:[#allocation31_spill] sm:$0xff] }
 0xba3   :  { %7390 = vmatpush.msrb.mxu3 %v7268_v13  ;;  %v7126_v16 = vpop.permute.xlu0 %7125 }
 0xba4   :  { %v7188_v27 = vsel %vm5389_vm13, %v10301_v58, %v7126_v16  ;;  %v7237_v60 = vmax.f32 %v15935_v3, %v7126_v16  ;;  %v6904_v3 = vmax.f32 %v16338_v2, 0.0  ;;  %v9570_v58 = vld [vmem:[%s17735_s6 + $0x2d0] sm:$0xff]  ;;  %v16381_v19 = vpop.f32.mrf.mxu2 }
 0xba5   :  { %7448 = vmatpush.msra.mxu3 %v9545_v56  ;;  %v7236_v22 = vmax.f32 %v15898_v18, %v7188_v27  ;;  %v18349_v18 = vld [vmem:[#allocation23_spill] sm:$0xff]  ;;  %v6666_v56 = vpop.f32.mrf.mxu1  ;;  %v18354_v27 = vld [vmem:[#allocation24_spill] sm:$0xff] }
 0xba6   :  { %9529 = vmatmul.msk.f32.vlgmr.msra.gmra.mxu0 %vm7321_vm4, %v7237_v60  ;;  %v6030_v1 = vadd.f32 %v18350_v25, %v18349_v18  ;;  %v16367_v47 = vpop.permute.xlu2 %7133  ;;  %v6267_v60 = vadd.f32 %v18354_v27, %v6028_v29  ;;  %v9568_v18 = vld [vmem:[%s17735_s6 + $0x2c0] sm:$0xff]  ;;  %v6029_v29 = vadd.f32 %v18356_v44, %v18355_v4  ;;  %v18358_v27 = vld [vmem:[#allocation35_spill] sm:$0xff]  ;;  %v18360_v4 = vld [vmem:[#allocation5_spill] sm:$0xff] }
 0xba7   :  { %7449 = vmatpush.msra.mxu3 %v9544_v40  ;;  %7522 = vmatpush.msra.mxu0 %v9573_v21  ;;  %v9540_v40 = vld [vmem:[%s17735_s6 + $0x1f0] sm:$0xff]  ;;  %v7241_v21 = vmax.f32 %v16065_v37, %v16367_v47  ;;  %v9538_v37 = vld [vmem:[%s17735_s6 + $0x1e0] sm:$0xff] }
 0xba8   :  { %7391 = vmatmul.f32.vlgmr.msrb.gmra.mxu3 %v7236_v22  ;;  %v6269_v13 = vadd.f32 %v18353_v63, %v6030_v1  ;;  %v9569_v22 = vld [vmem:[%s17735_s6 + $0x2c8] sm:$0xff]  ;;  %v6507_v25 = vadd.f32 %v6424_v17, %v6267_v60  ;;  %v6429_v63 = vpop.f32.mrf.mxu3 }
 0xba9   :  { %7450 = vmatpush.msra.mxu3 %v9543_v5  ;;  %6989 = vrot.lane.b32.xlu1 %v6904_v3, %s10368_s21 }
 0xbaa   :  { %7523 = vmatpush.msra.mxu0 %v9572_v62  ;;  %v9539_v62 = vld [vmem:[%s17735_s6 + $0x1e8] sm:$0xff] }
 0xbab   :  { %7451 = vmatpush.msra.mxu3 %v9542_v7  ;;  %v16383_v16 = vpop.permute.xlu0 %6838  ;;  %v6509_v7 = vadd.f32 %v6426_v45, %v6269_v13  ;;  %v9567_v45 = vld [vmem:[%s17735_s6 + $0x2b8] sm:$0xff]  ;;  %v6480_v13 = vpop.f32.mrf.mxu0 }
 0xbac   :  { %7524 = vmatpush.msra.mxu0 %v9571_v57  ;;  %v6720_v42 = vpop.f32.mrf.mxu2 }
 0xbad   :  { %7452 = vmatpush.msra.mxu3 %v9541_v10  ;;  %v10309_v5 = vpop.permute.xlu1 %10308  ;;  %v6749_v1 = vadd.f32 %v6666_v56, %v6509_v7  ;;  %v9537_v10 = vld [vmem:[%s17735_s6 + $0x1d8] sm:$0xff]  ;;  %v9566_v56 = vld [vmem:[%s17735_s6 + $0x2b0] sm:$0xff] }
 0xbae   :  { %7525 = vmatpush.msra.mxu0 %v9570_v58  ;;  %v10310_v57 = vunpack.i.l.bf16 %v10309_v5  ;;  %v6747_v58 = vadd.f32 %v16324_v26, %v6507_v25  ;;  %v6669_v26 = vpop.f32.mrf.mxu1 }
 0xbaf   :  { %7453 = vmatpush.msra.mxu3 %v9540_v40  ;;  %9557 = vmatmul.msk.f32.vlgmr.msrb.gmra.mxu0 %vm7321_vm4, %v7241_v21  ;;  %v16414_v17 = vadd.f32 %v16383_v16, %v6749_v1  ;;  %v18357_v40 = vld [vmem:[#allocation19_spill] sm:$0xff] }
 0xbb0   :  { %7526 = vmatpush.msra.mxu0 %v9569_v22  ;;  %v6031_v60 = vadd.f32 %v18358_v27, %v18357_v40  ;;  %v9536_v22 = vld [vmem:[%s17735_s6 + $0x1d0] sm:$0xff]  ;;  %v9565_v1 = vld [vmem:[%s17735_s6 + $0x2a8] sm:$0xff] }
 0xbb1   :  { %7454 = vmatpush.msra.mxu3 %v9539_v62  ;;  %v18359_v62 = vld [vmem:[#allocation22_spill] sm:$0xff]  ;;  %v18361_v40 = vld [vmem:[#allocation36_spill] sm:$0xff] }
 0xbb2   :  { %7527 = vmatpush.msra.mxu0 %v9568_v18  ;;  %v6268_v7 = vadd.f32 %v18359_v62, %v6029_v29  ;;  %v10311_v18 = vunpack.i.h.bf16 %v10309_v5  ;;  %v6270_v44 = vadd.f32 %v18360_v4, %v6031_v60  ;;  %v6514_v27 = vadd.f32 %v6480_v13, %v18361_v40  ;;  %v9535_v5 = vld [vmem:[%s17735_s6 + $0x1c8] sm:$0xff]  ;;  %v9564_v13 = vld [vmem:[%s17735_s6 + $0x2a0] sm:$0xff] }
 0xbb3   :  { %7455 = vmatpush.msra.mxu3 %v9538_v37  ;;  %v6834_v21 = vpop.permute.xlu0 %6833  ;;  %v7018_v37 = vsel %vm111_vm0, %v10310_v57, %v16276_v43  ;;  %v6909_v43 = vmax.f32 %v16414_v17, 0.0  ;;  %v9534_v60 = vld [vmem:[%s17735_s6 + $0x1c0] sm:$0xff]  ;;  %v9801_v17 = vld [vmem:[%s17735_s6 + $0x988] sm:$0xff] }
 0xbb4   :  { %7528 = vmatpush.msra.mxu0 %v9567_v45  ;;  %v16427_v25 = vadd.f32 %v6834_v21, %v6747_v58  ;;  %v6508_v36 = vadd.f32 %v16271_v30, %v6268_v7  ;;  %v6510_v38 = vadd.f32 %v16313_v15, %v6270_v44  ;;  %v9562_v15 = vld [vmem:[%s17735_s6 + $0x290] sm:$0xff]  ;;  %v9628_v4 = vld [vmem:[%s17735_s6 + $0x480] sm:$0xff] }
 0xbb5   :  { %7456 = vmatpush.msra.mxu3 %v9537_v10  ;;  %v6974_v45 = vpop.permute.xlu1 %6973  ;;  %v18362_v44 = vld [vmem:[#allocation28_spill] sm:$0xff] }
 0xbb6   :  { %7529 = vmatpush.msra.mxu0 %v9566_v56  ;;  %v6907_v57 = vmax.f32 %v16427_v25, 0.0  ;;  %v7017_v10 = vsel %vm111_vm0, %v10311_v18, %v6974_v45  ;;  %v16442_v29 = vmax.f32 %v6896_v52, %v6974_v45  ;;  %v16453_v56 = vmax.f32 %v6897_v9, %v7018_v37  ;;  %v9532_v18 = vld [vmem:[%s17735_s6 + $0x1b0] sm:$0xff]  ;;  %v9531_v45 = vld [vmem:[%s17735_s6 + $0x1a8] sm:$0xff] }
 0xbb7   :  { %7457 = vmatpush.msra.mxu3 %v9536_v22  ;;  %v16449_v58 = vmax.f32 %v6895_v51, %v7017_v10  ;;  %v6754_v52 = vadd.f32 %v6720_v42, %v6514_v27  ;;  %v9533_v51 = vld [vmem:[%s17735_s6 + $0x1b8] sm:$0xff]  ;;  %v6748_v42 = vadd.f32 %v16281_v35, %v6508_v36  ;;  %v6750_v62 = vadd.f32 %v16329_v28, %v6510_v38  ;;  %v6431_v35 = vpop.f32.mrf.mxu3  ;;  %v9629_v28 = vld [vmem:[%s17735_s6 + $0x488] sm:$0xff]  ;;  %v18364_v36 = vld [vmem:[#allocation44_spill] sm:$0xff] }
 0xbb8   :  { %7530 = vmatpush.msra.mxu0 %v9565_v1  ;;  %v10332_v22 = vpack.i.bf16 %v6907_v57, %v6909_v43  ;;  %7149 = vrot.lane.b32.xlu0 %v16442_v29, %s10377_s5  ;;  %v9561_v1 = vld [vmem:[%s17735_s6 + $0x288] sm:$0xff]  ;;  %v6511_v40 = vadd.f32 %v6429_v63, %v18362_v44  ;;  %v9627_v63 = vld [vmem:[%s17735_s6 + $0x478] sm:$0xff] }
 0xbb9   :  { %7458 = vmatpush.msra.mxu3 %v9535_v5  ;;  %v10337_v9 = vpack.i.bf16 %v16449_v58, %v16453_v56  ;;  %v16476_v30 = vadd.f32 %v16322_v53, %v6754_v52  ;;  %v16487_v37 = vadd.f32 %v6834_v21, %v6748_v42  ;;  %v16500_v27 = vadd.f32 %v16383_v16, %v6750_v62  ;;  %v18363_v5 = vld [vmem:[#allocation51_spill] sm:$0xff]  ;;  %v9560_v16 = vld [vmem:[%s17735_s6 + $0x280] sm:$0xff] }
 0xbba   :  { %7531 = vmatpush.msra.mxu0 %v9564_v13  ;;  %10333 = vrot.lane.b32.xlu1 %v10332_v22, %s10368_s21  ;;  %v6512_v10 = vadd.f32 %v16362_v11, %v18363_v5  ;;  %v6671_v13 = vpop.f32.mrf.mxu1  ;;  %v6513_v52 = vadd.f32 %v6431_v35, %v18364_v36  ;;  %v6751_v22 = vadd.f32 %v6669_v26, %v6511_v40  ;;  %v9699_v25 = vld [vmem:[%s17735_s6 + $0x688] sm:$0xff] }
 0xbbb   :  { %7459 = vmatpush.msra.mxu3 %v9534_v60  ;;  %v6844_v7 = vpop.permute.xlu0 %6843  ;;  %10338 = vrot.lane.b32.xlu2 %v10337_v9, %s10377_s5  ;;  %v6914_v60 = vmax.f32 %v16476_v30, 0.0  ;;  %v6908_v38 = vmax.f32 %v16487_v37, 0.0  ;;  %v9583_v9 = vld [vmem:[%s17735_s6 + $0x338] sm:$0x1f]  ;;  %v9802_v37 = vld [vmem:[%s17735_s6 + $0x990] sm:$0xff] }
 0xbbc   :  { %7532 = vmatpush.msra.mxu0 %v9563_v61  ;;  %7670 = vmatpush.msra.mxu2 %v9629_v28  ;;  %v9530_v61 = vld [vmem:[%s17735_s6 + $0x1a0] sm:$0xff]  ;;  %v6752_v11 = vadd.f32 %v16381_v19, %v6512_v10  ;;  %v6753_v26 = vadd.f32 %v6671_v13, %v6513_v52  ;;  %v16529_v42 = vadd.f32 %v6844_v7, %v6751_v22  ;;  %v9559_v19 = vld [vmem:[%s17735_s6 + $0x278] sm:$0xff]  ;;  %v9625_v28 = vld [vmem:[%s17735_s6 + $0x468] sm:$0xff] }
 0xbbd   :  { %7460 = vmatpush.msra.mxu3 %v9533_v51  ;;  %v16502_v21 = vpop.permute.xlu1 %10313  ;;  %v6910_v51 = vmax.f32 %v16500_v27, 0.0  ;;  %v9623_v52 = vld [vmem:[%s17735_s6 + $0x458] sm:$0xff]  ;;  %v9730_v27 = vld [vmem:[%s17735_s6 + $0x770] sm:$0xff] }
 0xbbe   :  { %7533 = vmatpush.msra.mxu0 %v9562_v15  ;;  %7671 = vmatpush.msra.mxu2 %v9628_v4  ;;  %v9626_v15 = vld [vmem:[%s17735_s6 + $0x470] sm:$0xff]  ;;  %v16537_v62 = vadd.f32 %v6844_v7, %v6752_v11  ;;  %v16546_v35 = vadd.f32 %v16322_v53, %v6753_v26  ;;  %v9581_v53 = vld [vmem:[%s17735_s6 + $0x328] sm:$0xff]  ;;  %v9639_v4 = vld [vmem:[%s17735_s6 + $0x4d8] sm:$0x1f]  ;;  %v6911_v44 = vmax.f32 %v16529_v42, 0.0  ;;  %v10315_v22 = vunpack.i.l.bf16 %v16502_v21 }
 0xbbf   :  { %7461 = vmatpush.msra.mxu3 %v9532_v18  ;;  %v9582_v18 = vld [vmem:[%s17735_s6 + $0x330] sm:$0xff]  ;;  %v9795_v42 = vld [vmem:[%s17735_s6 + $0x958] sm:$0xff] }
 0xbc0   :  { %7534 = vmatpush.msra.mxu0 %v9561_v1  ;;  %7009 = vrot.lane.b32.xlu0 %v6914_v60, %s10368_s21  ;;  %v9558_v7 = vld [vmem:[%s17735_s6 + $0x270] sm:$0xff]  ;;  %v6912_v5 = vmax.f32 %v16537_v62, 0.0  ;;  %v6913_v36 = vmax.f32 %v16546_v35, 0.0 }
 0xbc1   :  { %7462 = vmatpush.msra.mxu3 %v9531_v45  ;;  %7672 = vmatpush.msra.mxu2 %v9627_v63  ;;  %v9624_v45 = vld [vmem:[%s17735_s6 + $0x460] sm:$0xff]  ;;  %v9638_v63 = vld [vmem:[%s17735_s6 + $0x4d0] sm:$0xff] }
 0xbc2   :  { %7535 = vmatpush.msra.mxu0 %v9560_v16  ;;  %6997 = vrot.lane.b32.xlu1 %v6908_v38, %s10368_s21  ;;  %v9580_v16 = vld [vmem:[%s17735_s6 + $0x320] sm:$0xff]  ;;  %v10342_v26 = vpack.i.bf16 %v6911_v44, %v6913_v36  ;;  %v9768_v62 = vld [vmem:[%s17735_s6 + $0x890] sm:$0xff] }
 0xbc3   :  { %7463 = vmatpush.msra.mxu3 %v9530_v61  ;;  %v16549_v1 = vpop.permute.xlu0 %7137  ;;  %7001 = vrot.lane.b32.xlu2 %v6910_v51, %s10368_s21  ;;  %v9794_v35 = vld [vmem:[%s17735_s6 + $0x950] sm:$0xff] }
 0xbc4   :  { %7536 = vmatpush.msra.mxu0 %v9559_v19  ;;  %7673 = vmatpush.msra.mxu2 %v9626_v15 }
 0xbc5   :  { %9584 = vmatpush.msk.msrb.mxu3 %vm7325_vm3, %v9583_v9  ;;  %v10319_v40 = vpop.permute.xlu1 %10318  ;;  %v9579_v9 = vld [vmem:[%s17735_s6 + $0x318] sm:$0xff] }
 0xbc6   :  { %v10321_v10 = vunpack.i.h.bf16 %v10319_v40  ;;  %v10320_v13 = vunpack.i.l.bf16 %v10319_v40  ;;  %7537 = vmatpush.msra.mxu0 %v9558_v7  ;;  %7674 = vmatpush.msra.mxu2 %v9625_v28  ;;  %v6986_v7 = vpop.permute.xlu2 %6985  ;;  %v9636_v40 = vld [vmem:[%s17735_s6 + $0x4c0] sm:$0xff] }
 0xbc7   :  { %7549 = vmatpush.msrb.mxu3 %v9582_v18  ;;  %v9637_v18 = vld [vmem:[%s17735_s6 + $0x4c8] sm:$0xff]  ;;  %v16652_v59 = vmax.f32 %v6902_v32, %v6986_v7 }
 0xbc8   :  { %9640 = vmatpush.msk.msrb.mxu0 %vm7325_vm3, %v9639_v4  ;;  %v7191_v61 = vsel %vm5389_vm13, %v10321_v10, %v16549_v1  ;;  %v7190_v11 = vsel %vm5389_vm13, %v10320_v13, %v16367_v47  ;;  %7005 = vrot.lane.b32.xlu0 %v6912_v5, %s10368_s21  ;;  %v9578_v47 = vld [vmem:[%s17735_s6 + $0x310] sm:$0xff]  ;;  %v9577_v4 = vld [vmem:[%s17735_s6 + $0x308] sm:$0xff] }
 0xbc9   :  { %7550 = vmatpush.msrb.mxu3 %v9581_v53  ;;  %7675 = vmatpush.msra.mxu2 %v9624_v45  ;;  %v7242_v19 = vmax.f32 %v16095_v8, %v7191_v61  ;;  %v7240_v15 = vmax.f32 %v16082_v12, %v7190_v11  ;;  %v9622_v12 = vld [vmem:[%s17735_s6 + $0x450] sm:$0xff]  ;;  %v10316_v8 = vunpack.i.h.bf16 %v16502_v21  ;;  %v7020_v53 = vsel %vm111_vm0, %v10315_v22, %v6986_v7  ;;  %v9621_v10 = vld [vmem:[%s17735_s6 + $0x448] sm:$0xff]  ;;  %v9575_v22 = vld [vmem:[%s17735_s6 + $0x2f8] sm:$0xff] }
 0xbca   :  { %7697 = vmatpush.msrb.mxu0 %v9638_v63  ;;  %v9635_v63 = vld [vmem:[%s17735_s6 + $0x4b8] sm:$0xff]  ;;  %v16640_v0 = vmax.f32 %v6901_v33, %v7020_v53  ;;  %v9634_v33 = vld [vmem:[%s17735_s6 + $0x4b0] sm:$0xff]  ;;  %v9633_v32 = vld [vmem:[%s17735_s6 + $0x4a8] sm:$0xff]  ;;  %v7243_v61 = vmax.f32 %v16099_v34, %v16549_v1 }
 0xbcb   :  { %7551 = vmatpush.msrb.mxu3 %v9580_v16  ;;  %7676 = vmatpush.msra.mxu2 %v9623_v52  ;;  %v16605_v28 = vpop.permute.xlu0 %6993  ;;  %v9576_v16 = vld [vmem:[%s17735_s6 + $0x300] sm:$0xff]  ;;  %v9611_v11 = vld [vmem:[%s17735_s6 + $0x408] sm:$0x1f]  ;;  %v9615_v53 = vld [vmem:[%s17735_s6 + $0x418] sm:$0xff] }
 0xbcc   :  { %10343 = vrot.lane.b32.xlu2 %v10342_v26, %s10368_s21  ;;  %7464 = vmatmul.f32.vlgmr.msra.gmra.mxu3 %v7240_v15  ;;  %v16625_v21 = vmax.f32 %v6906_v41, %v16605_v28  ;;  %v9620_v41 = vld [vmem:[%s17735_s6 + $0x440] sm:$0xff]  ;;  %v9617_v1 = vld [vmem:[%s17735_s6 + $0x428] sm:$0xff]  ;;  %v9609_v15 = vld [vmem:[%s17735_s6 + $0x3f8] sm:$0xff] }
 0xbcd   :  { %7552 = vmatpush.msrb.mxu3 %v9579_v9  ;;  %7538 = vmatmul.f32.vlgmr.msra.gmra.mxu0 %v7242_v19  ;;  %v6982_v45 = vpop.permute.xlu1 %6981  ;;  %v9618_v9 = vld [vmem:[%s17735_s6 + $0x430] sm:$0xff]  ;;  %v9632_v26 = vld [vmem:[%s17735_s6 + $0x4a0] sm:$0xff]  ;;  %v9631_v19 = vld [vmem:[%s17735_s6 + $0x498] sm:$0xff] }
 0xbce   :  { %7698 = vmatpush.msrb.mxu0 %v9637_v18  ;;  %v7019_v13 = vsel %vm111_vm0, %v10316_v8, %v6982_v45  ;;  %7677 = vmatpush.msra.mxu2 %v9622_v12  ;;  %v9610_v34 = vld [vmem:[%s17735_s6 + $0x400] sm:$0xff]  ;;  %v9601_v18 = vld [vmem:[%s17735_s6 + $0x3b8] sm:$0xff]  ;;  %v16704_v7 = vmax.f32 %v6900_v49, %v6982_v45  ;;  %v9608_v12 = vld [vmem:[%s17735_s6 + $0x3f0] sm:$0xff] }
 0xbcf   :  { %7553 = vmatpush.msrb.mxu3 %v9578_v47  ;;  %v16636_v52 = vmax.f32 %v6899_v46, %v7019_v13  ;;  %v9574_v46 = vld [vmem:[%s17735_s6 + $0x2f0] sm:$0xff]  ;;  %v9616_v47 = vld [vmem:[%s17735_s6 + $0x420] sm:$0xff]  ;;  %7596 = vmatpush.msra.mxu1 %v9601_v18  ;;  %v9689_v18 = vld [vmem:[%s17735_s6 + $0x648] sm:$0xff] }
 0xbd0   :  { %7699 = vmatpush.msrb.mxu0 %v9636_v40  ;;  %7169 = vrot.lane.b32.xlu0 %v16625_v21, %s10377_s5  ;;  %v9630_v8 = vld [vmem:[%s17735_s6 + $0x490] sm:$0xff]  ;;  %v9606_v13 = vld [vmem:[%s17735_s6 + $0x3e0] sm:$0xff] }
 0xbd1   :  { %7554 = vmatpush.msrb.mxu3 %v9577_v4  ;;  %7678 = vmatpush.msra.mxu2 %v9621_v10  ;;  %v10347_v24 = vpack.i.bf16 %v16636_v52, %v16640_v0  ;;  %v9600_v49 = vld [vmem:[%s17735_s6 + $0x3b0] sm:$0xff]  ;;  %v9607_v4 = vld [vmem:[%s17735_s6 + $0x3e8] sm:$0xff] }
 0xbd2   :  { %7700 = vmatpush.msrb.mxu0 %v9635_v63  ;;  %v9614_v40 = vld [vmem:[%s17735_s6 + $0x410] sm:$0xff]  ;;  %v9599_v10 = vld [vmem:[%s17735_s6 + $0x3a8] sm:$0xff]  ;;  %7597 = vmatpush.msra.mxu1 %v9600_v49  ;;  %v9593_v49 = vld [vmem:[%s17735_s6 + $0x378] sm:$0xff] }
 0xbd3   :  { %7555 = vmatpush.msrb.mxu3 %v9576_v16  ;;  %7679 = vmatpush.msra.mxu2 %v9620_v41  ;;  %v9694_v45 = vld [vmem:[%s17735_s6 + $0x670] sm:$0xff]  ;;  %v9685_v16 = vld [vmem:[%s17735_s6 + $0x628] sm:$0xff]  ;;  %v9598_v41 = vld [vmem:[%s17735_s6 + $0x3a0] sm:$0xff] }
 0xbd4   :  { %7161 = vrot.lane.b32.xlu2 %v16652_v59, %s10377_s5  ;;  %10348 = vrot.lane.b32.xlu1 %v10347_v24, %s10377_s5  ;;  %v9693_v63 = vld [vmem:[%s17735_s6 + $0x668] sm:$0xff]  ;;  %v9684_v24 = vld [vmem:[%s17735_s6 + $0x620] sm:$0xff] }
 0xbd5   :  { %7556 = vmatpush.msrb.mxu3 %v9575_v22  ;;  %7701 = vmatpush.msrb.mxu0 %v9634_v33  ;;  %v9605_v22 = vld [vmem:[%s17735_s6 + $0x3d8] sm:$0xff]  ;;  %v9692_v33 = vld [vmem:[%s17735_s6 + $0x660] sm:$0xff] }
 0xbd6   :  { %7680 = vmatpush.msra.mxu2 %v9619_v48  ;;  %7598 = vmatpush.msra.mxu1 %v9599_v10  ;;  %v9604_v48 = vld [vmem:[%s17735_s6 + $0x3d0] sm:$0xff] }
 0xbd7   :  { %7557 = vmatpush.msrb.mxu3 %v9574_v46  ;;  %7702 = vmatpush.msrb.mxu0 %v9633_v32  ;;  %v9597_v46 = vld [vmem:[%s17735_s6 + $0x398] sm:$0xff]  ;;  %v9592_v10 = vld [vmem:[%s17735_s6 + $0x370] sm:$0xff] }
 0xbd8   :  { %9585 = vmatmul.msk.f32.vlgmr.msrb.gmra.mxu3 %vm7321_vm4, %v7243_v61  ;;  %7681 = vmatpush.msra.mxu2 %v9618_v9  ;;  %v9683_v32 = vld [vmem:[%s17735_s6 + $0x618] sm:$0xff]  ;;  %v9603_v61 = vld [vmem:[%s17735_s6 + $0x3c8] sm:$0xff]  ;;  %v9596_v9 = vld [vmem:[%s17735_s6 + $0x390] sm:$0xff] }
 0xbd9   :  { %9612 = vmatpush.msk.msra.mxu3 %vm7325_vm3, %v9611_v11  ;;  %7703 = vmatpush.msrb.mxu0 %v9632_v26  ;;  %v9691_v11 = vld [vmem:[%s17735_s6 + $0x658] sm:$0xff]  ;;  %v9682_v26 = vld [vmem:[%s17735_s6 + $0x610] sm:$0xff] }
 0xbda   :  { %7682 = vmatpush.msra.mxu2 %v9617_v1  ;;  %7599 = vmatpush.msra.mxu1 %v9598_v41  ;;  %v9595_v1 = vld [vmem:[%s17735_s6 + $0x388] sm:$0xff] }
 0xbdb   :  { %7623 = vmatpush.msra.mxu3 %v9610_v34  ;;  %7704 = vmatpush.msrb.mxu0 %v9631_v19  ;;  %v9690_v34 = vld [vmem:[%s17735_s6 + $0x650] sm:$0xff]  ;;  %v9602_v19 = vld [vmem:[%s17735_s6 + $0x3c0] sm:$0xff]  ;;  %v9591_v41 = vld [vmem:[%s17735_s6 + $0x368] sm:$0xff] }
 0xbdc   :  { %7683 = vmatpush.msra.mxu2 %v9616_v47  ;;  %7157 = vrot.lane.b32.xlu1 %v16704_v7, %s10377_s5  ;;  %v9657_v47 = vld [vmem:[%s17735_s6 + $0x558] sm:$0xff] }
 0xbdd   :  { %7624 = vmatpush.msra.mxu3 %v9609_v15  ;;  %7705 = vmatpush.msrb.mxu0 %v9630_v8  ;;  %v9681_v15 = vld [vmem:[%s17735_s6 + $0x608] sm:$0xff]  ;;  %v9680_v8 = vld [vmem:[%s17735_s6 + $0x600] sm:$0xff] }
 0xbde   :  { %7684 = vmatpush.msra.mxu2 %v9615_v53  ;;  %7600 = vmatpush.msra.mxu1 %v9597_v46  ;;  %v9656_v53 = vld [vmem:[%s17735_s6 + $0x550] sm:$0xff]  ;;  %v9590_v46 = vld [vmem:[%s17735_s6 + $0x360] sm:$0xff] }
 0xbdf   :  { %7625 = vmatpush.msra.mxu3 %v9608_v12  ;;  %9696 = vmatpush.msk.msra.mxu0 %vm7325_vm3, %v9695_v50  ;;  %v9594_v12 = vld [vmem:[%s17735_s6 + $0x380] sm:$0xff] }
 0xbe0   :  { %7685 = vmatpush.msra.mxu2 %v9614_v40  ;;  %7601 = vmatpush.msra.mxu1 %v9596_v9  ;;  %v9688_v50 = vld [vmem:[%s17735_s6 + $0x640] sm:$0xff]  ;;  %v9655_v40 = vld [vmem:[%s17735_s6 + $0x548] sm:$0xff] }
 0xbe1   :  { %7626 = vmatpush.msra.mxu3 %v9607_v4  ;;  %7845 = vmatpush.msra.mxu0 %v9694_v45  ;;  %v9679_v4 = vld [vmem:[%s17735_s6 + $0x5f8] sm:$0xff]  ;;  %v9651_v9 = vld [vmem:[%s17735_s6 + $0x528] sm:$0xff] }
 0xbe2   :  { %7818 = vmatpush.msrb.mxu2 %v9685_v16  ;;  %7602 = vmatpush.msra.mxu1 %v9595_v1  ;;  %v9687_v45 = vld [vmem:[%s17735_s6 + $0x638] sm:$0xff]  ;;  %v9678_v16 = vld [vmem:[%s17735_s6 + $0x5f0] sm:$0xff] }
 0xbe3   :  { %7627 = vmatpush.msra.mxu3 %v9606_v13  ;;  %7846 = vmatpush.msra.mxu0 %v9693_v63  ;;  %v9654_v13 = vld [vmem:[%s17735_s6 + $0x540] sm:$0xff]  ;;  %v9686_v63 = vld [vmem:[%s17735_s6 + $0x630] sm:$0xff] }
 0xbe4   :  { %7819 = vmatpush.msrb.mxu2 %v9684_v24  ;;  %7603 = vmatpush.msra.mxu1 %v9594_v12  ;;  %v9653_v24 = vld [vmem:[%s17735_s6 + $0x538] sm:$0xff]  ;;  %v9674_v1 = vld [vmem:[%s17735_s6 + $0x5d0] sm:$0xff] }
 0xbe5   :  { %7628 = vmatpush.msra.mxu3 %v9605_v22  ;;  %7847 = vmatpush.msra.mxu0 %v9692_v33  ;;  %v9677_v22 = vld [vmem:[%s17735_s6 + $0x5e8] sm:$0xff]  ;;  %v16841_v33 = vpop.permute.xlu2 %10323 }
 0xbe6   :  { %7820 = vmatpush.msrb.mxu2 %v9683_v32  ;;  %7604 = vmatpush.msra.mxu1 %v9593_v49  ;;  %v9652_v32 = vld [vmem:[%s17735_s6 + $0x530] sm:$0xff]  ;;  %v9667_v49 = vld [vmem:[%s17735_s6 + $0x5a8] sm:$0x1f] }
 0xbe7   :  { %7629 = vmatpush.msra.mxu3 %v9604_v48  ;;  %7848 = vmatpush.msra.mxu0 %v9691_v11  ;;  %v9676_v48 = vld [vmem:[%s17735_s6 + $0x5e0] sm:$0xff]  ;;  %v9675_v11 = vld [vmem:[%s17735_s6 + $0x5d8] sm:$0xff] }
 0xbe8   :  { %7821 = vmatpush.msrb.mxu2 %v9682_v26  ;;  %7605 = vmatpush.msra.mxu1 %v9592_v10  ;;  %v9650_v26 = vld [vmem:[%s17735_s6 + $0x520] sm:$0xff]  ;;  %v9670_v10 = vld [vmem:[%s17735_s6 + $0x5b0] sm:$0xff] }
 0xbe9   :  { %7630 = vmatpush.msra.mxu3 %v9603_v61  ;;  %7849 = vmatpush.msra.mxu0 %v9690_v34  ;;  %v9589_v61 = vld [vmem:[%s17735_s6 + $0x358] sm:$0xff]  ;;  %v9588_v34 = vld [vmem:[%s17735_s6 + $0x350] sm:$0xff] }
 0xbea   :  { %7822 = vmatpush.msrb.mxu2 %v9681_v15  ;;  %7606 = vmatpush.msra.mxu1 %v9591_v41  ;;  %v9587_v15 = vld [vmem:[%s17735_s6 + $0x348] sm:$0xff]  ;;  %v9644_v41 = vld [vmem:[%s17735_s6 + $0x4f0] sm:$0xff] }
 0xbeb   :  { %7631 = vmatpush.msra.mxu3 %v9602_v19  ;;  %7850 = vmatpush.msra.mxu0 %v9689_v18  ;;  %v9649_v19 = vld [vmem:[%s17735_s6 + $0x518] sm:$0xff] }
 0xbec   :  { %7823 = vmatpush.msrb.mxu2 %v9680_v8  ;;  %7607 = vmatpush.msra.mxu1 %v9590_v46  ;;  %v9648_v8 = vld [vmem:[%s17735_s6 + $0x510] sm:$0xff] }
 0xbed   :  { %7744 = vmatpush.msrb.mxu3 %v9657_v47  ;;  %7851 = vmatpush.msra.mxu0 %v9688_v50  ;;  %v9673_v47 = vld [vmem:[%s17735_s6 + $0x5c8] sm:$0xff]  ;;  %v9672_v50 = vld [vmem:[%s17735_s6 + $0x5c0] sm:$0xff] }
 0xbee   :  { %7824 = vmatpush.msrb.mxu2 %v9679_v4  ;;  %7608 = vmatpush.msra.mxu1 %v9589_v61  ;;  %v9671_v4 = vld [vmem:[%s17735_s6 + $0x5b8] sm:$0xff]  ;;  %v9642_v61 = vld [vmem:[%s17735_s6 + $0x4e0] sm:$0xff] }
 0xbef   :  { %7745 = vmatpush.msrb.mxu3 %v9656_v53  ;;  %7852 = vmatpush.msra.mxu0 %v9687_v45  ;;  %v9586_v53 = vld [vmem:[%s17735_s6 + $0x340] sm:$0xff] }
 0xbf0   :  { %7825 = vmatpush.msrb.mxu2 %v9678_v16  ;;  %7609 = vmatpush.msra.mxu1 %v9588_v34  ;;  %v9666_v45 = vld [vmem:[%s17735_s6 + $0x5a0] sm:$0xff]  ;;  %v9665_v16 = vld [vmem:[%s17735_s6 + $0x598] sm:$0xff]  ;;  %v9659_v34 = vld [vmem:[%s17735_s6 + $0x568] sm:$0xff] }
 0xbf1   :  { %7746 = vmatpush.msrb.mxu3 %v9655_v40  ;;  %7853 = vmatpush.msra.mxu0 %v9686_v63  ;;  %v9646_v40 = vld [vmem:[%s17735_s6 + $0x500] sm:$0xff]  ;;  %v9664_v63 = vld [vmem:[%s17735_s6 + $0x590] sm:$0xff] }
 0xbf2   :  { %7826 = vmatpush.msrb.mxu2 %v9677_v22  ;;  %7610 = vmatpush.msra.mxu1 %v9587_v15  ;;  %v9663_v22 = vld [vmem:[%s17735_s6 + $0x588] sm:$0xff] }
 0xbf3   :  { %7747 = vmatpush.msrb.mxu3 %v9654_v13  ;;  %v9645_v13 = vld [vmem:[%s17735_s6 + $0x4f8] sm:$0xff] }
 0xbf4   :  { %7827 = vmatpush.msrb.mxu2 %v9676_v48  ;;  %7611 = vmatpush.msra.mxu1 %v9586_v53  ;;  %v9643_v48 = vld [vmem:[%s17735_s6 + $0x4e8] sm:$0xff] }
 0xbf5   :  { %7748 = vmatpush.msrb.mxu3 %v9653_v24 }
 0xbf6   :  { %7828 = vmatpush.msrb.mxu2 %v9675_v11  ;;  %9668 = vmatpush.msk.msrb.mxu1 %vm7325_vm3, %v9667_v49  ;;  %v9741_v11 = vld [vmem:[%s17735_s6 + $0x7c8] sm:$0xff] }
 0xbf7   :  { %7749 = vmatpush.msrb.mxu3 %v9652_v32  ;;  %v9662_v32 = vld [vmem:[%s17735_s6 + $0x580] sm:$0xff] }
 0xbf8   :  { %7829 = vmatpush.msrb.mxu2 %v9674_v1  ;;  %v16879_v18 = vpop.permute.xlu2 %7145  ;;  %7771 = vmatpush.msrb.mxu1 %v9666_v45 }
 0xbf9   :  { %7750 = vmatpush.msrb.mxu3 %v9651_v9  ;;  %v7247_v12 = vmax.f32 %v16300_v23, %v16879_v18  ;;  %v9647_v23 = vld [vmem:[%s17735_s6 + $0x508] sm:$0xff]  ;;  %v9660_v9 = vld [vmem:[%s17735_s6 + $0x570] sm:$0xff] }
 0xbfa   :  { %7830 = vmatpush.msrb.mxu2 %v9673_v47  ;;  %7772 = vmatpush.msrb.mxu1 %v9665_v16  ;;  %v9738_v47 = vld [vmem:[%s17735_s6 + $0x7b0] sm:$0xff] }
 0xbfb   :  { %7751 = vmatpush.msrb.mxu3 %v9650_v26  ;;  %9641 = vmatmul.msk.f32.vlgmr.msrb.gmra.mxu0 %vm7321_vm4, %v7247_v12  ;;  %v9740_v26 = vld [vmem:[%s17735_s6 + $0x7c0] sm:$0xff] }
 0xbfc   :  { %7831 = vmatpush.msrb.mxu2 %v9672_v50  ;;  %7773 = vmatpush.msrb.mxu1 %v9664_v63  ;;  %v9658_v12 = vld [vmem:[%s17735_s6 + $0x560] sm:$0xff]  ;;  %v9735_v50 = vld [vmem:[%s17735_s6 + $0x798] sm:$0xff] }
 0xbfd   :  { %7752 = vmatpush.msrb.mxu3 %v9649_v19  ;;  %v9739_v19 = vld [vmem:[%s17735_s6 + $0x7b8] sm:$0xff] }
 0xbfe   :  { %7832 = vmatpush.msrb.mxu2 %v9671_v4  ;;  %7774 = vmatpush.msrb.mxu1 %v9663_v22  ;;  %v9751_v63 = vld [vmem:[%s17735_s6 + $0x818] sm:$0x1f]  ;;  %v10325_v22 = vunpack.i.l.bf16 %v16841_v33 }
 0xbff   :  { %7753 = vmatpush.msrb.mxu3 %v9648_v8  ;;  %v9737_v8 = vld [vmem:[%s17735_s6 + $0x7a8] sm:$0xff] }
 0xc00   :  { %7833 = vmatpush.msrb.mxu2 %v9670_v10  ;;  %7775 = vmatpush.msrb.mxu1 %v9662_v32  ;;  %v9712_v32 = vld [vmem:[%s17735_s6 + $0x6f0] sm:$0xff] }
 0xc01   :  { %7754 = vmatpush.msrb.mxu3 %v9647_v23 }
 0xc03   :  { %7755 = vmatpush.msrb.mxu3 %v9646_v40  ;;  %v7142_v24 = vpop.permute.xlu0 %7141  ;;  %v9734_v40 = vld [vmem:[%s17735_s6 + $0x790] sm:$0xff] }
 0xc04   :  { %v7245_v46 = vmax.f32 %v16261_v20, %v7142_v24  ;;  %v9661_v20 = vld [vmem:[%s17735_s6 + $0x578] sm:$0xff] }
 0xc05   :  { %7756 = vmatpush.msrb.mxu3 %v9645_v13  ;;  %7776 = vmatpush.msrb.mxu1 %v9661_v20  ;;  %v9749_v20 = vld [vmem:[%s17735_s6 + $0x808] sm:$0xff] }
 0xc06   :  { %9613 = vmatmul.msk.f32.vlgmr.msra.gmra.mxu3 %vm7321_vm4, %v7245_v46  ;;  %v10326_v46 = vunpack.i.h.bf16 %v16841_v33 }
 0xc07   :  { %7757 = vmatpush.msrb.mxu3 %v9644_v41  ;;  %7777 = vmatpush.msrb.mxu1 %v9660_v9  ;;  %v9733_v41 = vld [vmem:[%s17735_s6 + $0x788] sm:$0xff]  ;;  %v9731_v9 = vld [vmem:[%s17735_s6 + $0x778] sm:$0xff] }
 0xc09   :  { %7758 = vmatpush.msrb.mxu3 %v9643_v48  ;;  %7778 = vmatpush.msrb.mxu1 %v9659_v34  ;;  %v7022_v48 = vsel %vm111_vm0, %v10325_v22, %v16605_v28  ;;  %v9706_v22 = vld [vmem:[%s17735_s6 + $0x6c0] sm:$0xff] }
 0xc0a   :  { %v17024_v34 = vmax.f32 %v6905_v14, %v7022_v48  ;;  %v9747_v14 = vld [vmem:[%s17735_s6 + $0x7f8] sm:$0xff] }
 0xc0b   :  { %7759 = vmatpush.msrb.mxu3 %v9642_v61  ;;  %v7154_v1 = vpop.permute.xlu0 %7153  ;;  %7779 = vmatpush.msrb.mxu1 %v9658_v12  ;;  %v9729_v12 = vld [vmem:[%s17735_s6 + $0x768] sm:$0xff] }
 0xc0c   :  { %v7251_v15 = vmax.f32 %v16286_v39, %v7154_v1  ;;  %v9736_v39 = vld [vmem:[%s17735_s6 + $0x7a0] sm:$0xff] }
 0xc0d   :  { %7966 = vmatpush.msra.mxu3 %v9741_v11 }
 0xc0e   :  { %9697 = vmatmul.msk.f32.vlgmr.msra.gmra.mxu0 %vm7321_vm4, %v7251_v15 }
 0xc0f   :  { %7967 = vmatpush.msra.mxu3 %v9740_v26  ;;  %v9711_v26 = vld [vmem:[%s17735_s6 + $0x6e8] sm:$0xff] }
 0xc11   :  { %7968 = vmatpush.msra.mxu3 %v9739_v19 }
 0xc13   :  { %7969 = vmatpush.msra.mxu3 %v9738_v47  ;;  %v10329_v53 = vpop.permute.xlu1 %10328  ;;  %v9746_v47 = vld [vmem:[%s17735_s6 + $0x7f0] sm:$0xff] }
 0xc14   :  { %v10331_v49 = vunpack.i.h.bf16 %v10329_v53  ;;  %v10330_v23 = vunpack.i.l.bf16 %v10329_v53  ;;  %v9745_v53 = vld [vmem:[%s17735_s6 + $0x7e8] sm:$0xff] }
 0xc15   :  { %7970 = vmatpush.msra.mxu3 %v9737_v8  ;;  %v16973_v4 = vpop.permute.xlu2 %10338  ;;  %v9709_v8 = vld [vmem:[%s17735_s6 + $0x6d8] sm:$0xff] }
 0xc16   :  { %v7192_v45 = vsel %vm5389_vm13, %v10331_v49, %v7142_v24  ;;  %v7193_v10 = vsel %vm5389_vm13, %v10330_v23, %v16879_v18  ;;  %v10340_v24 = vunpack.i.l.bf16 %v16973_v4  ;;  %v9713_v18 = vld [vmem:[%s17735_s6 + $0x6f8] sm:$0xff]  ;;  %v9708_v49 = vld [vmem:[%s17735_s6 + $0x6d0] sm:$0xff] }
 0xc17   :  { %7971 = vmatpush.msra.mxu3 %v9736_v39  ;;  %v7244_v13 = vmax.f32 %v16307_v55, %v7192_v45  ;;  %v7246_v16 = vmax.f32 %v16311_v54, %v7193_v10  ;;  %v9750_v55 = vld [vmem:[%s17735_s6 + $0x810] sm:$0xff]  ;;  %v9732_v54 = vld [vmem:[%s17735_s6 + $0x780] sm:$0xff]  ;;  %v9721_v23 = vld [vmem:[%s17735_s6 + $0x738] sm:$0xff] }
 0xc18   :  { %v7195_v11 = vsel %vm5389_vm13, %v10340_v24, %v7154_v1  ;;  %v18365_v1 = vmax.f32 %v16114_v6, 0.0  ;;  %v9722_v39 = vld [vmem:[%s17735_s6 + $0x740] sm:$0xff]  ;;  %v9727_v10 = vld [vmem:[%s17735_s6 + $0x758] sm:$0xff]  ;;  %v9719_v24 = vld [vmem:[%s17735_s6 + $0x728] sm:$0xff] }
 0xc19   :  { %7972 = vmatpush.msra.mxu3 %v9735_v50  ;;  %7612 = vmatmul.f32.vlgmr.msra.gmra.mxu1 %v7244_v13  ;;  %v7250_v6 = vmax.f32 %v16453_v56, %v7195_v11  ;;  %v9710_v56 = vld [vmem:[%s17735_s6 + $0x6e0] sm:$0xff]  ;;  %v9707_v13 = vld [vmem:[%s17735_s6 + $0x6c8] sm:$0xff]  ;;  %v9807_v11 = vld [vmem:[%s17735_s6 + $0x9b8] sm:$0x1f] }
 0xc1a   :  { %7686 = vmatmul.f32.vlgmr.msra.gmra.mxu2 %v7246_v16  ;;  %7892 = vmatpush.msra.mxu1 %v9713_v18  ;;  %v9728_v50 = vld [vmem:[%s17735_s6 + $0x760] sm:$0xff]  ;;  %v9720_v16 = vld [vmem:[%s17735_s6 + $0x730] sm:$0xff]  ;;  %v10341_v18 = vunpack.i.h.bf16 %v16973_v4  ;;  %v9705_v4 = vld [vmem:[%s17735_s6 + $0x6b8] sm:$0xff] }
 0xc1b   :  { %7973 = vmatpush.msra.mxu3 %v9734_v40  ;;  %9752 = vmatpush.msk.msra.mxu2 %vm7325_vm3, %v9751_v63  ;;  %v6990_v61 = vpop.permute.xlu1 %6989  ;;  %v9744_v45 = vld [vmem:[%s17735_s6 + $0x7e0] sm:$0xff]  ;;  %v9743_v63 = vld [vmem:[%s17735_s6 + $0x7d8] sm:$0xff] }
 0xc1c   :  { %v7021_v33 = vsel %vm111_vm0, %v10326_v46, %v6990_v61  ;;  %v17014_v28 = vmax.f32 %v6904_v3, %v6990_v61  ;;  %v9748_v3 = vld [vmem:[%s17735_s6 + $0x800] sm:$0xff]  ;;  %7893 = vmatpush.msra.mxu1 %v9712_v32 }
 0xc1d   :  { %7974 = vmatpush.msra.mxu3 %v9733_v41  ;;  %7993 = vmatpush.msra.mxu2 %v9750_v55  ;;  %v17028_v19 = vmax.f32 %v18365_v1, %v7021_v33  ;;  %v17030_v2 = vpop.permute.xlu2 %7001  ;;  %v9726_v41 = vld [vmem:[%s17735_s6 + $0x750] sm:$0xff]  ;;  %v9718_v46 = vld [vmem:[%s17735_s6 + $0x720] sm:$0xff]  ;;  %v9717_v33 = vld [vmem:[%s17735_s6 + $0x718] sm:$0xff] }
 0xc1e   :  { %v17038_v15 = vmax.f32 %v6910_v51, %v17030_v2  ;;  %7165 = vrot.lane.b32.xlu1 %v17014_v28, %s10377_s5  ;;  %7894 = vmatpush.msra.mxu1 %v9711_v26  ;;  %v9723_v51 = vld [vmem:[%s17735_s6 + $0x748] sm:$0x1f]  ;;  %v9742_v55 = vld [vmem:[%s17735_s6 + $0x7d0] sm:$0xff] }
 0xc1f   :  { %7975 = vmatpush.msra.mxu3 %v9732_v54  ;;  %7994 = vmatpush.msra.mxu2 %v9749_v20  ;;  %v10352_v31 = vpack.i.bf16 %v17028_v19, %v17024_v34  ;;  %v9806_v26 = vld [vmem:[%s17735_s6 + $0x9b0] sm:$0xff] }
 0xc20   :  { %7177 = vrot.lane.b32.xlu0 %v17038_v15, %s10377_s5  ;;  %7895 = vmatpush.msra.mxu1 %v9710_v56  ;;  %v9716_v1 = vld [vmem:[%s17735_s6 + $0x710] sm:$0xff]  ;;  %v9804_v56 = vld [vmem:[%s17735_s6 + $0x9a0] sm:$0xff] }
 0xc21   :  { %7976 = vmatpush.msra.mxu3 %v9731_v9  ;;  %7995 = vmatpush.msra.mxu2 %v9748_v3 }
 0xc22   :  { %10353 = vrot.lane.b32.xlu2 %v10352_v31, %s10377_s5  ;;  %7834 = vmatmul.f32.vlgmr.msrb.gmra.mxu2 %v7250_v6  ;;  %v9703_v6 = vld [vmem:[%s17735_s6 + $0x6a8] sm:$0xff] }
 0xc23   :  { %7996 = vmatpush.msra.mxu2 %v9747_v14  ;;  %7977 = vmatpush.msra.mxu3 %v9730_v27  ;;  %v9715_v31 = vld [vmem:[%s17735_s6 + $0x708] sm:$0xff]  ;;  %v9702_v14 = vld [vmem:[%s17735_s6 + $0x6a0] sm:$0xff] }
 0xc24   :  { %9724 = vmatpush.msk.msrb.mxu0 %vm7325_vm3, %v9723_v51  ;;  %7896 = vmatpush.msra.mxu1 %v9709_v8  ;;  %v9701_v8 = vld [vmem:[%s17735_s6 + $0x698] sm:$0xff] }
 0xc25   :  { %7997 = vmatpush.msra.mxu2 %v9746_v47  ;;  %7978 = vmatpush.msra.mxu3 %v9729_v12 }
 0xc26   :  { %v17085_v40 = vpop.permute.xlu2 %10343  ;;  %7919 = vmatpush.msrb.mxu0 %v9722_v39  ;;  %7897 = vmatpush.msra.mxu1 %v9708_v49  ;;  %v9714_v39 = vld [vmem:[%s17735_s6 + $0x700] sm:$0xff] }
 0xc27   :  { %7998 = vmatpush.msra.mxu2 %v9745_v53  ;;  %7979 = vmatpush.msra.mxu3 %v9728_v50  ;;  %v9700_v50 = vld [vmem:[%s17735_s6 + $0x690] sm:$0xff] }
 0xc28   :  { %7920 = vmatpush.msrb.mxu0 %v9721_v23  ;;  %7898 = vmatpush.msra.mxu1 %v9707_v13  ;;  %v9800_v13 = vld [vmem:[%s17735_s6 + $0x980] sm:$0xff] }
 0xc29   :  { %7999 = vmatpush.msra.mxu2 %v9744_v45  ;;  %7980 = vmatpush.msra.mxu3 %v9727_v10  ;;  %v9698_v45 = vld [vmem:[%s17735_s6 + $0x680] sm:$0xff] }
 0xc2a   :  { %7921 = vmatpush.msrb.mxu0 %v9720_v16  ;;  %v7150_v54 = vpop.permute.xlu0 %7149  ;;  %7899 = vmatpush.msra.mxu1 %v9706_v22  ;;  %v9799_v22 = vld [vmem:[%s17735_s6 + $0x978] sm:$0xff] }
 0xc2b   :  { %8000 = vmatpush.msra.mxu2 %v9743_v63  ;;  %7981 = vmatpush.msra.mxu3 %v9726_v41  ;;  %v7194_v48 = vsel %vm5389_vm13, %v10341_v18, %v7150_v54  ;;  %v7249_v32 = vmax.f32 %v16442_v29, %v7150_v54  ;;  %v9704_v29 = vld [vmem:[%s17735_s6 + $0x6b0] sm:$0xff] }
 0xc2c   :  { %7922 = vmatpush.msrb.mxu0 %v9719_v24  ;;  %v7248_v61 = vmax.f32 %v16449_v58, %v7194_v48  ;;  %v10334_v20 = vpop.permute.xlu1 %10333  ;;  %7900 = vmatpush.msra.mxu1 %v9705_v4  ;;  %v9796_v24 = vld [vmem:[%s17735_s6 + $0x960] sm:$0xff]  ;;  %v9798_v54 = vld [vmem:[%s17735_s6 + $0x970] sm:$0xff]  ;;  %v9779_v48 = vld [vmem:[%s17735_s6 + $0x8e8] sm:$0x1f] }
 0xc2d   :  { %8001 = vmatpush.msra.mxu2 %v9742_v55  ;;  %9669 = vmatmul.msk.f32.vlgmr.msrb.gmra.mxu1 %vm7321_vm4, %v7249_v32  ;;  %v10335_v3 = vunpack.i.l.bf16 %v10334_v20  ;;  %v10336_v51 = vunpack.i.h.bf16 %v10334_v20  ;;  %v9766_v32 = vld [vmem:[%s17735_s6 + $0x880] sm:$0xff]  ;;  %v9765_v20 = vld [vmem:[%s17735_s6 + $0x878] sm:$0xff] }
 0xc2e   :  { %v17130_v9 = vpop.permute.xlu2 %7161  ;;  %7923 = vmatpush.msrb.mxu0 %v9718_v46  ;;  %7760 = vmatmul.f32.vlgmr.msrb.gmra.mxu3 %v7248_v61  ;;  %v9793_v46 = vld [vmem:[%s17735_s6 + $0x948] sm:$0xff]  ;;  %v9778_v4 = vld [vmem:[%s17735_s6 + $0x8e0] sm:$0xff] }
 0xc2f   :  { %v7255_v58 = vmax.f32 %v16652_v59, %v17130_v9  ;;  %9808 = vmatpush.msk.msrb.mxu3 %vm7325_vm3, %v9807_v11  ;;  %7901 = vmatpush.msra.mxu1 %v9704_v29  ;;  %v9805_v59 = vld [vmem:[%s17735_s6 + $0x9a8] sm:$0xff]  ;;  %v7024_v47 = vsel %vm111_vm0, %v10335_v3, %v17030_v2  ;;  %v9803_v2 = vld [vmem:[%s17735_s6 + $0x998] sm:$0xff]  ;;  %v9792_v61 = vld [vmem:[%s17735_s6 + $0x940] sm:$0xff] }
 0xc30   :  { %7924 = vmatpush.msrb.mxu0 %v9717_v33  ;;  %v17192_v23 = vmax.f32 %v6909_v43, %v7024_v47  ;;  %v10346_v43 = vunpack.i.h.bf16 %v17085_v40  ;;  %v9777_v11 = vld [vmem:[%s17735_s6 + $0x8d8] sm:$0xff]  ;;  %v9790_v3 = vld [vmem:[%s17735_s6 + $0x930] sm:$0xff] }
 0xc31   :  { %9753 = vmatmul.msk.f32.vlgmr.msra.gmra.mxu2 %vm7321_vm4, %v7255_v58  ;;  %8141 = vmatpush.msrb.mxu3 %v9806_v26  ;;  %v9791_v33 = vld [vmem:[%s17735_s6 + $0x938] sm:$0xff]  ;;  %v9764_v58 = vld [vmem:[%s17735_s6 + $0x870] sm:$0xff] }
 0xc32   :  { %7925 = vmatpush.msrb.mxu0 %v9716_v1  ;;  %v7010_v27 = vpop.permute.xlu0 %7009  ;;  %7902 = vmatpush.msra.mxu1 %v9703_v6  ;;  %v9776_v26 = vld [vmem:[%s17735_s6 + $0x8d0] sm:$0xff]  ;;  %v9763_v6 = vld [vmem:[%s17735_s6 + $0x868] sm:$0xff] }
 0xc33   :  { %v17165_v12 = vmax.f32 %v6914_v60, %v7010_v27  ;;  %8142 = vmatpush.msrb.mxu3 %v9805_v59 }
 0xc34   :  { %7926 = vmatpush.msrb.mxu0 %v9715_v31  ;;  %v6998_v53 = vpop.permute.xlu1 %6997  ;;  %7903 = vmatpush.msra.mxu1 %v9702_v14  ;;  %v9789_v31 = vld [vmem:[%s17735_s6 + $0x928] sm:$0xff] }
 0xc35   :  { %v7023_v30 = vsel %vm111_vm0, %v10336_v51, %v6998_v53  ;;  %v17179_v60 = vmax.f32 %v6908_v38, %v6998_v53  ;;  %7185 = vrot.lane.b32.xlu0 %v17165_v12, %s10377_s5  ;;  %8143 = vmatpush.msrb.mxu3 %v9804_v56  ;;  %v10345_v38 = vunpack.i.l.bf16 %v17085_v40  ;;  %v9797_v40 = vld [vmem:[%s17735_s6 + $0x968] sm:$0xff]  ;;  %v9788_v56 = vld [vmem:[%s17735_s6 + $0x920] sm:$0xff] }
 0xc36   :  { %v17188_v49 = vmax.f32 %v6907_v57, %v7023_v30  ;;  %7904 = vmatpush.msra.mxu1 %v9701_v8  ;;  %7927 = vmatpush.msrb.mxu0 %v9714_v39 }
 0xc37   :  { %7173 = vrot.lane.b32.xlu1 %v17179_v60, %s10377_s5  ;;  %8144 = vmatpush.msrb.mxu3 %v9803_v2  ;;  %v7026_v16 = vsel %vm111_vm0, %v10345_v38, %v7010_v27  ;;  %v9762_v27 = vld [vmem:[%s17735_s6 + $0x860] sm:$0xff]  ;;  %v9786_v2 = vld [vmem:[%s17735_s6 + $0x910] sm:$0xff]  ;;  %v9863_v38 = vld [vmem:[%s17735_s6 + $0xb58] sm:$0x1f] }
 0xc38   :  { %v10357_v57 = vpack.i.bf16 %v17188_v49, %v17192_v23  ;;  %7905 = vmatpush.msra.mxu1 %v9700_v50  ;;  %8114 = vmatpush.msrb.mxu2 %v9797_v40  ;;  %v17243_v55 = vmax.f32 %v6913_v36, %v7026_v16  ;;  %v9767_v36 = vld [vmem:[%s17735_s6 + $0x888] sm:$0xff]  ;;  %v9760_v50 = vld [vmem:[%s17735_s6 + $0x850] sm:$0xff]  ;;  %v9773_v40 = vld [vmem:[%s17735_s6 + $0x8b8] sm:$0xff] }
 0xc39   :  { %8145 = vmatpush.msrb.mxu3 %v9802_v37  ;;  %v9785_v37 = vld [vmem:[%s17735_s6 + $0x908] sm:$0xff]  ;;  %v9862_v16 = vld [vmem:[%s17735_s6 + $0xb50] sm:$0xff] }
 0xc3a   :  { %v7006_v10 = vpop.permute.xlu0 %7005  ;;  %10358 = vrot.lane.b32.xlu2 %v10357_v57, %s10377_s5  ;;  %7906 = vmatpush.msra.mxu1 %v9699_v25  ;;  %v9783_v25 = vld [vmem:[%s17735_s6 + $0x8f8] sm:$0xff]  ;;  %v9775_v57 = vld [vmem:[%s17735_s6 + $0x8c8] sm:$0xff] }
 0xc3b   :  { %v7025_v63 = vsel %vm111_vm0, %v10346_v43, %v7006_v10  ;;  %8146 = vmatpush.msrb.mxu3 %v9801_v17  ;;  %v17233_v18 = vmax.f32 %v6912_v5, %v7006_v10  ;;  %8115 = vmatpush.msrb.mxu2 %v9796_v24  ;;  %v9782_v17 = vld [vmem:[%s17735_s6 + $0x8f0] sm:$0xff]  ;;  %v9853_v43 = vld [vmem:[%s17735_s6 + $0xb08] sm:$0xff]  ;;  %v9774_v10 = vld [vmem:[%s17735_s6 + $0x8c0] sm:$0xff]  ;;  %vm8456_vm0 = vcmask 80896  }
 0xc3c   :  { %v17223_v41 = vmax.f32 %v6911_v44, %v7025_v63  ;;  %7907 = vmatpush.msra.mxu1 %v9698_v45  ;;  %v9769_v44 = vld [vmem:[%s17735_s6 + $0x898] sm:$0xff]  ;;  %v9758_v45 = vld [vmem:[%s17735_s6 + $0x840] sm:$0xff]  ;;  %v9861_v24 = vld [vmem:[%s17735_s6 + $0xb48] sm:$0xff] }
 0xc3d   :  { %8147 = vmatpush.msrb.mxu3 %v9800_v13  ;;  %8040 = vmatpush.msra.mxu0 %v9769_v44  ;;  %v9852_v13 = vld [vmem:[%s17735_s6 + $0xb00] sm:$0xff]  ;;  %v9757_v63 = vld [vmem:[%s17735_s6 + $0x838] sm:$0xff]  ;;  %v9772_v44 = vld [vmem:[%s17735_s6 + $0x8b0] sm:$0xff] }
 0xc3e   :  { %v10362_v5 = vpack.i.bf16 %v17223_v41, %v17243_v55  ;;  %8116 = vmatpush.msrb.mxu2 %v9795_v42  ;;  %9780 = vmatpush.msk.msrb.mxu1 %vm7325_vm3, %v9779_v48  ;;  %v9756_v42 = vld [vmem:[%s17735_s6 + $0x830] sm:$0xff]  ;;  %v9754_v48 = vld [vmem:[%s17735_s6 + $0x820] sm:$0xff] }
 0xc3f   :  { %7181 = vrot.lane.b32.xlu1 %v17233_v18, %s10377_s5  ;;  %8148 = vmatpush.msrb.mxu3 %v9799_v22  ;;  %v9851_v22 = vld [vmem:[%s17735_s6 + $0xaf8] sm:$0xff] }
 0xc40   :  { %8041 = vmatpush.msra.mxu0 %v9768_v62  ;;  %8117 = vmatpush.msrb.mxu2 %v9794_v35  ;;  %v9860_v62 = vld [vmem:[%s17735_s6 + $0xb40] sm:$0xff]  ;;  %v9755_v35 = vld [vmem:[%s17735_s6 + $0x828] sm:$0xff] }
 0xc41   :  { %8149 = vmatpush.msrb.mxu3 %v9798_v54  ;;  %8067 = vmatpush.msrb.mxu1 %v9778_v4  ;;  %v9850_v54 = vld [vmem:[%s17735_s6 + $0xaf0] sm:$0xff]  ;;  %v9848_v4 = vld [vmem:[%s17735_s6 + $0xae0] sm:$0xff] }
 0xc42   :  { %10363 = vrot.lane.b32.xlu2 %v10362_v5, %s10377_s5  ;;  %8042 = vmatpush.msra.mxu0 %v9767_v36  ;;  %v17317_v8 = vpop.permute.xlu0 %7169  ;;  %v9771_v5 = vld [vmem:[%s17735_s6 + $0x8a8] sm:$0xff] }
 0xc43   :  { %8118 = vmatpush.msrb.mxu2 %v9793_v46  ;;  %8068 = vmatpush.msrb.mxu1 %v9777_v11  ;;  %v9849_v36 = vld [vmem:[%s17735_s6 + $0xae8] sm:$0xff]  ;;  %v9859_v46 = vld [vmem:[%s17735_s6 + $0xb38] sm:$0xff]  ;;  %v9858_v11 = vld [vmem:[%s17735_s6 + $0xb30] sm:$0xff] }
 0xc44   :  { %8043 = vmatpush.msra.mxu0 %v9766_v32  ;;  %v9770_v32 = vld [vmem:[%s17735_s6 + $0x8a0] sm:$0xff] }
 0xc45   :  { %8119 = vmatpush.msrb.mxu2 %v9792_v61  ;;  %8069 = vmatpush.msrb.mxu1 %v9776_v26  ;;  %v9825_v61 = vld [vmem:[%s17735_s6 + $0xa38] sm:$0xff]  ;;  %v9857_v26 = vld [vmem:[%s17735_s6 + $0xb28] sm:$0xff] }
 0xc46   :  { %v10349_v29 = vpop.permute.xlu1 %10348  ;;  %8044 = vmatpush.msra.mxu0 %v9765_v20  ;;  %v9835_v20 = vld [vmem:[%s17735_s6 + $0xa88] sm:$0x1f] }
 0xc47   :  { %v10350_v1 = vunpack.i.l.bf16 %v10349_v29  ;;  %8120 = vmatpush.msrb.mxu2 %v9791_v33  ;;  %v10351_v51 = vunpack.i.h.bf16 %v10349_v29  ;;  %8070 = vmatpush.msrb.mxu1 %v9775_v57  ;;  %v9847_v33 = vld [vmem:[%s17735_s6 + $0xad8] sm:$0xff]  ;;  %v9824_v29 = vld [vmem:[%s17735_s6 + $0xa30] sm:$0xff] }
 0xc48   :  { %8045 = vmatpush.msra.mxu0 %v9764_v58  ;;  %v9834_v58 = vld [vmem:[%s17735_s6 + $0xa80] sm:$0xff]  ;;  %v9817_v57 = vld [vmem:[%s17735_s6 + $0x9f8] sm:$0xff] }
 0xc49   :  { %v7197_v59 = vsel %vm5389_vm13, %v10350_v1, %v17130_v9  ;;  %8121 = vmatpush.msrb.mxu2 %v9790_v3  ;;  %v9761_v9 = vld [vmem:[%s17735_s6 + $0x858] sm:$0xff]  ;;  %8071 = vmatpush.msrb.mxu1 %v9774_v10  ;;  %v9846_v1 = vld [vmem:[%s17735_s6 + $0xad0] sm:$0xff]  ;;  %v9823_v3 = vld [vmem:[%s17735_s6 + $0xa28] sm:$0xff] }
 0xc4a   :  { %v7254_v14 = vmax.f32 %v16640_v0, %v7197_v59  ;;  %8046 = vmatpush.msra.mxu0 %v9763_v6  ;;  %v9787_v0 = vld [vmem:[%s17735_s6 + $0x918] sm:$0xff]  ;;  %v9856_v59 = vld [vmem:[%s17735_s6 + $0xb20] sm:$0xff]  ;;  %v9838_v10 = vld [vmem:[%s17735_s6 + $0xa90] sm:$0xff] }
 0xc4b   :  { %8122 = vmatpush.msrb.mxu2 %v9789_v31  ;;  %8072 = vmatpush.msrb.mxu1 %v9773_v40  ;;  %v9833_v6 = vld [vmem:[%s17735_s6 + $0xa78] sm:$0xff]  ;;  %v9845_v31 = vld [vmem:[%s17735_s6 + $0xac8] sm:$0xff]  ;;  %v9918_v40 = vld [vmem:[%s17735_s6 + $0xcf0] sm:$0xff] }
 0xc4c   :  { %7982 = vmatmul.f32.vlgmr.msra.gmra.mxu3 %v7254_v14  ;;  %8047 = vmatpush.msra.mxu0 %v9762_v27  ;;  %v9822_v14 = vld [vmem:[%s17735_s6 + $0xa20] sm:$0xff]  ;;  %v9832_v27 = vld [vmem:[%s17735_s6 + $0xa70] sm:$0xff] }
 0xc4d   :  { %8123 = vmatpush.msrb.mxu2 %v9788_v56  ;;  %8262 = vmatpush.msra.mxu3 %v9853_v43  ;;  %v9855_v56 = vld [vmem:[%s17735_s6 + $0xb18] sm:$0xff] }
 0xc4e   :  { %v7158_v47 = vpop.permute.xlu1 %7157  ;;  %8048 = vmatpush.msra.mxu0 %v9761_v9  ;;  %8073 = vmatpush.msrb.mxu1 %v9772_v44  ;;  %v9844_v9 = vld [vmem:[%s17735_s6 + $0xac0] sm:$0xff]  ;;  %v9839_v43 = vld [vmem:[%s17735_s6 + $0xa98] sm:$0xff] }
 0xc4f   :  { %v7196_v39 = vsel %vm5389_vm13, %v10351_v51, %v7158_v47  ;;  %v7253_v53 = vmax.f32 %v16704_v7, %v7158_v47  ;;  %8124 = vmatpush.msrb.mxu2 %v9787_v0  ;;  %v7259_v7 = vmax.f32 %v16625_v21, %v17317_v8  ;;  %v9759_v21 = vld [vmem:[%s17735_s6 + $0x848] sm:$0xff]  ;;  %8263 = vmatpush.msra.mxu3 %v9852_v13  ;;  %v9821_v51 = vld [vmem:[%s17735_s6 + $0xa18] sm:$0xff]  ;;  %v9854_v47 = vld [vmem:[%s17735_s6 + $0xb10] sm:$0xff] }
 0xc50   :  { %v7252_v30 = vmax.f32 %v16636_v52, %v7196_v39  ;;  %v9784_v52 = vld [vmem:[%s17735_s6 + $0x900] sm:$0xff]  ;;  %8049 = vmatpush.msra.mxu0 %v9760_v50  ;;  %8074 = vmatpush.msrb.mxu1 %v9771_v5  ;;  %v9831_v0 = vld [vmem:[%s17735_s6 + $0xa68] sm:$0xff]  ;;  %v9843_v39 = vld [vmem:[%s17735_s6 + $0xab8] sm:$0xff] }
 0xc51   :  { %9725 = vmatmul.msk.f32.vlgmr.msrb.gmra.mxu0 %vm7321_vm4, %v7253_v53  ;;  %8125 = vmatpush.msrb.mxu2 %v9786_v2  ;;  %v9820_v53 = vld [vmem:[%s17735_s6 + $0xa10] sm:$0xff]  ;;  %v9830_v2 = vld [vmem:[%s17735_s6 + $0xa60] sm:$0xff]  ;;  %v9819_v50 = vld [vmem:[%s17735_s6 + $0xa08] sm:$0xff] }
 0xc52   :  { %7908 = vmatmul.f32.vlgmr.msra.gmra.mxu1 %v7252_v30  ;;  %8050 = vmatpush.msra.mxu0 %v9759_v21  ;;  %v9842_v30 = vld [vmem:[%s17735_s6 + $0xab0] sm:$0xff]  ;;  %v9840_v21 = vld [vmem:[%s17735_s6 + $0xaa0] sm:$0xff]  ;;  %v9815_v13 = vld [vmem:[%s17735_s6 + $0x9e8] sm:$0xff] }
 0xc53   :  { %8126 = vmatpush.msrb.mxu2 %v9785_v37  ;;  %8264 = vmatpush.msra.mxu3 %v9851_v22  ;;  %v9829_v37 = vld [vmem:[%s17735_s6 + $0xa58] sm:$0xff] }
 0xc54   :  { %9809 = vmatmul.msk.f32.vlgmr.msrb.gmra.mxu3 %vm7321_vm4, %v7259_v7  ;;  %8051 = vmatpush.msra.mxu0 %v9758_v45  ;;  %v9841_v7 = vld [vmem:[%s17735_s6 + $0xaa8] sm:$0xff]  ;;  %v9826_v45 = vld [vmem:[%s17735_s6 + $0xa40] sm:$0xff] }
 0xc55   :  { %8127 = vmatpush.msrb.mxu2 %v9784_v52  ;;  %8265 = vmatpush.msra.mxu3 %v9850_v54  ;;  %v9818_v52 = vld [vmem:[%s17735_s6 + $0xa00] sm:$0xff] }
 0xc56   :  { %8052 = vmatpush.msra.mxu0 %v9757_v63  ;;  %8075 = vmatpush.msrb.mxu1 %v9770_v32  ;;  %v9814_v63 = vld [vmem:[%s17735_s6 + $0x9e0] sm:$0xff]  ;;  %v9914_v32 = vld [vmem:[%s17735_s6 + $0xcd0] sm:$0xff] }
 0xc57   :  { %8128 = vmatpush.msrb.mxu2 %v9783_v25  ;;  %8266 = vmatpush.msra.mxu3 %v9849_v36  ;;  %v9828_v25 = vld [vmem:[%s17735_s6 + $0xa50] sm:$0xff]  ;;  %v9909_v36 = vld [vmem:[%s17735_s6 + $0xca8] sm:$0xff] }
 0xc58   :  { %8053 = vmatpush.msra.mxu0 %v9756_v42  ;;  %8188 = vmatpush.msra.mxu1 %v9825_v61  ;;  %v9917_v42 = vld [vmem:[%s17735_s6 + $0xce8] sm:$0xff] }
 0xc59   :  { %8129 = vmatpush.msrb.mxu2 %v9782_v17  ;;  %8267 = vmatpush.msra.mxu3 %v9848_v4  ;;  %v9827_v17 = vld [vmem:[%s17735_s6 + $0xa48] sm:$0xff]  ;;  %v9907_v4 = vld [vmem:[%s17735_s6 + $0xc98] sm:$0xff] }
 0xc5a   :  { %8054 = vmatpush.msra.mxu0 %v9755_v35  ;;  %8189 = vmatpush.msra.mxu1 %v9824_v29  ;;  %v9916_v35 = vld [vmem:[%s17735_s6 + $0xce0] sm:$0xff]  ;;  %v9913_v61 = vld [vmem:[%s17735_s6 + $0xcc8] sm:$0xff]  ;;  %v9911_v29 = vld [vmem:[%s17735_s6 + $0xcb8] sm:$0xff] }
 0xc5b   :  { %9864 = vmatpush.msk.msra.mxu2 %vm7325_vm3, %v9863_v38  ;;  %8268 = vmatpush.msra.mxu3 %v9847_v33  ;;  %v9816_v38 = vld [vmem:[%s17735_s6 + $0x9f0] sm:$0xff]  ;;  %v9905_v33 = vld [vmem:[%s17735_s6 + $0xc88] sm:$0xff] }
 0xc5c   :  { %8055 = vmatpush.msra.mxu0 %v9754_v48  ;;  %8190 = vmatpush.msra.mxu1 %v9823_v3  ;;  %v9908_v48 = vld [vmem:[%s17735_s6 + $0xca0] sm:$0xff]  ;;  %v9902_v3 = vld [vmem:[%s17735_s6 + $0xc70] sm:$0xff] }
 0xc5d   :  { %8289 = vmatpush.msra.mxu2 %v9862_v16  ;;  %8269 = vmatpush.msra.mxu3 %v9846_v1  ;;  %v9919_v16 = vld [vmem:[%s17735_s6 + $0xcf8] sm:$0x1f] }
 0xc5e   :  { %9836 = vmatpush.msk.msrb.mxu0 %vm7325_vm3, %v9835_v20  ;;  %8191 = vmatpush.msra.mxu1 %v9822_v14  ;;  %v9906_v20 = vld [vmem:[%s17735_s6 + $0xc90] sm:$0xff]  ;;  %v9903_v1 = vld [vmem:[%s17735_s6 + $0xc78] sm:$0xff] }
 0xc5f   :  { %8290 = vmatpush.msra.mxu2 %v9861_v24  ;;  %8270 = vmatpush.msra.mxu3 %v9845_v31  ;;  %v9813_v24 = vld [vmem:[%s17735_s6 + $0x9d8] sm:$0xff] }
 0xc60   :  { %8215 = vmatpush.msrb.mxu0 %v9834_v58  ;;  %8192 = vmatpush.msra.mxu1 %v9821_v51  ;;  %v9904_v58 = vld [vmem:[%s17735_s6 + $0xc80] sm:$0xff] }
 0xc61   :  { %8291 = vmatpush.msra.mxu2 %v9860_v62  ;;  %8271 = vmatpush.msra.mxu3 %v9844_v9  ;;  %v9812_v62 = vld [vmem:[%s17735_s6 + $0x9d0] sm:$0xff] }
 0xc62   :  { %8216 = vmatpush.msrb.mxu0 %v9833_v6  ;;  %8193 = vmatpush.msra.mxu1 %v9820_v53  ;;  %v9880_v53 = vld [vmem:[%s17735_s6 + $0xbd0] sm:$0xff] }
 0xc63   :  { %8292 = vmatpush.msra.mxu2 %v9859_v46  ;;  %8272 = vmatpush.msra.mxu3 %v9843_v39  ;;  %v9915_v46 = vld [vmem:[%s17735_s6 + $0xcd8] sm:$0xff]  ;;  %v9891_v39 = vld [vmem:[%s17735_s6 + $0xc28] sm:$0x1f] }
 0xc64   :  { %8217 = vmatpush.msrb.mxu0 %v9832_v27  ;;  %8194 = vmatpush.msra.mxu1 %v9819_v50  ;;  %v9879_v50 = vld [vmem:[%s17735_s6 + $0xbc8] sm:$0xff] }
 0xc65   :  { %8293 = vmatpush.msra.mxu2 %v9858_v11  ;;  %8273 = vmatpush.msra.mxu3 %v9842_v30  ;;  %v9912_v11 = vld [vmem:[%s17735_s6 + $0xcc0] sm:$0xff] }
 0xc66   :  { %8218 = vmatpush.msrb.mxu0 %v9831_v0  ;;  %8195 = vmatpush.msra.mxu1 %v9818_v52  ;;  %v9881_v0 = vld [vmem:[%s17735_s6 + $0xbd8] sm:$0xff]  ;;  %v9890_v30 = vld [vmem:[%s17735_s6 + $0xc20] sm:$0xff] }
 0xc67   :  { %8294 = vmatpush.msra.mxu2 %v9857_v26  ;;  %8274 = vmatpush.msra.mxu3 %v9841_v7  ;;  %v9910_v26 = vld [vmem:[%s17735_s6 + $0xcb0] sm:$0xff]  ;;  %v9897_v7 = vld [vmem:[%s17735_s6 + $0xc48] sm:$0xff] }
 0xc68   :  { %8219 = vmatpush.msrb.mxu0 %v9830_v2  ;;  %8196 = vmatpush.msra.mxu1 %v9817_v57  ;;  %v9898_v2 = vld [vmem:[%s17735_s6 + $0xc50] sm:$0xff]  ;;  %v9896_v57 = vld [vmem:[%s17735_s6 + $0xc40] sm:$0xff] }
 0xc69   :  { %8295 = vmatpush.msra.mxu2 %v9856_v59  ;;  %8275 = vmatpush.msra.mxu3 %v9840_v21  ;;  %v9901_v59 = vld [vmem:[%s17735_s6 + $0xc68] sm:$0xff]  ;;  %v9889_v21 = vld [vmem:[%s17735_s6 + $0xc18] sm:$0xff] }
 0xc6a   :  { %8220 = vmatpush.msrb.mxu0 %v9829_v37  ;;  %8197 = vmatpush.msra.mxu1 %v9816_v38  ;;  %v9876_v38 = vld [vmem:[%s17735_s6 + $0xbb0] sm:$0xff] }
 0xc6b   :  { %8296 = vmatpush.msra.mxu2 %v9855_v56  ;;  %8276 = vmatpush.msra.mxu3 %v9839_v43  ;;  %v9900_v56 = vld [vmem:[%s17735_s6 + $0xc60] sm:$0xff]  ;;  %v9895_v43 = vld [vmem:[%s17735_s6 + $0xc38] sm:$0xff] }
 0xc6c   :  { %8221 = vmatpush.msrb.mxu0 %v9828_v25  ;;  %8198 = vmatpush.msra.mxu1 %v9815_v13  ;;  %v9878_v25 = vld [vmem:[%s17735_s6 + $0xbc0] sm:$0xff]  ;;  %v9875_v13 = vld [vmem:[%s17735_s6 + $0xba8] sm:$0xff] }
 0xc6d   :  { %8297 = vmatpush.msra.mxu2 %v9854_v47  ;;  %8277 = vmatpush.msra.mxu3 %v9838_v10  ;;  %v9894_v10 = vld [vmem:[%s17735_s6 + $0xc30] sm:$0xff] }
 0xc6e   :  { %8222 = vmatpush.msrb.mxu0 %v9827_v17  ;;  %8199 = vmatpush.msra.mxu1 %v9814_v63  ;;  %v9888_v17 = vld [vmem:[%s17735_s6 + $0xc10] sm:$0xff]  ;;  %v9874_v63 = vld [vmem:[%s17735_s6 + $0xba0] sm:$0xff] }
 0xc6f   :  { %9920 = vmatpush.msk.msrb.mxu3 %vm7325_vm3, %v9919_v16  ;;  %v9886_v16 = vld [vmem:[%s17735_s6 + $0xc00] sm:$0xff] }
 0xc70   :  { %8223 = vmatpush.msrb.mxu0 %v9826_v45  ;;  %8200 = vmatpush.msra.mxu1 %v9813_v24  ;;  %v9887_v45 = vld [vmem:[%s17735_s6 + $0xc08] sm:$0xff]  ;;  %v9884_v24 = vld [vmem:[%s17735_s6 + $0xbf0] sm:$0xff] }
 0xc71   :  { %8437 = vmatpush.msrb.mxu3 %v9918_v40  ;;  %v9885_v40 = vld [vmem:[%s17735_s6 + $0xbf8] sm:$0xff] }
 0xc72   :  { %8201 = vmatpush.msra.mxu1 %v9812_v62 }
 0xc73   :  { %8438 = vmatpush.msrb.mxu3 %v9917_v42 }
 0xc75   :  { %8439 = vmatpush.msrb.mxu3 %v9916_v35  ;;  %v9871_v35 = vld [vmem:[%s17735_s6 + $0xb88] sm:$0xff] }
 0xc77   :  { %8440 = vmatpush.msrb.mxu3 %v9915_v46 }
 0xc79   :  { %8441 = vmatpush.msrb.mxu3 %v9914_v32 }
 0xc7b   :  { %8442 = vmatpush.msrb.mxu3 %v9913_v61 }
 0xc7c   :  { %v10354_v22 = vpop.permute.xlu2 %10353 }
 0xc7d   :  { %v10355_v44 = vunpack.i.l.bf16 %v10354_v22  ;;  %8443 = vmatpush.msrb.mxu3 %v9912_v11  ;;  %v10356_v6 = vunpack.i.h.bf16 %v10354_v22  ;;  %v9873_v22 = vld [vmem:[%s17735_s6 + $0xb98] sm:$0xff] }
 0xc7e   :  { %v9869_v11 = vld [vmem:[%s17735_s6 + $0xb78] sm:$0xff] }
 0xc7f   :  { %v7199_v54 = vsel %vm5389_vm13, %v10355_v44, %v17317_v8  ;;  %v9811_v8 = vld [vmem:[%s17735_s6 + $0x9c8] sm:$0xff]  ;;  %8444 = vmatpush.msrb.mxu3 %v9911_v29  ;;  %v9872_v44 = vld [vmem:[%s17735_s6 + $0xb90] sm:$0xff] }
 0xc80   :  { %v7258_v5 = vmax.f32 %v17024_v34, %v7199_v54  ;;  %8202 = vmatpush.msra.mxu1 %v9811_v8  ;;  %v9810_v34 = vld [vmem:[%s17735_s6 + $0x9c0] sm:$0xff]  ;;  %v9883_v54 = vld [vmem:[%s17735_s6 + $0xbe8] sm:$0xff] }
 0xc81   :  { %8445 = vmatpush.msrb.mxu3 %v9910_v26 }
 0xc82   :  { %8130 = vmatmul.f32.vlgmr.msrb.gmra.mxu2 %v7258_v5  ;;  %8203 = vmatpush.msra.mxu1 %v9810_v34  ;;  %v9882_v5 = vld [vmem:[%s17735_s6 + $0xbe0] sm:$0xff] }
 0xc83   :  { %8410 = vmatpush.msrb.mxu2 %v9909_v36  ;;  %v9870_v34 = vld [vmem:[%s17735_s6 + $0xb80] sm:$0xff] }
 0xc85   :  { %8411 = vmatpush.msrb.mxu2 %v9908_v48 }
 0xc87   :  { %8412 = vmatpush.msrb.mxu2 %v9907_v4 }
 0xc89   :  { %8413 = vmatpush.msrb.mxu2 %v9906_v20 }
 0xc8b   :  { %8414 = vmatpush.msrb.mxu2 %v9905_v33 }
 0xc8d   :  { %8415 = vmatpush.msrb.mxu2 %v9904_v58 }
 0xc8f   :  { %8416 = vmatpush.msrb.mxu2 %v9903_v1 }
 0xc90   :  { %v7166_v31 = vpop.permute.xlu1 %7165 }
 0xc91   :  { %8417 = vmatpush.msrb.mxu2 %v9902_v3  ;;  %v7198_v14 = vsel %vm5389_vm13, %v10356_v6, %v7166_v31  ;;  %v7257_v27 = vmax.f32 %v17014_v28, %v7166_v31  ;;  %v9899_v28 = vld [vmem:[%s17735_s6 + $0xc58] sm:$0xff]  ;;  %v7346_v3 = vpop.f32.mrf.mxu3 }
 0xc92   :  { %v7256_v9 = vmax.f32 %v17028_v19, %v7198_v14  ;;  %v7178_v51 = vpop.permute.xlu0 %7177 }
 0xc93   :  { %8418 = vmatpush.msrb.mxu2 %v9901_v59  ;;  %v7263_v47 = vmax.f32 %v17038_v15, %v7178_v51  ;;  %9781 = vmatmul.msk.f32.vlgmr.msrb.gmra.mxu1 %vm7321_vm4, %v7257_v27  ;;  %v7412_v59 = vpop.f32.mrf.mxu0 }
 0xc94   :  { %8056 = vmatmul.f32.vlgmr.msra.gmra.mxu0 %v7256_v9  ;;  %v17616_v19 = vpop.permute.xlu2 %10358  ;;  %9892 = vmatpush.msk.msrb.mxu1 %vm7325_vm3, %v9891_v39 }
 0xc95   :  { %8419 = vmatpush.msrb.mxu2 %v9900_v56  ;;  %v10360_v15 = vunpack.i.l.bf16 %v17616_v19  ;;  %8336 = vmatpush.msra.mxu0 %v9881_v0  ;;  %v10361_v8 = vunpack.i.h.bf16 %v17616_v19 }
 0xc96   :  { %9865 = vmatmul.msk.f32.vlgmr.msra.gmra.mxu2 %vm7321_vm4, %v7263_v47  ;;  %8363 = vmatpush.msrb.mxu1 %v9890_v30 }
 0xc97   :  { %8420 = vmatpush.msrb.mxu2 %v9899_v28  ;;  %v7201_v37 = vsel %vm5389_vm13, %v10360_v15, %v7178_v51  ;;  %8337 = vmatpush.msra.mxu0 %v9880_v53  ;;  %v7613_v28 = vpop.f32.mrf.mxu1 }
 0xc98   :  { %v7262_v52 = vmax.f32 %v17192_v23, %v7201_v37  ;;  %v9877_v23 = vld [vmem:[%s17735_s6 + $0xbb8] sm:$0xff]  ;;  %8364 = vmatpush.msrb.mxu1 %v9889_v21 }
 0xc99   :  { %8421 = vmatpush.msrb.mxu2 %v9898_v2  ;;  %8338 = vmatpush.msra.mxu0 %v9879_v50  ;;  %v7366_v6 = vpop.f32.mrf.mxu3 }
 0xc9a   :  { %8278 = vmatmul.f32.vlgmr.msra.gmra.mxu3 %v7262_v52  ;;  %8365 = vmatpush.msrb.mxu1 %v9888_v17  ;;  %v7367_v39 = vadd.f32 %v7366_v6, %v7346_v3 }
 0xc9b   :  { %8422 = vmatpush.msrb.mxu2 %v9897_v7  ;;  %8339 = vmatpush.msra.mxu0 %v9878_v25  ;;  %v7485_v27 = vpop.f32.mrf.mxu0 }
 0xc9c   :  { %8366 = vmatpush.msrb.mxu1 %v9887_v45  ;;  %v10364_v42 = vpop.permute.xlu2 %10363 }
 0xc9d   :  { %8423 = vmatpush.msrb.mxu2 %v9896_v57  ;;  %8340 = vmatpush.msra.mxu0 %v9877_v23  ;;  %v10365_v62 = vunpack.i.l.bf16 %v10364_v42  ;;  %v10366_v33 = vunpack.i.h.bf16 %v10364_v42  ;;  %v7687_v51 = vpop.f32.mrf.mxu2 }
 0xc9e   :  { %8367 = vmatpush.msrb.mxu1 %v9886_v16 }
 0xc9f   :  { %8424 = vmatpush.msrb.mxu2 %v9895_v43  ;;  %8341 = vmatpush.msra.mxu0 %v9876_v38 }
 0xca0   :  { %8368 = vmatpush.msrb.mxu1 %v9885_v40 }
 0xca1   :  { %8425 = vmatpush.msrb.mxu2 %v9894_v10  ;;  %8342 = vmatpush.msra.mxu0 %v9875_v13  ;;  %v7392_v31 = vpop.f32.mrf.mxu3 }
 0xca2   :  { %8369 = vmatpush.msrb.mxu1 %v9884_v24 }
 0xca3   :  { %8343 = vmatpush.msra.mxu0 %v9874_v63  ;;  %v7539_v9 = vpop.f32.mrf.mxu0 }
 0xca4   :  { %8370 = vmatpush.msrb.mxu1 %v9883_v54 }
 0xca5   :  { %8344 = vmatpush.msra.mxu0 %v9873_v22 }
 0xca6   :  { %8371 = vmatpush.msrb.mxu1 %v9882_v5 }
 0xca7   :  { %v7186_v36 = vpop.permute.xlu0 %7185  ;;  %8345 = vmatpush.msra.mxu0 %v9872_v44 }
 0xca8   :  { %v7203_v46 = vsel %vm5389_vm13, %v10365_v62, %v7186_v36  ;;  %v7267_v48 = vmax.f32 %v17165_v12, %v7186_v36 }
 0xca9   :  { %v7266_v32 = vmax.f32 %v17243_v55, %v7203_v46  ;;  %v7174_v4 = vpop.permute.xlu1 %7173  ;;  %8346 = vmatpush.msra.mxu0 %v9871_v35  ;;  %v9868_v55 = vld [vmem:[%s17735_s6 + $0xb70] sm:$0xff]  ;;  %v7465_v14 = vpop.f32.mrf.mxu3 }
 0xcaa   :  { %v7200_v61 = vsel %vm5389_vm13, %v10361_v8, %v7174_v4  ;;  %v7261_v20 = vmax.f32 %v17179_v60, %v7174_v4  ;;  %9921 = vmatmul.msk.f32.vlgmr.msrb.gmra.mxu3 %vm7321_vm4, %v7267_v48  ;;  %v9867_v60 = vld [vmem:[%s17735_s6 + $0xb68] sm:$0xff]  ;;  %v7486_v53 = vadd.f32 %v7485_v27, %v7465_v14  ;;  %v7781_v2 = vpop.f32.mrf.mxu1 }
 0xcab   :  { %v7260_v12 = vmax.f32 %v17188_v49, %v7200_v61  ;;  %8426 = vmatmul.f32.vlgmr.msrb.gmra.mxu2 %v7266_v32  ;;  %8347 = vmatpush.msra.mxu0 %v9870_v34  ;;  %v9866_v49 = vld [vmem:[%s17735_s6 + $0xb60] sm:$0xff]  ;;  %v7707_v47 = vpop.f32.mrf.mxu0 }
 0xcac   :  { %9837 = vmatmul.msk.f32.vlgmr.msrb.gmra.mxu0 %vm7321_vm4, %v7261_v20  ;;  %v7708_v25 = vadd.f32 %v7707_v47, %v7687_v51 }
 0xcad   :  { %8204 = vmatmul.f32.vlgmr.msra.gmra.mxu1 %v7260_v12  ;;  %8348 = vmatpush.msra.mxu0 %v9869_v11 }
 0xcaf   :  { %8349 = vmatpush.msra.mxu0 %v9868_v55 }
 0xcb1   :  { %v7182_v29 = vpop.permute.xlu1 %7181  ;;  %8350 = vmatpush.msra.mxu0 %v9867_v60  ;;  %v7559_v56 = vpop.f32.mrf.mxu3 }
 0xcb2   :  { %v7202_v58 = vsel %vm5389_vm13, %v10366_v33, %v7182_v29  ;;  %v7265_v26 = vmax.f32 %v17233_v18, %v7182_v29  ;;  %v7393_v18 = vadd.f32 %v7392_v31, %v7367_v39  ;;  %v7560_v50 = vadd.f32 %v7559_v56, %v7539_v9 }
 0xcb3   :  { %v7264_v1 = vmax.f32 %v17223_v41, %v7202_v58  ;;  %8351 = vmatpush.msra.mxu0 %v9866_v49  ;;  %v7835_v41 = vpop.f32.mrf.mxu2  ;;  %v7855_v15 = vpop.f32.mrf.mxu0 }
 0xcb4   :  { %v7413_v30 = vadd.f32 %v7412_v59, %v7393_v18  ;;  %v7856_v13 = vadd.f32 %v7855_v15, %v7835_v41 }
 0xcb5   :  { %8352 = vmatmul.f32.vlgmr.msra.gmra.mxu0 %v7264_v1  ;;  %9893 = vmatmul.msk.f32.vlgmr.msrb.gmra.mxu1 %vm7321_vm4, %v7265_v26  ;;  %v10367_v26 = vld [vmem:[%s17736_s7] ss:$0 sm:$0xff] }
 0xcb6   :  { %v7488_v37 = vadd.f32 %v7486_v53, %v7413_v30 }
 0xcb8   :  { %v7562_v52 = vadd.f32 %v7560_v50, %v7488_v37 }
 0xcb9   :  { %v7633_v0 = vpop.f32.mrf.mxu3 }
 0xcba   :  { %v7634_v7 = vadd.f32 %v7633_v0, %v7613_v28 }
 0xcbb   :  { %v8003_v57 = vpop.f32.mrf.mxu2 }
 0xcbc   :  { %v7636_v23 = vadd.f32 %v7634_v7, %v7562_v52 }
 0xcbe   :  { %v7710_v45 = vadd.f32 %v7708_v25, %v7636_v23 }
 0xcc1   :  { %v7761_v19 = vpop.f32.mrf.mxu3 }
 0xcc2   :  { %v7782_v17 = vadd.f32 %v7781_v2, %v7761_v19 }
 0xcc4   :  { %v7784_v10 = vadd.f32 %v7782_v17, %v7710_v45 }
 0xcc6   :  { %v7858_v40 = vadd.f32 %v7856_v13, %v7784_v10 }
 0xcce   :  { %v7929_v43 = vpop.f32.mrf.mxu0 }
 0xccf   :  { %v7983_v21 = vpop.f32.mrf.mxu3  ;;  %v7909_v38 = vpop.f32.mrf.mxu1 }
 0xcd0   :  { %v7930_v16 = vadd.f32 %v7929_v43, %v7909_v38  ;;  %v8004_v54 = vadd.f32 %v8003_v57, %v7983_v21 }
 0xcd2   :  { %v7932_v44 = vadd.f32 %v7930_v16, %v7858_v40 }
 0xcd4   :  { %v8006_v35 = vadd.f32 %v8004_v54, %v7932_v44 }
 0xcd7   :  { %v8151_v22 = vpop.f32.mrf.mxu3 }
 0xd05   :  { %v8131_v63 = vpop.f32.mrf.mxu2 }
 0xd06   :  { %v8152_v34 = vadd.f32 %v8151_v22, %v8131_v63 }
 0xd10   :  { %v8077_v42 = vpop.f32.mrf.mxu1 }
 0xd11   :  { %v8057_v24 = vpop.f32.mrf.mxu0 }
 0xd12   :  { %v8078_v62 = vadd.f32 %v8077_v42, %v8057_v24 }
 0xd14   :  { %v8080_v36 = vadd.f32 %v8078_v62, %v8006_v35 }
 0xd16   :  { %v8154_v4 = vadd.f32 %v8152_v34, %v8080_v36 }
 0xd19   :  { %v8299_v5 = vpop.f32.mrf.mxu2 }
 0xd1d   :  { %v8279_v8 = vpop.f32.mrf.mxu3 }
 0xd1e   :  { %v8300_v20 = vadd.f32 %v8299_v5, %v8279_v8 }
 0xd29   :  { %v8225_v46 = vpop.f32.mrf.mxu0 }
 0xd2a   :  { %v8205_v48 = vpop.f32.mrf.mxu1 }
 0xd2b   :  { %v8226_v32 = vadd.f32 %v8225_v46, %v8205_v48 }
 0xd2d   :  { %v8228_v61 = vadd.f32 %v8226_v32, %v8154_v4  ;;  %v8447_v11 = vpop.f32.mrf.mxu3 }
 0xd2e   :  { %v8427_v12 = vpop.f32.mrf.mxu2 }
 0xd2f   :  { %v8302_v33 = vadd.f32 %v8300_v20, %v8228_v61  ;;  %v8448_v29 = vadd.f32 %v8447_v11, %v8427_v12 }
 0xd32   :  { %v8353_v55 = vpop.f32.mrf.mxu0  ;;  %v8373_v60 = vpop.f32.mrf.mxu1 }
 0xd33   :  { %v8374_v49 = vadd.f32 %v8373_v60, %v8353_v55 }
 0xd35   :  { %v8376_v58 = vadd.f32 %v8374_v49, %v8302_v33 }
 0xd37   :  { %v8450_v1 = vadd.f32 %v8448_v29, %v8376_v58 }
 0xd39   :  { %v8455_v3 = vadd.f32 %v10367_v26, %v8450_v1 }
 0xd3b   :  { %8457 = vst.msk [vmem:[%s17737_s8] sm:$0xff] %vm8456_vm0, %v8455_v3 }

</bundles_post_ra>
